<compile_context>
chip_gen: v7x
topology: tpu7x:2x2x1
jax: 0.10.0
libtpu: 0.0.40
codegen_flags: <defaults>
</compile_context>

<pallas_src>
import jax
import jax.numpy as jnp
from jax.experimental import pallas as pl
from jax.experimental.pallas import tpu as pltpu  # noqa: F401  (kept for TPU-specific tuning hooks)

# Layer configuration fixed by the PyTorch module.
_HEADS = (8, 8, 12)
_CH = (32, 32, 64)


# ----------------------------------------------------------------------------- fused kernel
def _gatnet_fused_kernel(
    x_ref, adj_ref,
    w1_ref, s1_ref, d1_ref, b1_ref,
    w2_ref, s2_ref, d2_ref, b2_ref,
    w3_ref, s3_ref, d3_ref, b3_ref,
    pt_ref, pw1_ref, pb1_ref, pw2_ref, pb2_ref,
    wf_ref, bf_ref,
    out_ref,
):
    adj = adj_ref[...]                                   # [N, N] dense 0/1 mask (dst, src), self loops included
    neg_big = jnp.float32(-1e30)

    def gat_layer(x, w_ref, s_ref, d_ref, b_ref, heads, ch):
        # All-head projection: single lane-dense MXU matmul [N,F_in]x[F_in,H*C].
        xl = jnp.dot(x, w_ref[...], preferred_element_type=jnp.float32)          # [N, H*C]
        # Per-head attention logits via block-diagonal attention matrices (MXU).
        a_src = jnp.dot(xl, s_ref[...], preferred_element_type=jnp.float32)      # [N, H]
        a_dst = jnp.dot(xl, d_ref[...], preferred_element_type=jnp.float32)      # [N, H]
        a_src_t = jnp.transpose(a_src)                                            # [H, N] — one XLU move per layer
        outs = []
        for h in range(heads):                                                    # static unroll (H = 8 or 12)
            sc = a_dst[:, h:h + 1] + a_src_t[h:h + 1, :]                          # [N_dst, N_src]
            sc = jnp.where(sc >= 0, sc, 0.2 * sc)                                 # LeakyReLU(0.2)
            sc = jnp.where(adj > 0, sc, neg_big)                                  # mask non-edges
            m = jnp.max(sc, axis=-1, keepdims=True)
            p = jnp.exp(sc - m)                                                   # masked entries underflow to 0
            inv = pl.reciprocal(jnp.sum(p, axis=-1, keepdims=True), approx=True)  # EUP
            alpha = p * inv                                                       # softmax over incoming edges
            outs.append(jnp.dot(alpha, xl[:, h * ch:(h + 1) * ch],
                                preferred_element_type=jnp.float32))              # [N, C]
        y = jnp.concatenate(outs, axis=1) + b_ref[...]                            # [N, H*C]  (PyG concat + bias)
        return jnp.maximum(y, 0.0)                                                # torch.relu

    x1 = gat_layer(x_ref[...], w1_ref, s1_ref, d1_ref, b1_ref, _HEADS[0], _CH[0])  # [N, 256]
    x2 = gat_layer(x1, w2_ref, s2_ref, d2_ref, b2_ref, _HEADS[1], _CH[1])          # [N, 256]
    x3 = gat_layer(x2, w3_ref, s3_ref, d3_ref, b3_ref, _HEADS[2], _CH[2])          # [N, 768]

    # pT weights are node-independent, so sum_n(xc[n,f] * pw[b,f]) == colsum[f] * pw[b,f].
    colsum = jnp.sum(jnp.concatenate([x1, x2, x3], axis=1), axis=0, keepdims=True)  # [1, 1280]

    # pT attention MLP: Linear(1,16) -> ReLU -> Linear(16,1280) -> Sigmoid.
    pt = pt_ref[...]                                                               # [B, 1]
    h1 = jnp.maximum(pt * pw1_ref[...] + pb1_ref[...], 0.0)                        # [B, 16] (K=1 matmul == broadcast)
    pw = jax.nn.sigmoid(
        jnp.dot(h1, pw2_ref[...], preferred_element_type=jnp.float32) + pb2_ref[...])  # [B, 1280]

    ws = pw * colsum                                                               # [B, 1280]
    y = jnp.dot(ws, wf_ref[...], preferred_element_type=jnp.float32) + bf_ref[...]  # [B, 1]
    out_ref[...] = jax.nn.sigmoid(y)


def gatnet_with_pt_attention(packed, x, adj, jet_raw_pt):
    """Single fused pallas_call: whole-array VMEM blocks, no grid (all data ~1 MB)."""
    B = jet_raw_pt.shape[0]
    pt = jet_raw_pt.reshape(B, 1).astype(jnp.float32)          # JetRawPt.unsqueeze(1)
    return pl.pallas_call(
        _gatnet_fused_kernel,
        out_shape=jax.ShapeDtypeStruct((B, 1), jnp.float32),
    )(
        x, adj,
        packed["w1"], packed["s1"], packed["d1"], packed["b1"],
        packed["w2"], packed["s2"], packed["d2"], packed["b2"],
        packed["w3"], packed["s3"], packed["d3"], packed["b3"],
        pt,
        packed["pt_w1"], packed["pt_b1"], packed["pt_w2"], packed["pt_b2"],
        packed["fin_w"], packed["fin_b"],
    )


# ----------------------------------------------------------------------------- graph / params
def build_adjacency(edge_index, num_nodes):
    """Dense mask: adj[dst, src] = 1 for each edge, with self loops (GATConv default)."""
    src, dst = edge_index[0], edge_index[1]
    adj = jnp.zeros((num_nodes, num_nodes), jnp.float32)
    adj = adj.at[dst, src].set(1.0)
    eye = jnp.eye(num_nodes, dtype=jnp.float32)
    adj = adj * (1.0 - eye) + eye
    return adj


def init_params(key, in_channels):
    def nrm(k, shape, scale=0.1):
        return scale * jax.random.normal(k, shape, dtype=jnp.float32)

    ks = iter(jax.random.split(key, 24))
    p = {}
    f_in = in_channels
    for idx, (h, c) in enumerate(zip(_HEADS, _CH), start=1):
        p[f"conv{idx}"] = dict(
            w=nrm(next(ks), (h, f_in, c)),        # per-head projection weights
            att_src=nrm(next(ks), (h, c)),
            att_dst=nrm(next(ks), (h, c)),
            bias=nrm(next(ks), (h * c,)),         # PyG bias shape (concat=True)
        )
        f_in = h * c
    p["pt_w1"] = nrm(next(ks), (1, 16))
    p["pt_b1"] = nrm(next(ks), (1, 16))
    p["pt_w2"] = nrm(next(ks), (16, 1280))
    p["pt_b2"] = nrm(next(ks), (1, 1280))
    p["fin_w"] = nrm(next(ks), (1280, 1))
    p["fin_b"] = nrm(next(ks), (1, 1))
    return p


def _blockdiag(att):
    """[H, C] -> [H*C, H] block-diagonal so that (xl @ bd)[n,h] = <xl[n, h*C:(h+1)*C], att[h]>."""
    h, c = att.shape
    eye = jnp.eye(h, dtype=att.dtype)
    return (att[:, :, None] * eye[:, None, :]).reshape(h * c, h)


def pack_params(p):
    """Pack natural-format params into the lane-dense kernel layout (done once, outside jit)."""
    packed = {}
    for idx in (1, 2, 3):
        cp = p[f"conv{idx}"]
        h, f_in, c = cp["w"].shape
        packed[f"w{idx}"] = jnp.transpose(cp["w"], (1, 0, 2)).reshape(f_in, h * c)  # [F_in, H*C]
        packed[f"s{idx}"] = _blockdiag(cp["att_src"])                               # [H*C, H]
        packed[f"d{idx}"] = _blockdiag(cp["att_dst"])                               # [H*C, H]
        packed[f"b{idx}"] = cp["bias"].reshape(1, h * c)                            # [1, H*C]
    for k in ("pt_w1", "pt_b1", "pt_w2", "pt_b2", "fin_w", "fin_b"):
        packed[k] = p[k]
    return packed


# ----------------------------------------------------------------------------- pure-JAX reference
def reference_forward(p, x, adj, jet_raw_pt):
    def gat(x, cp):
        h_, _, c = cp["w"].shape
        xl = jnp.einsum("nf,hfc->nhc", x, cp["w"])                 # [N, H, C]
        a_src = jnp.sum(xl * cp["att_src"][None], axis=-1)         # [N, H]
        a_dst = jnp.sum(xl * cp["att_dst"][None], axis=-1)         # [N, H]
        s = a_dst[:, None, :] + a_src[None, :, :]                  # [N_dst, N_src, H]
        s = jnp.where(s >= 0, s, 0.2 * s)
        s = jnp.where(adj[:, :, None] > 0, s, -1e30)
        a = jax.nn.softmax(s, axis=1)
        out = jnp.einsum("ijh,jhc->ihc", a, xl).reshape(x.shape[0], h_ * c) + cp["bias"][None, :]
        return jnp.maximum(out, 0.0)

    x1 = gat(x, p["conv1"]); x2 = gat(x1, p["conv2"]); x3 = gat(x2, p["conv3"])
    xc = jnp.concatenate([x1, x2, x3], axis=1)                      # [N, 1280]
    pt = jet_raw_pt[:, None]
    h1 = jnp.maximum(pt @ p["pt_w1"] + p["pt_b1"], 0.0)
    pw = jax.nn.sigmoid(h1 @ p["pt_w2"] + p["pt_b2"])               # [B, 1280]
    ws = jnp.sum(xc[None] * pw[:, None, :], axis=1)                 # [B, 1280]
    return jax.nn.sigmoid(ws @ p["fin_w"] + p["fin_b"])


# ----------------------------------------------------------------------------- demo / check
if __name__ == "__main__":
    key = jax.random.PRNGKey(0)
    k_param, k_x, k_pt = jax.random.split(key, 3)

    N, IN_CHANNELS, B = 16, 4, 2

    x = jax.random.normal(k_x, (N, IN_CHANNELS), dtype=jnp.float32)
    # bidirectional ring graph: edge_index[0]=src, edge_index[1]=dst
    s = jnp.arange(N, dtype=jnp.int32)
    d = (s + 1) % N
    edge_index = jnp.stack([jnp.concatenate([s, d]), jnp.concatenate([d, s])])      # [2, 2N]
    jet_raw_pt = jax.random.uniform(k_pt, (B,), dtype=jnp.float32) * 100.0

    adj = build_adjacency(edge_index, N)
    params = init_params(k_param, IN_CHANNELS)
    packed = pack_params(params)

    fwd = jax.jit(gatnet_with_pt_attention)
    out = jax.block_until_ready(fwd(packed, x, adj, jet_raw_pt))

    assert out.shape == (B, 1), out.shape
    assert out.dtype == jnp.float32
    assert bool(jnp.all(jnp.isfinite(out)))

    # correctness vs. pure-JAX reference (tolerance covers approx reciprocal in softmax)
    ref = reference_forward(params, x, adj, jet_raw_pt)
    assert float(jnp.max(jnp.abs(out - ref))) < 2e-2, (out, ref)

    print("KERNEL_OK")
</pallas_src>

<mosaic_0001>
module attributes {stable_mosaic.version = 11 : i64} {
  func.func @_gatnet_fused_kernel(%arg0: memref<16x4xf32, #tpu.memory_space<vmem>>, %arg1: memref<16x16xf32, #tpu.memory_space<vmem>>, %arg2: memref<4x256xf32, #tpu.memory_space<vmem>>, %arg3: memref<256x8xf32, #tpu.memory_space<vmem>>, %arg4: memref<256x8xf32, #tpu.memory_space<vmem>>, %arg5: memref<1x256xf32, #tpu.memory_space<vmem>>, %arg6: memref<256x256xf32, #tpu.memory_space<vmem>>, %arg7: memref<256x8xf32, #tpu.memory_space<vmem>>, %arg8: memref<256x8xf32, #tpu.memory_space<vmem>>, %arg9: memref<1x256xf32, #tpu.memory_space<vmem>>, %arg10: memref<256x768xf32, #tpu.memory_space<vmem>>, %arg11: memref<768x12xf32, #tpu.memory_space<vmem>>, %arg12: memref<768x12xf32, #tpu.memory_space<vmem>>, %arg13: memref<1x768xf32, #tpu.memory_space<vmem>>, %arg14: memref<2x1xf32, #tpu.memory_space<vmem>>, %arg15: memref<1x16xf32, #tpu.memory_space<vmem>>, %arg16: memref<1x16xf32, #tpu.memory_space<vmem>>, %arg17: memref<16x1280xf32, #tpu.memory_space<vmem>>, %arg18: memref<1x1280xf32, #tpu.memory_space<vmem>>, %arg19: memref<1280x1xf32, #tpu.memory_space<vmem>>, %arg20: memref<1x1xf32, #tpu.memory_space<vmem>>, %arg21: memref<2x1xf32, #tpu.memory_space<vmem>>) attributes {dimension_semantics = [], scalar_prefetch = 0 : i64, scratch_operands = 0 : i64, tpu.core_type = #tpu.core_type<tc>} {
    %c0 = arith.constant 0 : index
    %c0_0 = arith.constant 0 : index
    %0 = vector.load %arg1[%c0, %c0_0] : memref<16x16xf32, #tpu.memory_space<vmem>>, vector<16x16xf32>
    %c0_1 = arith.constant 0 : index
    %c0_2 = arith.constant 0 : index
    %1 = vector.load %arg0[%c0_1, %c0_2] : memref<16x4xf32, #tpu.memory_space<vmem>>, vector<16x4xf32>
    %c0_3 = arith.constant 0 : index
    %c0_4 = arith.constant 0 : index
    %2 = vector.load %arg2[%c0_3, %c0_4] : memref<4x256xf32, #tpu.memory_space<vmem>>, vector<4x256xf32>
    %cst = arith.constant dense<0.000000e+00> : vector<16x256xf32>
    %3 = tpu.matmul %1, %2, %cst {dimension_numbers = #tpu.dot_dimension_numbers<[1], [0], [0], [1], [0, 0, 1, 1], [], []>} : vector<16x4xf32>, vector<4x256xf32>, vector<16x256xf32> -> vector<16x256xf32>
    %c0_5 = arith.constant 0 : index
    %c0_6 = arith.constant 0 : index
    %4 = vector.load %arg3[%c0_5, %c0_6] : memref<256x8xf32, #tpu.memory_space<vmem>>, vector<256x8xf32>
    %cst_7 = arith.constant dense<0.000000e+00> : vector<16x8xf32>
    %5 = tpu.matmul %3, %4, %cst_7 {dimension_numbers = #tpu.dot_dimension_numbers<[1], [0], [0], [1], [0, 0, 1, 1], [], []>} : vector<16x256xf32>, vector<256x8xf32>, vector<16x8xf32> -> vector<16x8xf32>
    %c0_8 = arith.constant 0 : index
    %c0_9 = arith.constant 0 : index
    %6 = vector.load %arg4[%c0_8, %c0_9] : memref<256x8xf32, #tpu.memory_space<vmem>>, vector<256x8xf32>
    %cst_10 = arith.constant dense<0.000000e+00> : vector<16x8xf32>
    %7 = tpu.matmul %3, %6, %cst_10 {dimension_numbers = #tpu.dot_dimension_numbers<[1], [0], [0], [1], [0, 0, 1, 1], [], []>} : vector<16x256xf32>, vector<256x8xf32>, vector<16x8xf32> -> vector<16x8xf32>
    %8 = tpu.transpose %5, [1, 0] : vector<16x8xf32> -> vector<8x16xf32>
    %9 = vector.extract_strided_slice %7 {offsets = [0, 0], sizes = [16, 1], strides = [1, 1]} : vector<16x8xf32> to vector<16x1xf32>
    %10 = vector.extract_strided_slice %8 {offsets = [0, 0], sizes = [1, 16], strides = [1, 1]} : vector<8x16xf32> to vector<1x16xf32>
    %11 = vector.broadcast %9 : vector<16x1xf32> to vector<16x16xf32>
    %12 = vector.broadcast %10 : vector<1x16xf32> to vector<16x16xf32>
    %13 = arith.addf %11, %12 : vector<16x16xf32>
    %cst_11 = arith.constant 0.000000e+00 : f32
    %14 = vector.broadcast %cst_11 : f32 to vector<16x16xf32>
    %15 = arith.cmpf oge, %13, %14 : vector<16x16xf32>
    %cst_12 = arith.constant 2.000000e-01 : f32
    %16 = vector.broadcast %cst_12 : f32 to vector<16x16xf32>
    %17 = arith.mulf %16, %13 : vector<16x16xf32>
    %18 = arith.select %15, %13, %17 : vector<16x16xi1>, vector<16x16xf32>
    %cst_13 = arith.constant 0.000000e+00 : f32
    %19 = vector.broadcast %cst_13 : f32 to vector<16x16xf32>
    %20 = arith.cmpf ogt, %0, %19 : vector<16x16xf32>
    %cst_14 = arith.constant -1.000000e+30 : f32
    %21 = vector.broadcast %cst_14 : f32 to vector<16x16xf32>
    %22 = arith.select %20, %18, %21 : vector<16x16xi1>, vector<16x16xf32>
    %cst_15 = arith.constant dense<0xFF800000> : vector<16xf32>
    %23 = vector.multi_reduction <maximumf>, %22, %cst_15 [1] : vector<16x16xf32> to vector<16xf32>
    %24 = vector.shape_cast %23 : vector<16xf32> to vector<16x1xf32>
    %25 = vector.broadcast %24 : vector<16x1xf32> to vector<16x16xf32>
    %26 = arith.subf %22, %25 : vector<16x16xf32>
    %27 = math.exp %26 : vector<16x16xf32>
    %cst_16 = arith.constant dense<0.000000e+00> : vector<16xf32>
    %28 = vector.multi_reduction <add>, %27, %cst_16 [1] : vector<16x16xf32> to vector<16xf32>
    %29 = vector.shape_cast %28 : vector<16xf32> to vector<16x1xf32>
    %30 = tpu.reciprocal %29 {approx = true} : vector<16x1xf32> -> vector<16x1xf32>
    %31 = vector.broadcast %30 : vector<16x1xf32> to vector<16x16xf32>
    %32 = arith.mulf %27, %31 : vector<16x16xf32>
    %33 = vector.extract_strided_slice %3 {offsets = [0, 0], sizes = [16, 32], strides = [1, 1]} : vector<16x256xf32> to vector<16x32xf32>
    %cst_17 = arith.constant dense<0.000000e+00> : vector<16x32xf32>
    %34 = tpu.matmul %32, %33, %cst_17 {dimension_numbers = #tpu.dot_dimension_numbers<[1], [0], [0], [1], [0, 0, 1, 1], [], []>} : vector<16x16xf32>, vector<16x32xf32>, vector<16x32xf32> -> vector<16x32xf32>
    %35 = vector.extract_strided_slice %7 {offsets = [0, 1], sizes = [16, 1], strides = [1, 1]} : vector<16x8xf32> to vector<16x1xf32>
    %36 = vector.extract_strided_slice %8 {offsets = [1, 0], sizes = [1, 16], strides = [1, 1]} : vector<8x16xf32> to vector<1x16xf32>
    %37 = vector.broadcast %35 : vector<16x1xf32> to vector<16x16xf32>
    %38 = vector.broadcast %36 : vector<1x16xf32> to vector<16x16xf32>
    %39 = arith.addf %37, %38 : vector<16x16xf32>
    %cst_18 = arith.constant 0.000000e+00 : f32
    %40 = vector.broadcast %cst_18 : f32 to vector<16x16xf32>
    %41 = arith.cmpf oge, %39, %40 : vector<16x16xf32>
    %cst_19 = arith.constant 2.000000e-01 : f32
    %42 = vector.broadcast %cst_19 : f32 to vector<16x16xf32>
    %43 = arith.mulf %42, %39 : vector<16x16xf32>
    %44 = arith.select %41, %39, %43 : vector<16x16xi1>, vector<16x16xf32>
    %cst_20 = arith.constant 0.000000e+00 : f32
    %45 = vector.broadcast %cst_20 : f32 to vector<16x16xf32>
    %46 = arith.cmpf ogt, %0, %45 : vector<16x16xf32>
    %cst_21 = arith.constant -1.000000e+30 : f32
    %47 = vector.broadcast %cst_21 : f32 to vector<16x16xf32>
    %48 = arith.select %46, %44, %47 : vector<16x16xi1>, vector<16x16xf32>
    %cst_22 = arith.constant dense<0xFF800000> : vector<16xf32>
    %49 = vector.multi_reduction <maximumf>, %48, %cst_22 [1] : vector<16x16xf32> to vector<16xf32>
    %50 = vector.shape_cast %49 : vector<16xf32> to vector<16x1xf32>
    %51 = vector.broadcast %50 : vector<16x1xf32> to vector<16x16xf32>
    %52 = arith.subf %48, %51 : vector<16x16xf32>
    %53 = math.exp %52 : vector<16x16xf32>
    %cst_23 = arith.constant dense<0.000000e+00> : vector<16xf32>
    %54 = vector.multi_reduction <add>, %53, %cst_23 [1] : vector<16x16xf32> to vector<16xf32>
    %55 = vector.shape_cast %54 : vector<16xf32> to vector<16x1xf32>
    %56 = tpu.reciprocal %55 {approx = true} : vector<16x1xf32> -> vector<16x1xf32>
    %57 = vector.broadcast %56 : vector<16x1xf32> to vector<16x16xf32>
    %58 = arith.mulf %53, %57 : vector<16x16xf32>
    %59 = vector.extract_strided_slice %3 {offsets = [0, 32], sizes = [16, 32], strides = [1, 1]} : vector<16x256xf32> to vector<16x32xf32>
    %cst_24 = arith.constant dense<0.000000e+00> : vector<16x32xf32>
    %60 = tpu.matmul %58, %59, %cst_24 {dimension_numbers = #tpu.dot_dimension_numbers<[1], [0], [0], [1], [0, 0, 1, 1], [], []>} : vector<16x16xf32>, vector<16x32xf32>, vector<16x32xf32> -> vector<16x32xf32>
    %61 = vector.extract_strided_slice %7 {offsets = [0, 2], sizes = [16, 1], strides = [1, 1]} : vector<16x8xf32> to vector<16x1xf32>
    %62 = vector.extract_strided_slice %8 {offsets = [2, 0], sizes = [1, 16], strides = [1, 1]} : vector<8x16xf32> to vector<1x16xf32>
    %63 = vector.broadcast %61 : vector<16x1xf32> to vector<16x16xf32>
    %64 = vector.broadcast %62 : vector<1x16xf32> to vector<16x16xf32>
    %65 = arith.addf %63, %64 : vector<16x16xf32>
    %cst_25 = arith.constant 0.000000e+00 : f32
    %66 = vector.broadcast %cst_25 : f32 to vector<16x16xf32>
    %67 = arith.cmpf oge, %65, %66 : vector<16x16xf32>
    %cst_26 = arith.constant 2.000000e-01 : f32
    %68 = vector.broadcast %cst_26 : f32 to vector<16x16xf32>
    %69 = arith.mulf %68, %65 : vector<16x16xf32>
    %70 = arith.select %67, %65, %69 : vector<16x16xi1>, vector<16x16xf32>
    %cst_27 = arith.constant 0.000000e+00 : f32
    %71 = vector.broadcast %cst_27 : f32 to vector<16x16xf32>
    %72 = arith.cmpf ogt, %0, %71 : vector<16x16xf32>
    %cst_28 = arith.constant -1.000000e+30 : f32
    %73 = vector.broadcast %cst_28 : f32 to vector<16x16xf32>
    %74 = arith.select %72, %70, %73 : vector<16x16xi1>, vector<16x16xf32>
    %cst_29 = arith.constant dense<0xFF800000> : vector<16xf32>
    %75 = vector.multi_reduction <maximumf>, %74, %cst_29 [1] : vector<16x16xf32> to vector<16xf32>
    %76 = vector.shape_cast %75 : vector<16xf32> to vector<16x1xf32>
    %77 = vector.broadcast %76 : vector<16x1xf32> to vector<16x16xf32>
    %78 = arith.subf %74, %77 : vector<16x16xf32>
    %79 = math.exp %78 : vector<16x16xf32>
    %cst_30 = arith.constant dense<0.000000e+00> : vector<16xf32>
    %80 = vector.multi_reduction <add>, %79, %cst_30 [1] : vector<16x16xf32> to vector<16xf32>
    %81 = vector.shape_cast %80 : vector<16xf32> to vector<16x1xf32>
    %82 = tpu.reciprocal %81 {approx = true} : vector<16x1xf32> -> vector<16x1xf32>
    %83 = vector.broadcast %82 : vector<16x1xf32> to vector<16x16xf32>
    %84 = arith.mulf %79, %83 : vector<16x16xf32>
    %85 = vector.extract_strided_slice %3 {offsets = [0, 64], sizes = [16, 32], strides = [1, 1]} : vector<16x256xf32> to vector<16x32xf32>
    %cst_31 = arith.constant dense<0.000000e+00> : vector<16x32xf32>
    %86 = tpu.matmul %84, %85, %cst_31 {dimension_numbers = #tpu.dot_dimension_numbers<[1], [0], [0], [1], [0, 0, 1, 1], [], []>} : vector<16x16xf32>, vector<16x32xf32>, vector<16x32xf32> -> vector<16x32xf32>
    %87 = vector.extract_strided_slice %7 {offsets = [0, 3], sizes = [16, 1], strides = [1, 1]} : vector<16x8xf32> to vector<16x1xf32>
    %88 = vector.extract_strided_slice %8 {offsets = [3, 0], sizes = [1, 16], strides = [1, 1]} : vector<8x16xf32> to vector<1x16xf32>
    %89 = vector.broadcast %87 : vector<16x1xf32> to vector<16x16xf32>
    %90 = vector.broadcast %88 : vector<1x16xf32> to vector<16x16xf32>
    %91 = arith.addf %89, %90 : vector<16x16xf32>
    %cst_32 = arith.constant 0.000000e+00 : f32
    %92 = vector.broadcast %cst_32 : f32 to vector<16x16xf32>
    %93 = arith.cmpf oge, %91, %92 : vector<16x16xf32>
    %cst_33 = arith.constant 2.000000e-01 : f32
    %94 = vector.broadcast %cst_33 : f32 to vector<16x16xf32>
    %95 = arith.mulf %94, %91 : vector<16x16xf32>
    %96 = arith.select %93, %91, %95 : vector<16x16xi1>, vector<16x16xf32>
    %cst_34 = arith.constant 0.000000e+00 : f32
    %97 = vector.broadcast %cst_34 : f32 to vector<16x16xf32>
    %98 = arith.cmpf ogt, %0, %97 : vector<16x16xf32>
    %cst_35 = arith.constant -1.000000e+30 : f32
    %99 = vector.broadcast %cst_35 : f32 to vector<16x16xf32>
    %100 = arith.select %98, %96, %99 : vector<16x16xi1>, vector<16x16xf32>
    %cst_36 = arith.constant dense<0xFF800000> : vector<16xf32>
    %101 = vector.multi_reduction <maximumf>, %100, %cst_36 [1] : vector<16x16xf32> to vector<16xf32>
    %102 = vector.shape_cast %101 : vector<16xf32> to vector<16x1xf32>
    %103 = vector.broadcast %102 : vector<16x1xf32> to vector<16x16xf32>
    %104 = arith.subf %100, %103 : vector<16x16xf32>
    %105 = math.exp %104 : vector<16x16xf32>
    %cst_37 = arith.constant dense<0.000000e+00> : vector<16xf32>
    %106 = vector.multi_reduction <add>, %105, %cst_37 [1] : vector<16x16xf32> to vector<16xf32>
    %107 = vector.shape_cast %106 : vector<16xf32> to vector<16x1xf32>
    %108 = tpu.reciprocal %107 {approx = true} : vector<16x1xf32> -> vector<16x1xf32>
    %109 = vector.broadcast %108 : vector<16x1xf32> to vector<16x16xf32>
    %110 = arith.mulf %105, %109 : vector<16x16xf32>
    %111 = vector.extract_strided_slice %3 {offsets = [0, 96], sizes = [16, 32], strides = [1, 1]} : vector<16x256xf32> to vector<16x32xf32>
    %cst_38 = arith.constant dense<0.000000e+00> : vector<16x32xf32>
    %112 = tpu.matmul %110, %111, %cst_38 {dimension_numbers = #tpu.dot_dimension_numbers<[1], [0], [0], [1], [0, 0, 1, 1], [], []>} : vector<16x16xf32>, vector<16x32xf32>, vector<16x32xf32> -> vector<16x32xf32>
    %113 = vector.extract_strided_slice %7 {offsets = [0, 4], sizes = [16, 1], strides = [1, 1]} : vector<16x8xf32> to vector<16x1xf32>
    %114 = vector.extract_strided_slice %8 {offsets = [4, 0], sizes = [1, 16], strides = [1, 1]} : vector<8x16xf32> to vector<1x16xf32>
    %115 = vector.broadcast %113 : vector<16x1xf32> to vector<16x16xf32>
    %116 = vector.broadcast %114 : vector<1x16xf32> to vector<16x16xf32>
    %117 = arith.addf %115, %116 : vector<16x16xf32>
    %cst_39 = arith.constant 0.000000e+00 : f32
    %118 = vector.broadcast %cst_39 : f32 to vector<16x16xf32>
    %119 = arith.cmpf oge, %117, %118 : vector<16x16xf32>
    %cst_40 = arith.constant 2.000000e-01 : f32
    %120 = vector.broadcast %cst_40 : f32 to vector<16x16xf32>
    %121 = arith.mulf %120, %117 : vector<16x16xf32>
    %122 = arith.select %119, %117, %121 : vector<16x16xi1>, vector<16x16xf32>
    %cst_41 = arith.constant 0.000000e+00 : f32
    %123 = vector.broadcast %cst_41 : f32 to vector<16x16xf32>
    %124 = arith.cmpf ogt, %0, %123 : vector<16x16xf32>
    %cst_42 = arith.constant -1.000000e+30 : f32
    %125 = vector.broadcast %cst_42 : f32 to vector<16x16xf32>
    %126 = arith.select %124, %122, %125 : vector<16x16xi1>, vector<16x16xf32>
    %cst_43 = arith.constant dense<0xFF800000> : vector<16xf32>
    %127 = vector.multi_reduction <maximumf>, %126, %cst_43 [1] : vector<16x16xf32> to vector<16xf32>
    %128 = vector.shape_cast %127 : vector<16xf32> to vector<16x1xf32>
    %129 = vector.broadcast %128 : vector<16x1xf32> to vector<16x16xf32>
    %130 = arith.subf %126, %129 : vector<16x16xf32>
    %131 = math.exp %130 : vector<16x16xf32>
    %cst_44 = arith.constant dense<0.000000e+00> : vector<16xf32>
    %132 = vector.multi_reduction <add>, %131, %cst_44 [1] : vector<16x16xf32> to vector<16xf32>
    %133 = vector.shape_cast %132 : vector<16xf32> to vector<16x1xf32>
    %134 = tpu.reciprocal %133 {approx = true} : vector<16x1xf32> -> vector<16x1xf32>
    %135 = vector.broadcast %134 : vector<16x1xf32> to vector<16x16xf32>
    %136 = arith.mulf %131, %135 : vector<16x16xf32>
    %137 = vector.extract_strided_slice %3 {offsets = [0, 128], sizes = [16, 32], strides = [1, 1]} : vector<16x256xf32> to vector<16x32xf32>
    %cst_45 = arith.constant dense<0.000000e+00> : vector<16x32xf32>
    %138 = tpu.matmul %136, %137, %cst_45 {dimension_numbers = #tpu.dot_dimension_numbers<[1], [0], [0], [1], [0, 0, 1, 1], [], []>} : vector<16x16xf32>, vector<16x32xf32>, vector<16x32xf32> -> vector<16x32xf32>
    %139 = vector.extract_strided_slice %7 {offsets = [0, 5], sizes = [16, 1], strides = [1, 1]} : vector<16x8xf32> to vector<16x1xf32>
    %140 = vector.extract_strided_slice %8 {offsets = [5, 0], sizes = [1, 16], strides = [1, 1]} : vector<8x16xf32> to vector<1x16xf32>
    %141 = vector.broadcast %139 : vector<16x1xf32> to vector<16x16xf32>
    %142 = vector.broadcast %140 : vector<1x16xf32> to vector<16x16xf32>
    %143 = arith.addf %141, %142 : vector<16x16xf32>
    %cst_46 = arith.constant 0.000000e+00 : f32
    %144 = vector.broadcast %cst_46 : f32 to vector<16x16xf32>
    %145 = arith.cmpf oge, %143, %144 : vector<16x16xf32>
    %cst_47 = arith.constant 2.000000e-01 : f32
    %146 = vector.broadcast %cst_47 : f32 to vector<16x16xf32>
    %147 = arith.mulf %146, %143 : vector<16x16xf32>
    %148 = arith.select %145, %143, %147 : vector<16x16xi1>, vector<16x16xf32>
    %cst_48 = arith.constant 0.000000e+00 : f32
    %149 = vector.broadcast %cst_48 : f32 to vector<16x16xf32>
    %150 = arith.cmpf ogt, %0, %149 : vector<16x16xf32>
    %cst_49 = arith.constant -1.000000e+30 : f32
    %151 = vector.broadcast %cst_49 : f32 to vector<16x16xf32>
    %152 = arith.select %150, %148, %151 : vector<16x16xi1>, vector<16x16xf32>
    %cst_50 = arith.constant dense<0xFF800000> : vector<16xf32>
    %153 = vector.multi_reduction <maximumf>, %152, %cst_50 [1] : vector<16x16xf32> to vector<16xf32>
    %154 = vector.shape_cast %153 : vector<16xf32> to vector<16x1xf32>
    %155 = vector.broadcast %154 : vector<16x1xf32> to vector<16x16xf32>
    %156 = arith.subf %152, %155 : vector<16x16xf32>
    %157 = math.exp %156 : vector<16x16xf32>
    %cst_51 = arith.constant dense<0.000000e+00> : vector<16xf32>
    %158 = vector.multi_reduction <add>, %157, %cst_51 [1] : vector<16x16xf32> to vector<16xf32>
    %159 = vector.shape_cast %158 : vector<16xf32> to vector<16x1xf32>
    %160 = tpu.reciprocal %159 {approx = true} : vector<16x1xf32> -> vector<16x1xf32>
    %161 = vector.broadcast %160 : vector<16x1xf32> to vector<16x16xf32>
    %162 = arith.mulf %157, %161 : vector<16x16xf32>
    %163 = vector.extract_strided_slice %3 {offsets = [0, 160], sizes = [16, 32], strides = [1, 1]} : vector<16x256xf32> to vector<16x32xf32>
    %cst_52 = arith.constant dense<0.000000e+00> : vector<16x32xf32>
    %164 = tpu.matmul %162, %163, %cst_52 {dimension_numbers = #tpu.dot_dimension_numbers<[1], [0], [0], [1], [0, 0, 1, 1], [], []>} : vector<16x16xf32>, vector<16x32xf32>, vector<16x32xf32> -> vector<16x32xf32>
    %165 = vector.extract_strided_slice %7 {offsets = [0, 6], sizes = [16, 1], strides = [1, 1]} : vector<16x8xf32> to vector<16x1xf32>
    %166 = vector.extract_strided_slice %8 {offsets = [6, 0], sizes = [1, 16], strides = [1, 1]} : vector<8x16xf32> to vector<1x16xf32>
    %167 = vector.broadcast %165 : vector<16x1xf32> to vector<16x16xf32>
    %168 = vector.broadcast %166 : vector<1x16xf32> to vector<16x16xf32>
    %169 = arith.addf %167, %168 : vector<16x16xf32>
    %cst_53 = arith.constant 0.000000e+00 : f32
    %170 = vector.broadcast %cst_53 : f32 to vector<16x16xf32>
    %171 = arith.cmpf oge, %169, %170 : vector<16x16xf32>
    %cst_54 = arith.constant 2.000000e-01 : f32
    %172 = vector.broadcast %cst_54 : f32 to vector<16x16xf32>
    %173 = arith.mulf %172, %169 : vector<16x16xf32>
    %174 = arith.select %171, %169, %173 : vector<16x16xi1>, vector<16x16xf32>
    %cst_55 = arith.constant 0.000000e+00 : f32
    %175 = vector.broadcast %cst_55 : f32 to vector<16x16xf32>
    %176 = arith.cmpf ogt, %0, %175 : vector<16x16xf32>
    %cst_56 = arith.constant -1.000000e+30 : f32
    %177 = vector.broadcast %cst_56 : f32 to vector<16x16xf32>
    %178 = arith.select %176, %174, %177 : vector<16x16xi1>, vector<16x16xf32>
    %cst_57 = arith.constant dense<0xFF800000> : vector<16xf32>
    %179 = vector.multi_reduction <maximumf>, %178, %cst_57 [1] : vector<16x16xf32> to vector<16xf32>
    %180 = vector.shape_cast %179 : vector<16xf32> to vector<16x1xf32>
    %181 = vector.broadcast %180 : vector<16x1xf32> to vector<16x16xf32>
    %182 = arith.subf %178, %181 : vector<16x16xf32>
    %183 = math.exp %182 : vector<16x16xf32>
    %cst_58 = arith.constant dense<0.000000e+00> : vector<16xf32>
    %184 = vector.multi_reduction <add>, %183, %cst_58 [1] : vector<16x16xf32> to vector<16xf32>
    %185 = vector.shape_cast %184 : vector<16xf32> to vector<16x1xf32>
    %186 = tpu.reciprocal %185 {approx = true} : vector<16x1xf32> -> vector<16x1xf32>
    %187 = vector.broadcast %186 : vector<16x1xf32> to vector<16x16xf32>
    %188 = arith.mulf %183, %187 : vector<16x16xf32>
    %189 = vector.extract_strided_slice %3 {offsets = [0, 192], sizes = [16, 32], strides = [1, 1]} : vector<16x256xf32> to vector<16x32xf32>
    %cst_59 = arith.constant dense<0.000000e+00> : vector<16x32xf32>
    %190 = tpu.matmul %188, %189, %cst_59 {dimension_numbers = #tpu.dot_dimension_numbers<[1], [0], [0], [1], [0, 0, 1, 1], [], []>} : vector<16x16xf32>, vector<16x32xf32>, vector<16x32xf32> -> vector<16x32xf32>
    %191 = vector.extract_strided_slice %7 {offsets = [0, 7], sizes = [16, 1], strides = [1, 1]} : vector<16x8xf32> to vector<16x1xf32>
    %192 = vector.extract_strided_slice %8 {offsets = [7, 0], sizes = [1, 16], strides = [1, 1]} : vector<8x16xf32> to vector<1x16xf32>
    %193 = vector.broadcast %191 : vector<16x1xf32> to vector<16x16xf32>
    %194 = vector.broadcast %192 : vector<1x16xf32> to vector<16x16xf32>
    %195 = arith.addf %193, %194 : vector<16x16xf32>
    %cst_60 = arith.constant 0.000000e+00 : f32
    %196 = vector.broadcast %cst_60 : f32 to vector<16x16xf32>
    %197 = arith.cmpf oge, %195, %196 : vector<16x16xf32>
    %cst_61 = arith.constant 2.000000e-01 : f32
    %198 = vector.broadcast %cst_61 : f32 to vector<16x16xf32>
    %199 = arith.mulf %198, %195 : vector<16x16xf32>
    %200 = arith.select %197, %195, %199 : vector<16x16xi1>, vector<16x16xf32>
    %cst_62 = arith.constant 0.000000e+00 : f32
    %201 = vector.broadcast %cst_62 : f32 to vector<16x16xf32>
    %202 = arith.cmpf ogt, %0, %201 : vector<16x16xf32>
    %cst_63 = arith.constant -1.000000e+30 : f32
    %203 = vector.broadcast %cst_63 : f32 to vector<16x16xf32>
    %204 = arith.select %202, %200, %203 : vector<16x16xi1>, vector<16x16xf32>
    %cst_64 = arith.constant dense<0xFF800000> : vector<16xf32>
    %205 = vector.multi_reduction <maximumf>, %204, %cst_64 [1] : vector<16x16xf32> to vector<16xf32>
    %206 = vector.shape_cast %205 : vector<16xf32> to vector<16x1xf32>
    %207 = vector.broadcast %206 : vector<16x1xf32> to vector<16x16xf32>
    %208 = arith.subf %204, %207 : vector<16x16xf32>
    %209 = math.exp %208 : vector<16x16xf32>
    %cst_65 = arith.constant dense<0.000000e+00> : vector<16xf32>
    %210 = vector.multi_reduction <add>, %209, %cst_65 [1] : vector<16x16xf32> to vector<16xf32>
    %211 = vector.shape_cast %210 : vector<16xf32> to vector<16x1xf32>
    %212 = tpu.reciprocal %211 {approx = true} : vector<16x1xf32> -> vector<16x1xf32>
    %213 = vector.broadcast %212 : vector<16x1xf32> to vector<16x16xf32>
    %214 = arith.mulf %209, %213 : vector<16x16xf32>
    %215 = vector.extract_strided_slice %3 {offsets = [0, 224], sizes = [16, 32], strides = [1, 1]} : vector<16x256xf32> to vector<16x32xf32>
    %cst_66 = arith.constant dense<0.000000e+00> : vector<16x32xf32>
    %216 = tpu.matmul %214, %215, %cst_66 {dimension_numbers = #tpu.dot_dimension_numbers<[1], [0], [0], [1], [0, 0, 1, 1], [], []>} : vector<16x16xf32>, vector<16x32xf32>, vector<16x32xf32> -> vector<16x32xf32>
    %217 = tpu.concatenate %34, %60, %86, %112, %138, %164, %190, %216 in 1 : vector<16x32xf32>, vector<16x32xf32>, vector<16x32xf32>, vector<16x32xf32>, vector<16x32xf32>, vector<16x32xf32>, vector<16x32xf32>, vector<16x32xf32> -> vector<16x256xf32>
    %c0_67 = arith.constant 0 : index
    %c0_68 = arith.constant 0 : index
    %218 = vector.load %arg5[%c0_67, %c0_68] : memref<1x256xf32, #tpu.memory_space<vmem>>, vector<1x256xf32>
    %219 = vector.broadcast %218 : vector<1x256xf32> to vector<16x256xf32>
    %220 = arith.addf %217, %219 : vector<16x256xf32>
    %cst_69 = arith.constant 0.000000e+00 : f32
    %221 = vector.broadcast %cst_69 : f32 to vector<16x256xf32>
    %222 = arith.maximumf %220, %221 : vector<16x256xf32>
    %c0_70 = arith.constant 0 : index
    %c0_71 = arith.constant 0 : index
    %223 = vector.load %arg6[%c0_70, %c0_71] : memref<256x256xf32, #tpu.memory_space<vmem>>, vector<256x256xf32>
    %cst_72 = arith.constant dense<0.000000e+00> : vector<16x256xf32>
    %224 = tpu.matmul %222, %223, %cst_72 {dimension_numbers = #tpu.dot_dimension_numbers<[1], [0], [0], [1], [0, 0, 1, 1], [], []>} : vector<16x256xf32>, vector<256x256xf32>, vector<16x256xf32> -> vector<16x256xf32>
    %c0_73 = arith.constant 0 : index
    %c0_74 = arith.constant 0 : index
    %225 = vector.load %arg7[%c0_73, %c0_74] : memref<256x8xf32, #tpu.memory_space<vmem>>, vector<256x8xf32>
    %cst_75 = arith.constant dense<0.000000e+00> : vector<16x8xf32>
    %226 = tpu.matmul %224, %225, %cst_75 {dimension_numbers = #tpu.dot_dimension_numbers<[1], [0], [0], [1], [0, 0, 1, 1], [], []>} : vector<16x256xf32>, vector<256x8xf32>, vector<16x8xf32> -> vector<16x8xf32>
    %c0_76 = arith.constant 0 : index
    %c0_77 = arith.constant 0 : index
    %227 = vector.load %arg8[%c0_76, %c0_77] : memref<256x8xf32, #tpu.memory_space<vmem>>, vector<256x8xf32>
    %cst_78 = arith.constant dense<0.000000e+00> : vector<16x8xf32>
    %228 = tpu.matmul %224, %227, %cst_78 {dimension_numbers = #tpu.dot_dimension_numbers<[1], [0], [0], [1], [0, 0, 1, 1], [], []>} : vector<16x256xf32>, vector<256x8xf32>, vector<16x8xf32> -> vector<16x8xf32>
    %229 = tpu.transpose %226, [1, 0] : vector<16x8xf32> -> vector<8x16xf32>
    %230 = vector.extract_strided_slice %228 {offsets = [0, 0], sizes = [16, 1], strides = [1, 1]} : vector<16x8xf32> to vector<16x1xf32>
    %231 = vector.extract_strided_slice %229 {offsets = [0, 0], sizes = [1, 16], strides = [1, 1]} : vector<8x16xf32> to vector<1x16xf32>
    %232 = vector.broadcast %230 : vector<16x1xf32> to vector<16x16xf32>
    %233 = vector.broadcast %231 : vector<1x16xf32> to vector<16x16xf32>
    %234 = arith.addf %232, %233 : vector<16x16xf32>
    %cst_79 = arith.constant 0.000000e+00 : f32
    %235 = vector.broadcast %cst_79 : f32 to vector<16x16xf32>
    %236 = arith.cmpf oge, %234, %235 : vector<16x16xf32>
    %cst_80 = arith.constant 2.000000e-01 : f32
    %237 = vector.broadcast %cst_80 : f32 to vector<16x16xf32>
    %238 = arith.mulf %237, %234 : vector<16x16xf32>
    %239 = arith.select %236, %234, %238 : vector<16x16xi1>, vector<16x16xf32>
    %cst_81 = arith.constant 0.000000e+00 : f32
    %240 = vector.broadcast %cst_81 : f32 to vector<16x16xf32>
    %241 = arith.cmpf ogt, %0, %240 : vector<16x16xf32>
    %cst_82 = arith.constant -1.000000e+30 : f32
    %242 = vector.broadcast %cst_82 : f32 to vector<16x16xf32>
    %243 = arith.select %241, %239, %242 : vector<16x16xi1>, vector<16x16xf32>
    %cst_83 = arith.constant dense<0xFF800000> : vector<16xf32>
    %244 = vector.multi_reduction <maximumf>, %243, %cst_83 [1] : vector<16x16xf32> to vector<16xf32>
    %245 = vector.shape_cast %244 : vector<16xf32> to vector<16x1xf32>
    %246 = vector.broadcast %245 : vector<16x1xf32> to vector<16x16xf32>
    %247 = arith.subf %243, %246 : vector<16x16xf32>
    %248 = math.exp %247 : vector<16x16xf32>
    %cst_84 = arith.constant dense<0.000000e+00> : vector<16xf32>
    %249 = vector.multi_reduction <add>, %248, %cst_84 [1] : vector<16x16xf32> to vector<16xf32>
    %250 = vector.shape_cast %249 : vector<16xf32> to vector<16x1xf32>
    %251 = tpu.reciprocal %250 {approx = true} : vector<16x1xf32> -> vector<16x1xf32>
    %252 = vector.broadcast %251 : vector<16x1xf32> to vector<16x16xf32>
    %253 = arith.mulf %248, %252 : vector<16x16xf32>
    %254 = vector.extract_strided_slice %224 {offsets = [0, 0], sizes = [16, 32], strides = [1, 1]} : vector<16x256xf32> to vector<16x32xf32>
    %cst_85 = arith.constant dense<0.000000e+00> : vector<16x32xf32>
    %255 = tpu.matmul %253, %254, %cst_85 {dimension_numbers = #tpu.dot_dimension_numbers<[1], [0], [0], [1], [0, 0, 1, 1], [], []>} : vector<16x16xf32>, vector<16x32xf32>, vector<16x32xf32> -> vector<16x32xf32>
    %256 = vector.extract_strided_slice %228 {offsets = [0, 1], sizes = [16, 1], strides = [1, 1]} : vector<16x8xf32> to vector<16x1xf32>
    %257 = vector.extract_strided_slice %229 {offsets = [1, 0], sizes = [1, 16], strides = [1, 1]} : vector<8x16xf32> to vector<1x16xf32>
    %258 = vector.broadcast %256 : vector<16x1xf32> to vector<16x16xf32>
    %259 = vector.broadcast %257 : vector<1x16xf32> to vector<16x16xf32>
    %260 = arith.addf %258, %259 : vector<16x16xf32>
    %cst_86 = arith.constant 0.000000e+00 : f32
    %261 = vector.broadcast %cst_86 : f32 to vector<16x16xf32>
    %262 = arith.cmpf oge, %260, %261 : vector<16x16xf32>
    %cst_87 = arith.constant 2.000000e-01 : f32
    %263 = vector.broadcast %cst_87 : f32 to vector<16x16xf32>
    %264 = arith.mulf %263, %260 : vector<16x16xf32>
    %265 = arith.select %262, %260, %264 : vector<16x16xi1>, vector<16x16xf32>
    %cst_88 = arith.constant 0.000000e+00 : f32
    %266 = vector.broadcast %cst_88 : f32 to vector<16x16xf32>
    %267 = arith.cmpf ogt, %0, %266 : vector<16x16xf32>
    %cst_89 = arith.constant -1.000000e+30 : f32
    %268 = vector.broadcast %cst_89 : f32 to vector<16x16xf32>
    %269 = arith.select %267, %265, %268 : vector<16x16xi1>, vector<16x16xf32>
    %cst_90 = arith.constant dense<0xFF800000> : vector<16xf32>
    %270 = vector.multi_reduction <maximumf>, %269, %cst_90 [1] : vector<16x16xf32> to vector<16xf32>
    %271 = vector.shape_cast %270 : vector<16xf32> to vector<16x1xf32>
    %272 = vector.broadcast %271 : vector<16x1xf32> to vector<16x16xf32>
    %273 = arith.subf %269, %272 : vector<16x16xf32>
    %274 = math.exp %273 : vector<16x16xf32>
    %cst_91 = arith.constant dense<0.000000e+00> : vector<16xf32>
    %275 = vector.multi_reduction <add>, %274, %cst_91 [1] : vector<16x16xf32> to vector<16xf32>
    %276 = vector.shape_cast %275 : vector<16xf32> to vector<16x1xf32>
    %277 = tpu.reciprocal %276 {approx = true} : vector<16x1xf32> -> vector<16x1xf32>
    %278 = vector.broadcast %277 : vector<16x1xf32> to vector<16x16xf32>
    %279 = arith.mulf %274, %278 : vector<16x16xf32>
    %280 = vector.extract_strided_slice %224 {offsets = [0, 32], sizes = [16, 32], strides = [1, 1]} : vector<16x256xf32> to vector<16x32xf32>
    %cst_92 = arith.constant dense<0.000000e+00> : vector<16x32xf32>
    %281 = tpu.matmul %279, %280, %cst_92 {dimension_numbers = #tpu.dot_dimension_numbers<[1], [0], [0], [1], [0, 0, 1, 1], [], []>} : vector<16x16xf32>, vector<16x32xf32>, vector<16x32xf32> -> vector<16x32xf32>
    %282 = vector.extract_strided_slice %228 {offsets = [0, 2], sizes = [16, 1], strides = [1, 1]} : vector<16x8xf32> to vector<16x1xf32>
    %283 = vector.extract_strided_slice %229 {offsets = [2, 0], sizes = [1, 16], strides = [1, 1]} : vector<8x16xf32> to vector<1x16xf32>
    %284 = vector.broadcast %282 : vector<16x1xf32> to vector<16x16xf32>
    %285 = vector.broadcast %283 : vector<1x16xf32> to vector<16x16xf32>
    %286 = arith.addf %284, %285 : vector<16x16xf32>
    %cst_93 = arith.constant 0.000000e+00 : f32
    %287 = vector.broadcast %cst_93 : f32 to vector<16x16xf32>
    %288 = arith.cmpf oge, %286, %287 : vector<16x16xf32>
    %cst_94 = arith.constant 2.000000e-01 : f32
    %289 = vector.broadcast %cst_94 : f32 to vector<16x16xf32>
    %290 = arith.mulf %289, %286 : vector<16x16xf32>
    %291 = arith.select %288, %286, %290 : vector<16x16xi1>, vector<16x16xf32>
    %cst_95 = arith.constant 0.000000e+00 : f32
    %292 = vector.broadcast %cst_95 : f32 to vector<16x16xf32>
    %293 = arith.cmpf ogt, %0, %292 : vector<16x16xf32>
    %cst_96 = arith.constant -1.000000e+30 : f32
    %294 = vector.broadcast %cst_96 : f32 to vector<16x16xf32>
    %295 = arith.select %293, %291, %294 : vector<16x16xi1>, vector<16x16xf32>
    %cst_97 = arith.constant dense<0xFF800000> : vector<16xf32>
    %296 = vector.multi_reduction <maximumf>, %295, %cst_97 [1] : vector<16x16xf32> to vector<16xf32>
    %297 = vector.shape_cast %296 : vector<16xf32> to vector<16x1xf32>
    %298 = vector.broadcast %297 : vector<16x1xf32> to vector<16x16xf32>
    %299 = arith.subf %295, %298 : vector<16x16xf32>
    %300 = math.exp %299 : vector<16x16xf32>
    %cst_98 = arith.constant dense<0.000000e+00> : vector<16xf32>
    %301 = vector.multi_reduction <add>, %300, %cst_98 [1] : vector<16x16xf32> to vector<16xf32>
    %302 = vector.shape_cast %301 : vector<16xf32> to vector<16x1xf32>
    %303 = tpu.reciprocal %302 {approx = true} : vector<16x1xf32> -> vector<16x1xf32>
    %304 = vector.broadcast %303 : vector<16x1xf32> to vector<16x16xf32>
    %305 = arith.mulf %300, %304 : vector<16x16xf32>
    %306 = vector.extract_strided_slice %224 {offsets = [0, 64], sizes = [16, 32], strides = [1, 1]} : vector<16x256xf32> to vector<16x32xf32>
    %cst_99 = arith.constant dense<0.000000e+00> : vector<16x32xf32>
    %307 = tpu.matmul %305, %306, %cst_99 {dimension_numbers = #tpu.dot_dimension_numbers<[1], [0], [0], [1], [0, 0, 1, 1], [], []>} : vector<16x16xf32>, vector<16x32xf32>, vector<16x32xf32> -> vector<16x32xf32>
    %308 = vector.extract_strided_slice %228 {offsets = [0, 3], sizes = [16, 1], strides = [1, 1]} : vector<16x8xf32> to vector<16x1xf32>
    %309 = vector.extract_strided_slice %229 {offsets = [3, 0], sizes = [1, 16], strides = [1, 1]} : vector<8x16xf32> to vector<1x16xf32>
    %310 = vector.broadcast %308 : vector<16x1xf32> to vector<16x16xf32>
    %311 = vector.broadcast %309 : vector<1x16xf32> to vector<16x16xf32>
    %312 = arith.addf %310, %311 : vector<16x16xf32>
    %cst_100 = arith.constant 0.000000e+00 : f32
    %313 = vector.broadcast %cst_100 : f32 to vector<16x16xf32>
    %314 = arith.cmpf oge, %312, %313 : vector<16x16xf32>
    %cst_101 = arith.constant 2.000000e-01 : f32
    %315 = vector.broadcast %cst_101 : f32 to vector<16x16xf32>
    %316 = arith.mulf %315, %312 : vector<16x16xf32>
    %317 = arith.select %314, %312, %316 : vector<16x16xi1>, vector<16x16xf32>
    %cst_102 = arith.constant 0.000000e+00 : f32
    %318 = vector.broadcast %cst_102 : f32 to vector<16x16xf32>
    %319 = arith.cmpf ogt, %0, %318 : vector<16x16xf32>
    %cst_103 = arith.constant -1.000000e+30 : f32
    %320 = vector.broadcast %cst_103 : f32 to vector<16x16xf32>
    %321 = arith.select %319, %317, %320 : vector<16x16xi1>, vector<16x16xf32>
    %cst_104 = arith.constant dense<0xFF800000> : vector<16xf32>
    %322 = vector.multi_reduction <maximumf>, %321, %cst_104 [1] : vector<16x16xf32> to vector<16xf32>
    %323 = vector.shape_cast %322 : vector<16xf32> to vector<16x1xf32>
    %324 = vector.broadcast %323 : vector<16x1xf32> to vector<16x16xf32>
    %325 = arith.subf %321, %324 : vector<16x16xf32>
    %326 = math.exp %325 : vector<16x16xf32>
    %cst_105 = arith.constant dense<0.000000e+00> : vector<16xf32>
    %327 = vector.multi_reduction <add>, %326, %cst_105 [1] : vector<16x16xf32> to vector<16xf32>
    %328 = vector.shape_cast %327 : vector<16xf32> to vector<16x1xf32>
    %329 = tpu.reciprocal %328 {approx = true} : vector<16x1xf32> -> vector<16x1xf32>
    %330 = vector.broadcast %329 : vector<16x1xf32> to vector<16x16xf32>
    %331 = arith.mulf %326, %330 : vector<16x16xf32>
    %332 = vector.extract_strided_slice %224 {offsets = [0, 96], sizes = [16, 32], strides = [1, 1]} : vector<16x256xf32> to vector<16x32xf32>
    %cst_106 = arith.constant dense<0.000000e+00> : vector<16x32xf32>
    %333 = tpu.matmul %331, %332, %cst_106 {dimension_numbers = #tpu.dot_dimension_numbers<[1], [0], [0], [1], [0, 0, 1, 1], [], []>} : vector<16x16xf32>, vector<16x32xf32>, vector<16x32xf32> -> vector<16x32xf32>
    %334 = vector.extract_strided_slice %228 {offsets = [0, 4], sizes = [16, 1], strides = [1, 1]} : vector<16x8xf32> to vector<16x1xf32>
    %335 = vector.extract_strided_slice %229 {offsets = [4, 0], sizes = [1, 16], strides = [1, 1]} : vector<8x16xf32> to vector<1x16xf32>
    %336 = vector.broadcast %334 : vector<16x1xf32> to vector<16x16xf32>
    %337 = vector.broadcast %335 : vector<1x16xf32> to vector<16x16xf32>
    %338 = arith.addf %336, %337 : vector<16x16xf32>
    %cst_107 = arith.constant 0.000000e+00 : f32
    %339 = vector.broadcast %cst_107 : f32 to vector<16x16xf32>
    %340 = arith.cmpf oge, %338, %339 : vector<16x16xf32>
    %cst_108 = arith.constant 2.000000e-01 : f32
    %341 = vector.broadcast %cst_108 : f32 to vector<16x16xf32>
    %342 = arith.mulf %341, %338 : vector<16x16xf32>
    %343 = arith.select %340, %338, %342 : vector<16x16xi1>, vector<16x16xf32>
    %cst_109 = arith.constant 0.000000e+00 : f32
    %344 = vector.broadcast %cst_109 : f32 to vector<16x16xf32>
    %345 = arith.cmpf ogt, %0, %344 : vector<16x16xf32>
    %cst_110 = arith.constant -1.000000e+30 : f32
    %346 = vector.broadcast %cst_110 : f32 to vector<16x16xf32>
    %347 = arith.select %345, %343, %346 : vector<16x16xi1>, vector<16x16xf32>
    %cst_111 = arith.constant dense<0xFF800000> : vector<16xf32>
    %348 = vector.multi_reduction <maximumf>, %347, %cst_111 [1] : vector<16x16xf32> to vector<16xf32>
    %349 = vector.shape_cast %348 : vector<16xf32> to vector<16x1xf32>
    %350 = vector.broadcast %349 : vector<16x1xf32> to vector<16x16xf32>
    %351 = arith.subf %347, %350 : vector<16x16xf32>
    %352 = math.exp %351 : vector<16x16xf32>
    %cst_112 = arith.constant dense<0.000000e+00> : vector<16xf32>
    %353 = vector.multi_reduction <add>, %352, %cst_112 [1] : vector<16x16xf32> to vector<16xf32>
    %354 = vector.shape_cast %353 : vector<16xf32> to vector<16x1xf32>
    %355 = tpu.reciprocal %354 {approx = true} : vector<16x1xf32> -> vector<16x1xf32>
    %356 = vector.broadcast %355 : vector<16x1xf32> to vector<16x16xf32>
    %357 = arith.mulf %352, %356 : vector<16x16xf32>
    %358 = vector.extract_strided_slice %224 {offsets = [0, 128], sizes = [16, 32], strides = [1, 1]} : vector<16x256xf32> to vector<16x32xf32>
    %cst_113 = arith.constant dense<0.000000e+00> : vector<16x32xf32>
    %359 = tpu.matmul %357, %358, %cst_113 {dimension_numbers = #tpu.dot_dimension_numbers<[1], [0], [0], [1], [0, 0, 1, 1], [], []>} : vector<16x16xf32>, vector<16x32xf32>, vector<16x32xf32> -> vector<16x32xf32>
    %360 = vector.extract_strided_slice %228 {offsets = [0, 5], sizes = [16, 1], strides = [1, 1]} : vector<16x8xf32> to vector<16x1xf32>
    %361 = vector.extract_strided_slice %229 {offsets = [5, 0], sizes = [1, 16], strides = [1, 1]} : vector<8x16xf32> to vector<1x16xf32>
    %362 = vector.broadcast %360 : vector<16x1xf32> to vector<16x16xf32>
    %363 = vector.broadcast %361 : vector<1x16xf32> to vector<16x16xf32>
    %364 = arith.addf %362, %363 : vector<16x16xf32>
    %cst_114 = arith.constant 0.000000e+00 : f32
    %365 = vector.broadcast %cst_114 : f32 to vector<16x16xf32>
    %366 = arith.cmpf oge, %364, %365 : vector<16x16xf32>
    %cst_115 = arith.constant 2.000000e-01 : f32
    %367 = vector.broadcast %cst_115 : f32 to vector<16x16xf32>
    %368 = arith.mulf %367, %364 : vector<16x16xf32>
    %369 = arith.select %366, %364, %368 : vector<16x16xi1>, vector<16x16xf32>
    %cst_116 = arith.constant 0.000000e+00 : f32
    %370 = vector.broadcast %cst_116 : f32 to vector<16x16xf32>
    %371 = arith.cmpf ogt, %0, %370 : vector<16x16xf32>
    %cst_117 = arith.constant -1.000000e+30 : f32
    %372 = vector.broadcast %cst_117 : f32 to vector<16x16xf32>
    %373 = arith.select %371, %369, %372 : vector<16x16xi1>, vector<16x16xf32>
    %cst_118 = arith.constant dense<0xFF800000> : vector<16xf32>
    %374 = vector.multi_reduction <maximumf>, %373, %cst_118 [1] : vector<16x16xf32> to vector<16xf32>
    %375 = vector.shape_cast %374 : vector<16xf32> to vector<16x1xf32>
    %376 = vector.broadcast %375 : vector<16x1xf32> to vector<16x16xf32>
    %377 = arith.subf %373, %376 : vector<16x16xf32>
    %378 = math.exp %377 : vector<16x16xf32>
    %cst_119 = arith.constant dense<0.000000e+00> : vector<16xf32>
    %379 = vector.multi_reduction <add>, %378, %cst_119 [1] : vector<16x16xf32> to vector<16xf32>
    %380 = vector.shape_cast %379 : vector<16xf32> to vector<16x1xf32>
    %381 = tpu.reciprocal %380 {approx = true} : vector<16x1xf32> -> vector<16x1xf32>
    %382 = vector.broadcast %381 : vector<16x1xf32> to vector<16x16xf32>
    %383 = arith.mulf %378, %382 : vector<16x16xf32>
    %384 = vector.extract_strided_slice %224 {offsets = [0, 160], sizes = [16, 32], strides = [1, 1]} : vector<16x256xf32> to vector<16x32xf32>
    %cst_120 = arith.constant dense<0.000000e+00> : vector<16x32xf32>
    %385 = tpu.matmul %383, %384, %cst_120 {dimension_numbers = #tpu.dot_dimension_numbers<[1], [0], [0], [1], [0, 0, 1, 1], [], []>} : vector<16x16xf32>, vector<16x32xf32>, vector<16x32xf32> -> vector<16x32xf32>
    %386 = vector.extract_strided_slice %228 {offsets = [0, 6], sizes = [16, 1], strides = [1, 1]} : vector<16x8xf32> to vector<16x1xf32>
    %387 = vector.extract_strided_slice %229 {offsets = [6, 0], sizes = [1, 16], strides = [1, 1]} : vector<8x16xf32> to vector<1x16xf32>
    %388 = vector.broadcast %386 : vector<16x1xf32> to vector<16x16xf32>
    %389 = vector.broadcast %387 : vector<1x16xf32> to vector<16x16xf32>
    %390 = arith.addf %388, %389 : vector<16x16xf32>
    %cst_121 = arith.constant 0.000000e+00 : f32
    %391 = vector.broadcast %cst_121 : f32 to vector<16x16xf32>
    %392 = arith.cmpf oge, %390, %391 : vector<16x16xf32>
    %cst_122 = arith.constant 2.000000e-01 : f32
    %393 = vector.broadcast %cst_122 : f32 to vector<16x16xf32>
    %394 = arith.mulf %393, %390 : vector<16x16xf32>
    %395 = arith.select %392, %390, %394 : vector<16x16xi1>, vector<16x16xf32>
    %cst_123 = arith.constant 0.000000e+00 : f32
    %396 = vector.broadcast %cst_123 : f32 to vector<16x16xf32>
    %397 = arith.cmpf ogt, %0, %396 : vector<16x16xf32>
    %cst_124 = arith.constant -1.000000e+30 : f32
    %398 = vector.broadcast %cst_124 : f32 to vector<16x16xf32>
    %399 = arith.select %397, %395, %398 : vector<16x16xi1>, vector<16x16xf32>
    %cst_125 = arith.constant dense<0xFF800000> : vector<16xf32>
    %400 = vector.multi_reduction <maximumf>, %399, %cst_125 [1] : vector<16x16xf32> to vector<16xf32>
    %401 = vector.shape_cast %400 : vector<16xf32> to vector<16x1xf32>
    %402 = vector.broadcast %401 : vector<16x1xf32> to vector<16x16xf32>
    %403 = arith.subf %399, %402 : vector<16x16xf32>
    %404 = math.exp %403 : vector<16x16xf32>
    %cst_126 = arith.constant dense<0.000000e+00> : vector<16xf32>
    %405 = vector.multi_reduction <add>, %404, %cst_126 [1] : vector<16x16xf32> to vector<16xf32>
    %406 = vector.shape_cast %405 : vector<16xf32> to vector<16x1xf32>
    %407 = tpu.reciprocal %406 {approx = true} : vector<16x1xf32> -> vector<16x1xf32>
    %408 = vector.broadcast %407 : vector<16x1xf32> to vector<16x16xf32>
    %409 = arith.mulf %404, %408 : vector<16x16xf32>
    %410 = vector.extract_strided_slice %224 {offsets = [0, 192], sizes = [16, 32], strides = [1, 1]} : vector<16x256xf32> to vector<16x32xf32>
    %cst_127 = arith.constant dense<0.000000e+00> : vector<16x32xf32>
    %411 = tpu.matmul %409, %410, %cst_127 {dimension_numbers = #tpu.dot_dimension_numbers<[1], [0], [0], [1], [0, 0, 1, 1], [], []>} : vector<16x16xf32>, vector<16x32xf32>, vector<16x32xf32> -> vector<16x32xf32>
    %412 = vector.extract_strided_slice %228 {offsets = [0, 7], sizes = [16, 1], strides = [1, 1]} : vector<16x8xf32> to vector<16x1xf32>
    %413 = vector.extract_strided_slice %229 {offsets = [7, 0], sizes = [1, 16], strides = [1, 1]} : vector<8x16xf32> to vector<1x16xf32>
    %414 = vector.broadcast %412 : vector<16x1xf32> to vector<16x16xf32>
    %415 = vector.broadcast %413 : vector<1x16xf32> to vector<16x16xf32>
    %416 = arith.addf %414, %415 : vector<16x16xf32>
    %cst_128 = arith.constant 0.000000e+00 : f32
    %417 = vector.broadcast %cst_128 : f32 to vector<16x16xf32>
    %418 = arith.cmpf oge, %416, %417 : vector<16x16xf32>
    %cst_129 = arith.constant 2.000000e-01 : f32
    %419 = vector.broadcast %cst_129 : f32 to vector<16x16xf32>
    %420 = arith.mulf %419, %416 : vector<16x16xf32>
    %421 = arith.select %418, %416, %420 : vector<16x16xi1>, vector<16x16xf32>
    %cst_130 = arith.constant 0.000000e+00 : f32
    %422 = vector.broadcast %cst_130 : f32 to vector<16x16xf32>
    %423 = arith.cmpf ogt, %0, %422 : vector<16x16xf32>
    %cst_131 = arith.constant -1.000000e+30 : f32
    %424 = vector.broadcast %cst_131 : f32 to vector<16x16xf32>
    %425 = arith.select %423, %421, %424 : vector<16x16xi1>, vector<16x16xf32>
    %cst_132 = arith.constant dense<0xFF800000> : vector<16xf32>
    %426 = vector.multi_reduction <maximumf>, %425, %cst_132 [1] : vector<16x16xf32> to vector<16xf32>
    %427 = vector.shape_cast %426 : vector<16xf32> to vector<16x1xf32>
    %428 = vector.broadcast %427 : vector<16x1xf32> to vector<16x16xf32>
    %429 = arith.subf %425, %428 : vector<16x16xf32>
    %430 = math.exp %429 : vector<16x16xf32>
    %cst_133 = arith.constant dense<0.000000e+00> : vector<16xf32>
    %431 = vector.multi_reduction <add>, %430, %cst_133 [1] : vector<16x16xf32> to vector<16xf32>
    %432 = vector.shape_cast %431 : vector<16xf32> to vector<16x1xf32>
    %433 = tpu.reciprocal %432 {approx = true} : vector<16x1xf32> -> vector<16x1xf32>
    %434 = vector.broadcast %433 : vector<16x1xf32> to vector<16x16xf32>
    %435 = arith.mulf %430, %434 : vector<16x16xf32>
    %436 = vector.extract_strided_slice %224 {offsets = [0, 224], sizes = [16, 32], strides = [1, 1]} : vector<16x256xf32> to vector<16x32xf32>
    %cst_134 = arith.constant dense<0.000000e+00> : vector<16x32xf32>
    %437 = tpu.matmul %435, %436, %cst_134 {dimension_numbers = #tpu.dot_dimension_numbers<[1], [0], [0], [1], [0, 0, 1, 1], [], []>} : vector<16x16xf32>, vector<16x32xf32>, vector<16x32xf32> -> vector<16x32xf32>
    %438 = tpu.concatenate %255, %281, %307, %333, %359, %385, %411, %437 in 1 : vector<16x32xf32>, vector<16x32xf32>, vector<16x32xf32>, vector<16x32xf32>, vector<16x32xf32>, vector<16x32xf32>, vector<16x32xf32>, vector<16x32xf32> -> vector<16x256xf32>
    %c0_135 = arith.constant 0 : index
    %c0_136 = arith.constant 0 : index
    %439 = vector.load %arg9[%c0_135, %c0_136] : memref<1x256xf32, #tpu.memory_space<vmem>>, vector<1x256xf32>
    %440 = vector.broadcast %439 : vector<1x256xf32> to vector<16x256xf32>
    %441 = arith.addf %438, %440 : vector<16x256xf32>
    %cst_137 = arith.constant 0.000000e+00 : f32
    %442 = vector.broadcast %cst_137 : f32 to vector<16x256xf32>
    %443 = arith.maximumf %441, %442 : vector<16x256xf32>
    %c0_138 = arith.constant 0 : index
    %c0_139 = arith.constant 0 : index
    %444 = vector.load %arg10[%c0_138, %c0_139] : memref<256x768xf32, #tpu.memory_space<vmem>>, vector<256x768xf32>
    %cst_140 = arith.constant dense<0.000000e+00> : vector<16x768xf32>
    %445 = tpu.matmul %443, %444, %cst_140 {dimension_numbers = #tpu.dot_dimension_numbers<[1], [0], [0], [1], [0, 0, 1, 1], [], []>} : vector<16x256xf32>, vector<256x768xf32>, vector<16x768xf32> -> vector<16x768xf32>
    %c0_141 = arith.constant 0 : index
    %c0_142 = arith.constant 0 : index
    %446 = vector.load %arg11[%c0_141, %c0_142] : memref<768x12xf32, #tpu.memory_space<vmem>>, vector<768x12xf32>
    %cst_143 = arith.constant dense<0.000000e+00> : vector<16x12xf32>
    %447 = tpu.matmul %445, %446, %cst_143 {dimension_numbers = #tpu.dot_dimension_numbers<[1], [0], [0], [1], [0, 0, 1, 1], [], []>} : vector<16x768xf32>, vector<768x12xf32>, vector<16x12xf32> -> vector<16x12xf32>
    %c0_144 = arith.constant 0 : index
    %c0_145 = arith.constant 0 : index
    %448 = vector.load %arg12[%c0_144, %c0_145] : memref<768x12xf32, #tpu.memory_space<vmem>>, vector<768x12xf32>
    %cst_146 = arith.constant dense<0.000000e+00> : vector<16x12xf32>
    %449 = tpu.matmul %445, %448, %cst_146 {dimension_numbers = #tpu.dot_dimension_numbers<[1], [0], [0], [1], [0, 0, 1, 1], [], []>} : vector<16x768xf32>, vector<768x12xf32>, vector<16x12xf32> -> vector<16x12xf32>
    %450 = tpu.transpose %447, [1, 0] : vector<16x12xf32> -> vector<12x16xf32>
    %451 = vector.extract_strided_slice %449 {offsets = [0, 0], sizes = [16, 1], strides = [1, 1]} : vector<16x12xf32> to vector<16x1xf32>
    %452 = vector.extract_strided_slice %450 {offsets = [0, 0], sizes = [1, 16], strides = [1, 1]} : vector<12x16xf32> to vector<1x16xf32>
    %453 = vector.broadcast %451 : vector<16x1xf32> to vector<16x16xf32>
    %454 = vector.broadcast %452 : vector<1x16xf32> to vector<16x16xf32>
    %455 = arith.addf %453, %454 : vector<16x16xf32>
    %cst_147 = arith.constant 0.000000e+00 : f32
    %456 = vector.broadcast %cst_147 : f32 to vector<16x16xf32>
    %457 = arith.cmpf oge, %455, %456 : vector<16x16xf32>
    %cst_148 = arith.constant 2.000000e-01 : f32
    %458 = vector.broadcast %cst_148 : f32 to vector<16x16xf32>
    %459 = arith.mulf %458, %455 : vector<16x16xf32>
    %460 = arith.select %457, %455, %459 : vector<16x16xi1>, vector<16x16xf32>
    %cst_149 = arith.constant 0.000000e+00 : f32
    %461 = vector.broadcast %cst_149 : f32 to vector<16x16xf32>
    %462 = arith.cmpf ogt, %0, %461 : vector<16x16xf32>
    %cst_150 = arith.constant -1.000000e+30 : f32
    %463 = vector.broadcast %cst_150 : f32 to vector<16x16xf32>
    %464 = arith.select %462, %460, %463 : vector<16x16xi1>, vector<16x16xf32>
    %cst_151 = arith.constant dense<0xFF800000> : vector<16xf32>
    %465 = vector.multi_reduction <maximumf>, %464, %cst_151 [1] : vector<16x16xf32> to vector<16xf32>
    %466 = vector.shape_cast %465 : vector<16xf32> to vector<16x1xf32>
    %467 = vector.broadcast %466 : vector<16x1xf32> to vector<16x16xf32>
    %468 = arith.subf %464, %467 : vector<16x16xf32>
    %469 = math.exp %468 : vector<16x16xf32>
    %cst_152 = arith.constant dense<0.000000e+00> : vector<16xf32>
    %470 = vector.multi_reduction <add>, %469, %cst_152 [1] : vector<16x16xf32> to vector<16xf32>
    %471 = vector.shape_cast %470 : vector<16xf32> to vector<16x1xf32>
    %472 = tpu.reciprocal %471 {approx = true} : vector<16x1xf32> -> vector<16x1xf32>
    %473 = vector.broadcast %472 : vector<16x1xf32> to vector<16x16xf32>
    %474 = arith.mulf %469, %473 : vector<16x16xf32>
    %475 = vector.extract_strided_slice %445 {offsets = [0, 0], sizes = [16, 64], strides = [1, 1]} : vector<16x768xf32> to vector<16x64xf32>
    %cst_153 = arith.constant dense<0.000000e+00> : vector<16x64xf32>
    %476 = tpu.matmul %474, %475, %cst_153 {dimension_numbers = #tpu.dot_dimension_numbers<[1], [0], [0], [1], [0, 0, 1, 1], [], []>} : vector<16x16xf32>, vector<16x64xf32>, vector<16x64xf32> -> vector<16x64xf32>
    %477 = vector.extract_strided_slice %449 {offsets = [0, 1], sizes = [16, 1], strides = [1, 1]} : vector<16x12xf32> to vector<16x1xf32>
    %478 = vector.extract_strided_slice %450 {offsets = [1, 0], sizes = [1, 16], strides = [1, 1]} : vector<12x16xf32> to vector<1x16xf32>
    %479 = vector.broadcast %477 : vector<16x1xf32> to vector<16x16xf32>
    %480 = vector.broadcast %478 : vector<1x16xf32> to vector<16x16xf32>
    %481 = arith.addf %479, %480 : vector<16x16xf32>
    %cst_154 = arith.constant 0.000000e+00 : f32
    %482 = vector.broadcast %cst_154 : f32 to vector<16x16xf32>
    %483 = arith.cmpf oge, %481, %482 : vector<16x16xf32>
    %cst_155 = arith.constant 2.000000e-01 : f32
    %484 = vector.broadcast %cst_155 : f32 to vector<16x16xf32>
    %485 = arith.mulf %484, %481 : vector<16x16xf32>
    %486 = arith.select %483, %481, %485 : vector<16x16xi1>, vector<16x16xf32>
    %cst_156 = arith.constant 0.000000e+00 : f32
    %487 = vector.broadcast %cst_156 : f32 to vector<16x16xf32>
    %488 = arith.cmpf ogt, %0, %487 : vector<16x16xf32>
    %cst_157 = arith.constant -1.000000e+30 : f32
    %489 = vector.broadcast %cst_157 : f32 to vector<16x16xf32>
    %490 = arith.select %488, %486, %489 : vector<16x16xi1>, vector<16x16xf32>
    %cst_158 = arith.constant dense<0xFF800000> : vector<16xf32>
    %491 = vector.multi_reduction <maximumf>, %490, %cst_158 [1] : vector<16x16xf32> to vector<16xf32>
    %492 = vector.shape_cast %491 : vector<16xf32> to vector<16x1xf32>
    %493 = vector.broadcast %492 : vector<16x1xf32> to vector<16x16xf32>
    %494 = arith.subf %490, %493 : vector<16x16xf32>
    %495 = math.exp %494 : vector<16x16xf32>
    %cst_159 = arith.constant dense<0.000000e+00> : vector<16xf32>
    %496 = vector.multi_reduction <add>, %495, %cst_159 [1] : vector<16x16xf32> to vector<16xf32>
    %497 = vector.shape_cast %496 : vector<16xf32> to vector<16x1xf32>
    %498 = tpu.reciprocal %497 {approx = true} : vector<16x1xf32> -> vector<16x1xf32>
    %499 = vector.broadcast %498 : vector<16x1xf32> to vector<16x16xf32>
    %500 = arith.mulf %495, %499 : vector<16x16xf32>
    %501 = vector.extract_strided_slice %445 {offsets = [0, 64], sizes = [16, 64], strides = [1, 1]} : vector<16x768xf32> to vector<16x64xf32>
    %cst_160 = arith.constant dense<0.000000e+00> : vector<16x64xf32>
    %502 = tpu.matmul %500, %501, %cst_160 {dimension_numbers = #tpu.dot_dimension_numbers<[1], [0], [0], [1], [0, 0, 1, 1], [], []>} : vector<16x16xf32>, vector<16x64xf32>, vector<16x64xf32> -> vector<16x64xf32>
    %503 = vector.extract_strided_slice %449 {offsets = [0, 2], sizes = [16, 1], strides = [1, 1]} : vector<16x12xf32> to vector<16x1xf32>
    %504 = vector.extract_strided_slice %450 {offsets = [2, 0], sizes = [1, 16], strides = [1, 1]} : vector<12x16xf32> to vector<1x16xf32>
    %505 = vector.broadcast %503 : vector<16x1xf32> to vector<16x16xf32>
    %506 = vector.broadcast %504 : vector<1x16xf32> to vector<16x16xf32>
    %507 = arith.addf %505, %506 : vector<16x16xf32>
    %cst_161 = arith.constant 0.000000e+00 : f32
    %508 = vector.broadcast %cst_161 : f32 to vector<16x16xf32>
    %509 = arith.cmpf oge, %507, %508 : vector<16x16xf32>
    %cst_162 = arith.constant 2.000000e-01 : f32
    %510 = vector.broadcast %cst_162 : f32 to vector<16x16xf32>
    %511 = arith.mulf %510, %507 : vector<16x16xf32>
    %512 = arith.select %509, %507, %511 : vector<16x16xi1>, vector<16x16xf32>
    %cst_163 = arith.constant 0.000000e+00 : f32
    %513 = vector.broadcast %cst_163 : f32 to vector<16x16xf32>
    %514 = arith.cmpf ogt, %0, %513 : vector<16x16xf32>
    %cst_164 = arith.constant -1.000000e+30 : f32
    %515 = vector.broadcast %cst_164 : f32 to vector<16x16xf32>
    %516 = arith.select %514, %512, %515 : vector<16x16xi1>, vector<16x16xf32>
    %cst_165 = arith.constant dense<0xFF800000> : vector<16xf32>
    %517 = vector.multi_reduction <maximumf>, %516, %cst_165 [1] : vector<16x16xf32> to vector<16xf32>
    %518 = vector.shape_cast %517 : vector<16xf32> to vector<16x1xf32>
    %519 = vector.broadcast %518 : vector<16x1xf32> to vector<16x16xf32>
    %520 = arith.subf %516, %519 : vector<16x16xf32>
    %521 = math.exp %520 : vector<16x16xf32>
    %cst_166 = arith.constant dense<0.000000e+00> : vector<16xf32>
    %522 = vector.multi_reduction <add>, %521, %cst_166 [1] : vector<16x16xf32> to vector<16xf32>
    %523 = vector.shape_cast %522 : vector<16xf32> to vector<16x1xf32>
    %524 = tpu.reciprocal %523 {approx = true} : vector<16x1xf32> -> vector<16x1xf32>
    %525 = vector.broadcast %524 : vector<16x1xf32> to vector<16x16xf32>
    %526 = arith.mulf %521, %525 : vector<16x16xf32>
    %527 = vector.extract_strided_slice %445 {offsets = [0, 128], sizes = [16, 64], strides = [1, 1]} : vector<16x768xf32> to vector<16x64xf32>
    %cst_167 = arith.constant dense<0.000000e+00> : vector<16x64xf32>
    %528 = tpu.matmul %526, %527, %cst_167 {dimension_numbers = #tpu.dot_dimension_numbers<[1], [0], [0], [1], [0, 0, 1, 1], [], []>} : vector<16x16xf32>, vector<16x64xf32>, vector<16x64xf32> -> vector<16x64xf32>
    %529 = vector.extract_strided_slice %449 {offsets = [0, 3], sizes = [16, 1], strides = [1, 1]} : vector<16x12xf32> to vector<16x1xf32>
    %530 = vector.extract_strided_slice %450 {offsets = [3, 0], sizes = [1, 16], strides = [1, 1]} : vector<12x16xf32> to vector<1x16xf32>
    %531 = vector.broadcast %529 : vector<16x1xf32> to vector<16x16xf32>
    %532 = vector.broadcast %530 : vector<1x16xf32> to vector<16x16xf32>
    %533 = arith.addf %531, %532 : vector<16x16xf32>
    %cst_168 = arith.constant 0.000000e+00 : f32
    %534 = vector.broadcast %cst_168 : f32 to vector<16x16xf32>
    %535 = arith.cmpf oge, %533, %534 : vector<16x16xf32>
    %cst_169 = arith.constant 2.000000e-01 : f32
    %536 = vector.broadcast %cst_169 : f32 to vector<16x16xf32>
    %537 = arith.mulf %536, %533 : vector<16x16xf32>
    %538 = arith.select %535, %533, %537 : vector<16x16xi1>, vector<16x16xf32>
    %cst_170 = arith.constant 0.000000e+00 : f32
    %539 = vector.broadcast %cst_170 : f32 to vector<16x16xf32>
    %540 = arith.cmpf ogt, %0, %539 : vector<16x16xf32>
    %cst_171 = arith.constant -1.000000e+30 : f32
    %541 = vector.broadcast %cst_171 : f32 to vector<16x16xf32>
    %542 = arith.select %540, %538, %541 : vector<16x16xi1>, vector<16x16xf32>
    %cst_172 = arith.constant dense<0xFF800000> : vector<16xf32>
    %543 = vector.multi_reduction <maximumf>, %542, %cst_172 [1] : vector<16x16xf32> to vector<16xf32>
    %544 = vector.shape_cast %543 : vector<16xf32> to vector<16x1xf32>
    %545 = vector.broadcast %544 : vector<16x1xf32> to vector<16x16xf32>
    %546 = arith.subf %542, %545 : vector<16x16xf32>
    %547 = math.exp %546 : vector<16x16xf32>
    %cst_173 = arith.constant dense<0.000000e+00> : vector<16xf32>
    %548 = vector.multi_reduction <add>, %547, %cst_173 [1] : vector<16x16xf32> to vector<16xf32>
    %549 = vector.shape_cast %548 : vector<16xf32> to vector<16x1xf32>
    %550 = tpu.reciprocal %549 {approx = true} : vector<16x1xf32> -> vector<16x1xf32>
    %551 = vector.broadcast %550 : vector<16x1xf32> to vector<16x16xf32>
    %552 = arith.mulf %547, %551 : vector<16x16xf32>
    %553 = vector.extract_strided_slice %445 {offsets = [0, 192], sizes = [16, 64], strides = [1, 1]} : vector<16x768xf32> to vector<16x64xf32>
    %cst_174 = arith.constant dense<0.000000e+00> : vector<16x64xf32>
    %554 = tpu.matmul %552, %553, %cst_174 {dimension_numbers = #tpu.dot_dimension_numbers<[1], [0], [0], [1], [0, 0, 1, 1], [], []>} : vector<16x16xf32>, vector<16x64xf32>, vector<16x64xf32> -> vector<16x64xf32>
    %555 = vector.extract_strided_slice %449 {offsets = [0, 4], sizes = [16, 1], strides = [1, 1]} : vector<16x12xf32> to vector<16x1xf32>
    %556 = vector.extract_strided_slice %450 {offsets = [4, 0], sizes = [1, 16], strides = [1, 1]} : vector<12x16xf32> to vector<1x16xf32>
    %557 = vector.broadcast %555 : vector<16x1xf32> to vector<16x16xf32>
    %558 = vector.broadcast %556 : vector<1x16xf32> to vector<16x16xf32>
    %559 = arith.addf %557, %558 : vector<16x16xf32>
    %cst_175 = arith.constant 0.000000e+00 : f32
    %560 = vector.broadcast %cst_175 : f32 to vector<16x16xf32>
    %561 = arith.cmpf oge, %559, %560 : vector<16x16xf32>
    %cst_176 = arith.constant 2.000000e-01 : f32
    %562 = vector.broadcast %cst_176 : f32 to vector<16x16xf32>
    %563 = arith.mulf %562, %559 : vector<16x16xf32>
    %564 = arith.select %561, %559, %563 : vector<16x16xi1>, vector<16x16xf32>
    %cst_177 = arith.constant 0.000000e+00 : f32
    %565 = vector.broadcast %cst_177 : f32 to vector<16x16xf32>
    %566 = arith.cmpf ogt, %0, %565 : vector<16x16xf32>
    %cst_178 = arith.constant -1.000000e+30 : f32
    %567 = vector.broadcast %cst_178 : f32 to vector<16x16xf32>
    %568 = arith.select %566, %564, %567 : vector<16x16xi1>, vector<16x16xf32>
    %cst_179 = arith.constant dense<0xFF800000> : vector<16xf32>
    %569 = vector.multi_reduction <maximumf>, %568, %cst_179 [1] : vector<16x16xf32> to vector<16xf32>
    %570 = vector.shape_cast %569 : vector<16xf32> to vector<16x1xf32>
    %571 = vector.broadcast %570 : vector<16x1xf32> to vector<16x16xf32>
    %572 = arith.subf %568, %571 : vector<16x16xf32>
    %573 = math.exp %572 : vector<16x16xf32>
    %cst_180 = arith.constant dense<0.000000e+00> : vector<16xf32>
    %574 = vector.multi_reduction <add>, %573, %cst_180 [1] : vector<16x16xf32> to vector<16xf32>
    %575 = vector.shape_cast %574 : vector<16xf32> to vector<16x1xf32>
    %576 = tpu.reciprocal %575 {approx = true} : vector<16x1xf32> -> vector<16x1xf32>
    %577 = vector.broadcast %576 : vector<16x1xf32> to vector<16x16xf32>
    %578 = arith.mulf %573, %577 : vector<16x16xf32>
    %579 = vector.extract_strided_slice %445 {offsets = [0, 256], sizes = [16, 64], strides = [1, 1]} : vector<16x768xf32> to vector<16x64xf32>
    %cst_181 = arith.constant dense<0.000000e+00> : vector<16x64xf32>
    %580 = tpu.matmul %578, %579, %cst_181 {dimension_numbers = #tpu.dot_dimension_numbers<[1], [0], [0], [1], [0, 0, 1, 1], [], []>} : vector<16x16xf32>, vector<16x64xf32>, vector<16x64xf32> -> vector<16x64xf32>
    %581 = vector.extract_strided_slice %449 {offsets = [0, 5], sizes = [16, 1], strides = [1, 1]} : vector<16x12xf32> to vector<16x1xf32>
    %582 = vector.extract_strided_slice %450 {offsets = [5, 0], sizes = [1, 16], strides = [1, 1]} : vector<12x16xf32> to vector<1x16xf32>
    %583 = vector.broadcast %581 : vector<16x1xf32> to vector<16x16xf32>
    %584 = vector.broadcast %582 : vector<1x16xf32> to vector<16x16xf32>
    %585 = arith.addf %583, %584 : vector<16x16xf32>
    %cst_182 = arith.constant 0.000000e+00 : f32
    %586 = vector.broadcast %cst_182 : f32 to vector<16x16xf32>
    %587 = arith.cmpf oge, %585, %586 : vector<16x16xf32>
    %cst_183 = arith.constant 2.000000e-01 : f32
    %588 = vector.broadcast %cst_183 : f32 to vector<16x16xf32>
    %589 = arith.mulf %588, %585 : vector<16x16xf32>
    %590 = arith.select %587, %585, %589 : vector<16x16xi1>, vector<16x16xf32>
    %cst_184 = arith.constant 0.000000e+00 : f32
    %591 = vector.broadcast %cst_184 : f32 to vector<16x16xf32>
    %592 = arith.cmpf ogt, %0, %591 : vector<16x16xf32>
    %cst_185 = arith.constant -1.000000e+30 : f32
    %593 = vector.broadcast %cst_185 : f32 to vector<16x16xf32>
    %594 = arith.select %592, %590, %593 : vector<16x16xi1>, vector<16x16xf32>
    %cst_186 = arith.constant dense<0xFF800000> : vector<16xf32>
    %595 = vector.multi_reduction <maximumf>, %594, %cst_186 [1] : vector<16x16xf32> to vector<16xf32>
    %596 = vector.shape_cast %595 : vector<16xf32> to vector<16x1xf32>
    %597 = vector.broadcast %596 : vector<16x1xf32> to vector<16x16xf32>
    %598 = arith.subf %594, %597 : vector<16x16xf32>
    %599 = math.exp %598 : vector<16x16xf32>
    %cst_187 = arith.constant dense<0.000000e+00> : vector<16xf32>
    %600 = vector.multi_reduction <add>, %599, %cst_187 [1] : vector<16x16xf32> to vector<16xf32>
    %601 = vector.shape_cast %600 : vector<16xf32> to vector<16x1xf32>
    %602 = tpu.reciprocal %601 {approx = true} : vector<16x1xf32> -> vector<16x1xf32>
    %603 = vector.broadcast %602 : vector<16x1xf32> to vector<16x16xf32>
    %604 = arith.mulf %599, %603 : vector<16x16xf32>
    %605 = vector.extract_strided_slice %445 {offsets = [0, 320], sizes = [16, 64], strides = [1, 1]} : vector<16x768xf32> to vector<16x64xf32>
    %cst_188 = arith.constant dense<0.000000e+00> : vector<16x64xf32>
    %606 = tpu.matmul %604, %605, %cst_188 {dimension_numbers = #tpu.dot_dimension_numbers<[1], [0], [0], [1], [0, 0, 1, 1], [], []>} : vector<16x16xf32>, vector<16x64xf32>, vector<16x64xf32> -> vector<16x64xf32>
    %607 = vector.extract_strided_slice %449 {offsets = [0, 6], sizes = [16, 1], strides = [1, 1]} : vector<16x12xf32> to vector<16x1xf32>
    %608 = vector.extract_strided_slice %450 {offsets = [6, 0], sizes = [1, 16], strides = [1, 1]} : vector<12x16xf32> to vector<1x16xf32>
    %609 = vector.broadcast %607 : vector<16x1xf32> to vector<16x16xf32>
    %610 = vector.broadcast %608 : vector<1x16xf32> to vector<16x16xf32>
    %611 = arith.addf %609, %610 : vector<16x16xf32>
    %cst_189 = arith.constant 0.000000e+00 : f32
    %612 = vector.broadcast %cst_189 : f32 to vector<16x16xf32>
    %613 = arith.cmpf oge, %611, %612 : vector<16x16xf32>
    %cst_190 = arith.constant 2.000000e-01 : f32
    %614 = vector.broadcast %cst_190 : f32 to vector<16x16xf32>
    %615 = arith.mulf %614, %611 : vector<16x16xf32>
    %616 = arith.select %613, %611, %615 : vector<16x16xi1>, vector<16x16xf32>
    %cst_191 = arith.constant 0.000000e+00 : f32
    %617 = vector.broadcast %cst_191 : f32 to vector<16x16xf32>
    %618 = arith.cmpf ogt, %0, %617 : vector<16x16xf32>
    %cst_192 = arith.constant -1.000000e+30 : f32
    %619 = vector.broadcast %cst_192 : f32 to vector<16x16xf32>
    %620 = arith.select %618, %616, %619 : vector<16x16xi1>, vector<16x16xf32>
    %cst_193 = arith.constant dense<0xFF800000> : vector<16xf32>
    %621 = vector.multi_reduction <maximumf>, %620, %cst_193 [1] : vector<16x16xf32> to vector<16xf32>
    %622 = vector.shape_cast %621 : vector<16xf32> to vector<16x1xf32>
    %623 = vector.broadcast %622 : vector<16x1xf32> to vector<16x16xf32>
    %624 = arith.subf %620, %623 : vector<16x16xf32>
    %625 = math.exp %624 : vector<16x16xf32>
    %cst_194 = arith.constant dense<0.000000e+00> : vector<16xf32>
    %626 = vector.multi_reduction <add>, %625, %cst_194 [1] : vector<16x16xf32> to vector<16xf32>
    %627 = vector.shape_cast %626 : vector<16xf32> to vector<16x1xf32>
    %628 = tpu.reciprocal %627 {approx = true} : vector<16x1xf32> -> vector<16x1xf32>
    %629 = vector.broadcast %628 : vector<16x1xf32> to vector<16x16xf32>
    %630 = arith.mulf %625, %629 : vector<16x16xf32>
    %631 = vector.extract_strided_slice %445 {offsets = [0, 384], sizes = [16, 64], strides = [1, 1]} : vector<16x768xf32> to vector<16x64xf32>
    %cst_195 = arith.constant dense<0.000000e+00> : vector<16x64xf32>
    %632 = tpu.matmul %630, %631, %cst_195 {dimension_numbers = #tpu.dot_dimension_numbers<[1], [0], [0], [1], [0, 0, 1, 1], [], []>} : vector<16x16xf32>, vector<16x64xf32>, vector<16x64xf32> -> vector<16x64xf32>
    %633 = vector.extract_strided_slice %449 {offsets = [0, 7], sizes = [16, 1], strides = [1, 1]} : vector<16x12xf32> to vector<16x1xf32>
    %634 = vector.extract_strided_slice %450 {offsets = [7, 0], sizes = [1, 16], strides = [1, 1]} : vector<12x16xf32> to vector<1x16xf32>
    %635 = vector.broadcast %633 : vector<16x1xf32> to vector<16x16xf32>
    %636 = vector.broadcast %634 : vector<1x16xf32> to vector<16x16xf32>
    %637 = arith.addf %635, %636 : vector<16x16xf32>
    %cst_196 = arith.constant 0.000000e+00 : f32
    %638 = vector.broadcast %cst_196 : f32 to vector<16x16xf32>
    %639 = arith.cmpf oge, %637, %638 : vector<16x16xf32>
    %cst_197 = arith.constant 2.000000e-01 : f32
    %640 = vector.broadcast %cst_197 : f32 to vector<16x16xf32>
    %641 = arith.mulf %640, %637 : vector<16x16xf32>
    %642 = arith.select %639, %637, %641 : vector<16x16xi1>, vector<16x16xf32>
    %cst_198 = arith.constant 0.000000e+00 : f32
    %643 = vector.broadcast %cst_198 : f32 to vector<16x16xf32>
    %644 = arith.cmpf ogt, %0, %643 : vector<16x16xf32>
    %cst_199 = arith.constant -1.000000e+30 : f32
    %645 = vector.broadcast %cst_199 : f32 to vector<16x16xf32>
    %646 = arith.select %644, %642, %645 : vector<16x16xi1>, vector<16x16xf32>
    %cst_200 = arith.constant dense<0xFF800000> : vector<16xf32>
    %647 = vector.multi_reduction <maximumf>, %646, %cst_200 [1] : vector<16x16xf32> to vector<16xf32>
    %648 = vector.shape_cast %647 : vector<16xf32> to vector<16x1xf32>
    %649 = vector.broadcast %648 : vector<16x1xf32> to vector<16x16xf32>
    %650 = arith.subf %646, %649 : vector<16x16xf32>
    %651 = math.exp %650 : vector<16x16xf32>
    %cst_201 = arith.constant dense<0.000000e+00> : vector<16xf32>
    %652 = vector.multi_reduction <add>, %651, %cst_201 [1] : vector<16x16xf32> to vector<16xf32>
    %653 = vector.shape_cast %652 : vector<16xf32> to vector<16x1xf32>
    %654 = tpu.reciprocal %653 {approx = true} : vector<16x1xf32> -> vector<16x1xf32>
    %655 = vector.broadcast %654 : vector<16x1xf32> to vector<16x16xf32>
    %656 = arith.mulf %651, %655 : vector<16x16xf32>
    %657 = vector.extract_strided_slice %445 {offsets = [0, 448], sizes = [16, 64], strides = [1, 1]} : vector<16x768xf32> to vector<16x64xf32>
    %cst_202 = arith.constant dense<0.000000e+00> : vector<16x64xf32>
    %658 = tpu.matmul %656, %657, %cst_202 {dimension_numbers = #tpu.dot_dimension_numbers<[1], [0], [0], [1], [0, 0, 1, 1], [], []>} : vector<16x16xf32>, vector<16x64xf32>, vector<16x64xf32> -> vector<16x64xf32>
    %659 = vector.extract_strided_slice %449 {offsets = [0, 8], sizes = [16, 1], strides = [1, 1]} : vector<16x12xf32> to vector<16x1xf32>
    %660 = vector.extract_strided_slice %450 {offsets = [8, 0], sizes = [1, 16], strides = [1, 1]} : vector<12x16xf32> to vector<1x16xf32>
    %661 = vector.broadcast %659 : vector<16x1xf32> to vector<16x16xf32>
    %662 = vector.broadcast %660 : vector<1x16xf32> to vector<16x16xf32>
    %663 = arith.addf %661, %662 : vector<16x16xf32>
    %cst_203 = arith.constant 0.000000e+00 : f32
    %664 = vector.broadcast %cst_203 : f32 to vector<16x16xf32>
    %665 = arith.cmpf oge, %663, %664 : vector<16x16xf32>
    %cst_204 = arith.constant 2.000000e-01 : f32
    %666 = vector.broadcast %cst_204 : f32 to vector<16x16xf32>
    %667 = arith.mulf %666, %663 : vector<16x16xf32>
    %668 = arith.select %665, %663, %667 : vector<16x16xi1>, vector<16x16xf32>
    %cst_205 = arith.constant 0.000000e+00 : f32
    %669 = vector.broadcast %cst_205 : f32 to vector<16x16xf32>
    %670 = arith.cmpf ogt, %0, %669 : vector<16x16xf32>
    %cst_206 = arith.constant -1.000000e+30 : f32
    %671 = vector.broadcast %cst_206 : f32 to vector<16x16xf32>
    %672 = arith.select %670, %668, %671 : vector<16x16xi1>, vector<16x16xf32>
    %cst_207 = arith.constant dense<0xFF800000> : vector<16xf32>
    %673 = vector.multi_reduction <maximumf>, %672, %cst_207 [1] : vector<16x16xf32> to vector<16xf32>
    %674 = vector.shape_cast %673 : vector<16xf32> to vector<16x1xf32>
    %675 = vector.broadcast %674 : vector<16x1xf32> to vector<16x16xf32>
    %676 = arith.subf %672, %675 : vector<16x16xf32>
    %677 = math.exp %676 : vector<16x16xf32>
    %cst_208 = arith.constant dense<0.000000e+00> : vector<16xf32>
    %678 = vector.multi_reduction <add>, %677, %cst_208 [1] : vector<16x16xf32> to vector<16xf32>
    %679 = vector.shape_cast %678 : vector<16xf32> to vector<16x1xf32>
    %680 = tpu.reciprocal %679 {approx = true} : vector<16x1xf32> -> vector<16x1xf32>
    %681 = vector.broadcast %680 : vector<16x1xf32> to vector<16x16xf32>
    %682 = arith.mulf %677, %681 : vector<16x16xf32>
    %683 = vector.extract_strided_slice %445 {offsets = [0, 512], sizes = [16, 64], strides = [1, 1]} : vector<16x768xf32> to vector<16x64xf32>
    %cst_209 = arith.constant dense<0.000000e+00> : vector<16x64xf32>
    %684 = tpu.matmul %682, %683, %cst_209 {dimension_numbers = #tpu.dot_dimension_numbers<[1], [0], [0], [1], [0, 0, 1, 1], [], []>} : vector<16x16xf32>, vector<16x64xf32>, vector<16x64xf32> -> vector<16x64xf32>
    %685 = vector.extract_strided_slice %449 {offsets = [0, 9], sizes = [16, 1], strides = [1, 1]} : vector<16x12xf32> to vector<16x1xf32>
    %686 = vector.extract_strided_slice %450 {offsets = [9, 0], sizes = [1, 16], strides = [1, 1]} : vector<12x16xf32> to vector<1x16xf32>
    %687 = vector.broadcast %685 : vector<16x1xf32> to vector<16x16xf32>
    %688 = vector.broadcast %686 : vector<1x16xf32> to vector<16x16xf32>
    %689 = arith.addf %687, %688 : vector<16x16xf32>
    %cst_210 = arith.constant 0.000000e+00 : f32
    %690 = vector.broadcast %cst_210 : f32 to vector<16x16xf32>
    %691 = arith.cmpf oge, %689, %690 : vector<16x16xf32>
    %cst_211 = arith.constant 2.000000e-01 : f32
    %692 = vector.broadcast %cst_211 : f32 to vector<16x16xf32>
    %693 = arith.mulf %692, %689 : vector<16x16xf32>
    %694 = arith.select %691, %689, %693 : vector<16x16xi1>, vector<16x16xf32>
    %cst_212 = arith.constant 0.000000e+00 : f32
    %695 = vector.broadcast %cst_212 : f32 to vector<16x16xf32>
    %696 = arith.cmpf ogt, %0, %695 : vector<16x16xf32>
    %cst_213 = arith.constant -1.000000e+30 : f32
    %697 = vector.broadcast %cst_213 : f32 to vector<16x16xf32>
    %698 = arith.select %696, %694, %697 : vector<16x16xi1>, vector<16x16xf32>
    %cst_214 = arith.constant dense<0xFF800000> : vector<16xf32>
    %699 = vector.multi_reduction <maximumf>, %698, %cst_214 [1] : vector<16x16xf32> to vector<16xf32>
    %700 = vector.shape_cast %699 : vector<16xf32> to vector<16x1xf32>
    %701 = vector.broadcast %700 : vector<16x1xf32> to vector<16x16xf32>
    %702 = arith.subf %698, %701 : vector<16x16xf32>
    %703 = math.exp %702 : vector<16x16xf32>
    %cst_215 = arith.constant dense<0.000000e+00> : vector<16xf32>
    %704 = vector.multi_reduction <add>, %703, %cst_215 [1] : vector<16x16xf32> to vector<16xf32>
    %705 = vector.shape_cast %704 : vector<16xf32> to vector<16x1xf32>
    %706 = tpu.reciprocal %705 {approx = true} : vector<16x1xf32> -> vector<16x1xf32>
    %707 = vector.broadcast %706 : vector<16x1xf32> to vector<16x16xf32>
    %708 = arith.mulf %703, %707 : vector<16x16xf32>
    %709 = vector.extract_strided_slice %445 {offsets = [0, 576], sizes = [16, 64], strides = [1, 1]} : vector<16x768xf32> to vector<16x64xf32>
    %cst_216 = arith.constant dense<0.000000e+00> : vector<16x64xf32>
    %710 = tpu.matmul %708, %709, %cst_216 {dimension_numbers = #tpu.dot_dimension_numbers<[1], [0], [0], [1], [0, 0, 1, 1], [], []>} : vector<16x16xf32>, vector<16x64xf32>, vector<16x64xf32> -> vector<16x64xf32>
    %711 = vector.extract_strided_slice %449 {offsets = [0, 10], sizes = [16, 1], strides = [1, 1]} : vector<16x12xf32> to vector<16x1xf32>
    %712 = vector.extract_strided_slice %450 {offsets = [10, 0], sizes = [1, 16], strides = [1, 1]} : vector<12x16xf32> to vector<1x16xf32>
    %713 = vector.broadcast %711 : vector<16x1xf32> to vector<16x16xf32>
    %714 = vector.broadcast %712 : vector<1x16xf32> to vector<16x16xf32>
    %715 = arith.addf %713, %714 : vector<16x16xf32>
    %cst_217 = arith.constant 0.000000e+00 : f32
    %716 = vector.broadcast %cst_217 : f32 to vector<16x16xf32>
    %717 = arith.cmpf oge, %715, %716 : vector<16x16xf32>
    %cst_218 = arith.constant 2.000000e-01 : f32
    %718 = vector.broadcast %cst_218 : f32 to vector<16x16xf32>
    %719 = arith.mulf %718, %715 : vector<16x16xf32>
    %720 = arith.select %717, %715, %719 : vector<16x16xi1>, vector<16x16xf32>
    %cst_219 = arith.constant 0.000000e+00 : f32
    %721 = vector.broadcast %cst_219 : f32 to vector<16x16xf32>
    %722 = arith.cmpf ogt, %0, %721 : vector<16x16xf32>
    %cst_220 = arith.constant -1.000000e+30 : f32
    %723 = vector.broadcast %cst_220 : f32 to vector<16x16xf32>
    %724 = arith.select %722, %720, %723 : vector<16x16xi1>, vector<16x16xf32>
    %cst_221 = arith.constant dense<0xFF800000> : vector<16xf32>
    %725 = vector.multi_reduction <maximumf>, %724, %cst_221 [1] : vector<16x16xf32> to vector<16xf32>
    %726 = vector.shape_cast %725 : vector<16xf32> to vector<16x1xf32>
    %727 = vector.broadcast %726 : vector<16x1xf32> to vector<16x16xf32>
    %728 = arith.subf %724, %727 : vector<16x16xf32>
    %729 = math.exp %728 : vector<16x16xf32>
    %cst_222 = arith.constant dense<0.000000e+00> : vector<16xf32>
    %730 = vector.multi_reduction <add>, %729, %cst_222 [1] : vector<16x16xf32> to vector<16xf32>
    %731 = vector.shape_cast %730 : vector<16xf32> to vector<16x1xf32>
    %732 = tpu.reciprocal %731 {approx = true} : vector<16x1xf32> -> vector<16x1xf32>
    %733 = vector.broadcast %732 : vector<16x1xf32> to vector<16x16xf32>
    %734 = arith.mulf %729, %733 : vector<16x16xf32>
    %735 = vector.extract_strided_slice %445 {offsets = [0, 640], sizes = [16, 64], strides = [1, 1]} : vector<16x768xf32> to vector<16x64xf32>
    %cst_223 = arith.constant dense<0.000000e+00> : vector<16x64xf32>
    %736 = tpu.matmul %734, %735, %cst_223 {dimension_numbers = #tpu.dot_dimension_numbers<[1], [0], [0], [1], [0, 0, 1, 1], [], []>} : vector<16x16xf32>, vector<16x64xf32>, vector<16x64xf32> -> vector<16x64xf32>
    %737 = vector.extract_strided_slice %449 {offsets = [0, 11], sizes = [16, 1], strides = [1, 1]} : vector<16x12xf32> to vector<16x1xf32>
    %738 = vector.extract_strided_slice %450 {offsets = [11, 0], sizes = [1, 16], strides = [1, 1]} : vector<12x16xf32> to vector<1x16xf32>
    %739 = vector.broadcast %737 : vector<16x1xf32> to vector<16x16xf32>
    %740 = vector.broadcast %738 : vector<1x16xf32> to vector<16x16xf32>
    %741 = arith.addf %739, %740 : vector<16x16xf32>
    %cst_224 = arith.constant 0.000000e+00 : f32
    %742 = vector.broadcast %cst_224 : f32 to vector<16x16xf32>
    %743 = arith.cmpf oge, %741, %742 : vector<16x16xf32>
    %cst_225 = arith.constant 2.000000e-01 : f32
    %744 = vector.broadcast %cst_225 : f32 to vector<16x16xf32>
    %745 = arith.mulf %744, %741 : vector<16x16xf32>
    %746 = arith.select %743, %741, %745 : vector<16x16xi1>, vector<16x16xf32>
    %cst_226 = arith.constant 0.000000e+00 : f32
    %747 = vector.broadcast %cst_226 : f32 to vector<16x16xf32>
    %748 = arith.cmpf ogt, %0, %747 : vector<16x16xf32>
    %cst_227 = arith.constant -1.000000e+30 : f32
    %749 = vector.broadcast %cst_227 : f32 to vector<16x16xf32>
    %750 = arith.select %748, %746, %749 : vector<16x16xi1>, vector<16x16xf32>
    %cst_228 = arith.constant dense<0xFF800000> : vector<16xf32>
    %751 = vector.multi_reduction <maximumf>, %750, %cst_228 [1] : vector<16x16xf32> to vector<16xf32>
    %752 = vector.shape_cast %751 : vector<16xf32> to vector<16x1xf32>
    %753 = vector.broadcast %752 : vector<16x1xf32> to vector<16x16xf32>
    %754 = arith.subf %750, %753 : vector<16x16xf32>
    %755 = math.exp %754 : vector<16x16xf32>
    %cst_229 = arith.constant dense<0.000000e+00> : vector<16xf32>
    %756 = vector.multi_reduction <add>, %755, %cst_229 [1] : vector<16x16xf32> to vector<16xf32>
    %757 = vector.shape_cast %756 : vector<16xf32> to vector<16x1xf32>
    %758 = tpu.reciprocal %757 {approx = true} : vector<16x1xf32> -> vector<16x1xf32>
    %759 = vector.broadcast %758 : vector<16x1xf32> to vector<16x16xf32>
    %760 = arith.mulf %755, %759 : vector<16x16xf32>
    %761 = vector.extract_strided_slice %445 {offsets = [0, 704], sizes = [16, 64], strides = [1, 1]} : vector<16x768xf32> to vector<16x64xf32>
    %cst_230 = arith.constant dense<0.000000e+00> : vector<16x64xf32>
    %762 = tpu.matmul %760, %761, %cst_230 {dimension_numbers = #tpu.dot_dimension_numbers<[1], [0], [0], [1], [0, 0, 1, 1], [], []>} : vector<16x16xf32>, vector<16x64xf32>, vector<16x64xf32> -> vector<16x64xf32>
    %763 = tpu.concatenate %476, %502, %528, %554, %580, %606, %632, %658, %684, %710, %736, %762 in 1 : vector<16x64xf32>, vector<16x64xf32>, vector<16x64xf32>, vector<16x64xf32>, vector<16x64xf32>, vector<16x64xf32>, vector<16x64xf32>, vector<16x64xf32>, vector<16x64xf32>, vector<16x64xf32>, vector<16x64xf32>, vector<16x64xf32> -> vector<16x768xf32>
    %c0_231 = arith.constant 0 : index
    %c0_232 = arith.constant 0 : index
    %764 = vector.load %arg13[%c0_231, %c0_232] : memref<1x768xf32, #tpu.memory_space<vmem>>, vector<1x768xf32>
    %765 = vector.broadcast %764 : vector<1x768xf32> to vector<16x768xf32>
    %766 = arith.addf %763, %765 : vector<16x768xf32>
    %cst_233 = arith.constant 0.000000e+00 : f32
    %767 = vector.broadcast %cst_233 : f32 to vector<16x768xf32>
    %768 = arith.maximumf %766, %767 : vector<16x768xf32>
    %769 = tpu.concatenate %222, %443, %768 in 1 : vector<16x256xf32>, vector<16x256xf32>, vector<16x768xf32> -> vector<16x1280xf32>
    %cst_234 = arith.constant dense<0.000000e+00> : vector<1280xf32>
    %770 = vector.multi_reduction <add>, %769, %cst_234 [0] : vector<16x1280xf32> to vector<1280xf32>
    %771 = vector.shape_cast %770 : vector<1280xf32> to vector<1x1280xf32>
    %c0_235 = arith.constant 0 : index
    %c0_236 = arith.constant 0 : index
    %772 = vector.load %arg14[%c0_235, %c0_236] : memref<2x1xf32, #tpu.memory_space<vmem>>, vector<2x1xf32>
    %c0_237 = arith.constant 0 : index
    %c0_238 = arith.constant 0 : index
    %773 = vector.load %arg15[%c0_237, %c0_238] : memref<1x16xf32, #tpu.memory_space<vmem>>, vector<1x16xf32>
    %774 = vector.broadcast %772 : vector<2x1xf32> to vector<2x16xf32>
    %775 = vector.broadcast %773 : vector<1x16xf32> to vector<2x16xf32>
    %776 = arith.mulf %774, %775 : vector<2x16xf32>
    %c0_239 = arith.constant 0 : index
    %c0_240 = arith.constant 0 : index
    %777 = vector.load %arg16[%c0_239, %c0_240] : memref<1x16xf32, #tpu.memory_space<vmem>>, vector<1x16xf32>
    %778 = vector.broadcast %777 : vector<1x16xf32> to vector<2x16xf32>
    %779 = arith.addf %776, %778 : vector<2x16xf32>
    %cst_241 = arith.constant 0.000000e+00 : f32
    %780 = vector.broadcast %cst_241 : f32 to vector<2x16xf32>
    %781 = arith.maximumf %779, %780 : vector<2x16xf32>
    %c0_242 = arith.constant 0 : index
    %c0_243 = arith.constant 0 : index
    %782 = vector.load %arg17[%c0_242, %c0_243] : memref<16x1280xf32, #tpu.memory_space<vmem>>, vector<16x1280xf32>
    %cst_244 = arith.constant dense<0.000000e+00> : vector<2x1280xf32>
    %783 = tpu.matmul %781, %782, %cst_244 {dimension_numbers = #tpu.dot_dimension_numbers<[1], [0], [0], [1], [0, 0, 1, 1], [], []>} : vector<2x16xf32>, vector<16x1280xf32>, vector<2x1280xf32> -> vector<2x1280xf32>
    %c0_245 = arith.constant 0 : index
    %c0_246 = arith.constant 0 : index
    %784 = vector.load %arg18[%c0_245, %c0_246] : memref<1x1280xf32, #tpu.memory_space<vmem>>, vector<1x1280xf32>
    %785 = vector.broadcast %784 : vector<1x1280xf32> to vector<2x1280xf32>
    %786 = arith.addf %783, %785 : vector<2x1280xf32>
    %787 = arith.negf %786 : vector<2x1280xf32>
    %788 = math.exp %787 : vector<2x1280xf32>
    %cst_247 = arith.constant 1.000000e+00 : f32
    %789 = vector.broadcast %cst_247 : f32 to vector<2x1280xf32>
    %790 = arith.addf %789, %788 : vector<2x1280xf32>
    %791 = arith.divf %789, %790 : vector<2x1280xf32>
    %792 = vector.broadcast %771 : vector<1x1280xf32> to vector<2x1280xf32>
    %793 = arith.mulf %791, %792 : vector<2x1280xf32>
    %c0_248 = arith.constant 0 : index
    %c0_249 = arith.constant 0 : index
    %794 = vector.load %arg19[%c0_248, %c0_249] : memref<1280x1xf32, #tpu.memory_space<vmem>>, vector<1280x1xf32>
    %cst_250 = arith.constant dense<0.000000e+00> : vector<2x1xf32>
    %795 = tpu.matmul %793, %794, %cst_250 {dimension_numbers = #tpu.dot_dimension_numbers<[1], [0], [0], [1], [0, 0, 1, 1], [], []>} : vector<2x1280xf32>, vector<1280x1xf32>, vector<2x1xf32> -> vector<2x1xf32>
    %c0_251 = arith.constant 0 : index
    %c0_252 = arith.constant 0 : index
    %796 = vector.load %arg20[%c0_251, %c0_252] : memref<1x1xf32, #tpu.memory_space<vmem>>, vector<1x1xf32>
    %797 = vector.broadcast %796 : vector<1x1xf32> to vector<2x1xf32>
    %798 = arith.addf %795, %797 : vector<2x1xf32>
    %799 = arith.negf %798 : vector<2x1xf32>
    %800 = math.exp %799 : vector<2x1xf32>
    %cst_253 = arith.constant 1.000000e+00 : f32
    %801 = vector.broadcast %cst_253 : f32 to vector<2x1xf32>
    %802 = arith.addf %801, %800 : vector<2x1xf32>
    %803 = arith.divf %801, %802 : vector<2x1xf32>
    %c0_254 = arith.constant 0 : index
    %c0_255 = arith.constant 0 : index
    %804 = vector.load %arg21[%c0_254, %c0_255] : memref<2x1xf32, #tpu.memory_space<vmem>>, vector<2x1xf32>
    tpu.vector_store %arg21[%c0_254, %c0_255], %803 {strides = array<i32>} : memref<2x1xf32, #tpu.memory_space<vmem>>, vector<2x1xf32>,
    return
  }
}

</mosaic_0001>

<bundles_post_ra>
// kernel: gatnet_with_pt_attention.1
= control target key start
LH: loop header
LB: loop body
LE: loop exit
PB: predicated region body
PF: predicated region fallthrough
CT: control target
= control target key end

     0   :  { %vm84_vm0 = vcmask 1043456   ;;  %v13047_v1 = vmov 0.0   ;;  %vm77_vm1 = vcmask 31744   ;;  %vm438_vm6 = vcmask 130048   ;;  %s9187_s22 = smov 96   ;;  %s9188_s23 = smov 64   ;;  %s13020_s2 = inlined_call_operand.vmem [shape: f32[4,256], index: 2, kind: input, shape index: {}]   ;;  %s13021_s0 = inlined_call_operand.vmem [shape: f32[16,4], index: 0, kind: input, shape index: {}]   ;;  %s13022_s3 = inlined_call_operand.vmem [shape: f32[256,8], index: 3, kind: input, shape index: {}]   ;;  %s13023_s4 = inlined_call_operand.vmem [shape: f32[256,8], index: 4, kind: input, shape index: {}]   ;;  %s13024_s1 = inlined_call_operand.vmem [shape: f32[16,16], index: 1, kind: input, shape index: {}]   ;;  %s13025_s6 = inlined_call_operand.vmem [shape: f32[256,256], index: 6, kind: input, shape index: {}]   ;;  %s13026_s7 = inlined_call_operand.vmem [shape: f32[256,8], index: 7, kind: input, shape index: {}]   ;;  %s13027_s5 = inlined_call_operand.vmem [shape: f32[1,256], index: 5, kind: input, shape index: {}]   ;;  %s13028_s8 = inlined_call_operand.vmem [shape: f32[256,8], index: 8, kind: input, shape index: {}]   ;;  %s13029_s10 = inlined_call_operand.vmem [shape: f32[256,768], index: 10, kind: input, shape index: {}]   ;;  %s13030_s11 = inlined_call_operand.vmem [shape: f32[768,12], index: 11, kind: input, shape index: {}]   ;;  %s13031_s9 = inlined_call_operand.vmem [shape: f32[1,256], index: 9, kind: input, shape index: {}]   ;;  %s13032_s12 = inlined_call_operand.vmem [shape: f32[768,12], index: 12, kind: input, shape index: {}]   ;;  %s13033_s14 = inlined_call_operand.vmem [shape: f32[2,1], index: 14, kind: input, shape index: {}]   ;;  %s13034_s17 = inlined_call_operand.vmem [shape: f32[16,1280], index: 17, kind: input, shape index: {}]   ;;  %s13035_s15 = inlined_call_operand.vmem [shape: f32[1,16], index: 15, kind: input, shape index: {}]   ;;  %s13036_s16 = inlined_call_operand.vmem [shape: f32[1,16], index: 16, kind: input, shape index: {}]   ;;  %s13037_s19 = inlined_call_operand.vmem [shape: f32[1280,1], index: 19, kind: input, shape index: {}]   ;;  %s13038_s18 = inlined_call_operand.vmem [shape: f32[1,1280], index: 18, kind: input, shape index: {}]   ;;  %s13039_s13 = inlined_call_operand.vmem [shape: f32[1,768], index: 13, kind: input, shape index: {}]   ;;  %s13040_s20 = inlined_call_operand.<no memory space> [shape: f32[1,1], index: 20, kind: input, shape index: {}]   ;;  %s13041_s21 = inlined_call_operand.vmem [shape: f32[2,1], index: 21, kind: output, shape index: {}]  }
   0x1   :  { %13051 = sst [smem:[#allocation5_spill]] %s13020_s2  ;;  %153 = vmatprep.mubr.f32.mxu1 %v13047_v1  ;;  %s9189_s24 = smov 32  }
   0x2   :  { %13052 = sst [smem:[#allocation6_spill]] %s13021_s0  ;;  %s13057_s26 = sld [smem:[#allocation5_spill]] }
   0x3   :  { %13053 = sst [smem:[#allocation7_spill]] %s13022_s3  ;;  %s13058_s28 = sld [smem:[#allocation6_spill]] }
   0x4   :  { %13054 = sst [smem:[#allocation8_spill]] %s13023_s4  ;;  %s13059_s2 = sld [smem:[#allocation7_spill]] }
   0x5   :  { %13055 = sst [smem:[#allocation9_spill]] %s13024_s1  ;;  %s13060_s0 = sld [smem:[#allocation8_spill]] }
   0x6   :  { %13056 = sst [smem:[#allocation10_spill]] %s13025_s6  ;;  %s13061_s30 = sld [smem:[#allocation9_spill]] }
   0x8   :  { %v74_v0 = vld [vmem:[%s13057_s26] sm:$0xff]  ;;  %s13064_s26 = sld [smem:[#allocation10_spill]] }
   0x9   :  { %v72_v2 = vld [vmem:[%s13058_s28] sm:$0xff]  ;;  %v76_v3 = vcombine.high %v74_v0, %v74_v0  ;;  %v73_v16 = vld [vmem:[%s13058_s28 + $0x8] sm:$0xff] }
   0xa   :  { %v182_v4 = vld [vmem:[%s13059_s2 + $0x80] sm:$0xff]  ;;  %v183_v5 = vld [vmem:[%s13059_s2 + $0x88] sm:$0xff]  ;;  %v184_v15 = vld [vmem:[%s13059_s2 + $0x90] sm:$0xff] }
   0xb   :  { %v289_v6 = vld [vmem:[%s13060_s0 + $0x80] sm:$0xff]  ;;  %v7878_v7 = vpack.c.bf16 %v183_v5, %v182_v4  ;;  %v290_v8 = vld [vmem:[%s13060_s0 + $0x88] sm:$0xff]  ;;  %6936 = vmatprep.subr.msk.mxu1 %vm84_vm0, %v76_v3  ;;  %v185_v18 = vld [vmem:[%s13059_s2 + $0x98] sm:$0xff] }
   0xc   :  { %v166_v9 = vld [vmem:[%s13059_s2] sm:$0xff]  ;;  %v167_v10 = vld [vmem:[%s13059_s2 + $0x8] sm:$0xff]  ;;  %v7910_v11 = vpack.c.bf16 %v290_v8, %v289_v6  ;;  %6937 = vmatpush1.msk.msra.mxu1 %vm84_vm0, %v74_v0  ;;  %v291_v19 = vld [vmem:[%s13060_s0 + $0x90] sm:$0xff]  ;;  %v7882_v21 = vpack.c.bf16 %v185_v18, %v184_v15 }
   0xd   :  { %v7880_v12 = vpack.c.bf16 %v167_v10, %v166_v9  ;;  %v273_v13 = vld [vmem:[%s13060_s0] sm:$0xff]  ;;  %v274_v14 = vld [vmem:[%s13060_s0 + $0x8] sm:$0xff]  ;;  %v292_v20 = vld [vmem:[%s13060_s0 + $0x98] sm:$0xff]  ;;  %6938 = vmatmul.mubr.msk.f32.vlgmr.msra.gmra.mrb[0].mxu1 %vm77_vm1, %v72_v2  ;;  %7879 = vmatprep.subr.bf16.mxu1 %v7878_v7 }
   0xe   :  { %v7912_v17 = vpack.c.bf16 %v274_v14, %v273_v13  ;;  %v7914_v22 = vpack.c.bf16 %v292_v20, %v291_v19  ;;  %v168_v23 = vld [vmem:[%s13059_s2 + $0x10] sm:$0xff]  ;;  %v169_v24 = vld [vmem:[%s13059_s2 + $0x18] sm:$0xff]  ;;  %159 = vmatprep.mubr.f32.mxu1 %v13047_v1  ;;  %7911 = vmatprep.subr.bf16.mxu0 %v7910_v11  ;;  %v186_v27 = vld [vmem:[%s13059_s2 + $0xa0] sm:$0xff] }
   0xf   :  { %v275_v25 = vld [vmem:[%s13060_s0 + $0x10] sm:$0xff]  ;;  %v276_v26 = vld [vmem:[%s13060_s0 + $0x18] sm:$0xff]  ;;  %v187_v28 = vld [vmem:[%s13059_s2 + $0xa8] sm:$0xff]  ;;  %7881 = vmatpush3.bf16.msra.mxu1 %v7880_v12  ;;  %v7884_v29 = vpack.c.bf16 %v169_v24, %v168_v23 }
  0x10   :  { %7913 = vmatpush3.bf16.msra.mxu0 %v7912_v17  ;;  %v7916_v30 = vpack.c.bf16 %v276_v26, %v275_v25  ;;  %v293_v31 = vld [vmem:[%s13060_s0 + $0xa0] sm:$0xff]  ;;  %v294_v32 = vld [vmem:[%s13060_s0 + $0xa8] sm:$0xff]  ;;  %7883 = vmatprep.subr.bf16.mxu1 %v7882_v21  ;;  %v7886_v34 = vpack.c.bf16 %v187_v28, %v186_v27  ;;  %v188_v39 = vld [vmem:[%s13059_s2 + $0xb0] sm:$0xff] }
  0x11   :  { %v170_v33 = vld [vmem:[%s13059_s2 + $0x20] sm:$0xff]  ;;  %7915 = vmatprep.subr.bf16.mxu0 %v7914_v22  ;;  %v7918_v35 = vpack.c.bf16 %v294_v32, %v293_v31  ;;  %v171_v36 = vld [vmem:[%s13059_s2 + $0x28] sm:$0xff]  ;;  %6939 = vmatmul.mubr.msk.f32.gmra.mrb[2].mxu1 %vm77_vm1, %v73_v16  ;;  %v189_v40 = vld [vmem:[%s13059_s2 + $0xb8] sm:$0xff] }
  0x12   :  { %v277_v37 = vld [vmem:[%s13060_s0 + $0x20] sm:$0xff]  ;;  %v278_v38 = vld [vmem:[%s13060_s0 + $0x28] sm:$0xff]  ;;  %v295_v41 = vld [vmem:[%s13060_s0 + $0xb0] sm:$0xff]  ;;  %v7888_v43 = vpack.c.bf16 %v171_v36, %v170_v33  ;;  %v7890_v47 = vpack.c.bf16 %v189_v40, %v188_v39 }
  0x13   :  { %v296_v42 = vld [vmem:[%s13060_s0 + $0xb8] sm:$0xff]  ;;  %7885 = vmatpush3.bf16.msra.mxu1 %v7884_v29  ;;  %v7920_v44 = vpack.c.bf16 %v278_v38, %v277_v37  ;;  %v172_v45 = vld [vmem:[%s13059_s2 + $0x30] sm:$0xff]  ;;  %v190_v51 = vld [vmem:[%s13059_s2 + $0xc0] sm:$0xff] }
  0x14   :  { %7917 = vmatpush3.bf16.msra.mxu0 %v7916_v30  ;;  %v173_v46 = vld [vmem:[%s13059_s2 + $0x38] sm:$0xff]  ;;  %7887 = vmatprep.subr.bf16.mxu1 %v7886_v34  ;;  %v7922_v48 = vpack.c.bf16 %v296_v42, %v295_v41  ;;  %v279_v49 = vld [vmem:[%s13060_s0 + $0x30] sm:$0xff]  ;;  %v191_v52 = vld [vmem:[%s13059_s2 + $0xc8] sm:$0xff] }
  0x15   :  { %7919 = vmatprep.subr.bf16.mxu0 %v7918_v35  ;;  %v280_v50 = vld [vmem:[%s13060_s0 + $0x38] sm:$0xff]  ;;  %v297_v53 = vld [vmem:[%s13060_s0 + $0xc0] sm:$0xff]  ;;  %v298_v54 = vld [vmem:[%s13060_s0 + $0xc8] sm:$0xff]  ;;  %v7892_v55 = vpack.c.bf16 %v173_v46, %v172_v45  ;;  %v7894_v59 = vpack.c.bf16 %v191_v52, %v190_v51  ;;  %v9179_v46 = vmov 1  }
  0x16   :  { %v7924_v56 = vpack.c.bf16 %v280_v50, %v279_v49  ;;  %v174_v57 = vld [vmem:[%s13059_s2 + $0x40] sm:$0xff]  ;;  %v175_v58 = vld [vmem:[%s13059_s2 + $0x48] sm:$0xff]  ;;  %v7926_v60 = vpack.c.bf16 %v298_v54, %v297_v53  ;;  %v192_v63 = vld [vmem:[%s13059_s2 + $0xd0] sm:$0xff]  ;;  %8763 = vset.pattern.permute.xlu1 %v9179_v46 }
  0x17   :  { %7889 = vmatpush3.bf16.msra.mxu1 %v7888_v43  ;;  %v281_v61 = vld [vmem:[%s13060_s0 + $0x40] sm:$0xff]  ;;  %v282_v62 = vld [vmem:[%s13060_s0 + $0x48] sm:$0xff]  ;;  %v193_v0 = vld [vmem:[%s13059_s2 + $0xd8] sm:$0xff]  ;;  %v7896_v4 = vpack.c.bf16 %v175_v58, %v174_v57 }
  0x18   :  { %7921 = vmatpush3.bf16.msra.mxu0 %v7920_v44  ;;  %7891 = vmatprep.subr.bf16.mxu1 %v7890_v47  ;;  %v299_v2 = vld [vmem:[%s13060_s0 + $0xd0] sm:$0xff]  ;;  %v300_v3 = vld [vmem:[%s13060_s0 + $0xd8] sm:$0xff]  ;;  %v7928_v5 = vpack.c.bf16 %v282_v62, %v281_v61  ;;  %v7898_v8 = vpack.c.bf16 %v193_v0, %v192_v63  ;;  %v194_v12 = vld [vmem:[%s13059_s2 + $0xe0] sm:$0xff]  ;;  %v9180_v47 = vmov 0   ;;  %v9182_v61 = vmov 2  }
  0x19   :  { %7923 = vmatprep.subr.bf16.mxu0 %v7922_v48  ;;  %v176_v6 = vld [vmem:[%s13059_s2 + $0x50] sm:$0xff]  ;;  %v177_v7 = vld [vmem:[%s13059_s2 + $0x58] sm:$0xff]  ;;  %v7930_v9 = vpack.c.bf16 %v300_v3, %v299_v2  ;;  %v195_v13 = vld [vmem:[%s13059_s2 + $0xe8] sm:$0xff]  ;;  %8762 = vset.pattern.permute.xlu0 %v9180_v47  ;;  %v9183_v62 = vmov 4   ;;  %v9184_v63 = vmov 5   ;;  %v9185_v0 = vmov 6  }
  0x1a   :  { %v283_v10 = vld [vmem:[%s13060_s0 + $0x50] sm:$0xff]  ;;  %v284_v11 = vld [vmem:[%s13060_s0 + $0x58] sm:$0xff]  ;;  %v301_v14 = vld [vmem:[%s13060_s0 + $0xe0] sm:$0xff]  ;;  %v7900_v16 = vpack.c.bf16 %v177_v7, %v176_v6  ;;  %v7902_v20 = vpack.c.bf16 %v195_v13, %v194_v12  ;;  %v9186_v2 = vmov 7   ;;  %v422_v7 = vlaneseq }
  0x1b   :  { %7893 = vmatpush3.bf16.msra.mxu1 %v7892_v55  ;;  %v302_v15 = vld [vmem:[%s13060_s0 + $0xe8] sm:$0xff]  ;;  %v7932_v17 = vpack.c.bf16 %v284_v11, %v283_v10  ;;  %v178_v18 = vld [vmem:[%s13059_s2 + $0x60] sm:$0xff]  ;;  %v196_v24 = vld [vmem:[%s13059_s2 + $0xf0] sm:$0xff] }
  0x1c   :  { %7925 = vmatpush3.bf16.msra.mxu0 %v7924_v56  ;;  %7895 = vmatprep.subr.bf16.mxu1 %v7894_v59  ;;  %v179_v19 = vld [vmem:[%s13059_s2 + $0x68] sm:$0xff]  ;;  %v7934_v21 = vpack.c.bf16 %v302_v15, %v301_v14  ;;  %v285_v22 = vld [vmem:[%s13060_s0 + $0x60] sm:$0xff]  ;;  %v197_v25 = vld [vmem:[%s13059_s2 + $0xf8] sm:$0xff] }
  0x1d   :  { %7927 = vmatprep.subr.bf16.mxu0 %v7926_v60  ;;  %v286_v23 = vld [vmem:[%s13060_s0 + $0x68] sm:$0xff]  ;;  %v303_v26 = vld [vmem:[%s13060_s0 + $0xf0] sm:$0xff]  ;;  %v304_v27 = vld [vmem:[%s13060_s0 + $0xf8] sm:$0xff]  ;;  %v7904_v28 = vpack.c.bf16 %v179_v19, %v178_v18  ;;  %v7906_v30 = vpack.c.bf16 %v197_v25, %v196_v24  ;;  %v9181_v60 = vmov 3  }
  0x1e   :  { %v7936_v29 = vpack.c.bf16 %v286_v23, %v285_v22  ;;  %v7938_v31 = vpack.c.bf16 %v304_v27, %v303_v26  ;;  %v180_v32 = vld [vmem:[%s13059_s2 + $0x70] sm:$0xff]  ;;  %v181_v33 = vld [vmem:[%s13059_s2 + $0x78] sm:$0xff]  ;;  %v9558_v19 = vld [vmem:[%s13061_s30] sm:$0xff] }
  0x1f   :  { %7897 = vmatpush3.bf16.msra.mxu1 %v7896_v4  ;;  %v287_v34 = vld [vmem:[%s13060_s0 + $0x70] sm:$0xff]  ;;  %v7908_v35 = vpack.c.bf16 %v181_v33, %v180_v32  ;;  %v288_v36 = vld [vmem:[%s13060_s0 + $0x78] sm:$0xff]  ;;  %vm434_vm3 = vcmp.gt.f32.partialorder %v9558_v19, 0.0 }
  0x20   :  { %7929 = vmatpush3.bf16.msra.mxu0 %v7928_v5  ;;  %7899 = vmatprep.subr.bf16.mxu1 %v7898_v8  ;;  %v7940_v37 = vpack.c.bf16 %v288_v36, %v287_v34 }
  0x21   :  { %7931 = vmatprep.subr.bf16.mxu0 %v7930_v9  ;;  %v423_v9 = vshrl.u32 %v422_v7, 7 }
  0x23   :  { %7901 = vmatpush3.bf16.msra.mxu1 %v7900_v16  ;;  %v9541_v12 = vsub.s32 0, %v423_v9  ;;  %v9543_v13 = vsub.s32 1, %v423_v9  ;;  %v9545_v14 = vsub.s32 2, %v423_v9  ;;  %v9547_v15 = vsub.s32 3, %v423_v9 }
  0x24   :  { %7933 = vmatpush3.bf16.msra.mxu0 %v7932_v17  ;;  %7903 = vmatprep.subr.bf16.mxu1 %v7902_v20  ;;  %v9552_v17 = vld [vmem:[%s13061_s30 + $0x8] sm:$0xff]  ;;  %v9569_v23 = vsub.s32 4, %v423_v9 }
  0x25   :  { %7935 = vmatprep.subr.bf16.mxu0 %v7934_v21  ;;  %vm435_vm2 = vcmp.gt.f32.partialorder %v9552_v17, 0.0 }
  0x27   :  { %7905 = vmatpush3.bf16.msra.mxu1 %v7904_v28 }
  0x28   :  { %7937 = vmatpush3.bf16.msra.mxu0 %v7936_v29  ;;  %7907 = vmatprep.subr.bf16.mxu1 %v7906_v30  ;;  %v9575_v29 = vsub.s32 5, %v423_v9 }
  0x29   :  { %7939 = vmatprep.subr.bf16.mxu0 %v7938_v31 }
  0x2b   :  { %7909 = vmatpush3.bf16.msra.mxu1 %v7908_v35 }
  0x2c   :  { %7941 = vmatpush3.bf16.msra.mxu0 %v7940_v37 }
  0xe0   :  { %v155_v38 = vpop.f32.mrb[0].mxu1 }
  0xe1   :  { %v157_v39 = vpop.f32.mrb[1].mxu1 }
  0xe2   :  { %262 = vmatprep.mubr.f32.mxu1 %v157_v39  ;;  %369 = vmatprep.mubr.f32.mxu0 %v157_v39 }
  0xe3   :  { %263 = vmatmul.mubr.f32.vlgmr.msra.gmra.mrb[4].mxu1 %v155_v38  ;;  %370 = vmatmul.mubr.f32.vlgmr.msra.gmra.mrb[0].mxu0 %v155_v38 }
  0xe4   :  { %v161_v40 = vpop.f32.mrb[2].mxu1 }
  0xe5   :  { %v163_v41 = vpop.f32.mrb[3].mxu1  ;;  %v7942_v42 = vpack.c.bf16 %v161_v40, %v155_v38  ;;  %v9511_v43 = vpack.i.bf16 %v161_v40, %v155_v38 }
  0xe6   :  { %267 = vmatprep.mubr.f32.mxu1 %v163_v41  ;;  %374 = vmatprep.mubr.f32.mxu0 %v163_v41  ;;  %v9513_v44 = vpack.i.bf16 %v163_v41, %v157_v39  ;;  %v9515_v45 = vpack.c.bf16 %v163_v41, %v157_v39 }
  0xe7   :  { %7943 = vmatprep.subr.bf16.mxu1 %v7942_v42  ;;  %268 = vmatmul.mubr.f32.gmra.mrb[6].mxu1 %v161_v40 }
  0xe8   :  { %7945 = vmatpush3.bf16.msra.mxu1 %v7942_v42  ;;  %375 = vmatmul.mubr.f32.gmra.mrb[2].mxu0 %v161_v40 }
 0x1b6   :  { %v7047_v48 = vpop.f32.mrb[4].mxu1  ;;  %v7085_v49 = vpop.f32.mrb[0].mxu0 }
 0x1b7   :  { %v7048_v50 = vpop.f32.mrb[5].mxu1  ;;  %v7086_v51 = vpop.f32.mrb[1].mxu0 }
 0x1b8   :  { %v7049_v52 = vadd.f32 %v7048_v50, %v7047_v48  ;;  %v7087_v53 = vadd.f32 %v7086_v51, %v7085_v49  ;;  %v9597_v50 = vsub.s32 6, %v423_v9 }
 0x1ba   :  { %543 = vperm.xlu1 %8763, %v7087_v53   ;;  %414 = vperm.xlu0 %8762, %v7087_v53   ;;  %v7050_v54 = vpop.f32.mrb[6].mxu1  ;;  %13062 = vst [vmem:[#allocation3_spill] sm:$0xff] %v9597_v50 }
 0x1bb   :  { %v7088_v55 = vpop.f32.mrb[2].mxu0  ;;  %v7051_v56 = vpop.f32.mrb[7].mxu1 }
 0x1bc   :  { %v7052_v57 = vadd.f32 %v7051_v56, %v7050_v54  ;;  %v7089_v58 = vpop.f32.mrb[3].mxu0 }
 0x1bd   :  { %v7090_v59 = vadd.f32 %v7089_v58, %v7088_v55 }
 0x1be   :  { %8765 = vset.pattern.permute.xlu1 %v9181_v60  ;;  %8764 = vset.pattern.permute.xlu0 %v9182_v61 }
 0x1bf   :  { %807 = vperm.xlu1 %8765, %v7087_v53   ;;  %676 = vperm.xlu0 %8764, %v7087_v53  }
 0x1c3   :  { %8766 = vset.pattern.permute.xlu1 %v9183_v62  ;;  %8767 = vset.pattern.permute.xlu0 %v9184_v63 }
 0x1c4   :  { %938 = vperm.xlu1 %8766, %v7087_v53   ;;  %1063 = vperm.xlu0 %8767, %v7087_v53  }
 0x1c8   :  { %8768 = vset.pattern.permute.xlu1 %v9185_v0  ;;  %8770 = vset.pattern.permute.xlu0 %v9180_v47 }
 0x1c9   :  { %1196 = vperm.xlu1 %8768, %v7087_v53   ;;  %419 = vperm.xlu0 %8770, %v7090_v59  }
 0x1cd   :  { %8769 = vset.pattern.permute.xlu1 %v9186_v2  ;;  %8773 = vset.pattern.permute.xlu0 %v9181_v60 }
 0x1ce   :  { %1327 = vperm.xlu1 %8769, %v7087_v53   ;;  %811 = vperm.xlu0 %8773, %v7090_v59  }
 0x1d2   :  { %8771 = vset.pattern.permute.xlu1 %v9179_v46  ;;  %8776 = vset.pattern.permute.xlu0 %v9185_v0 }
 0x1d3   :  { %547 = vperm.xlu1 %8771, %v7090_v59   ;;  %1200 = vperm.xlu0 %8776, %v7090_v59  }
 0x1d7   :  { %8772 = vset.pattern.permute.xlu1 %v9182_v61 }
 0x1d8   :  { %680 = vperm.xlu1 %8772, %v7090_v59  }
 0x1dc   :  { %8774 = vset.pattern.permute.xlu1 %v9183_v62 }
 0x1dd   :  { %942 = vperm.xlu1 %8774, %v7090_v59  }
 0x1e1   :  { %8775 = vset.pattern.permute.xlu1 %v9184_v63 }
 0x1e2   :  { %1067 = vperm.xlu1 %8775, %v7090_v59  }
 0x1e6   :  { %8777 = vset.pattern.permute.xlu1 %v9186_v2 }
 0x1e7   :  { %1331 = vperm.xlu1 %8777, %v7090_v59  }
 0x1eb   :  { %8809 = vset.pattern.permute.xlu1 %v9179_v46 }
 0x1f1   :  { %380 = vxpose.xlu0.b32.start [1/2] (short) (narrow) %v7049_v52, 8 }
 0x1f5   :  { %381 = vxpose.xlu0.b32.end [2/2] (short) (narrow) %v7052_v57, 8  ;;  %v9609_v57 = vsub.s32 7, %v423_v9 }
 0x1f7   :  { %13063 = vst [vmem:[#allocation4_spill] sm:$0xff] %v9609_v57 }
 0x21e   :  { %8808 = vset.pattern.permute.xlu0 %v9180_v47 }
 0x239   :  { %v415_v3 = vpop.permute.xlu0 %414  ;;  %v544_v11 = vpop.permute.xlu1 %543 }
 0x23e   :  { %v677_v4 = vpop.permute.xlu0 %676  ;;  %v808_v24 = vpop.permute.xlu1 %807 }
 0x243   :  { %v9535_v5 = vpop.permute.xlu0 %1063  ;;  %v939_v41 = vpop.permute.xlu1 %938 }
 0x248   :  { %v420_v6 = vpop.permute.xlu0 %419  ;;  %v1197_v58 = vpop.permute.xlu1 %1196 }
 0x24d   :  { %v9537_v8 = vpop.permute.xlu0 %811 }
 0x252   :  { %v9539_v10 = vpop.permute.xlu0 %1200 }
 0x271   :  { %v396_v16 = vpop.trf.xlu0 }
 0x272   :  { %v425_v18 = vrot.slane %v396_v16, %v9541_v12  ;;  %v9561_v20 = vrot.slane %v396_v16, %v9543_v13  ;;  %v9564_v21 = vrot.slane %v396_v16, %v9545_v14  ;;  %v9567_v22 = vrot.slane %v396_v16, %v9547_v15 }
 0x273   :  { %v9578_v33 = vrot.slane %v396_v16, %v9569_v23  ;;  %v9601_v54 = vrot.slane %v396_v16, %v9575_v29 }
 0x274   :  { %v427_v25 = vadd.f32 %v425_v18, %v420_v6  ;;  %v426_v26 = vadd.f32 %v425_v18, %v415_v3  ;;  %v554_v27 = vadd.f32 %v9561_v20, %v544_v11  ;;  %v687_v28 = vadd.f32 %v9564_v21, %v677_v4 }
 0x275   :  { %v818_v37 = vadd.f32 %v9567_v22, %v808_v24  ;;  %v949_v53 = vadd.f32 %v9578_v33, %v939_v41  ;;  %v1074_v4 = vadd.f32 %v9601_v54, %v9535_v5  ;;  %v1206_v6 = vrot.slane %v396_v16, %v9597_v50 }
 0x276   :  { %vm429_vm4 = vcmp.ge.f32.partialorder %v427_v25, 0.0  ;;  %v431_v30 = vmul.f32 0.2, %v427_v25  ;;  %vm428_vm5 = vcmp.ge.f32.partialorder %v426_v26, 0.0  ;;  %v430_v31 = vmul.f32 0.2, %v426_v26 }
 0x277   :  { %vm556_vm7 = vcmp.ge.f32.partialorder %v554_v27, 0.0  ;;  %v558_v32 = vmul.f32 0.2, %v554_v27  ;;  %v691_v36 = vmul.f32 0.2, %v687_v28  ;;  %vm689_vm8 = vcmp.ge.f32.partialorder %v687_v28, 0.0 }
 0x278   :  { %v433_v34 = vsel %vm429_vm4, %v427_v25, %v431_v30  ;;  %v432_v35 = vsel %vm428_vm5, %v426_v26, %v430_v31  ;;  %v822_v52 = vmul.f32 0.2, %v818_v37  ;;  %vm820_vm9 = vcmp.ge.f32.partialorder %v818_v37, 0.0  ;;  %v1328_v26 = vpop.permute.xlu1 %1327 }
 0x279   :  { %v9583_v38 = vsel %vm435_vm2, %v433_v34, -1e+30  ;;  %v9587_v39 = vsel %vm434_vm3, %v432_v35, -1e+30  ;;  %v560_v40 = vsel %vm556_vm7, %v554_v27, %v558_v32  ;;  %v693_v51 = vsel %vm689_vm8, %v687_v28, %v691_v36 }
 0x27a   :  { %v442_v42 = vsel %vm438_vm6, %v9583_v38, -inf  ;;  %v439_v48 = vsel %vm438_vm6, %v9587_v39, -inf  ;;  %v9595_v49 = vsel %vm434_vm3, %v560_v40, -1e+30  ;;  %v9607_v56 = vsel %vm434_vm3, %v693_v51, -1e+30 }
 0x27b   :  { %443 = vmax.xlane.f32.xlu0 %v442_v42  ;;  %440 = vmax.xlane.f32.xlu1 %v439_v48  ;;  %v564_v55 = vsel %vm438_vm6, %v9595_v49, -inf  ;;  %v824_v59 = vsel %vm820_vm9, %v818_v37, %v822_v52  ;;  %v953_v3 = vmul.f32 0.2, %v949_v53  ;;  %vm951_vm10 = vcmp.ge.f32.partialorder %v949_v53, 0.0 }
 0x27c   :  { %v697_v7 = vsel %vm438_vm6, %v9607_v56, -inf  ;;  %v9618_v11 = vsel %vm434_vm3, %v824_v59, -1e+30  ;;  %v1078_v9 = vmul.f32 0.2, %v1074_v4  ;;  %v1207_v24 = vadd.f32 %v1206_v6, %v1197_v58  ;;  %v548_v34 = vpop.permute.xlu1 %547 }
 0x27d   :  { %v955_v18 = vsel %vm951_vm10, %v949_v53, %v953_v3  ;;  %v1337_v25 = vrot.slane %v396_v16, %v9609_v57  ;;  %vm1076_vm11 = vcmp.ge.f32.partialorder %v1074_v4, 0.0  ;;  %v828_v5 = vsel %vm438_vm6, %v9618_v11, -inf }
 0x27e   :  { %v9625_v27 = vsel %vm434_vm3, %v955_v18, -1e+30  ;;  %v1080_v28 = vsel %vm1076_vm11, %v1074_v4, %v1078_v9  ;;  %v1211_v30 = vmul.f32 0.2, %v1207_v24  ;;  %vm1209_vm12 = vcmp.ge.f32.partialorder %v1207_v24, 0.0 }
 0x27f   :  { %565 = vmax.xlane.f32.xlu1 %v564_v55  ;;  %v1338_v31 = vadd.f32 %v1337_v25, %v1328_v26  ;;  %v959_v32 = vsel %vm438_vm6, %v9625_v27, -inf  ;;  %v9631_v16 = vsel %vm434_vm3, %v1080_v28, -1e+30  ;;  %v1208_v58 = vadd.f32 %v1206_v6, %v9539_v10 }
 0x280   :  { %v1213_v35 = vsel %vm1209_vm12, %v1207_v24, %v1211_v30  ;;  %v1084_v37 = vsel %vm438_vm6, %v9631_v16, -inf  ;;  %v681_v42 = vpop.permute.xlu1 %680  ;;  %vm1505_vm8 = vcmask 261120   ;;  %vm1508_vm9 = vcmask 523264  }
 0x281   :  { %v1342_v36 = vmul.f32 0.2, %v1338_v31  ;;  %vm1340_vm13 = vcmp.ge.f32.partialorder %v1338_v31, 0.0  ;;  %v9637_v40 = vsel %vm434_vm3, %v1213_v35, -1e+30  ;;  %vm1210_vm14 = vcmp.ge.f32.partialorder %v1208_v58, 0.0 }
 0x282   :  { %v1217_v48 = vsel %vm438_vm6, %v9637_v40, -inf  ;;  %v1212_v3 = vmul.f32 0.2, %v1208_v58  ;;  %v688_v28 = vadd.f32 %v9564_v21, %v681_v42  ;;  %vm1511_vm10 = vcmask 785408  }
 0x283   :  { %698 = vmax.xlane.f32.xlu1 %v697_v7  ;;  %v1344_v41 = vsel %vm1340_vm13, %v1338_v31, %v1342_v36 }
 0x284   :  { %v9645_v51 = vsel %vm434_vm3, %v1344_v41, -1e+30  ;;  %v943_v53 = vpop.permute.xlu1 %942  ;;  %v1214_v7 = vsel %vm1210_vm14, %v1208_v58, %v1212_v3  ;;  %v692_v31 = vmul.f32 0.2, %v688_v28  ;;  %vm690_vm1 = vcmp.ge.f32.partialorder %v688_v28, 0.0 }
 0x285   :  { %v1348_v52 = vsel %vm438_vm6, %v9645_v51, -inf  ;;  %v9654_v9 = vsel %vm435_vm2, %v1214_v7, -1e+30  ;;  %v950_v41 = vadd.f32 %v9578_v33, %v943_v53 }
 0x286   :  { %v1220_v26 = vsel %vm438_vm6, %v9654_v9, -inf  ;;  %v694_v36 = vsel %vm690_vm1, %v688_v28, %v692_v31 }
 0x287   :  { %829 = vmax.xlane.f32.xlu1 %v828_v5  ;;  %vm952_vm5 = vcmp.ge.f32.partialorder %v950_v41, 0.0 }
 0x288   :  { %v1068_v55 = vpop.permute.xlu1 %1067 }
 0x28b   :  { %960 = vmax.xlane.f32.xlu1 %v959_v32  ;;  %v819_v32 = vadd.f32 %v9567_v22, %v9537_v8  ;;  %v9679_v8 = vsel %vm435_vm2, %v694_v36, -1e+30  ;;  %v954_v22 = vmul.f32 0.2, %v950_v41 }
 0x28c   :  { %v1332_v59 = vpop.permute.xlu1 %1331  ;;  %v700_v33 = vsel %vm438_vm6, %v9679_v8, -inf }
 0x28d   :  { %v1339_v4 = vadd.f32 %v1337_v25, %v1332_v59  ;;  %v555_v25 = vadd.f32 %v9561_v20, %v548_v34  ;;  %vm821_vm4 = vcmp.ge.f32.partialorder %v819_v32, 0.0  ;;  %v1075_v34 = vadd.f32 %v9601_v54, %v1068_v55 }
 0x28e   :  { %v956_v42 = vsel %vm952_vm5, %v950_v41, %v954_v22 }
 0x28f   :  { %1085 = vmax.xlane.f32.xlu1 %v1084_v37  ;;  %v1343_v18 = vmul.f32 0.2, %v1339_v4  ;;  %vm1341_vm15 = vcmp.ge.f32.partialorder %v1339_v4, 0.0  ;;  %v559_v5 = vmul.f32 0.2, %v555_v25  ;;  %vm557_vm0 = vcmp.ge.f32.partialorder %v555_v25, 0.0 }
 0x290   :  { %v823_v37 = vmul.f32 0.2, %v819_v32  ;;  %vm1077_vm7 = vcmp.ge.f32.partialorder %v1075_v34, 0.0  ;;  %v9692_v53 = vsel %vm435_vm2, %v956_v42, -1e+30 }
 0x291   :  { %8779 = vrot.lane.b32.xlu0 %v9511_v43, %s9187_s22  ;;  %v1345_v24 = vsel %vm1341_vm15, %v1339_v4, %v1343_v18  ;;  %v561_v30 = vsel %vm557_vm0, %v555_v25, %v559_v5  ;;  %v962_v55 = vsel %vm438_vm6, %v9692_v53, -inf }
 0x292   :  { %v9660_v10 = vsel %vm435_vm2, %v1345_v24, -1e+30  ;;  %v9670_v35 = vsel %vm435_vm2, %v561_v30, -1e+30  ;;  %v825_v21 = vsel %vm821_vm4, %v819_v32, %v823_v37 }
 0x293   :  { %1218 = vmax.xlane.f32.xlu1 %v1217_v48  ;;  %v1351_v6 = vsel %vm438_vm6, %v9660_v10, -inf  ;;  %v567_v20 = vsel %vm438_vm6, %v9670_v35, -inf  ;;  %v1079_v48 = vmul.f32 0.2, %v1075_v34 }
 0x295   :  { %v1081_v54 = vsel %vm1077_vm7, %v1075_v34, %v1079_v48 }
 0x296   :  { %v9698_v58 = vsel %vm435_vm2, %v1081_v54, -1e+30 }
 0x297   :  { %1349 = vmax.xlane.f32.xlu1 %v1348_v52  ;;  %v1087_v59 = vsel %vm438_vm6, %v9698_v58, -inf }
 0x2a8   :  { %8784 = vrot.lane.b32.xlu1 %v9511_v43, %s9188_s23 }
 0x2b0   :  { %1221 = vmax.xlane.f32.xlu0 %v1220_v26 }
 0x2b4   :  { %1352 = vmax.xlane.f32.xlu0 %v1351_v6 }
 0x2ca   :  { %8789 = vrot.lane.b32.xlu0 %v9511_v43, %s9189_s24  ;;  %v9686_v43 = vsel %vm435_vm2, %v825_v21, -1e+30 }
 0x2cb   :  { %v831_v52 = vsel %vm438_vm6, %v9686_v43, -inf }
 0x2cc   :  { %568 = vmax.xlane.f32.xlu1 %v567_v20 }
 0x2d0   :  { %701 = vmax.xlane.f32.xlu1 %v700_v33 }
 0x2d4   :  { %832 = vmax.xlane.f32.xlu1 %v831_v52 }
 0x2d8   :  { %963 = vmax.xlane.f32.xlu1 %v962_v55 }
 0x2dc   :  { %1088 = vmax.xlane.f32.xlu1 %v1087_v59 }
 0x2ed   :  { %8794 = vrot.lane.b32.xlu1 %v9513_v44, %s9187_s22 }
 0x308   :  { %v444_v3 = vpop.xlane.xlu0 %443  ;;  %v441_v4 = vpop.xlane.xlu1 %440 }
 0x309   :  { %v446_v7 = vsub.f32 %v9583_v38, %v444_v3  ;;  %v445_v18 = vsub.f32 %v9587_v39, %v441_v4 }
 0x30b   :  { %v449_v24 = vmul.f32 1.442695, %v446_v7  ;;  %v447_v26 = vmul.f32 1.442695, %v445_v18 }
 0x30c   :  { %v8780_v6 = vpop.permute.xlu0 %8779  ;;  %v566_v25 = vpop.xlane.xlu1 %565 }
 0x30d   :  { %8910 = vpow2.f32 %v449_v24  ;;  %v8782_v5 = vunpack.i.h.bf16 %v8780_v6  ;;  %v8781_v28 = vunpack.i.l.bf16 %v8780_v6  ;;  %v570_v30 = vsub.f32 %v9595_v49, %v566_v25 }
 0x30e   :  { %8912 = vpow2.f32 %v447_v26 }
 0x30f   :  { %v572_v31 = vmul.f32 1.442695, %v570_v30  ;;  %v9707_v32 = vpack.c.bf16 %v8782_v5, %v8781_v28 }
 0x310   :  { %v699_v36 = vpop.xlane.xlu1 %698 }
 0x311   :  { %8914 = vpow2.f32 %v572_v31  ;;  %v703_v37 = vsub.f32 %v9607_v56, %v699_v36  ;;  %7947 = vmatprep.subr.bf16.mxu1 %v9707_v32 }
 0x313   :  { %v705_v38 = vmul.f32 1.442695, %v703_v37 }
 0x314   :  { %v830_v39 = vpop.xlane.xlu1 %829 }
 0x315   :  { %8916 = vpow2.f32 %v705_v38  ;;  %v834_v41 = vsub.f32 %v9618_v11, %v830_v39 }
 0x317   :  { %v9712_v20 = vpop.eup %8910  ;;  %v836_v21 = vmul.f32 1.442695, %v834_v41 }
 0x318   :  { %v9714_v22 = vpop.eup %8912  ;;  %v961_v49 = vpop.xlane.xlu1 %960  ;;  %v454_v34 = vsel %vm438_vm6, %v9712_v20, 0.0 }
 0x319   :  { %8918 = vpow2.f32 %v836_v21  ;;  %v965_v33 = vsub.f32 %v9625_v27, %v961_v49  ;;  %455 = vadd.xlane.f32.xlu0 %v454_v34  ;;  %v451_v56 = vsel %vm438_vm6, %v9714_v22, 0.0 }
 0x31a   :  { %452 = vadd.xlane.f32.xlu1 %v451_v56 }
 0x31b   :  { %v9721_v42 = vpop.eup %8914  ;;  %v967_v11 = vmul.f32 1.442695, %v965_v33 }
 0x31c   :  { %v1086_v48 = vpop.xlane.xlu1 %1085  ;;  %v576_v52 = vsel %vm438_vm6, %v9721_v42, 0.0 }
 0x31d   :  { %8920 = vpow2.f32 %v967_v11  ;;  %v1090_v54 = vsub.f32 %v9631_v16, %v1086_v48 }
 0x31e   :  { %577 = vadd.xlane.f32.xlu1 %v576_v52 }
 0x31f   :  { %v9726_v55 = vpop.eup %8916  ;;  %v1092_v59 = vmul.f32 1.442695, %v1090_v54 }
 0x320   :  { %v1219_v27 = vpop.xlane.xlu1 %1218  ;;  %v709_v3 = vsel %vm438_vm6, %v9726_v55, 0.0 }
 0x321   :  { %8922 = vpow2.f32 %v1092_v59  ;;  %v1223_v4 = vsub.f32 %v9637_v40, %v1219_v27 }
 0x322   :  { %710 = vadd.xlane.f32.xlu1 %v709_v3 }
 0x323   :  { %v9731_v7 = vpop.eup %8918  ;;  %v1225_v18 = vmul.f32 1.442695, %v1223_v4 }
 0x324   :  { %v1350_v24 = vpop.xlane.xlu1 %1349  ;;  %v840_v26 = vsel %vm438_vm6, %v9731_v7, 0.0 }
 0x325   :  { %8924 = vpow2.f32 %v1225_v18  ;;  %v1354_v16 = vsub.f32 %v9645_v51, %v1350_v24 }
 0x326   :  { %841 = vadd.xlane.f32.xlu1 %v840_v26 }
 0x327   :  { %v9736_v6 = vpop.eup %8920  ;;  %v1356_v25 = vmul.f32 1.442695, %v1354_v16 }
 0x328   :  { %v971_v5 = vsel %vm438_vm6, %v9736_v6, 0.0  ;;  %v9757_v34 = vpop.permute.xlu1 %8784 }
 0x329   :  { %8926 = vpow2.f32 %v1356_v25 }
 0x32a   :  { %972 = vadd.xlane.f32.xlu1 %v971_v5 }
 0x32b   :  { %v9740_v40 = vpop.eup %8922 }
 0x32c   :  { %v1096_v28 = vsel %vm438_vm6, %v9740_v40, 0.0 }
 0x32e   :  { %1097 = vadd.xlane.f32.xlu1 %v1096_v28 }
 0x32f   :  { %v9744_v30 = vpop.eup %8924 }
 0x330   :  { %v1229_v51 = vsel %vm438_vm6, %v9744_v30, 0.0 }
 0x332   :  { %1230 = vadd.xlane.f32.xlu1 %v1229_v51 }
 0x333   :  { %v9748_v31 = vpop.eup %8926 }
 0x334   :  { %v1360_v36 = vsel %vm438_vm6, %v9748_v31, 0.0 }
 0x336   :  { %1361 = vadd.xlane.f32.xlu1 %v1360_v36 }
 0x33d   :  { %v1222_v37 = vpop.xlane.xlu0 %1221 }
 0x341   :  { %v1353_v38 = vpop.xlane.xlu0 %1352 }
 0x342   :  { %v1355_v39 = vsub.f32 %v9660_v10, %v1353_v38 }
 0x344   :  { %v1358_v41 = vmul.f32 1.442695, %v1355_v39 }
 0x346   :  { %8928 = vpow2.f32 %v1358_v41  ;;  %v9793_v41 = vpop.permute.xlu0 %8789 }
 0x350   :  { %v9753_v21 = vpop.eup %8928 }
 0x351   :  { %v1363_v49 = vsel %vm438_vm6, %v9753_v21, 0.0 }
 0x352   :  { %1364 = vadd.xlane.f32.xlu1 %v1363_v49 }
 0x359   :  { %v569_v33 = vpop.xlane.xlu1 %568 }
 0x35a   :  { %v571_v56 = vsub.f32 %v9670_v35, %v569_v33  ;;  %v1224_v35 = vsub.f32 %v9654_v9, %v1222_v37 }
 0x35c   :  { %v574_v11 = vmul.f32 1.442695, %v571_v56  ;;  %v1227_v25 = vmul.f32 1.442695, %v1224_v35 }
 0x35d   :  { %v702_v48 = vpop.xlane.xlu1 %701 }
 0x35e   :  { %8930 = vpow2.f32 %v574_v11  ;;  %v704_v52 = vsub.f32 %v9679_v8, %v702_v48 }
 0x360   :  { %v707_v54 = vmul.f32 1.442695, %v704_v52 }
 0x361   :  { %v833_v10 = vpop.xlane.xlu1 %832 }
 0x362   :  { %8932 = vpow2.f32 %v707_v54  ;;  %v835_v59 = vsub.f32 %v9686_v43, %v833_v10  ;;  %v8787_v10 = vunpack.i.h.bf16 %v9757_v34 }
 0x363   :  { %8804 = vrot.lane.b32.xlu1 %v9513_v44, %s9189_s24 }
 0x364   :  { %v838_v27 = vmul.f32 1.442695, %v835_v59  ;;  %v8786_v59 = vunpack.i.l.bf16 %v9757_v34 }
 0x365   :  { %v964_v3 = vpop.xlane.xlu1 %963 }
 0x366   :  { %8934 = vpow2.f32 %v838_v27  ;;  %v966_v4 = vsub.f32 %v9692_v53, %v964_v3  ;;  %v7950_v35 = vpack.c.bf16 %v8787_v10, %v8786_v59 }
 0x368   :  { %v9765_v18 = vpop.eup %8930  ;;  %v969_v24 = vmul.f32 1.442695, %v966_v4 }
 0x369   :  { %v1089_v26 = vpop.xlane.xlu1 %1088  ;;  %v579_v8 = vsel %vm438_vm6, %v9765_v18, 0.0 }
 0x36a   :  { %8936 = vpow2.f32 %v969_v24  ;;  %v1091_v43 = vsub.f32 %v9698_v58, %v1089_v26  ;;  %580 = vadd.xlane.f32.xlu0 %v579_v8 }
 0x36c   :  { %v9771_v16 = vpop.eup %8932  ;;  %v1094_v5 = vmul.f32 1.442695, %v1091_v43 }
 0x36d   :  { %v712_v53 = vsel %vm438_vm6, %v9771_v16, 0.0  ;;  %v9795_v49 = vpop.permute.xlu1 %8794 }
 0x36e   :  { %8938 = vpow2.f32 %v1094_v5  ;;  %713 = vadd.xlane.f32.xlu0 %v712_v53 }
 0x36f   :  { %8940 = vpow2.f32 %v1227_v25 }
 0x370   :  { %v9775_v28 = vpop.eup %8934 }
 0x371   :  { %v843_v9 = vsel %vm438_vm6, %v9775_v28, 0.0 }
 0x372   :  { %844 = vadd.xlane.f32.xlu0 %v843_v9 }
 0x374   :  { %v9779_v51 = vpop.eup %8936 }
 0x375   :  { %v974_v58 = vsel %vm438_vm6, %v9779_v51, 0.0 }
 0x376   :  { %975 = vadd.xlane.f32.xlu0 %v974_v58 }
 0x378   :  { %v9783_v36 = vpop.eup %8938 }
 0x379   :  { %v1099_v37 = vsel %vm438_vm6, %v9783_v36, 0.0  ;;  %v9787_v38 = vpop.eup %8940 }
 0x37a   :  { %1100 = vadd.xlane.f32.xlu0 %v1099_v37  ;;  %v1232_v39 = vsel %vm438_vm6, %v9787_v38, 0.0 }
 0x37e   :  { %1233 = vadd.xlane.f32.xlu0 %v1232_v39 }
 0x394   :  { %8799 = vrot.lane.b32.xlu0 %v9513_v44, %s9188_s23 }
 0x3a6   :  { %v456_v33 = vpop.xlane.xlu0 %455 }
 0x3a7   :  { %8942 = vrcp.f32 %v456_v33  ;;  %v453_v56 = vpop.xlane.xlu1 %452 }
 0x3a8   :  { %8944 = vrcp.f32 %v453_v56  ;;  %v8792_v56 = vunpack.i.h.bf16 %v9793_v41 }
 0x3ab   :  { %v578_v11 = vpop.xlane.xlu1 %577 }
 0x3ac   :  { %8946 = vrcp.f32 %v578_v11  ;;  %v8791_v11 = vunpack.i.l.bf16 %v9793_v41 }
 0x3ae   :  { %v7954_v59 = vpack.c.bf16 %v8792_v56, %v8791_v11  ;;  %v1549_v56 = vld [vmem:[%s13064_s26 + $0x48] sm:$0xff]  ;;  %v1551_v11 = vld [vmem:[%s13064_s26 + $0x58] sm:$0xff] }
 0x3af   :  { %v711_v48 = vpop.xlane.xlu1 %710 }
 0x3b1   :  { %v8943_v52 = vpop.eup %8942 }
 0x3b2   :  { %v8945_v54 = vpop.eup %8944  ;;  %v460_v27 = vmul.f32 %v8943_v52, %v9712_v20 }
 0x3b3   :  { %v842_v44 = vpop.xlane.xlu1 %841  ;;  %v459_v3 = vmul.f32 %v8945_v54, %v9714_v22 }
 0x3b5   :  { %7686 = vmatprep.mubr.msk.f32.mxu1 %vm438_vm6, %v459_v3 }
 0x3b6   :  { %v8947_v4 = vpop.eup %8946  ;;  %7687 = vmatmul.mubr.msk.f32.vlgmr.msra.gmra.mrb[8].mxu1 %vm438_vm6, %v460_v27 }
 0x3b7   :  { %7949 = vmatpush3.bf16.msra.mxu1 %v9707_v32  ;;  %v973_v24 = vpop.xlane.xlu1 %972  ;;  %v584_v26 = vmul.f32 %v8947_v4, %v9721_v42  ;;  %v8797_v4 = vunpack.i.h.bf16 %v9795_v49 }
 0x3b8   :  { %7951 = vmatprep.subr.bf16.mxu1 %v7950_v35 }
 0x3b9   :  { %7693 = vmatprep.mubr.msk.f32.mxu1 %vm438_vm6, %v584_v26 }
 0x3bb   :  { %v1098_v34 = vpop.xlane.xlu1 %1097 }
 0x3bf   :  { %v1231_v8 = vpop.xlane.xlu1 %1230 }
 0x3c3   :  { %v1362_v20 = vpop.xlane.xlu1 %1361 }
 0x3c4   :  { %8948 = vrcp.f32 %v1362_v20 }
 0x3ce   :  { %v8949_v43 = vpop.eup %8948 }
 0x3cf   :  { %v1368_v22 = vmul.f32 %v8949_v43, %v9748_v31 }
 0x3d1   :  { %7735 = vmatprep.mubr.msk.f32.mxu0 %vm438_vm6, %v1368_v22 }
 0x3df   :  { %v1365_v25 = vpop.xlane.xlu1 %1364 }
 0x3e0   :  { %8950 = vrcp.f32 %v1365_v25 }
 0x3e1   :  { %8952 = vrcp.f32 %v711_v48 }
 0x3e3   :  { %v8805_v5 = vpop.permute.xlu1 %8804 }
 0x3e4   :  { %v8807_v53 = vunpack.i.h.bf16 %v8805_v5  ;;  %v8806_v32 = vunpack.i.l.bf16 %v8805_v5 }
 0x3e6   :  { %v7970_v9 = vpack.c.bf16 %v8807_v53, %v8806_v32  ;;  %v1541_v32 = vld [vmem:[%s13064_s26 + $0x8] sm:$0xff] }
 0x3e8   :  { %7971 = vmatprep.subr.bf16.mxu0 %v7970_v9 }
 0x3e9   :  { %7973 = vmatpush3.bf16.msra.mxu0 %v7970_v9 }
 0x3ea   :  { %v8951_v42 = vpop.eup %8950 }
 0x3eb   :  { %v1369_v58 = vmul.f32 %v8951_v42, %v9753_v21  ;;  %v8953_v33 = vpop.eup %8952  ;;  %v1542_v42 = vld [vmem:[%s13064_s26 + $0x10] sm:$0xff] }
 0x3ec   :  { %v717_v48 = vmul.f32 %v8953_v33, %v9726_v55  ;;  %v8796_v55 = vunpack.i.l.bf16 %v9795_v49  ;;  %v1546_v33 = vld [vmem:[%s13064_s26 + $0x30] sm:$0xff] }
 0x3ed   :  { %7736 = vmatmul.mubr.msk.f32.vlgmr.msra.gmra.mrb[4].mxu0 %vm438_vm6, %v1369_v58  ;;  %v1547_v58 = vld [vmem:[%s13064_s26 + $0x38] sm:$0xff] }
 0x3f7   :  { %v581_v37 = vpop.xlane.xlu0 %580 }
 0x3f8   :  { %8954 = vrcp.f32 %v581_v37 }
 0x3f9   :  { %8956 = vrcp.f32 %v842_v44 }
 0x3fb   :  { %v714_v31 = vpop.xlane.xlu0 %713 }
 0x3fc   :  { %8958 = vrcp.f32 %v714_v31 }
 0x3fd   :  { %8960 = vrcp.f32 %v973_v24 }
 0x3ff   :  { %v845_v39 = vpop.xlane.xlu0 %844 }
 0x400   :  { %8962 = vrcp.f32 %v845_v39  ;;  %v1544_v39 = vld [vmem:[%s13064_s26 + $0x20] sm:$0xff] }
 0x401   :  { %8964 = vrcp.f32 %v1098_v34  ;;  %v7962_v34 = vpack.c.bf16 %v8797_v4, %v8796_v55  ;;  %v1557_v4 = vld [vmem:[%s13064_s26 + $0x88] sm:$0xff]  ;;  %v1559_v55 = vld [vmem:[%s13064_s26 + $0x98] sm:$0xff] }
 0x402   :  { %v8955_v52 = vpop.eup %8954 }
 0x403   :  { %v976_v54 = vpop.xlane.xlu0 %975  ;;  %v585_v21 = vmul.f32 %v8955_v52, %v9765_v18  ;;  %v8957_v10 = vpop.eup %8956  ;;  %v7980_v52 = vpack.c.bf16 %v1546_v33, %v1544_v39  ;;  %v1572_v33 = vld [vmem:[%s13064_s26 + $0x100] sm:$0xff] }
 0x404   :  { %8966 = vrcp.f32 %v976_v54  ;;  %v848_v3 = vmul.f32 %v8957_v10, %v9731_v7  ;;  %v7982_v54 = vpack.c.bf16 %v1551_v11, %v1549_v56  ;;  %v1553_v10 = vld [vmem:[%s13064_s26 + $0x68] sm:$0xff]  ;;  %v1574_v56 = vld [vmem:[%s13064_s26 + $0x110] sm:$0xff] }
 0x405   :  { %7694 = vmatmul.mubr.msk.f32.vlgmr.msra.gmra.mrb[10].mxu1 %vm438_vm6, %v585_v21  ;;  %8968 = vrcp.f32 %v1231_v8  ;;  %v1548_v21 = vld [vmem:[%s13064_s26 + $0x40] sm:$0xff]  ;;  %v1577_v11 = vld [vmem:[%s13064_s26 + $0x128] sm:$0xff] }
 0x406   :  { %v8959_v27 = vpop.eup %8958  ;;  %7953 = vmatpush3.bf16.msra.mxu1 %v7950_v35  ;;  %7700 = vmatprep.mubr.msk.f32.mxu1 %vm438_vm6, %v717_v48  ;;  %v1550_v48 = vld [vmem:[%s13064_s26 + $0x50] sm:$0xff] }
 0x407   :  { %v718_v44 = vmul.f32 %v8959_v27, %v9771_v16  ;;  %7955 = vmatprep.subr.bf16.mxu1 %v7954_v59  ;;  %v1101_v41 = vpop.xlane.xlu0 %1100  ;;  %v8961_v18 = vpop.eup %8960  ;;  %v7984_v27 = vpack.c.bf16 %v1550_v48, %v1548_v21  ;;  %v1576_v21 = vld [vmem:[%s13064_s26 + $0x120] sm:$0xff]  ;;  %v1578_v48 = vld [vmem:[%s13064_s26 + $0x130] sm:$0xff] }
 0x408   :  { %8970 = vrcp.f32 %v1101_v41  ;;  %v979_v26 = vmul.f32 %v8961_v18, %v9736_v6  ;;  %v1552_v41 = vld [vmem:[%s13064_s26 + $0x60] sm:$0xff] }
 0x409   :  { %7701 = vmatmul.mubr.msk.f32.vlgmr.msra.gmra.mrb[12].mxu1 %vm438_vm6, %v718_v44 }
 0x40a   :  { %v8963_v24 = vpop.eup %8962  ;;  %7957 = vmatpush3.bf16.msra.mxu1 %v7954_v59  ;;  %7707 = vmatprep.mubr.msk.f32.mxu1 %vm438_vm6, %v848_v3  ;;  %v1555_v59 = vld [vmem:[%s13064_s26 + $0x78] sm:$0xff]  ;;  %v1554_v3 = vld [vmem:[%s13064_s26 + $0x70] sm:$0xff] }
 0x40b   :  { %7959 = vmatprep.subr.bf16.mxu1 %v9515_v45  ;;  %v1234_v35 = vpop.xlane.xlu0 %1233  ;;  %v849_v16 = vmul.f32 %v8963_v24, %v9775_v28  ;;  %v8965_v7 = vpop.eup %8964  ;;  %v7986_v44 = vpack.c.bf16 %v1555_v59, %v1553_v10  ;;  %v8012_v59 = vpack.c.bf16 %v1578_v48, %v1576_v21  ;;  %v1599_v21 = vld [vmem:[%s13064_s26 + $0x1d8] sm:$0xff]  ;;  %v1596_v48 = vld [vmem:[%s13064_s26 + $0x1c0] sm:$0xff] }
 0x40c   :  { %8972 = vrcp.f32 %v1234_v35  ;;  %v1104_v28 = vmul.f32 %v8965_v7, %v9740_v40  ;;  %v7988_v35 = vpack.c.bf16 %v1554_v3, %v1552_v41  ;;  %v1558_v7 = vld [vmem:[%s13064_s26 + $0x90] sm:$0xff]  ;;  %v1580_v41 = vld [vmem:[%s13064_s26 + $0x140] sm:$0xff] }
 0x40d   :  { %7708 = vmatmul.mubr.msk.f32.vlgmr.msra.gmra.mrb[14].mxu1 %vm438_vm6, %v849_v16  ;;  %v7990_v16 = vpack.c.bf16 %v1559_v55, %v1557_v4  ;;  %v1582_v4 = vld [vmem:[%s13064_s26 + $0x150] sm:$0xff] }
 0x40e   :  { %v8967_v8 = vpop.eup %8966  ;;  %7961 = vmatpush3.bf16.msra.mxu1 %v9515_v45  ;;  %7714 = vmatprep.mubr.msk.f32.mxu1 %vm438_vm6, %v979_v26  ;;  %v1556_v26 = vld [vmem:[%s13064_s26 + $0x80] sm:$0xff]  ;;  %v8016_v55 = vpack.c.bf16 %v1582_v4, %v1580_v41 }
 0x40f   :  { %7963 = vmatprep.subr.bf16.mxu1 %v7962_v34  ;;  %v8800_v49 = vpop.permute.xlu0 %8799  ;;  %v980_v20 = vmul.f32 %v8967_v8, %v9779_v51  ;;  %v8969_v25 = vpop.eup %8968  ;;  %v1563_v8 = vld [vmem:[%s13064_s26 + $0xb8] sm:$0xff]  ;;  %v1600_v4 = vld [vmem:[%s13064_s26 + $0x1e0] sm:$0xff] }
 0x410   :  { %v8802_v43 = vunpack.i.h.bf16 %v8800_v49  ;;  %v8801_v22 = vunpack.i.l.bf16 %v8800_v49  ;;  %v1237_v53 = vmul.f32 %v8969_v25, %v9744_v30  ;;  %v1540_v30 = vld [vmem:[%s13064_s26] sm:$0xff]  ;;  %v7992_v49 = vpack.c.bf16 %v1558_v7, %v1556_v26  ;;  %v1567_v25 = vld [vmem:[%s13064_s26 + $0xd8] sm:$0xff] }
 0x411   :  { %7715 = vmatmul.mubr.msk.f32.vlgmr.msra.gmra.mrb[16].mxu1 %vm438_vm6, %v980_v20  ;;  %v7976_v37 = vpack.c.bf16 %v1542_v42, %v1540_v30  ;;  %v1568_v30 = vld [vmem:[%s13064_s26 + $0xe0] sm:$0xff]  ;;  %v1573_v42 = vld [vmem:[%s13064_s26 + $0x108] sm:$0xff]  ;;  %v1587_v26 = vld [vmem:[%s13064_s26 + $0x178] sm:$0xff] }
 0x412   :  { %v8971_v6 = vpop.eup %8970  ;;  %7965 = vmatpush3.bf16.msra.mxu1 %v7962_v34  ;;  %7721 = vmatprep.mubr.msk.f32.mxu1 %vm438_vm6, %v1104_v28  ;;  %v7966_v5 = vpack.c.bf16 %v8802_v43, %v8801_v22  ;;  %v1561_v34 = vld [vmem:[%s13064_s26 + $0xa8] sm:$0xff]  ;;  %v1560_v43 = vld [vmem:[%s13064_s26 + $0xa0] sm:$0xff]  ;;  %v1562_v22 = vld [vmem:[%s13064_s26 + $0xb0] sm:$0xff] }
 0x413   :  { %v1105_v45 = vmul.f32 %v8971_v6, %v9783_v36  ;;  %v1543_v36 = vld [vmem:[%s13064_s26 + $0x18] sm:$0xff]  ;;  %v7994_v20 = vpack.c.bf16 %v1563_v8, %v1561_v34  ;;  %v1565_v28 = vld [vmem:[%s13064_s26 + $0xc8] sm:$0xff]  ;;  %v7996_v6 = vpack.c.bf16 %v1562_v22, %v1560_v43  ;;  %v1584_v7 = vld [vmem:[%s13064_s26 + $0x160] sm:$0xff] }
 0x414   :  { %7967 = vmatprep.subr.bf16.mxu1 %v7966_v5  ;;  %v7974_v9 = vpack.c.bf16 %v1543_v36, %v1541_v32  ;;  %v1591_v43 = vld [vmem:[%s13064_s26 + $0x198] sm:$0xff] }
 0x415   :  { %7722 = vmatmul.mubr.msk.f32.vlgmr.msra.gmra.mrb[18].mxu1 %vm438_vm6, %v1105_v45  ;;  %v1564_v45 = vld [vmem:[%s13064_s26 + $0xc0] sm:$0xff] }
 0x416   :  { %v8973_v51 = vpop.eup %8972  ;;  %7969 = vmatpush3.bf16.msra.mxu1 %v7966_v5  ;;  %7728 = vmatprep.mubr.msk.f32.mxu1 %vm438_vm6, %v1237_v53  ;;  %v7998_v5 = vpack.c.bf16 %v1567_v25, %v1565_v28  ;;  %v1566_v53 = vld [vmem:[%s13064_s26 + $0xd0] sm:$0xff]  ;;  %v1588_v25 = vld [vmem:[%s13064_s26 + $0x180] sm:$0xff] }
 0x417   :  { %v1238_v40 = vmul.f32 %v8973_v51, %v9787_v38  ;;  %v1545_v38 = vld [vmem:[%s13064_s26 + $0x28] sm:$0xff]  ;;  %7975 = vmatprep.subr.bf16.mxu1 %v7974_v9  ;;  %v8000_v32 = vpack.c.bf16 %v1566_v53, %v1564_v45  ;;  %v1570_v9 = vld [vmem:[%s13064_s26 + $0xf0] sm:$0xff] }
 0x418   :  { %v7978_v31 = vpack.c.bf16 %v1547_v58, %v1545_v38  ;;  %v1569_v51 = vld [vmem:[%s13064_s26 + $0xe8] sm:$0xff]  ;;  %v1575_v38 = vld [vmem:[%s13064_s26 + $0x118] sm:$0xff]  ;;  %v8004_v58 = vpack.c.bf16 %v1570_v9, %v1568_v30  ;;  %v1594_v30 = vld [vmem:[%s13064_s26 + $0x1b0] sm:$0xff] }
 0x419   :  { %7729 = vmatmul.mubr.msk.f32.vlgmr.msra.gmra.mrb[20].mxu1 %vm438_vm6, %v1238_v40  ;;  %v1571_v40 = vld [vmem:[%s13064_s26 + $0xf8] sm:$0xff] }
 0x41a   :  { %7977 = vmatpush1.bf16.msra.mxu1 %v7976_v37  ;;  %v8002_v36 = vpack.c.bf16 %v1571_v40, %v1569_v51  ;;  %v8006_v37 = vpack.c.bf16 %v1575_v38, %v1573_v42  ;;  %v1593_v51 = vld [vmem:[%s13064_s26 + $0x1a8] sm:$0xff]  ;;  %v1595_v40 = vld [vmem:[%s13064_s26 + $0x1b8] sm:$0xff] }
 0x41b   :  { %7979 = vmatprep.subr.bf16.mxu1 %v7978_v31 }
 0x41e   :  { %7981 = vmatpush1.bf16.msra.mxu1 %v7980_v52  ;;  %v8008_v52 = vpack.c.bf16 %v1574_v56, %v1572_v33 }
 0x41f   :  { %7983 = vmatprep.subr.bf16.mxu1 %v7982_v54  ;;  %v1579_v54 = vld [vmem:[%s13064_s26 + $0x138] sm:$0xff] }
 0x420   :  { %v8010_v10 = vpack.c.bf16 %v1579_v54, %v1577_v11  ;;  %v1597_v54 = vld [vmem:[%s13064_s26 + $0x1c8] sm:$0xff] }
 0x422   :  { %7985 = vmatpush1.bf16.msra.mxu1 %v7984_v27  ;;  %v1581_v27 = vld [vmem:[%s13064_s26 + $0x148] sm:$0xff] }
 0x423   :  { %7987 = vmatprep.subr.bf16.mxu1 %v7986_v44  ;;  %v1583_v44 = vld [vmem:[%s13064_s26 + $0x158] sm:$0xff] }
 0x424   :  { %v8014_v3 = vpack.c.bf16 %v1583_v44, %v1581_v27  ;;  %v1601_v27 = vld [vmem:[%s13064_s26 + $0x1e8] sm:$0xff]  ;;  %v1603_v44 = vld [vmem:[%s13064_s26 + $0x1f8] sm:$0xff] }
 0x426   :  { %7989 = vmatpush1.bf16.msra.mxu1 %v7988_v35 }
 0x427   :  { %7991 = vmatprep.subr.bf16.mxu1 %v7990_v16  ;;  %v1585_v16 = vld [vmem:[%s13064_s26 + $0x168] sm:$0xff] }
 0x428   :  { %v8018_v8 = vpack.c.bf16 %v1587_v26, %v1585_v16  ;;  %v1698_v16 = vld [vmem:[%s13026_s7 + $0x88] sm:$0xff]  ;;  %v1681_v26 = vld [vmem:[%s13026_s7] sm:$0xff] }
 0x42a   :  { %7993 = vmatpush1.bf16.msra.mxu1 %v7992_v49  ;;  %v1586_v49 = vld [vmem:[%s13064_s26 + $0x170] sm:$0xff] }
 0x42b   :  { %7995 = vmatprep.subr.bf16.mxu1 %v7994_v20  ;;  %v1589_v20 = vld [vmem:[%s13064_s26 + $0x188] sm:$0xff]  ;;  %v8020_v22 = vpack.c.bf16 %v1586_v49, %v1584_v7  ;;  %v1700_v49 = vld [vmem:[%s13026_s7 + $0x98] sm:$0xff] }
 0x42c   :  { %v8022_v28 = vpack.c.bf16 %v1591_v43, %v1589_v20 }
 0x42e   :  { %7997 = vmatpush1.bf16.msra.mxu1 %v7996_v6  ;;  %v1590_v6 = vld [vmem:[%s13064_s26 + $0x190] sm:$0xff] }
 0x42f   :  { %7999 = vmatprep.subr.bf16.mxu1 %v7998_v5  ;;  %v8024_v45 = vpack.c.bf16 %v1590_v6, %v1588_v25  ;;  %v1702_v25 = vld [vmem:[%s13026_s7 + $0xa8] sm:$0xff] }
 0x432   :  { %8001 = vmatpush1.bf16.msra.mxu1 %v8000_v32  ;;  %v1592_v32 = vld [vmem:[%s13064_s26 + $0x1a0] sm:$0xff] }
 0x433   :  { %8003 = vmatprep.subr.bf16.mxu1 %v8002_v36  ;;  %v8026_v36 = vpack.c.bf16 %v1595_v40, %v1593_v51  ;;  %v8028_v42 = vpack.c.bf16 %v1594_v30, %v1592_v32  ;;  %v1703_v51 = vld [vmem:[%s13026_s7 + $0xb0] sm:$0xff]  ;;  %v1704_v40 = vld [vmem:[%s13026_s7 + $0xb8] sm:$0xff] }
 0x434   :  { %v1687_v30 = vld [vmem:[%s13026_s7 + $0x30] sm:$0xff] }
 0x436   :  { %8005 = vmatpush1.bf16.msra.mxu1 %v8004_v58 }
 0x437   :  { %8007 = vmatprep.subr.bf16.mxu1 %v8006_v37 }
 0x43a   :  { %8009 = vmatpush1.bf16.msra.mxu1 %v8008_v52 }
 0x43b   :  { %8011 = vmatprep.subr.bf16.mxu1 %v8010_v10  ;;  %v8030_v10 = vpack.c.bf16 %v1599_v21, %v1597_v54  ;;  %v1707_v54 = vld [vmem:[%s13026_s7 + $0xd0] sm:$0xff]  ;;  %v1708_v21 = vld [vmem:[%s13026_s7 + $0xd8] sm:$0xff] }
 0x43e   :  { %8013 = vmatpush1.bf16.msra.mxu1 %v8012_v59  ;;  %v1598_v59 = vld [vmem:[%s13064_s26 + $0x1d0] sm:$0xff] }
 0x43f   :  { %8015 = vmatprep.subr.bf16.mxu1 %v8014_v3  ;;  %v8032_v41 = vpack.c.bf16 %v1598_v59, %v1596_v48  ;;  %v8034_v3 = vpack.c.bf16 %v1603_v44, %v1601_v27  ;;  %v1691_v59 = vld [vmem:[%s13026_s7 + $0x50] sm:$0xff]  ;;  %v1692_v27 = vld [vmem:[%s13026_s7 + $0x58] sm:$0xff]  ;;  %v1709_v44 = vld [vmem:[%s13026_s7 + $0xe0] sm:$0xff] }
 0x442   :  { %8017 = vmatpush1.bf16.msra.mxu1 %v8016_v55  ;;  %v1602_v55 = vld [vmem:[%s13064_s26 + $0x1f0] sm:$0xff] }
 0x443   :  { %8019 = vmatprep.subr.bf16.mxu1 %v8018_v8  ;;  %v1699_v8 = vld [vmem:[%s13026_s7 + $0x90] sm:$0xff] }
 0x444   :  { %v8042_v43 = vpack.c.bf16 %v1700_v49, %v1699_v8  ;;  %v1696_v8 = vld [vmem:[%s13026_s7 + $0x78] sm:$0xff] }
 0x446   :  { %8021 = vmatpush1.bf16.msra.mxu1 %v8020_v22  ;;  %v1683_v22 = vld [vmem:[%s13026_s7 + $0x10] sm:$0xff] }
 0x447   :  { %8023 = vmatprep.subr.bf16.mxu1 %v8022_v28  ;;  %v1701_v28 = vld [vmem:[%s13026_s7 + $0xa0] sm:$0xff] }
 0x44a   :  { %8025 = vmatpush1.bf16.msra.mxu1 %v8024_v45  ;;  %v1685_v45 = vld [vmem:[%s13026_s7 + $0x20] sm:$0xff] }
 0x44b   :  { %8027 = vmatprep.subr.bf16.mxu1 %v8026_v36  ;;  %v8050_v36 = vpack.c.bf16 %v1704_v40, %v1703_v51 }
 0x44e   :  { %8029 = vmatpush1.bf16.msra.mxu1 %v8028_v42  ;;  %v1705_v42 = vld [vmem:[%s13026_s7 + $0xc0] sm:$0xff] }
 0x44f   :  { %8031 = vmatprep.subr.bf16.mxu1 %v8030_v10  ;;  %v8058_v10 = vpack.c.bf16 %v1708_v21, %v1707_v54 }
 0x452   :  { %8033 = vmatpush1.bf16.msra.mxu1 %v8032_v41  ;;  %v1710_v41 = vld [vmem:[%s13026_s7 + $0xe8] sm:$0xff] }
 0x453   :  { %8035 = vmatprep.subr.bf16.mxu1 %v8034_v3  ;;  %v8060_v3 = vpack.c.bf16 %v1692_v27, %v1691_v59 }
 0x489   :  { %v9886_v18 = vpop.f32.mrb[8].mxu1 }
 0x48a   :  { %v9894_v24 = vpop.f32.mrb[9].mxu1 }
 0x4c0   :  { %v9944_v31 = vpop.f32.mrb[4].mxu0 }
 0x4c1   :  { %v9946_v39 = vpop.f32.mrb[5].mxu0 }
 0x4d8   :  { %v7695_v35 = vpop.f32.mrb[10].mxu1 }
 0x4d9   :  { %v666_v34 = vpop.f32.mrb[11].mxu1 }
 0x4da   :  { %1459 = vrot.lane.b32.xlu1 %v666_v34, %s9189_s24  ;;  %v1682_v34 = vld [vmem:[%s13026_s7 + $0x8] sm:$0xff] }
 0x4db   :  { %v8040_v20 = vpack.c.bf16 %v1682_v34, %v1681_v26  ;;  %v1695_v34 = vld [vmem:[%s13026_s7 + $0x70] sm:$0xff] }
 0x4dc   :  { %v7702_v5 = vpop.f32.mrb[12].mxu1  ;;  %v8068_v49 = vpack.c.bf16 %v1696_v8, %v1695_v34  ;;  %v1806_v34 = vld [vmem:[%s13028_s8 + $0x90] sm:$0xff]  ;;  %v1807_v8 = vld [vmem:[%s13028_s8 + $0x98] sm:$0xff] }
 0x4dd   :  { %v797_v53 = vpop.f32.mrb[13].mxu1 }
 0x4de   :  { %1467 = vrot.lane.b32.xlu1 %v797_v53, %s9188_s23  ;;  %v1686_v53 = vld [vmem:[%s13026_s7 + $0x28] sm:$0xff] }
 0x4df   :  { %v8048_v32 = vpack.c.bf16 %v1686_v53, %v1685_v45 }
 0x4e0   :  { %v7709_v9 = vpop.f32.mrb[14].mxu1 }
 0x4e1   :  { %v928_v38 = vpop.f32.mrb[15].mxu1 }
 0x4e2   :  { %1475 = vrot.lane.b32.xlu1 %v928_v38, %s9187_s22  ;;  %v1706_v38 = vld [vmem:[%s13026_s7 + $0xc8] sm:$0xff] }
 0x4e4   :  { %v10017_v58 = vpop.f32.mrb[16].mxu1 }
 0x4e5   :  { %v10019_v37 = vpop.f32.mrb[17].mxu1 }
 0x4e6   :  { %1461 = vrot.lane.b32.xlu1 %v7695_v35, %s9189_s24  ;;  %v8036_v35 = vpack.c.bf16 %v1602_v55, %v1600_v4  ;;  %v8062_v4 = vpack.c.bf16 %v1710_v41, %v1709_v44  ;;  %v1693_v55 = vld [vmem:[%s13026_s7 + $0x60] sm:$0xff] }
 0x4e8   :  { %v7723_v33 = vpop.f32.mrb[18].mxu1  ;;  %8037 = vmatpush1.bf16.msra.mxu1 %v8036_v35  ;;  %v1694_v35 = vld [vmem:[%s13026_s7 + $0x68] sm:$0xff] }
 0x4e9   :  { %v1186_v56 = vpop.f32.mrb[19].mxu1  ;;  %v8064_v26 = vpack.c.bf16 %v1694_v35, %v1693_v55 }
 0x4ea   :  { %1469 = vrot.lane.b32.xlu1 %v7702_v5, %s9188_s23  ;;  %1483 = vrot.lane.b32.xlu0 %v1186_v56, %s9189_s24  ;;  %v8046_v5 = vpack.c.bf16 %v1702_v25, %v1701_v28  ;;  %v8054_v56 = vpack.c.bf16 %v1706_v38, %v1705_v42  ;;  %v1520_v28 = vld [vmem:[%s13027_s5] sm:$0x3] }
 0x4ec   :  { %v7730_v11 = vpop.f32.mrb[20].mxu1 }
 0x4ed   :  { %v1317_v52 = vpop.f32.mrb[21].mxu1 }
 0x4ee   :  { %1477 = vrot.lane.b32.xlu1 %v7709_v9, %s9187_s22  ;;  %1491 = vrot.lane.b32.xlu0 %v1317_v52, %s9188_s23  ;;  %v1688_v9 = vld [vmem:[%s13026_s7 + $0x38] sm:$0xff]  ;;  %v1690_v52 = vld [vmem:[%s13026_s7 + $0x48] sm:$0xff] }
 0x4f2   :  { %1499 = vrot.lane.b32.xlu0 %v9946_v39, %s9187_s22  ;;  %v1697_v39 = vld [vmem:[%s13026_s7 + $0x80] sm:$0xff] }
 0x4f3   :  { %v8038_v7 = vpack.c.bf16 %v1698_v16, %v1697_v39  ;;  %v1711_v39 = vld [vmem:[%s13026_s7 + $0xf0] sm:$0xff]  ;;  %v1712_v16 = vld [vmem:[%s13026_s7 + $0xf8] sm:$0xff] }
 0x4f5   :  { %8039 = vmatprep.subr.bf16.mxu0 %v8038_v7  ;;  %v8066_v7 = vpack.c.bf16 %v1712_v16, %v1711_v39  ;;  %v1804_v39 = vld [vmem:[%s13028_s8 + $0x80] sm:$0xff]  ;;  %v1805_v16 = vld [vmem:[%s13028_s8 + $0x88] sm:$0xff] }
 0x4f6   :  { %1485 = vrot.lane.b32.xlu0 %v7723_v33, %s9189_s24  ;;  %8041 = vmatpush3.bf16.msra.mxu0 %v8040_v20  ;;  %v8052_v33 = vpack.c.bf16 %v1688_v9, %v1687_v30 }
 0x4f7   :  { %8043 = vmatprep.subr.bf16.mxu0 %v8042_v43 }
 0x4fa   :  { %1493 = vrot.lane.b32.xlu0 %v7730_v11, %s9188_s23  ;;  %v1689_v11 = vld [vmem:[%s13026_s7 + $0x40] sm:$0xff] }
 0x4fb   :  { %v8056_v48 = vpack.c.bf16 %v1690_v52, %v1689_v11 }
 0x4fe   :  { %1501 = vrot.lane.b32.xlu0 %v9944_v31, %s9187_s22  ;;  %v1684_v31 = vld [vmem:[%s13026_s7 + $0x18] sm:$0xff] }
 0x4ff   :  { %v8044_v6 = vpack.c.bf16 %v1684_v31, %v1683_v22 }
 0x501   :  { %8045 = vmatpush3.bf16.msra.mxu0 %v8044_v6 }
 0x502   :  { %8047 = vmatprep.subr.bf16.mxu0 %v8046_v5  ;;  %v1525_v5 = vrot.slane %v1520_v28, %v9541_v12 }
 0x505   :  { %8049 = vmatpush3.bf16.msra.mxu0 %v8048_v32 }
 0x506   :  { %8051 = vmatprep.subr.bf16.mxu0 %v8050_v36 }
 0x509   :  { %8053 = vmatpush3.bf16.msra.mxu0 %v8052_v33 }
 0x50a   :  { %8055 = vmatprep.subr.bf16.mxu0 %v8054_v56 }
 0x50d   :  { %8057 = vmatpush3.bf16.msra.mxu0 %v8056_v48 }
 0x50e   :  { %8059 = vmatprep.subr.bf16.mxu0 %v8058_v10 }
 0x511   :  { %8061 = vmatpush3.bf16.msra.mxu0 %v8060_v3 }
 0x512   :  { %8063 = vmatprep.subr.bf16.mxu0 %v8062_v4 }
 0x515   :  { %8065 = vmatpush3.bf16.msra.mxu0 %v8064_v26  ;;  %v1788_v26 = vld [vmem:[%s13028_s8] sm:$0xff] }
 0x516   :  { %8067 = vmatprep.subr.bf16.mxu0 %v8066_v7  ;;  %v1789_v7 = vld [vmem:[%s13028_s8 + $0x8] sm:$0xff] }
 0x519   :  { %8069 = vmatpush3.bf16.msra.mxu0 %v8068_v49 }
 0x54c   :  { %v1460_v20 = vpop.permute.xlu1 %1459 }
 0x54d   :  { %v1506_v25 = vsel %vm1505_vm8, %v9894_v24, %v1460_v20  ;;  %v1529_v24 = vrot.slane %v1520_v28, %v9543_v13  ;;  %v8072_v20 = vpack.c.bf16 %v1789_v7, %v1788_v26  ;;  %v1791_v28 = vld [vmem:[%s13028_s8 + $0x18] sm:$0xff]  ;;  %v1800_v7 = vld [vmem:[%s13028_s8 + $0x60] sm:$0xff] }
 0x550   :  { %v1468_v43 = vpop.permute.xlu1 %1467 }
 0x551   :  { %v1509_v6 = vsel %vm1508_vm9, %v1506_v25, %v1468_v43  ;;  %v1808_v25 = vld [vmem:[%s13028_s8 + $0xa0] sm:$0xff] }
 0x554   :  { %v1476_v22 = vpop.permute.xlu1 %1475 }
 0x555   :  { %v1512_v51 = vsel %vm1511_vm10, %v1509_v6, %v1476_v22  ;;  %v8074_v22 = vpack.c.bf16 %v1807_v8, %v1806_v34  ;;  %v1809_v6 = vld [vmem:[%s13028_s8 + $0xa8] sm:$0xff]  ;;  %v1818_v8 = vld [vmem:[%s13028_s8 + $0xf0] sm:$0xff] }
 0x556   :  { %v1532_v32 = vadd.f32 %v1525_v5, %v1512_v51  ;;  %v1793_v51 = vld [vmem:[%s13028_s8 + $0x28] sm:$0xff] }
 0x557   :  { %v1801_v34 = vld [vmem:[%s13028_s8 + $0x68] sm:$0xff] }
 0x558   :  { %v1462_v31 = vpop.permute.xlu1 %1461  ;;  %v1536_v56 = vmax.f32 %v1532_v32, 0.0  ;;  %v1811_v32 = vld [vmem:[%s13028_s8 + $0xb8] sm:$0xff] }
 0x559   :  { %v1507_v40 = vsel %vm1505_vm8, %v9886_v18, %v1462_v31  ;;  %v1790_v31 = vld [vmem:[%s13028_s8 + $0x10] sm:$0xff] }
 0x55c   :  { %v1470_v45 = vpop.permute.xlu1 %1469  ;;  %v1484_v53 = vpop.permute.xlu0 %1483 }
 0x55d   :  { %v1510_v36 = vsel %vm1508_vm9, %v1507_v40, %v1470_v45  ;;  %v1514_v33 = vsel %vm1505_vm8, %v10019_v37, %v1484_v53  ;;  %v8078_v45 = vpack.c.bf16 %v1809_v6, %v1808_v25  ;;  %v1792_v53 = vld [vmem:[%s13028_s8 + $0x20] sm:$0xff]  ;;  %v1810_v40 = vld [vmem:[%s13028_s8 + $0xb0] sm:$0xff] }
 0x560   :  { %v1478_v30 = vpop.permute.xlu1 %1477  ;;  %v1492_v9 = vpop.permute.xlu0 %1491 }
 0x561   :  { %v1513_v42 = vsel %vm1511_vm10, %v1510_v36, %v1478_v30  ;;  %v1516_v52 = vsel %vm1508_vm9, %v1514_v33, %v1492_v9  ;;  %v8080_v36 = vpack.c.bf16 %v1793_v51, %v1792_v53  ;;  %v1794_v30 = vld [vmem:[%s13028_s8 + $0x30] sm:$0xff]  ;;  %v8082_v9 = vpack.c.bf16 %v1811_v32, %v1810_v40 }
 0x562   :  { %v1534_v38 = vadd.f32 %v1525_v5, %v1513_v42  ;;  %v8076_v5 = vpack.c.bf16 %v1791_v28, %v1790_v31  ;;  %v1795_v42 = vld [vmem:[%s13028_s8 + $0x38] sm:$0xff]  ;;  %v1802_v31 = vld [vmem:[%s13028_s8 + $0x70] sm:$0xff] }
 0x563   :  { %v1803_v28 = vld [vmem:[%s13028_s8 + $0x78] sm:$0xff] }
 0x564   :  { %v1538_v11 = vmax.f32 %v1534_v38, 0.0  ;;  %v1500_v54 = vpop.permute.xlu0 %1499  ;;  %v1812_v38 = vld [vmem:[%s13028_s8 + $0xc0] sm:$0xff]  ;;  %v8100_v25 = vpack.c.bf16 %v1803_v28, %v1802_v31 }
 0x565   :  { %v1518_v18 = vsel %vm1511_vm10, %v1516_v52, %v1500_v54 }
 0x566   :  { %v10169_v21 = vadd.f32 %v1538_v11, %v1536_v56  ;;  %v1533_v48 = vadd.f32 %v1529_v24, %v1518_v18  ;;  %v1796_v18 = vld [vmem:[%s13028_s8 + $0x40] sm:$0xff] }
 0x568   :  { %v1537_v10 = vmax.f32 %v1533_v48, 0.0  ;;  %v1486_v59 = vpop.permute.xlu0 %1485  ;;  %v1797_v48 = vld [vmem:[%s13028_s8 + $0x48] sm:$0xff] }
 0x569   :  { %v1515_v44 = vsel %vm1505_vm8, %v10017_v58, %v1486_v59  ;;  %v8070_v58 = vpack.c.bf16 %v1805_v16, %v1804_v39  ;;  %v1814_v59 = vld [vmem:[%s13028_s8 + $0xd0] sm:$0xff]  ;;  %v1816_v39 = vld [vmem:[%s13028_s8 + $0xe0] sm:$0xff]  ;;  %v1817_v16 = vld [vmem:[%s13028_s8 + $0xe8] sm:$0xff] }
 0x56a   :  { %1668 = vmatprep.mubr.f32.mxu1 %v1537_v10  ;;  %v8094_v26 = vpack.c.bf16 %v1817_v16, %v1816_v39 }
 0x56b   :  { %1669 = vmatmul.mubr.f32.vlgmr.msra.gmra.mrb[22].mxu1 %v1536_v56  ;;  %8071 = vmatprep.subr.bf16.mxu0 %v8070_v58  ;;  %v8084_v56 = vpack.c.bf16 %v1795_v42, %v1794_v30 }
 0x56c   :  { %v1494_v27 = vpop.permute.xlu0 %1493 }
 0x56d   :  { %v1517_v37 = vsel %vm1508_vm9, %v1515_v44, %v1494_v27  ;;  %v1815_v27 = vld [vmem:[%s13028_s8 + $0xd8] sm:$0xff] }
 0x570   :  { %v1502_v41 = vpop.permute.xlu0 %1501 }
 0x571   :  { %v1519_v3 = vsel %vm1511_vm10, %v1517_v37, %v1502_v41  ;;  %v8088_v41 = vpack.c.bf16 %v1797_v48, %v1796_v18 }
 0x572   :  { %v1535_v4 = vadd.f32 %v1529_v24, %v1519_v3  ;;  %v1813_v24 = vld [vmem:[%s13028_s8 + $0xc8] sm:$0xff]  ;;  %v8090_v3 = vpack.c.bf16 %v1815_v27, %v1814_v59 }
 0x574   :  { %v1539_v55 = vmax.f32 %v1535_v4, 0.0  ;;  %v1798_v4 = vld [vmem:[%s13028_s8 + $0x50] sm:$0xff] }
 0x576   :  { %v10175_v35 = vadd.f32 %v1539_v55, %v1537_v10  ;;  %1674 = vmatprep.mubr.f32.mxu1 %v1539_v55  ;;  %v1799_v55 = vld [vmem:[%s13028_s8 + $0x58] sm:$0xff] }
 0x577   :  { %1675 = vmatmul.mubr.f32.gmra.mrb[24].mxu1 %v1538_v11  ;;  %v8086_v11 = vpack.c.bf16 %v1813_v24, %v1812_v38  ;;  %v8092_v58 = vpack.c.bf16 %v1799_v55, %v1798_v4 }
 0x63e   :  { %v10195_v49 = vpop.f32.mrb[22].mxu1 }
 0x63f   :  { %v1672_v43 = vpop.f32.mrb[23].mxu1 }
 0x640   :  { %1777 = vmatprep.mubr.f32.mxu0 %v1672_v43 }
 0x641   :  { %1778 = vmatmul.mubr.f32.vlgmr.msra.gmra.mrb[6].mxu0 %v10195_v49 }
 0x642   :  { %8073 = vmatpush3.bf16.msra.mxu0 %v8072_v20  ;;  %v1819_v20 = vld [vmem:[%s13028_s8 + $0xf8] sm:$0xff] }
 0x643   :  { %8075 = vmatprep.subr.bf16.mxu0 %v8074_v22  ;;  %v8098_v22 = vpack.c.bf16 %v1819_v20, %v1818_v8 }
 0x646   :  { %8077 = vmatpush3.bf16.msra.mxu0 %v8076_v5 }
 0x647   :  { %8079 = vmatprep.subr.bf16.mxu0 %v8078_v45 }
 0x64a   :  { %8081 = vmatpush3.bf16.msra.mxu0 %v8080_v36  ;;  %v1676_v33 = vpop.f32.mrb[24].mxu1 }
 0x64b   :  { %v1678_v52 = vpop.f32.mrb[25].mxu1  ;;  %8083 = vmatprep.subr.bf16.mxu0 %v8082_v9  ;;  %v8102_v54 = vpack.c.bf16 %v1676_v33, %v10195_v49  ;;  %v10242_v10 = vpack.i.bf16 %v1676_v33, %v10195_v49 }
 0x64c   :  { %1782 = vmatprep.mubr.f32.mxu0 %v1678_v52  ;;  %v10250_v44 = vpack.i.bf16 %v1678_v52, %v1672_v43  ;;  %v10252_v37 = vpack.c.bf16 %v1678_v52, %v1672_v43 }
 0x64d   :  { %1783 = vmatmul.mubr.f32.gmra.mrb[8].mxu0 %v1676_v33  ;;  %8103 = vmatprep.subr.bf16.mxu1 %v8102_v54 }
 0x64e   :  { %8085 = vmatpush3.bf16.msra.mxu0 %v8084_v56  ;;  %1884 = vmatprep.mubr.f32.mxu0 %v1672_v43  ;;  %v8096_v43 = vpack.c.bf16 %v1801_v34, %v1800_v7 }
 0x64f   :  { %8105 = vmatpush3.bf16.msra.mxu1 %v8102_v54  ;;  %8087 = vmatprep.subr.bf16.mxu0 %v8086_v11 }
 0x652   :  { %8089 = vmatpush3.bf16.msra.mxu0 %v8088_v41 }
 0x653   :  { %8091 = vmatprep.subr.bf16.mxu0 %v8090_v3 }
 0x656   :  { %8093 = vmatpush3.bf16.msra.mxu0 %v8092_v58 }
 0x657   :  { %8095 = vmatprep.subr.bf16.mxu0 %v8094_v26 }
 0x65a   :  { %8097 = vmatpush3.bf16.msra.mxu0 %v8096_v43 }
 0x65b   :  { %8099 = vmatprep.subr.bf16.mxu0 %v8098_v22 }
 0x65e   :  { %8101 = vmatpush3.bf16.msra.mxu0 %v8100_v25 }
 0x661   :  { %1885 = vmatmul.mubr.f32.vlgmr.msra.gmra.mrb[10].mxu0 %v10195_v49 }
 0x662   :  { %1889 = vmatprep.mubr.f32.mxu0 %v1678_v52 }
 0x665   :  { %1890 = vmatmul.mubr.f32.gmra.mrb[12].mxu0 %v1676_v33 }
 0x714   :  { %v7155_v6 = vpop.f32.mrb[6].mxu0 }
 0x715   :  { %v7156_v5 = vpop.f32.mrb[7].mxu0 }
 0x716   :  { %v7157_v45 = vadd.f32 %v7156_v5, %v7155_v6 }
 0x720   :  { %v7158_v53 = vpop.f32.mrb[8].mxu0 }
 0x721   :  { %v7159_v51 = vpop.f32.mrb[9].mxu0 }
 0x722   :  { %v7160_v40 = vadd.f32 %v7159_v51, %v7158_v53 }
 0x734   :  { %v7193_v32 = vpop.f32.mrb[10].mxu0 }
 0x735   :  { %v7194_v36 = vpop.f32.mrb[11].mxu0 }
 0x736   :  { %v7195_v30 = vadd.f32 %v7194_v36, %v7193_v32 }
 0x738   :  { %v7196_v9 = vpop.f32.mrb[12].mxu0  ;;  %2055 = vperm.xlu1 %8809, %v7195_v30   ;;  %1929 = vperm.xlu0 %8808, %v7195_v30  }
 0x739   :  { %v7197_v42 = vpop.f32.mrb[13].mxu0 }
 0x73a   :  { %v7198_v38 = vadd.f32 %v7197_v42, %v7196_v9 }
 0x73c   :  { %8810 = vset.pattern.permute.xlu1 %v9182_v61  ;;  %8811 = vset.pattern.permute.xlu0 %v9181_v60 }
 0x73d   :  { %2188 = vperm.xlu1 %8810, %v7195_v30   ;;  %2319 = vperm.xlu0 %8811, %v7195_v30  }
 0x741   :  { %8812 = vset.pattern.permute.xlu1 %v9183_v62  ;;  %8814 = vset.pattern.permute.xlu0 %v9185_v0 }
 0x742   :  { %2450 = vperm.xlu1 %8812, %v7195_v30   ;;  %2708 = vperm.xlu0 %8814, %v7195_v30  }
 0x746   :  { %8813 = vset.pattern.permute.xlu1 %v9184_v63  ;;  %8817 = vset.pattern.permute.xlu0 %v9179_v46 }
 0x747   :  { %2575 = vperm.xlu1 %8813, %v7195_v30   ;;  %2059 = vperm.xlu0 %8817, %v7198_v38  }
 0x74b   :  { %8815 = vset.pattern.permute.xlu1 %v9186_v2  ;;  %8820 = vset.pattern.permute.xlu0 %v9183_v62 }
 0x74c   :  { %2839 = vperm.xlu1 %8815, %v7195_v30   ;;  %2454 = vperm.xlu0 %8820, %v7198_v38  }
 0x750   :  { %8816 = vset.pattern.permute.xlu1 %v9180_v47  ;;  %8828 = vset.pattern.permute.xlu0 %v9186_v2 }
 0x751   :  { %1934 = vperm.xlu1 %8816, %v7198_v38   ;;  %2843 = vperm.xlu0 %8828, %v7198_v38  }
 0x755   :  { %8818 = vset.pattern.permute.xlu1 %v9182_v61 }
 0x756   :  { %2192 = vperm.xlu1 %8818, %v7198_v38  }
 0x75a   :  { %8819 = vset.pattern.permute.xlu1 %v9181_v60 }
 0x75b   :  { %2323 = vperm.xlu1 %8819, %v7198_v38  }
 0x75f   :  { %8821 = vset.pattern.permute.xlu1 %v9184_v63 }
 0x760   :  { %2579 = vperm.xlu1 %8821, %v7198_v38  }
 0x764   :  { %8822 = vset.pattern.permute.xlu1 %v9185_v0 }
 0x765   :  { %2712 = vperm.xlu1 %8822, %v7198_v38  }
 0x78e   :  { %1895 = vxpose.xlu1.b32.start [1/2] (short) (narrow) %v7157_v45, 8 }
 0x792   :  { %1896 = vxpose.xlu1.b32.end [2/2] (short) (narrow) %v7160_v40, 8 }
 0x7b0   :  { %8824 = vrot.lane.b32.xlu1 %v10242_v10, %s9187_s22 }
 0x7b1   :  { %8859 = vset.pattern.permute.xlu1 %v9180_v47 }
 0x7b7   :  { %v2056_v49 = vpop.permute.xlu1 %2055  ;;  %v1930_v18 = vpop.permute.xlu0 %1929 }
 0x7bc   :  { %v2189_v24 = vpop.permute.xlu1 %2188  ;;  %v2320_v59 = vpop.permute.xlu0 %2319 }
 0x7c1   :  { %v2451_v33 = vpop.permute.xlu1 %2450  ;;  %v2709_v41 = vpop.permute.xlu0 %2708 }
 0x7c6   :  { %v2576_v56 = vpop.permute.xlu1 %2575  ;;  %v2060_v26 = vpop.permute.xlu0 %2059 }
 0x7cb   :  { %v2840_v11 = vpop.permute.xlu1 %2839 }
 0x7d0   :  { %v10302_v52 = vpop.permute.xlu1 %1934 }
 0x7d5   :  { %v10304_v54 = vpop.permute.xlu1 %2192 }
 0x7da   :  { %v10306_v48 = vpop.permute.xlu1 %2323 }
 0x7df   :  { %v10308_v27 = vpop.permute.xlu1 %2579 }
 0x7e4   :  { %v10310_v3 = vpop.permute.xlu1 %2712 }
 0x80e   :  { %v1911_v4 = vpop.trf.xlu1 }
 0x80f   :  { %v10313_v55 = vrot.slane %v1911_v4, %v9609_v57  ;;  %v10316_v39 = vrot.slane %v1911_v4, %v9541_v12  ;;  %v2065_v16 = vrot.slane %v1911_v4, %v9543_v13  ;;  %v10320_v58 = vrot.slane %v1911_v4, %v9545_v14 }
 0x810   :  { %v10323_v7 = vrot.slane %v1911_v4, %v9547_v15  ;;  %v10330_v28 = vrot.slane %v1911_v4, %v9569_v23 }
 0x811   :  { %v2850_v34 = vadd.f32 %v10313_v55, %v2840_v11  ;;  %v1941_v8 = vadd.f32 %v10316_v39, %v1930_v18  ;;  %v2067_v20 = vadd.f32 %v2065_v16, %v2060_v26  ;;  %v2066_v43 = vadd.f32 %v2065_v16, %v2056_v49 }
 0x812   :  { %v2199_v22 = vadd.f32 %v10320_v58, %v2189_v24  ;;  %v2330_v31 = vadd.f32 %v10323_v7, %v2320_v59  ;;  %v2461_v59 = vadd.f32 %v10330_v28, %v2451_v33  ;;  %v2585_v16 = vrot.slane %v1911_v4, %v9575_v29 }
 0x813   :  { %vm2852_vm11 = vcmp.ge.f32.partialorder %v2850_v34, 0.0  ;;  %v2854_v25 = vmul.f32 0.2, %v2850_v34  ;;  %vm1943_vm12 = vcmp.ge.f32.partialorder %v1941_v8, 0.0  ;;  %v1945_v6 = vmul.f32 0.2, %v1941_v8 }
 0x814   :  { %vm2069_vm13 = vcmp.ge.f32.partialorder %v2067_v20, 0.0  ;;  %v2071_v5 = vmul.f32 0.2, %v2067_v20  ;;  %vm2068_vm14 = vcmp.ge.f32.partialorder %v2066_v43, 0.0  ;;  %v2070_v45 = vmul.f32 0.2, %v2066_v43 }
 0x815   :  { %v2856_v53 = vsel %vm2852_vm11, %v2850_v34, %v2854_v25  ;;  %v1947_v51 = vsel %vm1943_vm12, %v1941_v8, %v1945_v6  ;;  %vm2201_vm15 = vcmp.ge.f32.partialorder %v2199_v22, 0.0  ;;  %v2203_v40 = vmul.f32 0.2, %v2199_v22 }
 0x816   :  { %v10334_v32 = vsel %vm434_vm3, %v2856_v53, -1e+30  ;;  %v10338_v36 = vsel %vm434_vm3, %v1947_v51, -1e+30  ;;  %v2073_v30 = vsel %vm2069_vm13, %v2067_v20, %v2071_v5  ;;  %v2072_v9 = vsel %vm2068_vm14, %v2066_v43, %v2070_v45 }
 0x817   :  { %v2860_v42 = vsel %vm438_vm6, %v10334_v32, -inf  ;;  %v1951_v38 = vsel %vm438_vm6, %v10338_v36, -inf  ;;  %v10346_v49 = vsel %vm435_vm2, %v2073_v30, -1e+30  ;;  %v10350_v24 = vsel %vm434_vm3, %v2072_v9, -1e+30 }
 0x818   :  { %2861 = vmax.xlane.f32.xlu1 %v2860_v42  ;;  %1952 = vmax.xlane.f32.xlu0 %v1951_v38  ;;  %v2205_v11 = vsel %vm2201_vm15, %v2199_v22, %v2203_v40  ;;  %v2334_v18 = vmul.f32 0.2, %v2330_v31  ;;  %vm2332_vm0 = vcmp.ge.f32.partialorder %v2330_v31, 0.0  ;;  %v2079_v26 = vsel %vm438_vm6, %v10346_v49, -inf }
 0x819   :  { %v2076_v34 = vsel %vm438_vm6, %v10350_v24, -inf  ;;  %v10360_v8 = vsel %vm434_vm3, %v2205_v11, -1e+30  ;;  %v2465_v43 = vmul.f32 0.2, %v2461_v59  ;;  %v2586_v22 = vadd.f32 %v2585_v16, %v2576_v56 }
 0x81a   :  { %v2336_v20 = vsel %vm2332_vm0, %v2330_v31, %v2334_v18  ;;  %v2718_v33 = vrot.slane %v1911_v4, %v9597_v50  ;;  %vm2463_vm1 = vcmp.ge.f32.partialorder %v2461_v59, 0.0  ;;  %v2209_v25 = vsel %vm438_vm6, %v10360_v8, -inf }
 0x81b   :  { %v10367_v6 = vsel %vm434_vm3, %v2336_v20, -1e+30  ;;  %v2467_v5 = vsel %vm2463_vm1, %v2461_v59, %v2465_v43  ;;  %v2590_v45 = vmul.f32 0.2, %v2586_v22  ;;  %vm2588_vm4 = vcmp.ge.f32.partialorder %v2586_v22, 0.0 }
 0x81c   :  { %2080 = vmax.xlane.f32.xlu1 %v2079_v26  ;;  %2077 = vmax.xlane.f32.xlu0 %v2076_v34  ;;  %v2719_v53 = vadd.f32 %v2718_v33, %v2709_v41  ;;  %v2340_v56 = vsel %vm438_vm6, %v10367_v6, -inf  ;;  %v10373_v4 = vsel %vm434_vm3, %v2467_v5, -1e+30  ;;  %v1942_v38 = vadd.f32 %v10316_v39, %v10302_v52 }
 0x81d   :  { %v2592_v9 = vsel %vm2588_vm4, %v2586_v22, %v2590_v45  ;;  %v2471_v41 = vsel %vm438_vm6, %v10373_v4, -inf  ;;  %v2200_v26 = vadd.f32 %v10320_v58, %v10304_v54  ;;  %v2331_v43 = vadd.f32 %v10323_v7, %v10306_v48  ;;  %v2455_v58 = vpop.permute.xlu0 %2454 }
 0x81e   :  { %v2723_v42 = vmul.f32 0.2, %v2719_v53  ;;  %vm2721_vm5 = vcmp.ge.f32.partialorder %v2719_v53, 0.0  ;;  %v10381_v11 = vsel %vm434_vm3, %v2592_v9, -1e+30  ;;  %vm1944_vm7 = vcmp.ge.f32.partialorder %v1942_v38, 0.0 }
 0x81f   :  { %v1946_v59 = vmul.f32 0.2, %v1942_v38  ;;  %v2596_v52 = vsel %vm438_vm6, %v10381_v11, -inf  ;;  %v2204_v20 = vmul.f32 0.2, %v2200_v26  ;;  %vm2202_vm11 = vcmp.ge.f32.partialorder %v2200_v26, 0.0 }
 0x820   :  { %2210 = vmax.xlane.f32.xlu0 %v2209_v25  ;;  %v2725_v18 = vsel %vm2721_vm5, %v2719_v53, %v2723_v42  ;;  %v2335_v5 = vmul.f32 0.2, %v2331_v43  ;;  %v2462_v45 = vadd.f32 %v10330_v28, %v2455_v58  ;;  %vm2333_vm12 = vcmp.ge.f32.partialorder %v2331_v43, 0.0 }
 0x821   :  { %v10389_v39 = vsel %vm434_vm3, %v2725_v18, -1e+30  ;;  %v1948_v34 = vsel %vm1944_vm7, %v1942_v38, %v1946_v59  ;;  %v2206_v25 = vsel %vm2202_vm11, %v2200_v26, %v2204_v20  ;;  %v2720_v9 = vadd.f32 %v2718_v33, %v10310_v3  ;;  %v2844_v38 = vpop.permute.xlu0 %2843 }
 0x822   :  { %v8825_v51 = vpop.permute.xlu1 %8824  ;;  %v2729_v54 = vsel %vm438_vm6, %v10389_v39, -inf  ;;  %v10399_v22 = vsel %vm435_vm2, %v1948_v34, -1e+30  ;;  %v10408_v7 = vsel %vm435_vm2, %v2206_v25, -1e+30  ;;  %v2337_v53 = vsel %vm2333_vm12, %v2331_v43, %v2335_v5 }
 0x823   :  { %v8827_v40 = vunpack.i.h.bf16 %v8825_v51  ;;  %v8826_v31 = vunpack.i.l.bf16 %v8825_v51  ;;  %v1954_v48 = vsel %vm438_vm6, %v10399_v22, -inf  ;;  %v2466_v51 = vmul.f32 0.2, %v2462_v45 }
 0x824   :  { %2341 = vmax.xlane.f32.xlu0 %v2340_v56  ;;  %vm2464_vm13 = vcmp.ge.f32.partialorder %v2462_v45, 0.0  ;;  %v10415_v28 = vsel %vm435_vm2, %v2337_v53, -1e+30  ;;  %v2851_v18 = vadd.f32 %v10313_v55, %v2844_v38  ;;  %vm2722_vm15 = vcmp.ge.f32.partialorder %v2720_v9, 0.0 }
 0x825   :  { %v8106_v30 = vpack.c.bf16 %v8827_v40, %v8826_v31  ;;  %v2587_v40 = vadd.f32 %v2585_v16, %v10308_v27  ;;  %v2212_v31 = vsel %vm438_vm6, %v10408_v7, -inf  ;;  %v2468_v56 = vsel %vm2464_vm13, %v2462_v45, %v2466_v51 }
 0x826   :  { %v2343_v42 = vsel %vm438_vm6, %v10415_v28, -inf  ;;  %v10422_v27 = vsel %vm435_vm2, %v2468_v56, -1e+30  ;;  %v2855_v26 = vmul.f32 0.2, %v2851_v18  ;;  %vm2853_vm0 = vcmp.ge.f32.partialorder %v2851_v18, 0.0 }
 0x827   :  { %8107 = vmatprep.subr.bf16.mxu0 %v8106_v30  ;;  %vm2589_vm14 = vcmp.ge.f32.partialorder %v2587_v40, 0.0  ;;  %v2474_v59 = vsel %vm438_vm6, %v10422_v27, -inf }
 0x828   :  { %2472 = vmax.xlane.f32.xlu0 %v2471_v41  ;;  %8109 = vmatpush3.bf16.msra.mxu0 %v8106_v30  ;;  %v2591_v30 = vmul.f32 0.2, %v2587_v40  ;;  %v2724_v41 = vmul.f32 0.2, %v2720_v9  ;;  %v2857_v55 = vsel %vm2853_vm0, %v2851_v18, %v2855_v26 }
 0x829   :  { %v10441_v43 = vsel %vm435_vm2, %v2857_v55, -1e+30 }
 0x82a   :  { %v2593_v16 = vsel %vm2589_vm14, %v2587_v40, %v2591_v30  ;;  %v2726_v33 = vsel %vm2722_vm15, %v2720_v9, %v2724_v41 }
 0x82b   :  { %v10429_v3 = vsel %vm435_vm2, %v2593_v16, -1e+30  ;;  %v10435_v34 = vsel %vm435_vm2, %v2726_v33, -1e+30 }
 0x82c   :  { %2597 = vmax.xlane.f32.xlu0 %v2596_v52  ;;  %v2599_v52 = vsel %vm438_vm6, %v10429_v3, -inf  ;;  %v2732_v20 = vsel %vm438_vm6, %v10435_v34, -inf }
 0x82d   :  { %8835 = vrot.lane.b32.xlu1 %v10242_v10, %s9189_s24 }
 0x830   :  { %2730 = vmax.xlane.f32.xlu0 %v2729_v54  ;;  %v2863_v54 = vsel %vm438_vm6, %v10441_v43, -inf }
 0x831   :  { %8840 = vrot.lane.b32.xlu1 %v10250_v44, %s9187_s22 }
 0x834   :  { %1955 = vmax.xlane.f32.xlu0 %v1954_v48 }
 0x838   :  { %2213 = vmax.xlane.f32.xlu0 %v2212_v31 }
 0x83c   :  { %2344 = vmax.xlane.f32.xlu0 %v2343_v42 }
 0x840   :  { %2475 = vmax.xlane.f32.xlu0 %v2474_v59 }
 0x844   :  { %2600 = vmax.xlane.f32.xlu0 %v2599_v52 }
 0x848   :  { %2733 = vmax.xlane.f32.xlu0 %v2732_v20 }
 0x84c   :  { %2864 = vmax.xlane.f32.xlu0 %v2863_v54 }
 0x862   :  { %8830 = vrot.lane.b32.xlu0 %v10242_v10, %s9188_s23 }
 0x8a5   :  { %v1953_v58 = vpop.xlane.xlu0 %1952  ;;  %v2862_v25 = vpop.xlane.xlu1 %2861 }
 0x8a6   :  { %v1957_v5 = vsub.f32 %v10338_v36, %v1953_v58  ;;  %v2866_v54 = vsub.f32 %v10334_v32, %v2862_v25 }
 0x8a8   :  { %v1959_v45 = vmul.f32 1.442695, %v1957_v5 }
 0x8a9   :  { %v2078_v48 = vpop.xlane.xlu0 %2077  ;;  %v2081_v53 = vpop.xlane.xlu1 %2080 }
 0x8aa   :  { %8974 = vpow2.f32 %v1959_v45  ;;  %v2082_v51 = vsub.f32 %v10350_v24, %v2078_v48 }
 0x8ac   :  { %v2084_v40 = vmul.f32 1.442695, %v2082_v51  ;;  %v2868_v51 = vmul.f32 1.442695, %v2866_v54 }
 0x8ad   :  { %v2211_v31 = vpop.xlane.xlu0 %2210  ;;  %v8836_v56 = vpop.permute.xlu1 %8835 }
 0x8ae   :  { %8976 = vpow2.f32 %v2084_v40  ;;  %v2215_v30 = vsub.f32 %v10360_v8, %v2211_v31  ;;  %v8838_v9 = vunpack.i.h.bf16 %v8836_v56  ;;  %v8837_v42 = vunpack.i.l.bf16 %v8836_v56 }
 0x8af   :  { %v2083_v40 = vsub.f32 %v10346_v49, %v2081_v53 }
 0x8b0   :  { %v2217_v38 = vmul.f32 1.442695, %v2215_v30  ;;  %v10450_v10 = vpack.c.bf16 %v8838_v9, %v8837_v42 }
 0x8b1   :  { %v2342_v16 = vpop.xlane.xlu0 %2341  ;;  %v2086_v30 = vmul.f32 1.442695, %v2083_v40 }
 0x8b2   :  { %8978 = vpow2.f32 %v2217_v38  ;;  %v2346_v36 = vsub.f32 %v10367_v6, %v2342_v16  ;;  %8115 = vmatprep.subr.bf16.mxu0 %v10450_v10 }
 0x8b4   :  { %v10454_v41 = vpop.eup %8974  ;;  %v2348_v24 = vmul.f32 1.442695, %v2346_v36 }
 0x8b5   :  { %v2473_v18 = vpop.xlane.xlu0 %2472  ;;  %v1963_v59 = vsel %vm438_vm6, %v10454_v41, 0.0 }
 0x8b6   :  { %8980 = vpow2.f32 %v2348_v24  ;;  %v2477_v8 = vsub.f32 %v10373_v4, %v2473_v18  ;;  %1964 = vadd.xlane.f32.xlu1 %v1963_v59 }
 0x8b8   :  { %v10459_v33 = vpop.eup %8976  ;;  %v2479_v26 = vmul.f32 1.442695, %v2477_v8 }
 0x8b9   :  { %v2598_v52 = vpop.xlane.xlu0 %2597  ;;  %v2088_v6 = vsel %vm438_vm6, %v10459_v33, 0.0 }
 0x8ba   :  { %8982 = vpow2.f32 %v2479_v26  ;;  %v2602_v55 = vsub.f32 %v10381_v11, %v2598_v52  ;;  %2089 = vadd.xlane.f32.xlu1 %v2088_v6 }
 0x8bc   :  { %v10464_v20 = vpop.eup %8978  ;;  %v2604_v58 = vmul.f32 1.442695, %v2602_v55 }
 0x8bd   :  { %v2731_v5 = vpop.xlane.xlu0 %2730  ;;  %v2221_v4 = vsel %vm438_vm6, %v10464_v20, 0.0 }
 0x8be   :  { %8984 = vpow2.f32 %v2604_v58  ;;  %v2735_v45 = vsub.f32 %v10389_v39, %v2731_v5  ;;  %2222 = vadd.xlane.f32.xlu1 %v2221_v4 }
 0x8c0   :  { %v10470_v48 = vpop.eup %8980  ;;  %v2737_v11 = vmul.f32 1.442695, %v2735_v45 }
 0x8c1   :  { %v1956_v31 = vpop.xlane.xlu0 %1955  ;;  %v2352_v56 = vsel %vm438_vm6, %v10470_v48, 0.0 }
 0x8c2   :  { %8986 = vpow2.f32 %v2737_v11  ;;  %v1958_v32 = vsub.f32 %v10399_v22, %v1956_v31  ;;  %2353 = vadd.xlane.f32.xlu1 %v2352_v56 }
 0x8c3   :  { %8988 = vpow2.f32 %v2868_v51 }
 0x8c4   :  { %v10476_v25 = vpop.eup %8982  ;;  %v1961_v39 = vmul.f32 1.442695, %v1958_v32 }
 0x8c5   :  { %v2214_v9 = vpop.xlane.xlu0 %2213  ;;  %v2483_v42 = vsel %vm438_vm6, %v10476_v25, 0.0 }
 0x8c6   :  { %8990 = vpow2.f32 %v1961_v39  ;;  %v2216_v49 = vsub.f32 %v10408_v7, %v2214_v9  ;;  %2484 = vadd.xlane.f32.xlu1 %v2483_v42 }
 0x8c7   :  { %8992 = vpow2.f32 %v2086_v30 }
 0x8c8   :  { %v10481_v53 = vpop.eup %8984  ;;  %v2219_v38 = vmul.f32 1.442695, %v2216_v49 }
 0x8c9   :  { %v2345_v16 = vpop.xlane.xlu0 %2344  ;;  %v2608_v22 = vsel %vm438_vm6, %v10481_v53, 0.0 }
 0x8ca   :  { %v2347_v36 = vsub.f32 %v10415_v28, %v2345_v16  ;;  %2609 = vadd.xlane.f32.xlu1 %v2608_v22  ;;  %8994 = vpow2.f32 %v2219_v38 }
 0x8cc   :  { %v10486_v24 = vpop.eup %8986  ;;  %v2350_v18 = vmul.f32 1.442695, %v2347_v36 }
 0x8cd   :  { %v2476_v59 = vpop.xlane.xlu0 %2475  ;;  %v2741_v7 = vsel %vm438_vm6, %v10486_v24, 0.0  ;;  %v10490_v8 = vpop.eup %8988 }
 0x8ce   :  { %v2478_v26 = vsub.f32 %v10422_v27, %v2476_v59  ;;  %2742 = vadd.xlane.f32.xlu1 %v2741_v7  ;;  %8996 = vpow2.f32 %v2350_v18  ;;  %v2872_v54 = vsel %vm438_vm6, %v10490_v8, 0.0 }
 0x8d0   :  { %v10493_v52 = vpop.eup %8990  ;;  %v2481_v6 = vmul.f32 1.442695, %v2478_v26  ;;  %v8841_v26 = vpop.permute.xlu1 %8840 }
 0x8d1   :  { %v2601_v55 = vpop.xlane.xlu0 %2600  ;;  %v1966_v28 = vsel %vm438_vm6, %v10493_v52, 0.0  ;;  %v10499_v58 = vpop.eup %8992 }
 0x8d2   :  { %v2603_v5 = vsub.f32 %v10429_v3, %v2601_v55  ;;  %1967 = vadd.xlane.f32.xlu0 %v1966_v28  ;;  %2873 = vadd.xlane.f32.xlu1 %v2872_v54  ;;  %8998 = vpow2.f32 %v2481_v6  ;;  %v2091_v45 = vsel %vm438_vm6, %v10499_v58, 0.0 }
 0x8d4   :  { %v2606_v27 = vmul.f32 1.442695, %v2603_v5  ;;  %v10504_v51 = vpop.eup %8994 }
 0x8d5   :  { %v2734_v4 = vpop.xlane.xlu0 %2733  ;;  %v2224_v56 = vsel %vm438_vm6, %v10504_v51, 0.0 }
 0x8d6   :  { %v2736_v40 = vsub.f32 %v10435_v34, %v2734_v4  ;;  %2092 = vadd.xlane.f32.xlu0 %v2091_v45  ;;  %9000 = vpow2.f32 %v2606_v27 }
 0x8d8   :  { %v2739_v11 = vmul.f32 1.442695, %v2736_v40  ;;  %v10509_v3 = vpop.eup %8996 }
 0x8d9   :  { %v2865_v31 = vpop.xlane.xlu0 %2864  ;;  %v2355_v9 = vsel %vm438_vm6, %v10509_v3, 0.0 }
 0x8da   :  { %v2867_v32 = vsub.f32 %v10441_v43, %v2865_v31  ;;  %2225 = vadd.xlane.f32.xlu0 %v2224_v56  ;;  %9002 = vpow2.f32 %v2739_v11 }
 0x8dc   :  { %v2870_v30 = vmul.f32 1.442695, %v2867_v32  ;;  %v10514_v42 = vpop.eup %8998 }
 0x8dd   :  { %v8831_v39 = vpop.permute.xlu0 %8830  ;;  %v2486_v16 = vsel %vm438_vm6, %v10514_v42, 0.0 }
 0x8de   :  { %v8833_v34 = vunpack.i.h.bf16 %v8831_v39  ;;  %v8832_v49 = vunpack.i.l.bf16 %v8831_v39  ;;  %2356 = vadd.xlane.f32.xlu0 %v2355_v9  ;;  %9004 = vpow2.f32 %v2870_v30 }
 0x8e0   :  { %v8110_v38 = vpack.c.bf16 %v8833_v34, %v8832_v49  ;;  %v10518_v22 = vpop.eup %9000 }
 0x8e1   :  { %v2611_v43 = vsel %vm438_vm6, %v10518_v22, 0.0 }
 0x8e2   :  { %8111 = vmatprep.subr.bf16.mxu1 %v8110_v38  ;;  %2487 = vadd.xlane.f32.xlu0 %v2486_v16  ;;  %v8843_v16 = vunpack.i.h.bf16 %v8841_v26 }
 0x8e3   :  { %8850 = vrot.lane.b32.xlu1 %v10250_v44, %s9189_s24 }
 0x8e4   :  { %v10524_v36 = vpop.eup %9002 }
 0x8e5   :  { %v2744_v18 = vsel %vm438_vm6, %v10524_v36, 0.0 }
 0x8e6   :  { %2612 = vadd.xlane.f32.xlu0 %v2611_v43  ;;  %v8842_v43 = vunpack.i.l.bf16 %v8841_v26 }
 0x8e8   :  { %v10528_v59 = vpop.eup %9004 }
 0x8e9   :  { %v2875_v7 = vsel %vm438_vm6, %v10528_v59, 0.0 }
 0x8ea   :  { %2745 = vadd.xlane.f32.xlu0 %v2744_v18 }
 0x8ee   :  { %2876 = vadd.xlane.f32.xlu0 %v2875_v7 }
 0x904   :  { %8845 = vrot.lane.b32.xlu0 %v10250_v44, %s9188_s23 }
 0x943   :  { %v1965_v6 = vpop.xlane.xlu1 %1964 }
 0x944   :  { %9006 = vrcp.f32 %v1965_v6 }
 0x947   :  { %v2090_v55 = vpop.xlane.xlu1 %2089 }
 0x948   :  { %9008 = vrcp.f32 %v2090_v55 }
 0x94b   :  { %v2223_v54 = vpop.xlane.xlu1 %2222 }
 0x94c   :  { %9010 = vrcp.f32 %v2223_v54 }
 0x94e   :  { %v9007_v28 = vpop.eup %9006 }
 0x94f   :  { %v1971_v5 = vmul.f32 %v9007_v28, %v10454_v41  ;;  %v2354_v45 = vpop.xlane.xlu1 %2353 }
 0x951   :  { %7742 = vmatprep.mubr.msk.f32.mxu1 %vm438_vm6, %v1971_v5 }
 0x952   :  { %v9009_v27 = vpop.eup %9008 }
 0x953   :  { %v2096_v4 = vmul.f32 %v9009_v27, %v10459_v33  ;;  %v2485_v40 = vpop.xlane.xlu1 %2484 }
 0x955   :  { %7749 = vmatprep.mubr.msk.f32.mxu0 %vm438_vm6, %v2096_v4 }
 0x956   :  { %v9011_v41 = vpop.eup %9010 }
 0x957   :  { %v2610_v11 = vpop.xlane.xlu1 %2609  ;;  %v2229_v34 = vmul.f32 %v9011_v41, %v10464_v20  ;;  %v8122_v20 = vpack.c.bf16 %v8843_v16, %v8842_v43  ;;  %v3058_v43 = vld [vmem:[%s13029_s10 + $0x48] sm:$0xff] }
 0x95b   :  { %v2743_v56 = vpop.xlane.xlu1 %2742 }
 0x95f   :  { %v1968_v44 = vpop.xlane.xlu0 %1967  ;;  %v2874_v9 = vpop.xlane.xlu1 %2873 }
 0x960   :  { %9012 = vrcp.f32 %v1968_v44 }
 0x961   :  { %9014 = vrcp.f32 %v2354_v45 }
 0x963   :  { %v2093_v31 = vpop.xlane.xlu0 %2092  ;;  %v8851_v28 = vpop.permute.xlu1 %8850 }
 0x964   :  { %9016 = vrcp.f32 %v2093_v31  ;;  %v8852_v27 = vunpack.i.l.bf16 %v8851_v28 }
 0x965   :  { %9018 = vrcp.f32 %v2485_v40 }
 0x967   :  { %v2226_v32 = vpop.xlane.xlu0 %2225 }
 0x968   :  { %9020 = vrcp.f32 %v2226_v32 }
 0x969   :  { %9022 = vrcp.f32 %v2610_v11 }
 0x96a   :  { %v9013_v30 = vpop.eup %9012 }
 0x96b   :  { %v1972_v33 = vmul.f32 %v9013_v30, %v10493_v52  ;;  %v2357_v39 = vpop.xlane.xlu0 %2356  ;;  %v9015_v49 = vpop.eup %9014 }
 0x96c   :  { %9024 = vrcp.f32 %v2357_v39  ;;  %v2360_v6 = vmul.f32 %v9015_v49, %v10470_v48  ;;  %v8853_v48 = vunpack.i.h.bf16 %v8851_v28  ;;  %v3049_v49 = vld [vmem:[%s13029_s10] sm:$0xff] }
 0x96d   :  { %7743 = vmatmul.mubr.msk.f32.vlgmr.msra.gmra.mrb[26].mxu1 %vm438_vm6, %v1972_v33  ;;  %9026 = vrcp.f32 %v2743_v56  ;;  %v3061_v28 = vld [vmem:[%s13029_s10 + $0x60] sm:$0xff] }
 0x96e   :  { %v9017_v18 = vpop.eup %9016  ;;  %8113 = vmatpush3.bf16.msra.mxu1 %v8110_v38  ;;  %7756 = vmatprep.mubr.msk.f32.mxu1 %vm438_vm6, %v2229_v34 }
 0x96f   :  { %v2097_v7 = vmul.f32 %v9017_v18, %v10499_v58  ;;  %8119 = vmatprep.subr.bf16.mxu1 %v10252_v37  ;;  %v2488_v52 = vpop.xlane.xlu0 %2487  ;;  %v9019_v55 = vpop.eup %9018 }
 0x970   :  { %9028 = vrcp.f32 %v2488_v52  ;;  %v2491_v54 = vmul.f32 %v9019_v55, %v10476_v25  ;;  %v8130_v25 = vpack.c.bf16 %v8853_v48, %v8852_v27  ;;  %v3051_v52 = vld [vmem:[%s13029_s10 + $0x10] sm:$0xff]  ;;  %v3062_v55 = vld [vmem:[%s13029_s10 + $0x68] sm:$0xff] }
 0x971   :  { %7750 = vmatmul.mubr.msk.f32.vlgmr.msra.gmra.mrb[14].mxu0 %vm438_vm6, %v2097_v7  ;;  %9030 = vrcp.f32 %v2874_v9  ;;  %v3070_v48 = vld [vmem:[%s13029_s10 + $0xa8] sm:$0xff]  ;;  %v3063_v27 = vld [vmem:[%s13029_s10 + $0x70] sm:$0xff] }
 0x972   :  { %v9021_v26 = vpop.eup %9020  ;;  %8117 = vmatpush3.bf16.msra.mxu0 %v10450_v10  ;;  %7763 = vmatprep.mubr.msk.f32.mxu0 %vm438_vm6, %v2360_v6  ;;  %v3057_v6 = vld [vmem:[%s13029_s10 + $0x40] sm:$0xff] }
 0x973   :  { %8123 = vmatprep.subr.bf16.mxu0 %v8122_v20  ;;  %v2613_v38 = vpop.xlane.xlu0 %2612  ;;  %v2230_v58 = vmul.f32 %v9021_v26, %v10504_v51  ;;  %v9023_v5 = vpop.eup %9022  ;;  %v3068_v26 = vld [vmem:[%s13029_s10 + $0x98] sm:$0xff] }
 0x974   :  { %9032 = vrcp.f32 %v2613_v38  ;;  %v2616_v40 = vmul.f32 %v9023_v5, %v10481_v53  ;;  %v3067_v38 = vld [vmem:[%s13029_s10 + $0x90] sm:$0xff]  ;;  %v3064_v5 = vld [vmem:[%s13029_s10 + $0x78] sm:$0xff] }
 0x975   :  { %7757 = vmatmul.mubr.msk.f32.vlgmr.msra.gmra.mrb[28].mxu1 %vm438_vm6, %v2230_v58  ;;  %v8138_v58 = vpack.c.bf16 %v3068_v26, %v3062_v55  ;;  %v3103_v55 = vld [vmem:[%s13029_s10 + $0x1b0] sm:$0xff] }
 0x976   :  { %v9025_v4 = vpop.eup %9024  ;;  %8121 = vmatpush3.bf16.msra.mxu1 %v10252_v37  ;;  %7770 = vmatprep.mubr.msk.f32.mxu1 %vm438_vm6, %v2491_v54  ;;  %v8140_v54 = vpack.c.bf16 %v3067_v38, %v3061_v28  ;;  %v3105_v28 = vld [vmem:[%s13029_s10 + $0x1c0] sm:$0xff]  ;;  %v3110_v38 = vld [vmem:[%s13029_s10 + $0x1e8] sm:$0xff] }
 0x977   :  { %v2746_v10 = vpop.xlane.xlu0 %2745  ;;  %v2361_v45 = vmul.f32 %v9025_v4, %v10509_v3  ;;  %v9027_v44 = vpop.eup %9026  ;;  %v8202_v4 = vpack.c.bf16 %v3070_v48, %v3064_v5  ;;  %v3118_v5 = vld [vmem:[%s13029_s10 + $0x228] sm:$0xff] }
 0x978   :  { %9034 = vrcp.f32 %v2746_v10  ;;  %v2749_v31 = vmul.f32 %v9027_v44, %v10486_v24  ;;  %v3069_v10 = vld [vmem:[%s13029_s10 + $0xa0] sm:$0xff] }
 0x979   :  { %7764 = vmatmul.mubr.msk.f32.vlgmr.msra.gmra.mrb[16].mxu0 %vm438_vm6, %v2361_v45  ;;  %v3074_v45 = vld [vmem:[%s13029_s10 + $0xc8] sm:$0xff]  ;;  %v8204_v44 = vpack.c.bf16 %v3069_v10, %v3063_v27  ;;  %v3109_v10 = vld [vmem:[%s13029_s10 + $0x1e0] sm:$0xff] }
 0x97a   :  { %v9029_v51 = vpop.eup %9028  ;;  %8125 = vmatpush3.bf16.msra.mxu0 %v8122_v20  ;;  %7777 = vmatprep.mubr.msk.f32.mxu0 %vm438_vm6, %v2616_v40  ;;  %v8200_v20 = vpack.c.bf16 %v3057_v6, %v3051_v52  ;;  %v3080_v40 = vld [vmem:[%s13029_s10 + $0xf8] sm:$0xff]  ;;  %v3097_v6 = vld [vmem:[%s13029_s10 + $0x180] sm:$0xff] }
 0x97b   :  { %8131 = vmatprep.subr.bf16.mxu0 %v8130_v25  ;;  %v2877_v11 = vpop.xlane.xlu0 %2876  ;;  %v2492_v37 = vmul.f32 %v9029_v51, %v10514_v42  ;;  %v9031_v56 = vpop.eup %9030  ;;  %v3073_v51 = vld [vmem:[%s13029_s10 + $0xc0] sm:$0xff]  ;;  %v8152_v48 = vpack.c.bf16 %v3103_v55, %v3097_v6  ;;  %v3146_v6 = vld [vmem:[%s13029_s10 + $0x308] sm:$0xff]  ;;  %v3152_v55 = vld [vmem:[%s13029_s10 + $0x338] sm:$0xff] }
 0x97c   :  { %9036 = vrcp.f32 %v2877_v11  ;;  %v2880_v33 = vmul.f32 %v9031_v56, %v10490_v8  ;;  %v3050_v8 = vld [vmem:[%s13029_s10 + $0x8] sm:$0xff]  ;;  %v3079_v11 = vld [vmem:[%s13029_s10 + $0xf0] sm:$0xff] }
 0x97d   :  { %7771 = vmatmul.mubr.msk.f32.vlgmr.msra.gmra.mrb[30].mxu1 %vm438_vm6, %v2492_v37  ;;  %v3076_v37 = vld [vmem:[%s13029_s10 + $0xd8] sm:$0xff]  ;;  %v3075_v56 = vld [vmem:[%s13029_s10 + $0xd0] sm:$0xff] }
 0x97e   :  { %v9033_v53 = vpop.eup %9032  ;;  %7784 = vmatprep.mubr.msk.f32.mxu1 %vm438_vm6, %v2749_v31  ;;  %v3082_v31 = vld [vmem:[%s13029_s10 + $0x108] sm:$0xff] }
 0x97f   :  { %v8846_v3 = vpop.permute.xlu0 %8845  ;;  %v2617_v32 = vmul.f32 %v9033_v53, %v10518_v22  ;;  %v3056_v22 = vld [vmem:[%s13029_s10 + $0x38] sm:$0xff]  ;;  %v3081_v53 = vld [vmem:[%s13029_s10 + $0x100] sm:$0xff] }
 0x980   :  { %v8848_v41 = vunpack.i.h.bf16 %v8846_v3  ;;  %v8847_v30 = vunpack.i.l.bf16 %v8846_v3  ;;  %v8134_v16 = vpack.c.bf16 %v3056_v22, %v3050_v8  ;;  %v8144_v3 = vpack.c.bf16 %v3079_v11, %v3073_v51  ;;  %v3087_v22 = vld [vmem:[%s13029_s10 + $0x130] sm:$0xff]  ;;  %v3122_v51 = vld [vmem:[%s13029_s10 + $0x248] sm:$0xff]  ;;  %v3128_v11 = vld [vmem:[%s13029_s10 + $0x278] sm:$0xff] }
 0x981   :  { %7778 = vmatmul.mubr.msk.f32.vlgmr.msra.gmra.mrb[18].mxu0 %vm438_vm6, %v2617_v32  ;;  %v8206_v32 = vpack.c.bf16 %v3082_v31, %v3076_v37  ;;  %v3124_v37 = vld [vmem:[%s13029_s10 + $0x258] sm:$0xff]  ;;  %v3130_v31 = vld [vmem:[%s13029_s10 + $0x288] sm:$0xff] }
 0x982   :  { %v8126_v39 = vpack.c.bf16 %v8848_v41, %v8847_v30  ;;  %8133 = vmatpush3.bf16.msra.mxu0 %v8130_v25  ;;  %7791 = vmatprep.mubr.msk.f32.mxu0 %vm438_vm6, %v2880_v33  ;;  %v9035_v24 = vpop.eup %9034  ;;  %v8142_v25 = vpack.c.bf16 %v3080_v40, %v3074_v45  ;;  %v3086_v41 = vld [vmem:[%s13029_s10 + $0x128] sm:$0xff]  ;;  %v3092_v30 = vld [vmem:[%s13029_s10 + $0x158] sm:$0xff]  ;;  %v3085_v33 = vld [vmem:[%s13029_s10 + $0x120] sm:$0xff] }
 0x983   :  { %v2750_v9 = vmul.f32 %v9035_v24, %v10524_v36  ;;  %v3055_v36 = vld [vmem:[%s13029_s10 + $0x30] sm:$0xff]  ;;  %v8146_v24 = vpack.c.bf16 %v3092_v30, %v3086_v41 }
 0x984   :  { %8127 = vmatprep.subr.bf16.mxu1 %v8126_v39  ;;  %v8136_v18 = vpack.c.bf16 %v3055_v36, %v3049_v49  ;;  %v3093_v49 = vld [vmem:[%s13029_s10 + $0x160] sm:$0xff]  ;;  %v3104_v36 = vld [vmem:[%s13029_s10 + $0x1b8] sm:$0xff]  ;;  %v3115_v45 = vld [vmem:[%s13029_s10 + $0x210] sm:$0xff] }
 0x985   :  { %8129 = vmatpush3.bf16.msra.mxu1 %v8126_v39  ;;  %v8208_v39 = vpack.c.bf16 %v3081_v53, %v3075_v56  ;;  %v3111_v40 = vld [vmem:[%s13029_s10 + $0x1f0] sm:$0xff]  ;;  %v8156_v56 = vpack.c.bf16 %v3115_v45, %v3109_v10  ;;  %v3158_v10 = vld [vmem:[%s13029_s10 + $0x368] sm:$0xff]  ;;  %v3164_v45 = vld [vmem:[%s13029_s10 + $0x398] sm:$0xff] }
 0x986   :  { %v9037_v42 = vpop.eup %9036  ;;  %8135 = vmatprep.subr.bf16.mxu1 %v8134_v16  ;;  %v3098_v16 = vld [vmem:[%s13029_s10 + $0x188] sm:$0xff]  ;;  %v3127_v41 = vld [vmem:[%s13029_s10 + $0x270] sm:$0xff] }
 0x987   :  { %v2881_v34 = vmul.f32 %v9037_v42, %v10528_v59  ;;  %v3052_v59 = vld [vmem:[%s13029_s10 + $0x18] sm:$0xff]  ;;  %v3091_v42 = vld [vmem:[%s13029_s10 + $0x150] sm:$0xff]  ;;  %v8150_v52 = vpack.c.bf16 %v3104_v36, %v3098_v16  ;;  %v3133_v16 = vld [vmem:[%s13029_s10 + $0x2a0] sm:$0xff] }
 0x988   :  { %7785 = vmatmul.mubr.msk.f32.vlgmr.msra.gmra.mrb[32].mxu1 %vm438_vm6, %v2750_v9  ;;  %v8198_v7 = vpack.c.bf16 %v3058_v43, %v3052_v59  ;;  %v3088_v9 = vld [vmem:[%s13029_s10 + $0x138] sm:$0xff]  ;;  %v8148_v59 = vpack.c.bf16 %v3091_v42, %v3085_v33  ;;  %v3123_v30 = vld [vmem:[%s13029_s10 + $0x250] sm:$0xff]  ;;  %v8222_v33 = vpack.c.bf16 %v3130_v31, %v3124_v37 }
 0x989   :  { %7792 = vmatmul.mubr.msk.f32.vlgmr.msra.gmra.mrb[20].mxu0 %vm438_vm6, %v2881_v34  ;;  %8137 = vmatpush1.bf16.msra.mxu1 %v8136_v18  ;;  %v3094_v34 = vld [vmem:[%s13029_s10 + $0x168] sm:$0xff]  ;;  %v3100_v43 = vld [vmem:[%s13029_s10 + $0x198] sm:$0xff]  ;;  %v3139_v36 = vld [vmem:[%s13029_s10 + $0x2d0] sm:$0xff] }
 0x98a   :  { %8199 = vmatprep.subr.bf16.mxu0 %v8198_v7  ;;  %8139 = vmatprep.subr.bf16.mxu1 %v8138_v58  ;;  %v8210_v8 = vpack.c.bf16 %v3094_v34, %v3088_v9  ;;  %v3106_v18 = vld [vmem:[%s13029_s10 + $0x1c8] sm:$0xff]  ;;  %v8212_v7 = vpack.c.bf16 %v3093_v49, %v3087_v22  ;;  %v3116_v58 = vld [vmem:[%s13029_s10 + $0x218] sm:$0xff] }
 0x98b   :  { %8201 = vmatpush1.bf16.msra.mxu0 %v8200_v20  ;;  %v3099_v20 = vld [vmem:[%s13029_s10 + $0x190] sm:$0xff]  ;;  %v8214_v26 = vpack.c.bf16 %v3106_v18, %v3100_v43  ;;  %v3140_v42 = vld [vmem:[%s13029_s10 + $0x2d8] sm:$0xff]  ;;  %v3142_v34 = vld [vmem:[%s13029_s10 + $0x2e8] sm:$0xff] }
 0x98c   :  { %8203 = vmatprep.subr.bf16.mxu0 %v8202_v4  ;;  %v8216_v27 = vpack.c.bf16 %v3105_v28, %v3099_v20  ;;  %v8154_v4 = vpack.c.bf16 %v3116_v58, %v3110_v38  ;;  %v3136_v9 = vld [vmem:[%s13029_s10 + $0x2b8] sm:$0xff]  ;;  %v3135_v43 = vld [vmem:[%s13029_s10 + $0x2b0] sm:$0xff]  ;;  %v3141_v18 = vld [vmem:[%s13029_s10 + $0x2e0] sm:$0xff] }
 0x98d   :  { %8141 = vmatpush1.bf16.msra.mxu1 %v8140_v54  ;;  %v3112_v54 = vld [vmem:[%s13029_s10 + $0x1f8] sm:$0xff]  ;;  %v3145_v20 = vld [vmem:[%s13029_s10 + $0x300] sm:$0xff]  ;;  %v3151_v28 = vld [vmem:[%s13029_s10 + $0x330] sm:$0xff] }
 0x98e   :  { %8143 = vmatprep.subr.bf16.mxu1 %v8142_v25  ;;  %v3117_v25 = vld [vmem:[%s13029_s10 + $0x220] sm:$0xff]  ;;  %v3148_v38 = vld [vmem:[%s13029_s10 + $0x318] sm:$0xff]  ;;  %v3154_v58 = vld [vmem:[%s13029_s10 + $0x348] sm:$0xff] }
 0x98f   :  { %8205 = vmatpush1.bf16.msra.mxu0 %v8204_v44  ;;  %v8218_v44 = vpack.c.bf16 %v3118_v5, %v3112_v54  ;;  %v8220_v53 = vpack.c.bf16 %v3117_v25, %v3111_v40  ;;  %v8168_v54 = vpack.c.bf16 %v3151_v28, %v3145_v20  ;;  %v8230_v5 = vpack.c.bf16 %v3154_v58, %v3148_v38  ;;  %v3157_v40 = vld [vmem:[%s13029_s10 + $0x360] sm:$0xff]  ;;  %v3163_v25 = vld [vmem:[%s13029_s10 + $0x390] sm:$0xff]  ;;  %v3184_v28 = vld [vmem:[%s13029_s10 + $0x438] sm:$0xff] }
 0x990   :  { %8207 = vmatprep.subr.bf16.mxu0 %v8206_v32  ;;  %v3121_v32 = vld [vmem:[%s13029_s10 + $0x240] sm:$0xff]  ;;  %v8172_v37 = vpack.c.bf16 %v3163_v25, %v3157_v40  ;;  %v3190_v38 = vld [vmem:[%s13029_s10 + $0x468] sm:$0xff]  ;;  %v3183_v58 = vld [vmem:[%s13029_s10 + $0x430] sm:$0xff] }
 0x991   :  { %8145 = vmatpush1.bf16.msra.mxu1 %v8144_v3  ;;  %v8158_v3 = vpack.c.bf16 %v3128_v11, %v3122_v51  ;;  %v3160_v51 = vld [vmem:[%s13029_s10 + $0x378] sm:$0xff]  ;;  %v3166_v11 = vld [vmem:[%s13029_s10 + $0x3a8] sm:$0xff]  ;;  %v3193_v40 = vld [vmem:[%s13029_s10 + $0x480] sm:$0xff] }
 0x992   :  { %8147 = vmatprep.subr.bf16.mxu1 %v8146_v24  ;;  %v3134_v24 = vld [vmem:[%s13029_s10 + $0x2a8] sm:$0xff]  ;;  %v8234_v31 = vpack.c.bf16 %v3166_v11, %v3160_v51  ;;  %v3196_v25 = vld [vmem:[%s13029_s10 + $0x498] sm:$0xff]  ;;  %v3195_v11 = vld [vmem:[%s13029_s10 + $0x490] sm:$0xff] }
 0x993   :  { %8209 = vmatpush1.bf16.msra.mxu0 %v8208_v39  ;;  %v3129_v39 = vld [vmem:[%s13029_s10 + $0x280] sm:$0xff]  ;;  %v8162_v49 = vpack.c.bf16 %v3140_v42, %v3134_v24  ;;  %v3202_v51 = vld [vmem:[%s13029_s10 + $0x4c8] sm:$0xff] }
 0x994   :  { %8211 = vmatprep.subr.bf16.mxu0 %v8210_v8  ;;  %v8160_v8 = vpack.c.bf16 %v3127_v41, %v3121_v32  ;;  %v8224_v22 = vpack.c.bf16 %v3129_v39, %v3123_v30  ;;  %v3176_v39 = vld [vmem:[%s13029_s10 + $0x3f8] sm:$0xff]  ;;  %v3169_v24 = vld [vmem:[%s13029_s10 + $0x3c0] sm:$0xff] }
 0x995   :  { %8149 = vmatpush1.bf16.msra.mxu1 %v8148_v59  ;;  %v8226_v59 = vpack.c.bf16 %v3142_v34, %v3136_v9  ;;  %v3175_v34 = vld [vmem:[%s13029_s10 + $0x3f0] sm:$0xff] }
 0x996   :  { %8151 = vmatprep.subr.bf16.mxu1 %v8150_v52  ;;  %v8228_v52 = vpack.c.bf16 %v3141_v18, %v3135_v43  ;;  %v3182_v43 = vld [vmem:[%s13029_s10 + $0x428] sm:$0xff] }
 0x997   :  { %8213 = vmatpush1.bf16.msra.mxu0 %v8212_v7  ;;  %v8164_v7 = vpack.c.bf16 %v3139_v36, %v3133_v16  ;;  %v3171_v36 = vld [vmem:[%s13029_s10 + $0x3d0] sm:$0xff] }
 0x998   :  { %8215 = vmatprep.subr.bf16.mxu0 %v8214_v26  ;;  %v8166_v26 = vpack.c.bf16 %v3152_v55, %v3146_v6  ;;  %v3187_v6 = vld [vmem:[%s13029_s10 + $0x450] sm:$0xff] }
 0x999   :  { %8153 = vmatpush1.bf16.msra.mxu1 %v8152_v48  ;;  %v3147_v48 = vld [vmem:[%s13029_s10 + $0x310] sm:$0xff] }
 0x99a   :  { %8155 = vmatprep.subr.bf16.mxu1 %v8154_v4 }
 0x99b   :  { %8217 = vmatpush1.bf16.msra.mxu0 %v8216_v27  ;;  %v3153_v27 = vld [vmem:[%s13029_s10 + $0x340] sm:$0xff] }
 0x99c   :  { %8219 = vmatprep.subr.bf16.mxu0 %v8218_v44  ;;  %v8232_v4 = vpack.c.bf16 %v3153_v27, %v3147_v48  ;;  %v8170_v44 = vpack.c.bf16 %v3164_v45, %v3158_v10  ;;  %v3189_v48 = vld [vmem:[%s13029_s10 + $0x460] sm:$0xff]  ;;  %v3194_v27 = vld [vmem:[%s13029_s10 + $0x488] sm:$0xff] }
 0x99d   :  { %8157 = vmatpush1.bf16.msra.mxu1 %v8156_v56  ;;  %v3159_v56 = vld [vmem:[%s13029_s10 + $0x370] sm:$0xff]  ;;  %v8244_v10 = vpack.c.bf16 %v3189_v48, %v3183_v58  ;;  %v3226_v58 = vld [vmem:[%s13029_s10 + $0x588] sm:$0xff] }
 0x99e   :  { %8159 = vmatprep.subr.bf16.mxu1 %v8158_v3 }
 0x99f   :  { %8221 = vmatpush1.bf16.msra.mxu0 %v8220_v53  ;;  %v3165_v53 = vld [vmem:[%s13029_s10 + $0x3a0] sm:$0xff] }
 0x9a0   :  { %8223 = vmatprep.subr.bf16.mxu0 %v8222_v33  ;;  %v8236_v32 = vpack.c.bf16 %v3165_v53, %v3159_v56  ;;  %v3170_v33 = vld [vmem:[%s13029_s10 + $0x3c8] sm:$0xff]  ;;  %v8246_v53 = vpack.c.bf16 %v3202_v51, %v3196_v25  ;;  %v3236_v25 = vld [vmem:[%s13029_s10 + $0x5d8] sm:$0xff]  ;;  %v3229_v51 = vld [vmem:[%s13029_s10 + $0x5a0] sm:$0xff] }
 0x9a1   :  { %8161 = vmatpush1.bf16.msra.mxu1 %v8160_v8  ;;  %v8174_v9 = vpack.c.bf16 %v3176_v39, %v3170_v33  ;;  %v3172_v8 = vld [vmem:[%s13029_s10 + $0x3d8] sm:$0xff] }
 0x9a2   :  { %8163 = vmatprep.subr.bf16.mxu1 %v8162_v49  ;;  %v8176_v49 = vpack.c.bf16 %v3175_v34, %v3169_v24  ;;  %v3206_v34 = vld [vmem:[%s13029_s10 + $0x4e8] sm:$0xff] }
 0x9a3   :  { %8225 = vmatpush1.bf16.msra.mxu0 %v8224_v22  ;;  %v3178_v22 = vld [vmem:[%s13029_s10 + $0x408] sm:$0xff] }
 0x9a4   :  { %8227 = vmatprep.subr.bf16.mxu0 %v8226_v59  ;;  %v8238_v16 = vpack.c.bf16 %v3178_v22, %v3172_v8  ;;  %v3177_v59 = vld [vmem:[%s13029_s10 + $0x400] sm:$0xff]  ;;  %v3212_v8 = vld [vmem:[%s13029_s10 + $0x518] sm:$0xff] }
 0x9a5   :  { %8165 = vmatpush1.bf16.msra.mxu1 %v8164_v7  ;;  %v8240_v18 = vpack.c.bf16 %v3177_v59, %v3171_v36  ;;  %v3188_v7 = vld [vmem:[%s13029_s10 + $0x458] sm:$0xff]  ;;  %v8186_v22 = vpack.c.bf16 %v3212_v8, %v3206_v34  ;;  %v3214_v59 = vld [vmem:[%s13029_s10 + $0x528] sm:$0xff]  ;;  %v3237_v34 = vld [vmem:[%s13029_s10 + $0x5e0] sm:$0xff] }
 0x9a6   :  { %8167 = vmatprep.subr.bf16.mxu1 %v8166_v26  ;;  %v8178_v20 = vpack.c.bf16 %v3188_v7, %v3182_v43  ;;  %v3207_v43 = vld [vmem:[%s13029_s10 + $0x4f0] sm:$0xff]  ;;  %v3054_v8 = vld [vmem:[%s13029_s10 + $0x28] sm:$0xff] }
 0x9a7   :  { %8229 = vmatpush1.bf16.msra.mxu0 %v8228_v52  ;;  %v3181_v52 = vld [vmem:[%s13029_s10 + $0x420] sm:$0xff] }
 0x9a8   :  { %8231 = vmatprep.subr.bf16.mxu0 %v8230_v5  ;;  %v8180_v26 = vpack.c.bf16 %v3187_v6, %v3181_v52  ;;  %v8242_v5 = vpack.c.bf16 %v3190_v38, %v3184_v28  ;;  %v3218_v6 = vld [vmem:[%s13029_s10 + $0x548] sm:$0xff]  ;;  %v3223_v28 = vld [vmem:[%s13029_s10 + $0x570] sm:$0xff]  ;;  %v3220_v38 = vld [vmem:[%s13029_s10 + $0x558] sm:$0xff] }
 0x9a9   :  { %8169 = vmatpush1.bf16.msra.mxu1 %v8168_v54  ;;  %v8254_v48 = vpack.c.bf16 %v3226_v58, %v3220_v38 }
 0x9aa   :  { %8171 = vmatprep.subr.bf16.mxu1 %v8170_v44  ;;  %v3199_v44 = vld [vmem:[%s13029_s10 + $0x4b0] sm:$0xff] }
 0x9ab   :  { %8233 = vmatpush1.bf16.msra.mxu0 %v8232_v4  ;;  %v3200_v4 = vld [vmem:[%s13029_s10 + $0x4b8] sm:$0xff]  ;;  %v8184_v56 = vpack.c.bf16 %v3199_v44, %v3193_v40 }
 0x9ac   :  { %8235 = vmatprep.subr.bf16.mxu0 %v8234_v31  ;;  %v8182_v45 = vpack.c.bf16 %v3200_v4, %v3194_v27  ;;  %v3219_v27 = vld [vmem:[%s13029_s10 + $0x550] sm:$0xff]  ;;  %v3225_v4 = vld [vmem:[%s13029_s10 + $0x580] sm:$0xff] }
 0x9ad   :  { %8173 = vmatpush1.bf16.msra.mxu1 %v8172_v37  ;;  %v3201_v37 = vld [vmem:[%s13029_s10 + $0x4c0] sm:$0xff]  ;;  %v8256_v44 = vpack.c.bf16 %v3225_v4, %v3219_v27  ;;  %v3059_v27 = vld [vmem:[%s13029_s10 + $0x50] sm:$0xff] }
 0x9ae   :  { %8175 = vmatprep.subr.bf16.mxu1 %v8174_v9  ;;  %v8248_v33 = vpack.c.bf16 %v3201_v37, %v3195_v11  ;;  %v3235_v11 = vld [vmem:[%s13029_s10 + $0x5d0] sm:$0xff] }
 0x9af   :  { %8237 = vmatpush1.bf16.msra.mxu0 %v8236_v32 }
 0x9b0   :  { %8239 = vmatprep.subr.bf16.mxu0 %v8238_v16  ;;  %v3208_v16 = vld [vmem:[%s13029_s10 + $0x4f8] sm:$0xff] }
 0x9b1   :  { %8177 = vmatpush1.bf16.msra.mxu1 %v8176_v49  ;;  %v3205_v49 = vld [vmem:[%s13029_s10 + $0x4e0] sm:$0xff]  ;;  %v8250_v7 = vpack.c.bf16 %v3214_v59, %v3208_v16 }
 0x9b2   :  { %8179 = vmatprep.subr.bf16.mxu1 %v8178_v20  ;;  %v3217_v20 = vld [vmem:[%s13029_s10 + $0x540] sm:$0xff] }
 0x9b3   :  { %8241 = vmatpush1.bf16.msra.mxu0 %v8240_v18  ;;  %v3213_v18 = vld [vmem:[%s13029_s10 + $0x520] sm:$0xff] }
 0x9b4   :  { %8243 = vmatprep.subr.bf16.mxu0 %v8242_v5  ;;  %v8252_v52 = vpack.c.bf16 %v3213_v18, %v3207_v43  ;;  %v8192_v5 = vpack.c.bf16 %v3223_v28, %v3217_v20  ;;  %v3488_v16 = vld [vmem:[%s13030_s11 + $0x80] sm:$0xff] }
 0x9b5   :  { %8181 = vmatpush1.bf16.msra.mxu1 %v8180_v26 }
 0x9b6   :  { %8183 = vmatprep.subr.bf16.mxu1 %v8182_v45 }
 0x9b7   :  { %8245 = vmatpush1.bf16.msra.mxu0 %v8244_v10  ;;  %v3230_v10 = vld [vmem:[%s13029_s10 + $0x5a8] sm:$0xff] }
 0x9b8   :  { %8247 = vmatprep.subr.bf16.mxu0 %v8246_v53  ;;  %v3238_v53 = vld [vmem:[%s13029_s10 + $0x5e8] sm:$0xff] }
 0x9b9   :  { %8185 = vmatpush1.bf16.msra.mxu1 %v8184_v56  ;;  %v3232_v56 = vld [vmem:[%s13029_s10 + $0x5b8] sm:$0xff] }
 0x9ba   :  { %8187 = vmatprep.subr.bf16.mxu1 %v8186_v22  ;;  %v3060_v22 = vld [vmem:[%s13029_s10 + $0x58] sm:$0xff] }
 0x9bb   :  { %8249 = vmatpush1.bf16.msra.mxu0 %v8248_v33  ;;  %v8196_v33 = vpack.c.bf16 %v3235_v11, %v3229_v51  ;;  %v3072_v51 = vld [vmem:[%s13029_s10 + $0xb8] sm:$0xff]  ;;  %v3490_v11 = vld [vmem:[%s13030_s11 + $0x90] sm:$0xff] }
 0x9bc   :  { %8251 = vmatprep.subr.bf16.mxu0 %v8250_v7 }
 0x9bf   :  { %8253 = vmatpush1.bf16.msra.mxu0 %v8252_v52 }
 0x9c0   :  { %8255 = vmatprep.subr.bf16.mxu0 %v8254_v48 }
 0x9c3   :  { %8257 = vmatpush1.bf16.msra.mxu0 %v8256_v44  ;;  %v3473_v44 = vld [vmem:[%s13030_s11 + $0x8] sm:$0xff] }
 0xa40   :  { %v10809_v3 = vpop.f32.mrb[26].mxu1 }
 0xa41   :  { %v10811_v41 = vpop.f32.mrb[27].mxu1 }
 0xa44   :  { %v7751_v30 = vpop.f32.mrb[14].mxu0 }
 0xa45   :  { %v2178_v42 = vpop.f32.mrb[15].mxu0 }
 0xa46   :  { %2971 = vrot.lane.b32.xlu1 %v2178_v42, %s9189_s24 }
 0xa48   :  { %v7758_v55 = vpop.f32.mrb[28].mxu1 }
 0xa49   :  { %v2309_v54 = vpop.f32.mrb[29].mxu1 }
 0xa4a   :  { %2979 = vrot.lane.b32.xlu1 %v2309_v54, %s9188_s23 }
 0xa4c   :  { %v7765_v31 = vpop.f32.mrb[16].mxu0 }
 0xa4d   :  { %v2440_v32 = vpop.f32.mrb[17].mxu0 }
 0xa4e   :  { %2987 = vrot.lane.b32.xlu1 %v2440_v32, %s9187_s22  ;;  %v3231_v32 = vld [vmem:[%s13029_s10 + $0x5b0] sm:$0xff] }
 0xa50   :  { %v10888_v39 = vpop.f32.mrb[30].mxu1 }
 0xa51   :  { %v10890_v24 = vpop.f32.mrb[31].mxu1 }
 0xa52   :  { %2973 = vrot.lane.b32.xlu1 %v7751_v30, %s9189_s24  ;;  %v3211_v30 = vld [vmem:[%s13029_s10 + $0x510] sm:$0xff] }
 0xa53   :  { %v8188_v36 = vpack.c.bf16 %v3211_v30, %v3205_v49  ;;  %v8262_v49 = vpack.c.bf16 %v3060_v22, %v3054_v8  ;;  %v8260_v30 = vpack.c.bf16 %v3237_v34, %v3231_v32  ;;  %v3065_v32 = vld [vmem:[%s13029_s10 + $0x80] sm:$0xff]  ;;  %v3078_v22 = vld [vmem:[%s13029_s10 + $0xe8] sm:$0xff] }
 0xa54   :  { %v7779_v42 = vpop.f32.mrb[18].mxu0 }
 0xa55   :  { %v2698_v9 = vpop.f32.mrb[19].mxu0  ;;  %8189 = vmatpush1.bf16.msra.mxu1 %v8188_v36  ;;  %v3489_v36 = vld [vmem:[%s13030_s11 + $0x88] sm:$0xff] }
 0xa56   :  { %2981 = vrot.lane.b32.xlu1 %v7758_v55, %s9188_s23  ;;  %2995 = vrot.lane.b32.xlu0 %v2698_v9, %s9189_s24  ;;  %v3224_v55 = vld [vmem:[%s13029_s10 + $0x578] sm:$0xff]  ;;  %v8258_v9 = vpack.c.bf16 %v3238_v53, %v3232_v56  ;;  %v8326_v59 = vpack.c.bf16 %v3489_v36, %v3488_v16 }
 0xa57   :  { %v8190_v26 = vpack.c.bf16 %v3224_v55, %v3218_v6  ;;  %v3475_v16 = vld [vmem:[%s13030_s11 + $0x18] sm:$0xff] }
 0xa58   :  { %8259 = vmatprep.subr.bf16.mxu0 %v8258_v9  ;;  %v3084_v36 = vld [vmem:[%s13029_s10 + $0x118] sm:$0xff] }
 0xa59   :  { %8191 = vmatprep.subr.bf16.mxu1 %v8190_v26  ;;  %8261 = vmatpush1.bf16.msra.mxu0 %v8260_v30  ;;  %v3474_v30 = vld [vmem:[%s13030_s11 + $0x10] sm:$0xff] }
 0xa5a   :  { %2989 = vrot.lane.b32.xlu1 %v7765_v31, %s9187_s22  ;;  %v8194_v31 = vpack.c.bf16 %v3236_v25, %v3230_v10  ;;  %8193 = vmatpush1.bf16.msra.mxu1 %v8192_v5 }
 0xa5b   :  { %v7786_v54 = vpop.f32.mrb[32].mxu1  ;;  %8327 = vmatprep.subr.bf16.mxu0 %v8326_v59  ;;  %v3492_v59 = vld [vmem:[%s13030_s11 + $0xa0] sm:$0xff] }
 0xa5c   :  { %v2829_v45 = vpop.f32.mrb[33].mxu1  ;;  %v7793_v40 = vpop.f32.mrb[20].mxu0  ;;  %8195 = vmatprep.subr.bf16.mxu1 %v8194_v31 }
 0xa5d   :  { %3003 = vrot.lane.b32.xlu0 %v2829_v45, %s9188_s23  ;;  %v2960_v37 = vpop.f32.mrb[21].mxu0 }
 0xa5e   :  { %8197 = vmatpush1.bf16.msra.mxu1 %v8196_v33  ;;  %v3071_v33 = vld [vmem:[%s13029_s10 + $0xb0] sm:$0xff] }
 0xa5f   :  { %8263 = vmatprep.subr.bf16.mxu1 %v8262_v49 }
 0xa61   :  { %3011 = vrot.lane.b32.xlu0 %v2960_v37, %s9187_s22  ;;  %v3491_v37 = vld [vmem:[%s13030_s11 + $0x98] sm:$0xff] }
 0xa62   :  { %v8330_v49 = vpack.c.bf16 %v3491_v37, %v3490_v11 }
 0xa65   :  { %2997 = vrot.lane.b32.xlu0 %v7779_v42, %s9189_s24  ;;  %v3029_v42 = vld [vmem:[%s13031_s9] sm:$0x3] }
 0xa66   :  { %v10992_v28 = vrot.slane %v3029_v42, %v9541_v12  ;;  %v10996_v58 = vrot.slane %v3029_v42, %v9543_v13  ;;  %v8268_v42 = vpack.c.bf16 %v3071_v33, %v3065_v32 }
 0xa69   :  { %3005 = vrot.lane.b32.xlu0 %v7786_v54, %s9188_s23 }
 0xa6d   :  { %3013 = vrot.lane.b32.xlu0 %v7793_v40, %s9187_s22  ;;  %v3472_v40 = vld [vmem:[%s13030_s11] sm:$0xff] }
 0xa6e   :  { %v8328_v9 = vpack.c.bf16 %v3473_v44, %v3472_v40 }
 0xab8   :  { %v2972_v43 = vpop.permute.xlu1 %2971 }
 0xab9   :  { %v3017_v55 = vsel %vm1505_vm8, %v10811_v41, %v2972_v43  ;;  %v3053_v41 = vld [vmem:[%s13029_s10 + $0x20] sm:$0xff]  ;;  %v3493_v43 = vld [vmem:[%s13030_s11 + $0xa8] sm:$0xff] }
 0xaba   :  { %v8264_v53 = vpack.c.bf16 %v3059_v27, %v3053_v41  ;;  %v3477_v41 = vld [vmem:[%s13030_s11 + $0x28] sm:$0xff] }
 0xabc   :  { %v2980_v18 = vpop.permute.xlu1 %2979 }
 0xabd   :  { %v3019_v26 = vsel %vm1508_vm9, %v3017_v55, %v2980_v18  ;;  %v3077_v55 = vld [vmem:[%s13029_s10 + $0xe0] sm:$0xff] }
 0xac0   :  { %v2988_v7 = vpop.permute.xlu1 %2987 }
 0xac1   :  { %v3021_v38 = vsel %vm1511_vm10, %v3019_v26, %v2988_v7  ;;  %v3090_v26 = vld [vmem:[%s13029_s10 + $0x148] sm:$0xff] }
 0xac2   :  { %v3041_v4 = vadd.f32 %v10992_v28, %v3021_v38  ;;  %v8332_v38 = vpack.c.bf16 %v3475_v16, %v3474_v30 }
 0xac4   :  { %v2974_v6 = vpop.permute.xlu1 %2973  ;;  %v11036_v34 = vmax.f32 %v3041_v4, 0.0  ;;  %v3494_v4 = vld [vmem:[%s13030_s11 + $0xb0] sm:$0xff] }
 0xac5   :  { %v3018_v7 = vsel %vm1505_vm8, %v10809_v3, %v2974_v6  ;;  %v8270_v3 = vpack.c.bf16 %v3084_v36, %v3078_v22  ;;  %v3096_v6 = vld [vmem:[%s13029_s10 + $0x178] sm:$0xff]  ;;  %v3496_v22 = vld [vmem:[%s13030_s11 + $0xc0] sm:$0xff] }
 0xac8   :  { %v2996_v52 = vpop.permute.xlu0 %2995  ;;  %v2982_v10 = vpop.permute.xlu1 %2981 }
 0xac9   :  { %v3023_v54 = vsel %vm1505_vm8, %v10890_v24, %v2996_v52  ;;  %v3066_v24 = vld [vmem:[%s13029_s10 + $0x88] sm:$0xff] }
 0xaca   :  { %v8266_v8 = vpack.c.bf16 %v3072_v51, %v3066_v24 }
 0xacc   :  { %v2990_v18 = vpop.permute.xlu1 %2989 }
 0xacf   :  { %v3004_v20 = vpop.permute.xlu0 %3003 }
 0xad0   :  { %v3025_v5 = vsel %vm1508_vm9, %v3023_v54, %v3004_v20  ;;  %v3083_v20 = vld [vmem:[%s13029_s10 + $0x110] sm:$0xff]  ;;  %v3020_v54 = vsel %vm1508_vm9, %v3018_v7, %v2982_v10  ;;  %v3495_v10 = vld [vmem:[%s13030_s11 + $0xb8] sm:$0xff] }
 0xad1   :  { %v3022_v27 = vsel %vm1511_vm10, %v3020_v54, %v2990_v18  ;;  %v8272_v24 = vpack.c.bf16 %v3083_v20, %v3077_v55  ;;  %v8338_v32 = vpack.c.bf16 %v3495_v10, %v3494_v4  ;;  %v3114_v18 = vld [vmem:[%s13029_s10 + $0x208] sm:$0xff]  ;;  %v3480_v20 = vld [vmem:[%s13030_s11 + $0x40] sm:$0xff]  ;;  %v3499_v54 = vld [vmem:[%s13030_s11 + $0xd8] sm:$0xff] }
 0xad2   :  { %v3043_v11 = vadd.f32 %v10992_v28, %v3022_v27  ;;  %v3108_v28 = vld [vmem:[%s13029_s10 + $0x1d8] sm:$0xff]  ;;  %v3482_v10 = vld [vmem:[%s13030_s11 + $0x50] sm:$0xff] }
 0xad3   :  { %v3012_v48 = vpop.permute.xlu0 %3011 }
 0xad4   :  { %v3027_v45 = vsel %vm1511_vm10, %v3025_v5, %v3012_v48  ;;  %v8334_v5 = vpack.c.bf16 %v3493_v43, %v3492_v59  ;;  %v3476_v48 = vld [vmem:[%s13030_s11 + $0x20] sm:$0xff]  ;;  %v11120_v16 = vmax.f32 %v3043_v11, 0.0  ;;  %v3107_v43 = vld [vmem:[%s13029_s10 + $0x1d0] sm:$0xff] }
 0xad5   :  { %v3042_v25 = vadd.f32 %v10996_v58, %v3027_v45  ;;  %v8336_v51 = vpack.c.bf16 %v3477_v41, %v3476_v48  ;;  %v3101_v59 = vld [vmem:[%s13029_s10 + $0x1a0] sm:$0xff]  ;;  %v3119_v48 = vld [vmem:[%s13029_s10 + $0x230] sm:$0xff]  ;;  %v3126_v41 = vld [vmem:[%s13029_s10 + $0x268] sm:$0xff] }
 0xad6   :  { %v3131_v11 = vld [vmem:[%s13029_s10 + $0x290] sm:$0xff] }
 0xad7   :  { %v11028_v31 = vmax.f32 %v3042_v25, 0.0  ;;  %v2998_v56 = vpop.permute.xlu0 %2997  ;;  %v8274_v25 = vpack.c.bf16 %v3096_v6, %v3090_v26  ;;  %v3481_v26 = vld [vmem:[%s13030_s11 + $0x48] sm:$0xff] }
 0xad8   :  { %v3024_v45 = vsel %vm1505_vm8, %v10888_v39, %v2998_v56  ;;  %v3095_v39 = vld [vmem:[%s13029_s10 + $0x170] sm:$0xff]  ;;  %v3102_v56 = vld [vmem:[%s13029_s10 + $0x1a8] sm:$0xff]  ;;  %v8344_v27 = vpack.c.bf16 %v3481_v26, %v3480_v20  ;;  %v3149_v26 = vld [vmem:[%s13029_s10 + $0x320] sm:$0xff] }
 0xad9   :  { %3305 = vmatprep.mubr.f32.mxu1 %v11028_v31  ;;  %3382 = vmatprep.mubr.f32.mxu0 %v11028_v31  ;;  %v8278_v36 = vpack.c.bf16 %v3108_v28, %v3102_v56  ;;  %v3502_v28 = vld [vmem:[%s13030_s11 + $0xf0] sm:$0xff] }
 0xada   :  { %3306 = vmatmul.mubr.f32.vlgmr.msra.gmra.mrb[34].mxu1 %v11036_v34  ;;  %3383 = vmatmul.mubr.f32.vlgmr.msra.gmra.mrb[22].mxu0 %v11036_v34 }
 0xadb   :  { %8265 = vmatpush1.bf16.msra.mxu1 %v8264_v53  ;;  %v3006_v52 = vpop.permute.xlu0 %3005  ;;  %8329 = vmatpush3.bf16.msra.mxu0 %v8328_v9  ;;  %v3089_v53 = vld [vmem:[%s13029_s10 + $0x140] sm:$0xff]  ;;  %v3478_v9 = vld [vmem:[%s13030_s11 + $0x30] sm:$0xff] }
 0xadc   :  { %8267 = vmatprep.subr.bf16.mxu1 %v8266_v8  ;;  %8331 = vmatprep.subr.bf16.mxu0 %v8330_v49  ;;  %v3026_v40 = vsel %vm1508_vm9, %v3024_v45, %v3006_v52  ;;  %v3479_v8 = vld [vmem:[%s13030_s11 + $0x38] sm:$0xff]  ;;  %v8276_v30 = vpack.c.bf16 %v3095_v39, %v3089_v53 }
 0xadd   :  { %v8340_v7 = vpack.c.bf16 %v3479_v8, %v3478_v9  ;;  %v3483_v45 = vld [vmem:[%s13030_s11 + $0x58] sm:$0xff] }
 0xade   :  { %v8348_v53 = vpack.c.bf16 %v3483_v45, %v3482_v10  ;;  %v3144_v39 = vld [vmem:[%s13029_s10 + $0x2f8] sm:$0xff] }
 0xadf   :  { %8269 = vmatpush1.bf16.msra.mxu1 %v8268_v42  ;;  %v3014_v44 = vpop.permute.xlu0 %3013  ;;  %8333 = vmatpush3.bf16.msra.mxu0 %v8332_v38  ;;  %v3120_v42 = vld [vmem:[%s13029_s10 + $0x238] sm:$0xff]  ;;  %v3498_v38 = vld [vmem:[%s13030_s11 + $0xd0] sm:$0xff] }
 0xae0   :  { %v3028_v37 = vsel %vm1511_vm10, %v3026_v40, %v3014_v44  ;;  %8271 = vmatprep.subr.bf16.mxu1 %v8270_v3  ;;  %8335 = vmatprep.subr.bf16.mxu0 %v8334_v5  ;;  %v8280_v3 = vpack.c.bf16 %v3107_v43, %v3101_v59  ;;  %v8282_v6 = vpack.c.bf16 %v3120_v42, %v3114_v18  ;;  %v3113_v5 = vld [vmem:[%s13029_s10 + $0x200] sm:$0xff]  ;;  %v3501_v40 = vld [vmem:[%s13030_s11 + $0xe8] sm:$0xff]  ;;  %v3503_v9 = vld [vmem:[%s13030_s11 + $0xf8] sm:$0xff] }
 0xae1   :  { %v3044_v33 = vadd.f32 %v10996_v58, %v3028_v37  ;;  %v3497_v58 = vld [vmem:[%s13030_s11 + $0xc8] sm:$0xff]  ;;  %v8346_v4 = vpack.c.bf16 %v3499_v54, %v3498_v38  ;;  %v8284_v44 = vpack.c.bf16 %v3119_v48, %v3113_v5  ;;  %v3156_v43 = vld [vmem:[%s13029_s10 + $0x358] sm:$0xff]  ;;  %v8354_v18 = vpack.c.bf16 %v3503_v9, %v3502_v28  ;;  %v3155_v38 = vld [vmem:[%s13029_s10 + $0x350] sm:$0xff] }
 0xae2   :  { %v8342_v55 = vpack.c.bf16 %v3497_v58, %v3496_v22  ;;  %v3138_v37 = vld [vmem:[%s13029_s10 + $0x2c8] sm:$0xff]  ;;  %v3137_v58 = vld [vmem:[%s13029_s10 + $0x2c0] sm:$0xff]  ;;  %v3487_v42 = vld [vmem:[%s13030_s11 + $0x78] sm:$0xff]  ;;  %v8296_v5 = vpack.c.bf16 %v3155_v38, %v3149_v26 }
 0xae3   :  { %v11118_v49 = vmax.f32 %v3044_v33, 0.0  ;;  %8273 = vmatpush1.bf16.msra.mxu1 %v8272_v24  ;;  %8337 = vmatpush3.bf16.msra.mxu0 %v8336_v51  ;;  %v3500_v24 = vld [vmem:[%s13030_s11 + $0xe0] sm:$0xff]  ;;  %v3485_v33 = vld [vmem:[%s13030_s11 + $0x68] sm:$0xff]  ;;  %v8290_v22 = vpack.c.bf16 %v3144_v39, %v3138_v37  ;;  %v3203_v9 = vld [vmem:[%s13029_s10 + $0x4d0] sm:$0xff] }
 0xae4   :  { %8275 = vmatprep.subr.bf16.mxu1 %v8274_v25  ;;  %8339 = vmatprep.subr.bf16.mxu0 %v8338_v32  ;;  %v3125_v51 = vld [vmem:[%s13029_s10 + $0x260] sm:$0xff]  ;;  %v8350_v56 = vpack.c.bf16 %v3501_v40, %v3500_v24  ;;  %v3179_v40 = vld [vmem:[%s13029_s10 + $0x410] sm:$0xff]  ;;  %v3198_v39 = vld [vmem:[%s13029_s10 + $0x4a8] sm:$0xff] }
 0xae5   :  { %v11133_v52 = vadd.f32 %v11118_v49, %v11028_v31  ;;  %3311 = vmatprep.mubr.f32.mxu1 %v11118_v49  ;;  %3388 = vmatprep.mubr.f32.mxu0 %v11118_v49  ;;  %v3484_v32 = vld [vmem:[%s13030_s11 + $0x60] sm:$0xff]  ;;  %v8288_v8 = vpack.c.bf16 %v3131_v11, %v3125_v51  ;;  %v3234_v26 = vld [vmem:[%s13029_s10 + $0x5c8] sm:$0xff]  ;;  %v3240_v38 = vld [vmem:[%s13029_s10 + $0x5f8] sm:$0xff] }
 0xae6   :  { %3312 = vmatmul.mubr.f32.gmra.mrb[36].mxu1 %v11120_v16  ;;  %3389 = vmatmul.mubr.f32.gmra.mrb[24].mxu0 %v11120_v16  ;;  %v8352_v59 = vpack.c.bf16 %v3485_v33, %v3484_v32  ;;  %v3173_v24 = vld [vmem:[%s13029_s10 + $0x3e0] sm:$0xff] }
 0xae7   :  { %8277 = vmatpush1.bf16.msra.mxu1 %v8276_v30  ;;  %3459 = vmatprep.mubr.f32.mxu1 %v11028_v31  ;;  %v3132_v31 = vld [vmem:[%s13029_s10 + $0x298] sm:$0xff]  ;;  %v3143_v30 = vld [vmem:[%s13029_s10 + $0x2f0] sm:$0xff]  ;;  %v8304_v51 = vpack.c.bf16 %v3179_v40, %v3173_v24  ;;  %v3185_v37 = vld [vmem:[%s13029_s10 + $0x440] sm:$0xff] }
 0xae8   :  { %8279 = vmatprep.subr.bf16.mxu1 %v8278_v36  ;;  %8341 = vmatpush3.bf16.msra.mxu0 %v8340_v7  ;;  %v8286_v25 = vpack.c.bf16 %v3132_v31, %v3126_v41  ;;  %v3150_v36 = vld [vmem:[%s13029_s10 + $0x328] sm:$0xff]  ;;  %v3486_v7 = vld [vmem:[%s13030_s11 + $0x70] sm:$0xff]  ;;  %v3161_v41 = vld [vmem:[%s13029_s10 + $0x380] sm:$0xff] }
 0xae9   :  { %8343 = vmatprep.subr.bf16.mxu0 %v8342_v55  ;;  %v8292_v55 = vpack.c.bf16 %v3143_v30, %v3137_v58  ;;  %v8294_v20 = vpack.c.bf16 %v3156_v43, %v3150_v36  ;;  %v8356_v54 = vpack.c.bf16 %v3487_v42, %v3486_v7  ;;  %v3174_v31 = vld [vmem:[%s13029_s10 + $0x3e8] sm:$0xff]  ;;  %v3197_v28 = vld [vmem:[%s13029_s10 + $0x4a0] sm:$0xff] }
 0xaea   :  { %v8312_v58 = vpack.c.bf16 %v3203_v9, %v3197_v28  ;;  %v3209_v36 = vld [vmem:[%s13029_s10 + $0x500] sm:$0xff]  ;;  %v3222_v43 = vld [vmem:[%s13029_s10 + $0x568] sm:$0xff] }
 0xaeb   :  { %8281 = vmatpush1.bf16.msra.mxu1 %v8280_v3  ;;  %v3162_v3 = vld [vmem:[%s13029_s10 + $0x388] sm:$0xff] }
 0xaec   :  { %8283 = vmatprep.subr.bf16.mxu1 %v8282_v6  ;;  %8345 = vmatpush3.bf16.msra.mxu0 %v8344_v27  ;;  %v3168_v6 = vld [vmem:[%s13029_s10 + $0x3b8] sm:$0xff]  ;;  %v3167_v27 = vld [vmem:[%s13029_s10 + $0x3b0] sm:$0xff]  ;;  %v3537_v24 = vld [vmem:[%s13030_s11 + $0x208] sm:$0xff] }
 0xaed   :  { %8347 = vmatprep.subr.bf16.mxu0 %v8346_v4  ;;  %v8298_v48 = vpack.c.bf16 %v3168_v6, %v3162_v3  ;;  %v3180_v4 = vld [vmem:[%s13029_s10 + $0x418] sm:$0xff]  ;;  %v8300_v10 = vpack.c.bf16 %v3167_v27, %v3161_v41  ;;  %v8322_v3 = vpack.c.bf16 %v3240_v38, %v3234_v26  ;;  %v3233_v6 = vld [vmem:[%s13029_s10 + $0x5c0] sm:$0xff]  ;;  %v3521_v27 = vld [vmem:[%s13030_s11 + $0x188] sm:$0xff] }
 0xaee   :  { %v8302_v45 = vpack.c.bf16 %v3180_v4, %v3174_v31  ;;  %v3520_v41 = vld [vmem:[%s13030_s11 + $0x180] sm:$0xff]  ;;  %v3541_v28 = vld [vmem:[%s13030_s11 + $0x228] sm:$0xff]  ;;  %v3562_v26 = vld [vmem:[%s13030_s11 + $0x2d0] sm:$0xff] }
 0xaef   :  { %8285 = vmatpush1.bf16.msra.mxu1 %v8284_v44  ;;  %v3186_v44 = vld [vmem:[%s13029_s10 + $0x448] sm:$0xff]  ;;  %v8358_v31 = vpack.c.bf16 %v3521_v27, %v3520_v41  ;;  %v3552_v4 = vld [vmem:[%s13030_s11 + $0x280] sm:$0xff]  ;;  %v3563_v38 = vld [vmem:[%s13030_s11 + $0x2d8] sm:$0xff] }
 0xaf0   :  { %8287 = vmatprep.subr.bf16.mxu1 %v8286_v25  ;;  %8349 = vmatpush3.bf16.msra.mxu0 %v8348_v53  ;;  %v3192_v25 = vld [vmem:[%s13029_s10 + $0x478] sm:$0xff]  ;;  %v3191_v53 = vld [vmem:[%s13029_s10 + $0x470] sm:$0xff]  ;;  %v3565_v41 = vld [vmem:[%s13030_s11 + $0x2e8] sm:$0xff] }
 0xaf1   :  { %8351 = vmatprep.subr.bf16.mxu0 %v8350_v56  ;;  %v8306_v11 = vpack.c.bf16 %v3192_v25, %v3186_v44  ;;  %v3204_v56 = vld [vmem:[%s13029_s10 + $0x4d8] sm:$0xff]  ;;  %v8308_v32 = vpack.c.bf16 %v3191_v53, %v3185_v37  ;;  %v3554_v44 = vld [vmem:[%s13030_s11 + $0x290] sm:$0xff]  ;;  %v3548_v27 = vld [vmem:[%s13030_s11 + $0x260] sm:$0xff] }
 0xaf2   :  { %v8310_v33 = vpack.c.bf16 %v3204_v56, %v3198_v39  ;;  %v3555_v25 = vld [vmem:[%s13030_s11 + $0x298] sm:$0xff]  ;;  %v3556_v39 = vld [vmem:[%s13030_s11 + $0x2a0] sm:$0xff]  ;;  %v3557_v56 = vld [vmem:[%s13030_s11 + $0x2a8] sm:$0xff] }
 0xaf3   :  { %8289 = vmatpush1.bf16.msra.mxu1 %v8288_v8  ;;  %v3210_v8 = vld [vmem:[%s13029_s10 + $0x508] sm:$0xff]  ;;  %v3539_v37 = vld [vmem:[%s13030_s11 + $0x218] sm:$0xff] }
 0xaf4   :  { %8291 = vmatprep.subr.bf16.mxu1 %v8290_v22  ;;  %8353 = vmatpush3.bf16.msra.mxu0 %v8352_v59  ;;  %v3216_v22 = vld [vmem:[%s13029_s10 + $0x538] sm:$0xff]  ;;  %v3215_v59 = vld [vmem:[%s13029_s10 + $0x530] sm:$0xff] }
 0xaf5   :  { %8355 = vmatprep.subr.bf16.mxu0 %v8354_v18  ;;  %v8314_v30 = vpack.c.bf16 %v3216_v22, %v3210_v8  ;;  %v3228_v18 = vld [vmem:[%s13029_s10 + $0x598] sm:$0xff]  ;;  %v8316_v7 = vpack.c.bf16 %v3215_v59, %v3209_v36  ;;  %v3558_v8 = vld [vmem:[%s13030_s11 + $0x2b0] sm:$0xff] }
 0xaf6   :  { %v8318_v42 = vpack.c.bf16 %v3228_v18, %v3222_v43  ;;  %v3559_v22 = vld [vmem:[%s13030_s11 + $0x2b8] sm:$0xff]  ;;  %v3560_v43 = vld [vmem:[%s13030_s11 + $0x2c0] sm:$0xff]  ;;  %v3561_v18 = vld [vmem:[%s13030_s11 + $0x2c8] sm:$0xff] }
 0xaf7   :  { %8293 = vmatpush1.bf16.msra.mxu1 %v8292_v55  ;;  %v3221_v55 = vld [vmem:[%s13029_s10 + $0x560] sm:$0xff]  ;;  %v3543_v36 = vld [vmem:[%s13030_s11 + $0x238] sm:$0xff] }
 0xaf8   :  { %8295 = vmatprep.subr.bf16.mxu1 %v8294_v20  ;;  %8357 = vmatpush3.bf16.msra.mxu0 %v8356_v54  ;;  %v3227_v20 = vld [vmem:[%s13029_s10 + $0x590] sm:$0xff] }
 0xaf9   :  { %v8320_v54 = vpack.c.bf16 %v3227_v20, %v3221_v55  ;;  %8359 = vmatprep.subr.bf16.mxu0 %v8358_v31  ;;  %v3545_v55 = vld [vmem:[%s13030_s11 + $0x248] sm:$0xff] }
 0xafb   :  { %8297 = vmatpush1.bf16.msra.mxu1 %v8296_v5  ;;  %v3239_v5 = vld [vmem:[%s13029_s10 + $0x5f0] sm:$0xff] }
 0xafc   :  { %8299 = vmatprep.subr.bf16.mxu1 %v8298_v48  ;;  %v8324_v48 = vpack.c.bf16 %v3239_v5, %v3233_v6  ;;  %v3547_v6 = vld [vmem:[%s13030_s11 + $0x258] sm:$0xff] }
 0xaff   :  { %8301 = vmatpush1.bf16.msra.mxu1 %v8300_v10 }
 0xb00   :  { %8303 = vmatprep.subr.bf16.mxu1 %v8302_v45  ;;  %v3536_v45 = vld [vmem:[%s13030_s11 + $0x200] sm:$0xff] }
 0xb01   :  { %v8392_v40 = vpack.c.bf16 %v3537_v24, %v3536_v45  ;;  %v3567_v45 = vld [vmem:[%s13030_s11 + $0x2f8] sm:$0xff]  ;;  %v3550_v24 = vld [vmem:[%s13030_s11 + $0x270] sm:$0xff] }
 0xb03   :  { %8305 = vmatpush1.bf16.msra.mxu1 %v8304_v51  ;;  %v8394_v51 = vpack.c.bf16 %v3555_v25, %v3554_v44  ;;  %v3551_v44 = vld [vmem:[%s13030_s11 + $0x278] sm:$0xff] }
 0xb04   :  { %8307 = vmatprep.subr.bf16.mxu1 %v8306_v11  ;;  %v3538_v11 = vld [vmem:[%s13030_s11 + $0x210] sm:$0xff]  ;;  %v8420_v25 = vpack.c.bf16 %v3551_v44, %v3550_v24  ;;  %v3513_v44 = vld [vmem:[%s13030_s11 + $0x148] sm:$0xff] }
 0xb05   :  { %v8396_v53 = vpack.c.bf16 %v3539_v37, %v3538_v11  ;;  %v3842_v11 = vld [vmem:[%s13032_s12 + $0x188] sm:$0xff] }
 0xb07   :  { %8309 = vmatpush1.bf16.msra.mxu1 %v8308_v32  ;;  %v3540_v32 = vld [vmem:[%s13030_s11 + $0x220] sm:$0xff] }
 0xb08   :  { %8311 = vmatprep.subr.bf16.mxu1 %v8310_v33  ;;  %v8398_v33 = vpack.c.bf16 %v3557_v56, %v3556_v39  ;;  %v8400_v9 = vpack.c.bf16 %v3541_v28, %v3540_v32  ;;  %v3505_v39 = vld [vmem:[%s13030_s11 + $0x108] sm:$0xff]  ;;  %v3522_v56 = vld [vmem:[%s13030_s11 + $0x190] sm:$0xff]  ;;  %v3523_v32 = vld [vmem:[%s13030_s11 + $0x198] sm:$0xff] }
 0xb0b   :  { %8313 = vmatpush1.bf16.msra.mxu1 %v8312_v58  ;;  %v3542_v58 = vld [vmem:[%s13030_s11 + $0x230] sm:$0xff] }
 0xb0c   :  { %8315 = vmatprep.subr.bf16.mxu1 %v8314_v30  ;;  %v8402_v30 = vpack.c.bf16 %v3559_v22, %v3558_v8  ;;  %v8404_v59 = vpack.c.bf16 %v3543_v36, %v3542_v58  ;;  %v8362_v58 = vpack.c.bf16 %v3523_v32, %v3522_v56  ;;  %v3507_v36 = vld [vmem:[%s13030_s11 + $0x118] sm:$0xff] }
 0xb0f   :  { %8317 = vmatpush1.bf16.msra.mxu1 %v8316_v7  ;;  %v3544_v7 = vld [vmem:[%s13030_s11 + $0x240] sm:$0xff] }
 0xb10   :  { %8319 = vmatprep.subr.bf16.mxu1 %v8318_v42  ;;  %v8406_v42 = vpack.c.bf16 %v3561_v18, %v3560_v43  ;;  %v8408_v20 = vpack.c.bf16 %v3545_v55, %v3544_v7  ;;  %v3525_v43 = vld [vmem:[%s13030_s11 + $0x1a8] sm:$0xff] }
 0xb11   :  { %v3509_v55 = vld [vmem:[%s13030_s11 + $0x128] sm:$0xff] }
 0xb13   :  { %8321 = vmatpush1.bf16.msra.mxu1 %v8320_v54  ;;  %v3546_v54 = vld [vmem:[%s13030_s11 + $0x250] sm:$0xff] }
 0xb14   :  { %8323 = vmatprep.subr.bf16.mxu1 %v8322_v3  ;;  %v8410_v3 = vpack.c.bf16 %v3563_v38, %v3562_v26  ;;  %v8412_v5 = vpack.c.bf16 %v3547_v6, %v3546_v54  ;;  %v3527_v26 = vld [vmem:[%s13030_s11 + $0x1b8] sm:$0xff]  ;;  %v3510_v54 = vld [vmem:[%s13030_s11 + $0x130] sm:$0xff] }
 0xb15   :  { %v3511_v6 = vld [vmem:[%s13030_s11 + $0x138] sm:$0xff] }
 0xb17   :  { %8325 = vmatpush1.bf16.msra.mxu1 %v8324_v48  ;;  %v3564_v48 = vld [vmem:[%s13030_s11 + $0x2e0] sm:$0xff] }
 0xb18   :  { %v8414_v31 = vpack.c.bf16 %v3565_v41, %v3564_v48  ;;  %v3529_v48 = vld [vmem:[%s13030_s11 + $0x1c8] sm:$0xff] }
 0xb1a   :  { %3460 = vmatmul.mubr.f32.vlgmr.msra.gmra.mrb[38].mxu1 %v11036_v34 }
 0xb1b   :  { %3465 = vmatprep.mubr.f32.mxu1 %v11118_v49  ;;  %v3553_v49 = vld [vmem:[%s13030_s11 + $0x288] sm:$0xff] }
 0xb1c   :  { %v8390_v10 = vpack.c.bf16 %v3553_v49, %v3552_v4  ;;  %v3549_v4 = vld [vmem:[%s13030_s11 + $0x268] sm:$0xff] }
 0xb1d   :  { %v8416_v49 = vpack.c.bf16 %v3549_v4, %v3548_v27 }
 0xb1e   :  { %3466 = vmatmul.mubr.f32.gmra.mrb[40].mxu1 %v11120_v16  ;;  %8391 = vmatprep.subr.bf16.mxu1 %v8390_v10  ;;  %v3566_v10 = vld [vmem:[%s13030_s11 + $0x2f0] sm:$0xff] }
 0xb1f   :  { %8393 = vmatpush3.bf16.msra.mxu1 %v8392_v40  ;;  %v8418_v40 = vpack.c.bf16 %v3567_v45, %v3566_v10 }
 0xb20   :  { %8395 = vmatprep.subr.bf16.mxu1 %v8394_v51  ;;  %v3841_v51 = vld [vmem:[%s13032_s12 + $0x180] sm:$0xff] }
 0xb21   :  { %v8454_v37 = vpack.c.bf16 %v3842_v11, %v3841_v51 }
 0xb23   :  { %8397 = vmatpush3.bf16.msra.mxu1 %v8396_v53  ;;  %v3504_v53 = vld [vmem:[%s13030_s11 + $0x100] sm:$0xff] }
 0xb24   :  { %8399 = vmatprep.subr.bf16.mxu1 %v8398_v33 }
 0xb27   :  { %8401 = vmatpush3.bf16.msra.mxu1 %v8400_v9  ;;  %v8360_v9 = vpack.c.bf16 %v3505_v39, %v3504_v53  ;;  %v3530_v53 = vld [vmem:[%s13030_s11 + $0x1d0] sm:$0xff]  ;;  %v3531_v39 = vld [vmem:[%s13030_s11 + $0x1d8] sm:$0xff] }
 0xb28   :  { %8403 = vmatprep.subr.bf16.mxu1 %v8402_v30  ;;  %v3506_v30 = vld [vmem:[%s13030_s11 + $0x110] sm:$0xff] }
 0xb29   :  { %v8364_v18 = vpack.c.bf16 %v3507_v36, %v3506_v30  ;;  %v3514_v30 = vld [vmem:[%s13030_s11 + $0x150] sm:$0xff]  ;;  %v3515_v36 = vld [vmem:[%s13030_s11 + $0x158] sm:$0xff] }
 0xb2b   :  { %8405 = vmatpush3.bf16.msra.mxu1 %v8404_v59  ;;  %v3524_v59 = vld [vmem:[%s13030_s11 + $0x1a0] sm:$0xff] }
 0xb2c   :  { %8407 = vmatprep.subr.bf16.mxu1 %v8406_v42  ;;  %v8366_v7 = vpack.c.bf16 %v3525_v43, %v3524_v59  ;;  %v3508_v42 = vld [vmem:[%s13030_s11 + $0x120] sm:$0xff]  ;;  %v3533_v43 = vld [vmem:[%s13030_s11 + $0x1e8] sm:$0xff] }
 0xb2d   :  { %v8368_v38 = vpack.c.bf16 %v3509_v55, %v3508_v42  ;;  %v3532_v59 = vld [vmem:[%s13030_s11 + $0x1e0] sm:$0xff]  ;;  %v3517_v55 = vld [vmem:[%s13030_s11 + $0x168] sm:$0xff] }
 0xb2e   :  { %v3516_v42 = vld [vmem:[%s13030_s11 + $0x160] sm:$0xff] }
 0xb2f   :  { %8409 = vmatpush3.bf16.msra.mxu1 %v8408_v20  ;;  %v3526_v20 = vld [vmem:[%s13030_s11 + $0x1b0] sm:$0xff] }
 0xb30   :  { %8411 = vmatprep.subr.bf16.mxu1 %v8410_v3  ;;  %v8370_v3 = vpack.c.bf16 %v3527_v26, %v3526_v20  ;;  %v3534_v20 = vld [vmem:[%s13030_s11 + $0x1f0] sm:$0xff]  ;;  %v3535_v26 = vld [vmem:[%s13030_s11 + $0x1f8] sm:$0xff] }
 0xb33   :  { %8413 = vmatpush3.bf16.msra.mxu1 %v8412_v5  ;;  %v3528_v5 = vld [vmem:[%s13030_s11 + $0x1c0] sm:$0xff] }
 0xb34   :  { %8415 = vmatprep.subr.bf16.mxu1 %v8414_v31  ;;  %v8372_v31 = vpack.c.bf16 %v3511_v6, %v3510_v54  ;;  %v8374_v4 = vpack.c.bf16 %v3529_v48, %v3528_v5  ;;  %v8386_v54 = vpack.c.bf16 %v3535_v26, %v3534_v20  ;;  %v3519_v6 = vld [vmem:[%s13030_s11 + $0x178] sm:$0xff]  ;;  %v3809_v5 = vld [vmem:[%s13032_s12 + $0x80] sm:$0xff]  ;;  %v3810_v48 = vld [vmem:[%s13032_s12 + $0x88] sm:$0xff] }
 0xb35   :  { %v3816_v20 = vld [vmem:[%s13032_s12 + $0xb8] sm:$0xff] }
 0xb37   :  { %8417 = vmatpush3.bf16.msra.mxu1 %v8416_v49 }
 0xb38   :  { %8419 = vmatprep.subr.bf16.mxu1 %v8418_v40  ;;  %v3512_v40 = vld [vmem:[%s13030_s11 + $0x140] sm:$0xff] }
 0xb3b   :  { %8421 = vmatpush3.bf16.msra.mxu1 %v8420_v25 }
 0xb3c   :  { %8455 = vmatprep.subr.bf16.mxu1 %v8454_v37 }
 0xbad   :  { %v11434_v33 = vpop.f32.mrb[34].mxu1  ;;  %v11436_v28 = vpop.f32.mrb[22].mxu0 }
 0xbae   :  { %v11438_v8 = vpop.f32.mrb[35].mxu1  ;;  %v11440_v22 = vpop.f32.mrb[23].mxu0 }
 0xbaf   :  { %3632 = vmatprep.mubr.f32.mxu0 %v11438_v8 }
 0xbb0   :  { %3633 = vmatmul.mubr.f32.vlgmr.msra.gmra.mrb[26].mxu0 %v11434_v33 }
 0xbb1   :  { %8361 = vmatpush3.bf16.msra.mxu0 %v8360_v9  ;;  %v8376_v9 = vpack.c.bf16 %v3513_v44, %v3512_v40  ;;  %v3794_v40 = vld [vmem:[%s13032_s12 + $0x8] sm:$0xff]  ;;  %v3811_v44 = vld [vmem:[%s13032_s12 + $0x90] sm:$0xff] }
 0xbb2   :  { %8363 = vmatprep.subr.bf16.mxu0 %v8362_v58  ;;  %v8378_v58 = vpack.c.bf16 %v3531_v39, %v3530_v53  ;;  %v3812_v53 = vld [vmem:[%s13032_s12 + $0x98] sm:$0xff] }
 0xbb5   :  { %8365 = vmatpush3.bf16.msra.mxu0 %v8364_v18  ;;  %v8380_v18 = vpack.c.bf16 %v3515_v36, %v3514_v30  ;;  %v3796_v30 = vld [vmem:[%s13032_s12 + $0x18] sm:$0xff]  ;;  %v3813_v36 = vld [vmem:[%s13032_s12 + $0xa0] sm:$0xff] }
 0xbb6   :  { %8367 = vmatprep.subr.bf16.mxu0 %v8366_v7  ;;  %v8382_v7 = vpack.c.bf16 %v3533_v43, %v3532_v59  ;;  %v3814_v59 = vld [vmem:[%s13032_s12 + $0xa8] sm:$0xff] }
 0xbb9   :  { %8369 = vmatpush3.bf16.msra.mxu0 %v8368_v38  ;;  %v11480_v41 = vpop.f32.mrb[36].mxu1  ;;  %v11482_v27 = vpop.f32.mrb[24].mxu0  ;;  %v8384_v38 = vpack.c.bf16 %v3517_v55, %v3516_v42  ;;  %v3798_v42 = vld [vmem:[%s13032_s12 + $0x28] sm:$0xff]  ;;  %v3815_v55 = vld [vmem:[%s13032_s12 + $0xb0] sm:$0xff] }
 0xbba   :  { %v8854_v49 = vpack.i.bf16 %v11480_v41, %v11434_v33  ;;  %v11488_v45 = vpop.f32.mrb[37].mxu1  ;;  %v11490_v24 = vpop.f32.mrb[25].mxu0  ;;  %8371 = vmatprep.subr.bf16.mxu0 %v8370_v3  ;;  %v11500_v25 = vpack.c.bf16 %v11480_v41, %v11434_v33  ;;  %v11504_v51 = vpack.c.bf16 %v11482_v27, %v11436_v28  ;;  %v3518_v3 = vld [vmem:[%s13030_s11 + $0x170] sm:$0xff] }
 0xbbb   :  { %3637 = vmatprep.mubr.f32.mxu0 %v11488_v45  ;;  %v11519_v56 = vpack.c.bf16 %v11488_v45, %v11438_v8  ;;  %v11523_v32 = vpack.c.bf16 %v11490_v24, %v11440_v22 }
 0xbbc   :  { %8855 = vrot.lane.b32.xlu0 %v8854_v49, %s9188_s23  ;;  %3638 = vmatmul.mubr.f32.gmra.mrb[28].mxu0 %v11480_v41  ;;  %v3793_v49 = vld [vmem:[%s13032_s12] sm:$0xff] }
 0xbbd   :  { %8373 = vmatpush3.bf16.msra.mxu0 %v8372_v31  ;;  %3707 = vmatprep.mubr.f32.mxu0 %v11440_v22  ;;  %v8388_v31 = vpack.c.bf16 %v3519_v6, %v3518_v3  ;;  %v8424_v39 = vpack.c.bf16 %v3794_v40, %v3793_v49  ;;  %v3800_v3 = vld [vmem:[%s13032_s12 + $0x38] sm:$0xff]  ;;  %v3817_v6 = vld [vmem:[%s13032_s12 + $0xc0] sm:$0xff]  ;;  %v3802_v49 = vld [vmem:[%s13032_s12 + $0x48] sm:$0xff] }
 0xbbe   :  { %8375 = vmatprep.subr.bf16.mxu0 %v8374_v4  ;;  %v8422_v4 = vpack.c.bf16 %v3810_v48, %v3809_v5  ;;  %v3818_v5 = vld [vmem:[%s13032_s12 + $0xc8] sm:$0xff]  ;;  %v3819_v40 = vld [vmem:[%s13032_s12 + $0xd0] sm:$0xff] }
 0xbc1   :  { %8377 = vmatpush3.bf16.msra.mxu0 %v8376_v9  ;;  %v8426_v9 = vpack.c.bf16 %v3812_v53, %v3811_v44  ;;  %v3820_v44 = vld [vmem:[%s13032_s12 + $0xd8] sm:$0xff] }
 0xbc2   :  { %8379 = vmatprep.subr.bf16.mxu0 %v8378_v58  ;;  %v3795_v58 = vld [vmem:[%s13032_s12 + $0x10] sm:$0xff] }
 0xbc3   :  { %v8428_v43 = vpack.c.bf16 %v3796_v30, %v3795_v58  ;;  %v3804_v58 = vld [vmem:[%s13032_s12 + $0x58] sm:$0xff]  ;;  %v3821_v30 = vld [vmem:[%s13032_s12 + $0xe0] sm:$0xff] }
 0xbc5   :  { %8381 = vmatpush3.bf16.msra.mxu0 %v8380_v18  ;;  %v8430_v18 = vpack.c.bf16 %v3814_v59, %v3813_v36  ;;  %v3822_v36 = vld [vmem:[%s13032_s12 + $0xe8] sm:$0xff] }
 0xbc6   :  { %8383 = vmatprep.subr.bf16.mxu0 %v8382_v7  ;;  %v3797_v7 = vld [vmem:[%s13032_s12 + $0x20] sm:$0xff] }
 0xbc7   :  { %v8432_v26 = vpack.c.bf16 %v3798_v42, %v3797_v7  ;;  %v3806_v7 = vld [vmem:[%s13032_s12 + $0x68] sm:$0xff]  ;;  %v3823_v42 = vld [vmem:[%s13032_s12 + $0xf0] sm:$0xff] }
 0xbc9   :  { %8385 = vmatpush3.bf16.msra.mxu0 %v8384_v38  ;;  %v8434_v38 = vpack.c.bf16 %v3816_v20, %v3815_v55  ;;  %v3824_v55 = vld [vmem:[%s13032_s12 + $0xf8] sm:$0xff] }
 0xbca   :  { %8387 = vmatprep.subr.bf16.mxu0 %v8386_v54  ;;  %v3799_v54 = vld [vmem:[%s13032_s12 + $0x30] sm:$0xff] }
 0xbcb   :  { %v8436_v48 = vpack.c.bf16 %v3800_v3, %v3799_v54  ;;  %v3808_v54 = vld [vmem:[%s13032_s12 + $0x78] sm:$0xff]  ;;  %v3873_v3 = vld [vmem:[%s13032_s12 + $0x280] sm:$0xff] }
 0xbcd   :  { %8389 = vmatpush3.bf16.msra.mxu0 %v8388_v31  ;;  %v8438_v31 = vpack.c.bf16 %v3818_v5, %v3817_v6  ;;  %v3874_v6 = vld [vmem:[%s13032_s12 + $0x288] sm:$0xff] }
 0xbce   :  { %8423 = vmatprep.subr.bf16.mxu0 %v8422_v4  ;;  %v3801_v4 = vld [vmem:[%s13032_s12 + $0x40] sm:$0xff] }
 0xbcf   :  { %v8440_v53 = vpack.c.bf16 %v3802_v49, %v3801_v4  ;;  %v8486_v4 = vpack.c.bf16 %v3874_v6, %v3873_v3  ;;  %v3857_v49 = vld [vmem:[%s13032_s12 + $0x200] sm:$0xff]  ;;  %v3878_v3 = vld [vmem:[%s13032_s12 + $0x2a8] sm:$0xff] }
 0xbd0   :  { %3708 = vmatmul.mubr.f32.vlgmr.msra.gmra.mrb[30].mxu0 %v11436_v28 }
 0xbd1   :  { %3712 = vmatprep.mubr.f32.mxu0 %v11490_v24  ;;  %8425 = vmatpush3.bf16.msra.mxu0 %v8424_v39  ;;  %v8442_v39 = vpack.c.bf16 %v3820_v44, %v3819_v40  ;;  %v3858_v40 = vld [vmem:[%s13032_s12 + $0x208] sm:$0xff]  ;;  %v3843_v44 = vld [vmem:[%s13032_s12 + $0x190] sm:$0xff] }
 0xbd2   :  { %8427 = vmatprep.subr.bf16.mxu0 %v8426_v9  ;;  %v3803_v9 = vld [vmem:[%s13032_s12 + $0x50] sm:$0xff] }
 0xbd3   :  { %v8444_v59 = vpack.c.bf16 %v3804_v58, %v3803_v9  ;;  %v3876_v9 = vld [vmem:[%s13032_s12 + $0x298] sm:$0xff] }
 0xbd4   :  { %3713 = vmatmul.mubr.f32.gmra.mrb[32].mxu0 %v11482_v27 }
 0xbd5   :  { %8429 = vmatpush3.bf16.msra.mxu0 %v8428_v43  ;;  %3953 = vmatprep.mubr.f32.mxu0 %v11438_v8  ;;  %v8446_v43 = vpack.c.bf16 %v3822_v36, %v3821_v30  ;;  %v3827_v36 = vld [vmem:[%s13032_s12 + $0x110] sm:$0xff] }
 0xbd6   :  { %8431 = vmatprep.subr.bf16.mxu0 %v8430_v18  ;;  %v3805_v18 = vld [vmem:[%s13032_s12 + $0x60] sm:$0xff] }
 0xbd7   :  { %v8448_v20 = vpack.c.bf16 %v3806_v7, %v3805_v18  ;;  %v3828_v7 = vld [vmem:[%s13032_s12 + $0x118] sm:$0xff] }
 0xbd9   :  { %8433 = vmatpush3.bf16.msra.mxu0 %v8432_v26  ;;  %v8450_v26 = vpack.c.bf16 %v3824_v55, %v3823_v42  ;;  %v3859_v42 = vld [vmem:[%s13032_s12 + $0x210] sm:$0xff]  ;;  %v3860_v55 = vld [vmem:[%s13032_s12 + $0x218] sm:$0xff] }
 0xbda   :  { %8435 = vmatprep.subr.bf16.mxu0 %v8434_v38  ;;  %v3807_v38 = vld [vmem:[%s13032_s12 + $0x70] sm:$0xff] }
 0xbdb   :  { %v8452_v5 = vpack.c.bf16 %v3808_v54, %v3807_v38  ;;  %v3846_v38 = vld [vmem:[%s13032_s12 + $0x1a8] sm:$0xff]  ;;  %v3877_v54 = vld [vmem:[%s13032_s12 + $0x2a0] sm:$0xff] }
 0xbdd   :  { %8437 = vmatpush3.bf16.msra.mxu0 %v8436_v48  ;;  %v3825_v48 = vld [vmem:[%s13032_s12 + $0x100] sm:$0xff] }
 0xbde   :  { %8439 = vmatprep.subr.bf16.mxu0 %v8438_v31  ;;  %v3826_v31 = vld [vmem:[%s13032_s12 + $0x108] sm:$0xff] }
 0xbdf   :  { %v8456_v30 = vpack.c.bf16 %v3826_v31, %v3825_v48  ;;  %v8492_v48 = vpack.c.bf16 %v3860_v55, %v3859_v42  ;;  %v3880_v42 = vld [vmem:[%s13032_s12 + $0x2b8] sm:$0xff] }
 0xbe1   :  { %8441 = vmatpush3.bf16.msra.mxu0 %v8440_v53  ;;  %v3844_v53 = vld [vmem:[%s13032_s12 + $0x198] sm:$0xff] }
 0xbe2   :  { %8443 = vmatprep.subr.bf16.mxu0 %v8442_v39  ;;  %v3875_v39 = vld [vmem:[%s13032_s12 + $0x290] sm:$0xff]  ;;  %v8458_v18 = vpack.c.bf16 %v3844_v53, %v3843_v44  ;;  %v3861_v44 = vld [vmem:[%s13032_s12 + $0x220] sm:$0xff] }
 0xbe5   :  { %8445 = vmatpush3.bf16.msra.mxu0 %v8444_v59 }
 0xbe6   :  { %8447 = vmatprep.subr.bf16.mxu0 %v8446_v43  ;;  %v8488_v43 = vpack.c.bf16 %v3858_v40, %v3857_v49  ;;  %v3829_v49 = vld [vmem:[%s13032_s12 + $0x120] sm:$0xff]  ;;  %v3830_v40 = vld [vmem:[%s13032_s12 + $0x128] sm:$0xff] }
 0xbe7   :  { %v8464_v55 = vpack.c.bf16 %v3830_v40, %v3829_v49  ;;  %v3850_v49 = vld [vmem:[%s13032_s12 + $0x1c8] sm:$0xff]  ;;  %v3881_v40 = vld [vmem:[%s13032_s12 + $0x2c0] sm:$0xff] }
 0xbe9   :  { %8449 = vmatpush3.bf16.msra.mxu0 %v8448_v20  ;;  %v8490_v20 = vpack.c.bf16 %v3876_v9, %v3875_v39  ;;  %v8494_v9 = vpack.c.bf16 %v3878_v3, %v3877_v54  ;;  %v3863_v54 = vld [vmem:[%s13032_s12 + $0x230] sm:$0xff] }
 0xbea   :  { %8451 = vmatprep.subr.bf16.mxu0 %v8450_v26  ;;  %v3845_v26 = vld [vmem:[%s13032_s12 + $0x1a0] sm:$0xff] }
 0xbed   :  { %v11688_v58 = vpop.f32.mrb[38].mxu1  ;;  %8453 = vmatpush3.bf16.msra.mxu0 %v8452_v5  ;;  %v8460_v5 = vpack.c.bf16 %v3828_v7, %v3827_v36  ;;  %v3847_v36 = vld [vmem:[%s13032_s12 + $0x1b0] sm:$0xff] }
 0xbee   :  { %v11693_v59 = vpop.f32.mrb[39].mxu1  ;;  %8487 = vmatprep.subr.bf16.mxu0 %v8486_v4  ;;  %v8462_v4 = vpack.c.bf16 %v3846_v38, %v3845_v26  ;;  %v3879_v7 = vld [vmem:[%s13032_s12 + $0x2b0] sm:$0xff]  ;;  %v3832_v38 = vld [vmem:[%s13032_s12 + $0x138] sm:$0xff] }
 0xbef   :  { %3782 = vmatprep.mubr.f32.mxu1 %v11693_v59  ;;  %v8498_v3 = vpack.c.bf16 %v3880_v42, %v3879_v7  ;;  %v3865_v7 = vld [vmem:[%s13032_s12 + $0x240] sm:$0xff] }
 0xbf0   :  { %3783 = vmatmul.mubr.f32.vlgmr.msra.gmra.mrb[42].mxu1 %v11688_v58  ;;  %3954 = vmatmul.mubr.f32.vlgmr.msra.gmra.mrb[34].mxu0 %v11434_v33 }
 0xbf1   :  { %8457 = vmatpush3.bf16.msra.mxu1 %v8456_v30  ;;  %v11719_v6 = vpop.f32.mrb[40].mxu1  ;;  %3958 = vmatprep.mubr.f32.mxu0 %v11488_v45  ;;  %v3862_v30 = vld [vmem:[%s13032_s12 + $0x228] sm:$0xff] }
 0xbf2   :  { %8489 = vmatpush3.bf16.msra.mxu0 %v8488_v43  ;;  %v11724_v33 = vpop.f32.mrb[41].mxu1  ;;  %8459 = vmatprep.subr.bf16.mxu1 %v8458_v18  ;;  %v11737_v53 = vpack.c.bf16 %v11719_v6, %v11688_v58  ;;  %v3848_v43 = vld [vmem:[%s13032_s12 + $0x1b8] sm:$0xff] }
 0xbf3   :  { %3787 = vmatprep.mubr.f32.mxu1 %v11724_v33  ;;  %8491 = vmatprep.subr.bf16.mxu0 %v8490_v20  ;;  %v11753_v18 = vpack.c.bf16 %v11724_v33, %v11693_v59  ;;  %v8496_v20 = vpack.c.bf16 %v3862_v30, %v3861_v44  ;;  %v8466_v26 = vpack.c.bf16 %v3848_v43, %v3847_v36  ;;  %v3833_v36 = vld [vmem:[%s13032_s12 + $0x140] sm:$0xff]  ;;  %v3834_v43 = vld [vmem:[%s13032_s12 + $0x148] sm:$0xff] }
 0xbf4   :  { %3788 = vmatmul.mubr.f32.gmra.mrb[44].mxu1 %v11719_v6  ;;  %3959 = vmatmul.mubr.f32.gmra.mrb[36].mxu0 %v11480_v41  ;;  %v3831_v41 = vld [vmem:[%s13032_s12 + $0x130] sm:$0xff] }
 0xbf5   :  { %8461 = vmatpush3.bf16.msra.mxu1 %v8460_v5  ;;  %4028 = vmatprep.mubr.f32.mxu1 %v11440_v22  ;;  %v3864_v5 = vld [vmem:[%s13032_s12 + $0x238] sm:$0xff]  ;;  %v8468_v44 = vpack.c.bf16 %v3832_v38, %v3831_v41  ;;  %v3883_v41 = vld [vmem:[%s13032_s12 + $0x2d0] sm:$0xff] }
 0xbf6   :  { %8493 = vmatpush3.bf16.msra.mxu0 %v8492_v48  ;;  %4103 = vmatprep.mubr.f32.mxu0 %v11693_v59  ;;  %v3849_v48 = vld [vmem:[%s13032_s12 + $0x1c0] sm:$0xff]  ;;  %v3884_v38 = vld [vmem:[%s13032_s12 + $0x2d8] sm:$0xff] }
 0xbf7   :  { %8463 = vmatprep.subr.bf16.mxu1 %v8462_v4  ;;  %8495 = vmatprep.subr.bf16.mxu0 %v8494_v9  ;;  %v3882_v4 = vld [vmem:[%s13032_s12 + $0x2c8] sm:$0xff]  ;;  %v8500_v9 = vpack.c.bf16 %v3864_v5, %v3863_v54  ;;  %v8470_v30 = vpack.c.bf16 %v3850_v49, %v3849_v48  ;;  %v8472_v54 = vpack.c.bf16 %v3834_v43, %v3833_v36  ;;  %v3835_v48 = vld [vmem:[%s13032_s12 + $0x150] sm:$0xff]  ;;  %v3836_v49 = vld [vmem:[%s13032_s12 + $0x158] sm:$0xff] }
 0xbf8   :  { %v8502_v42 = vpack.c.bf16 %v3882_v4, %v3881_v40  ;;  %v3867_v40 = vld [vmem:[%s13032_s12 + $0x250] sm:$0xff]  ;;  %v8506_v4 = vpack.c.bf16 %v3884_v38, %v3883_v41  ;;  %v3885_v36 = vld [vmem:[%s13032_s12 + $0x2e0] sm:$0xff]  ;;  %v3886_v43 = vld [vmem:[%s13032_s12 + $0x2e8] sm:$0xff] }
 0xbf9   :  { %8465 = vmatpush3.bf16.msra.mxu1 %v8464_v55  ;;  %v3866_v55 = vld [vmem:[%s13032_s12 + $0x248] sm:$0xff]  ;;  %v3869_v41 = vld [vmem:[%s13032_s12 + $0x260] sm:$0xff]  ;;  %v8510_v38 = vpack.c.bf16 %v3886_v43, %v3885_v36  ;;  %v3871_v43 = vld [vmem:[%s13032_s12 + $0x270] sm:$0xff] }
 0xbfa   :  { %8497 = vmatpush3.bf16.msra.mxu0 %v8496_v20  ;;  %8467 = vmatprep.subr.bf16.mxu1 %v8466_v26  ;;  %v3851_v20 = vld [vmem:[%s13032_s12 + $0x1d0] sm:$0xff]  ;;  %v3852_v26 = vld [vmem:[%s13032_s12 + $0x1d8] sm:$0xff] }
 0xbfb   :  { %8499 = vmatprep.subr.bf16.mxu0 %v8498_v3  ;;  %v8504_v3 = vpack.c.bf16 %v3866_v55, %v3865_v7  ;;  %v8474_v5 = vpack.c.bf16 %v3852_v26, %v3851_v20  ;;  %v8476_v7 = vpack.c.bf16 %v3836_v49, %v3835_v48  ;;  %v3837_v20 = vld [vmem:[%s13032_s12 + $0x160] sm:$0xff]  ;;  %v3838_v26 = vld [vmem:[%s13032_s12 + $0x168] sm:$0xff]  ;;  %v3887_v48 = vld [vmem:[%s13032_s12 + $0x2f0] sm:$0xff] }
 0xbfc   :  { %v3888_v49 = vld [vmem:[%s13032_s12 + $0x2f8] sm:$0xff] }
 0xbfd   :  { %8469 = vmatpush3.bf16.msra.mxu1 %v8468_v44  ;;  %v3868_v44 = vld [vmem:[%s13032_s12 + $0x258] sm:$0xff]  ;;  %v8514_v36 = vpack.c.bf16 %v3888_v49, %v3887_v48 }
 0xbfe   :  { %8501 = vmatpush3.bf16.msra.mxu0 %v8500_v9  ;;  %8471 = vmatprep.subr.bf16.mxu1 %v8470_v30  ;;  %v3853_v9 = vld [vmem:[%s13032_s12 + $0x1e0] sm:$0xff]  ;;  %v3854_v30 = vld [vmem:[%s13032_s12 + $0x1e8] sm:$0xff] }
 0xbff   :  { %8503 = vmatprep.subr.bf16.mxu0 %v8502_v42  ;;  %v8508_v42 = vpack.c.bf16 %v3868_v44, %v3867_v40  ;;  %v8478_v55 = vpack.c.bf16 %v3854_v30, %v3853_v9  ;;  %v8480_v40 = vpack.c.bf16 %v3838_v26, %v3837_v20  ;;  %v3839_v9 = vld [vmem:[%s13032_s12 + $0x170] sm:$0xff]  ;;  %v3840_v30 = vld [vmem:[%s13032_s12 + $0x178] sm:$0xff] }
 0xc01   :  { %8473 = vmatpush3.bf16.msra.mxu1 %v8472_v54  ;;  %v3870_v54 = vld [vmem:[%s13032_s12 + $0x268] sm:$0xff] }
 0xc02   :  { %8505 = vmatpush3.bf16.msra.mxu0 %v8504_v3  ;;  %8475 = vmatprep.subr.bf16.mxu1 %v8474_v5  ;;  %v3855_v3 = vld [vmem:[%s13032_s12 + $0x1f0] sm:$0xff]  ;;  %v3856_v5 = vld [vmem:[%s13032_s12 + $0x1f8] sm:$0xff] }
 0xc03   :  { %8507 = vmatprep.subr.bf16.mxu0 %v8506_v4  ;;  %v8512_v4 = vpack.c.bf16 %v3870_v54, %v3869_v41  ;;  %v8482_v44 = vpack.c.bf16 %v3856_v5, %v3855_v3 }
 0xc05   :  { %8477 = vmatpush3.bf16.msra.mxu1 %v8476_v7  ;;  %v3872_v7 = vld [vmem:[%s13032_s12 + $0x278] sm:$0xff] }
 0xc06   :  { %8509 = vmatpush3.bf16.msra.mxu0 %v8508_v42  ;;  %8479 = vmatprep.subr.bf16.mxu1 %v8478_v55  ;;  %v8484_v42 = vpack.c.bf16 %v3840_v30, %v3839_v9  ;;  %v8516_v55 = vpack.c.bf16 %v3872_v7, %v3871_v43 }
 0xc07   :  { %8511 = vmatprep.subr.bf16.mxu0 %v8510_v38 }
 0xc09   :  { %8481 = vmatpush3.bf16.msra.mxu1 %v8480_v40 }
 0xc0a   :  { %8513 = vmatpush3.bf16.msra.mxu0 %v8512_v4  ;;  %8483 = vmatprep.subr.bf16.mxu1 %v8482_v44 }
 0xc0b   :  { %8515 = vmatprep.subr.bf16.mxu0 %v8514_v36 }
 0xc0d   :  { %8485 = vmatpush3.bf16.msra.mxu1 %v8484_v42 }
 0xc0e   :  { %8517 = vmatpush3.bf16.msra.mxu0 %v8516_v55  ;;  %8519 = vmatprep.subr.bf16.mxu1 %v11500_v25 }
 0xc10   :  { %4029 = vmatmul.mubr.f32.vlgmr.msra.gmra.mrb[46].mxu1 %v11436_v28 }
 0xc11   :  { %4033 = vmatprep.mubr.f32.mxu1 %v11490_v24  ;;  %4104 = vmatmul.mubr.f32.vlgmr.msra.gmra.mrb[38].mxu0 %v11688_v58 }
 0xc12   :  { %8521 = vmatpush3.bf16.msra.mxu1 %v11500_v25  ;;  %4108 = vmatprep.mubr.f32.mxu0 %v11724_v33 }
 0xc13   :  { %8527 = vmatprep.subr.bf16.mxu1 %v11519_v56 }
 0xc14   :  { %4034 = vmatmul.mubr.f32.gmra.mrb[48].mxu1 %v11482_v27 }
 0xc15   :  { %4109 = vmatmul.mubr.f32.gmra.mrb[40].mxu0 %v11719_v6 }
 0xc2e   :  { %v8856_v20 = vpop.permute.xlu0 %8855 }
 0xc2f   :  { %v8858_v26 = vunpack.i.h.bf16 %v8856_v20  ;;  %v8857_v41 = vunpack.i.l.bf16 %v8856_v20 }
 0xc31   :  { %v8522_v38 = vpack.c.bf16 %v8858_v26, %v8857_v41 }
 0xc33   :  { %8523 = vmatprep.subr.bf16.mxu0 %v8522_v38 }
 0xc34   :  { %8525 = vmatpush3.bf16.msra.mxu0 %v8522_v38 }
 0xc83   :  { %v7263_v54 = vpop.f32.mrb[26].mxu0 }
 0xc84   :  { %v7264_v3 = vpop.f32.mrb[27].mxu0 }
 0xc85   :  { %v7265_v5 = vadd.f32 %v7264_v3, %v7263_v54 }
 0xc8f   :  { %v7266_v48 = vpop.f32.mrb[28].mxu0 }
 0xc90   :  { %v7267_v49 = vpop.f32.mrb[29].mxu0 }
 0xc91   :  { %v7268_v25 = vadd.f32 %v7267_v49, %v7266_v48 }
 0xca3   :  { %v7301_v40 = vpop.f32.mrb[30].mxu0 }
 0xca4   :  { %v7302_v4 = vpop.f32.mrb[31].mxu0 }
 0xca5   :  { %v7303_v44 = vadd.f32 %v7302_v4, %v7301_v40 }
 0xca7   :  { %v3710_v9 = vadd.f32 %v7303_v44, %v7265_v5  ;;  %v7304_v30 = vpop.f32.mrb[32].mxu0 }
 0xca8   :  { %v7305_v36 = vpop.f32.mrb[33].mxu0 }
 0xca9   :  { %v7306_v43 = vadd.f32 %v7305_v36, %v7304_v30 }
 0xcab   :  { %v3715_v7 = vadd.f32 %v7306_v43, %v7268_v25 }
 0xcc3   :  { %v7339_v42 = vpop.f32.mrb[42].mxu1  ;;  %v7377_v55 = vpop.f32.mrb[34].mxu0 }
 0xcc4   :  { %v7340_v20 = vpop.f32.mrb[43].mxu1  ;;  %v7378_v26 = vpop.f32.mrb[35].mxu0 }
 0xcc5   :  { %v7341_v41 = vadd.f32 %v7340_v20, %v7339_v42  ;;  %v7379_v38 = vadd.f32 %v7378_v26, %v7377_v55 }
 0xcc7   :  { %v3785_v1 = vadd.f32 %v7341_v41, %v3710_v9  ;;  %v7342_v39 = vpop.f32.mrb[44].mxu1  ;;  %v7380_v54 = vpop.f32.mrb[36].mxu0 }
 0xcc8   :  { %v7343_v3 = vpop.f32.mrb[45].mxu1  ;;  %v7381_v31 = vpop.f32.mrb[37].mxu0 }
 0xcc9   :  { %v7344_v48 = vadd.f32 %v7343_v3, %v7342_v39  ;;  %v7382_v49 = vadd.f32 %v7381_v31, %v7380_v54  ;;  %4114 = vxpose.xlu0.b32.start [1/2] (short) (narrow) %v3785_v1, 16  ;;  %v9190_v1 = vmov 8  }
 0xccb   :  { %v3790_v40 = vadd.f32 %v7344_v48, %v3715_v7 }
 0xccd   :  { %4115 = vxpose.xlu0.b32.end [2/2] (short) (narrow) %v3790_v40, 16 }
 0xce3   :  { %v7415_v5 = vpop.f32.mrb[46].mxu1 }
 0xce4   :  { %v7416_v4 = vpop.f32.mrb[47].mxu1  ;;  %v7453_v44 = vpop.f32.mrb[38].mxu0 }
 0xce5   :  { %v7417_v25 = vadd.f32 %v7416_v4, %v7415_v5  ;;  %v7454_v30 = vpop.f32.mrb[39].mxu0 }
 0xce6   :  { %v7455_v36 = vadd.f32 %v7454_v30, %v7453_v44 }
 0xce7   :  { %v4031_v43 = vadd.f32 %v7417_v25, %v7379_v38  ;;  %v7418_v37 = vpop.f32.mrb[48].mxu1 }
 0xce8   :  { %v7419_v42 = vpop.f32.mrb[49].mxu1  ;;  %v7456_v55 = vpop.f32.mrb[40].mxu0 }
 0xce9   :  { %v4106_v9 = vadd.f32 %v7455_v36, %v4031_v43  ;;  %v7420_v20 = vadd.f32 %v7419_v42, %v7418_v37  ;;  %v7457_v26 = vpop.f32.mrb[41].mxu0  ;;  %v9193_v37 = vmov 11  }
 0xcea   :  { %v7458_v41 = vadd.f32 %v7457_v26, %v7456_v55 }
 0xceb   :  { %v4036_v10 = vadd.f32 %v7420_v20, %v7382_v49  ;;  %4148 = vperm.xlu1 %8859, %v4106_v9  }
 0xced   :  { %v4111_v31 = vadd.f32 %v7458_v41, %v4036_v10  ;;  %v9191_v10 = vmov 10  }
 0xcef   :  { %8860 = vset.pattern.permute.xlu1 %v9179_v46 }
 0xcf0   :  { %4274 = vperm.xlu1 %8860, %v4106_v9  }
 0xcf4   :  { %8861 = vset.pattern.permute.xlu1 %v9182_v61 }
 0xcf5   :  { %4407 = vperm.xlu1 %8861, %v4106_v9  }
 0xcf6   :  { %8873 = vset.pattern.permute.xlu0 %v9182_v61  ;;  %v9192_v61 = vmov 9  }
 0xcf7   :  { %4411 = vperm.xlu0 %8873, %v4111_v31  }
 0xcf9   :  { %8862 = vset.pattern.permute.xlu1 %v9181_v60 }
 0xcfa   :  { %4532 = vperm.xlu1 %8862, %v4106_v9  }
 0xcfb   :  { %8877 = vset.pattern.permute.xlu0 %v9190_v1 }
 0xcfc   :  { %5185 = vperm.xlu0 %8877, %v4111_v31  }
 0xcfe   :  { %8863 = vset.pattern.permute.xlu1 %v9183_v62 }
 0xcff   :  { %4665 = vperm.xlu1 %8863, %v4106_v9  }
 0xd00   :  { %8888 = vset.pattern.permute.xlu0 %v9180_v47 }
 0xd03   :  { %8864 = vset.pattern.permute.xlu1 %v9185_v0 }
 0xd04   :  { %4923 = vperm.xlu1 %8864, %v4106_v9  }
 0xd08   :  { %8865 = vset.pattern.permute.xlu1 %v9190_v1 }
 0xd09   :  { %5181 = vperm.xlu1 %8865, %v4106_v9  }
 0xd0d   :  { %8866 = vset.pattern.permute.xlu1 %v9191_v10 }
 0xd0e   :  { %5439 = vperm.xlu1 %8866, %v4106_v9  }
 0xd12   :  { %8867 = vset.pattern.permute.xlu1 %v9184_v63 }
 0xd13   :  { %4790 = vperm.xlu1 %8867, %v4106_v9  }
 0xd17   :  { %8868 = vset.pattern.permute.xlu1 %v9186_v2 }
 0xd18   :  { %5048 = vperm.xlu1 %8868, %v4106_v9  }
 0xd1c   :  { %8869 = vset.pattern.permute.xlu1 %v9192_v61 }
 0xd1d   :  { %5306 = vperm.xlu1 %8869, %v4106_v9  }
 0xd21   :  { %8870 = vset.pattern.permute.xlu1 %v9193_v37 }
 0xd22   :  { %5564 = vperm.xlu1 %8870, %v4106_v9  }
 0xd26   :  { %8871 = vset.pattern.permute.xlu1 %v9180_v47 }
 0xd27   :  { %4153 = vperm.xlu1 %8871, %v4111_v31  }
 0xd2b   :  { %8872 = vset.pattern.permute.xlu1 %v9179_v46 }
 0xd2c   :  { %4278 = vperm.xlu1 %8872, %v4111_v31  }
 0xd30   :  { %8874 = vset.pattern.permute.xlu1 %v9181_v60 }
 0xd31   :  { %4536 = vperm.xlu1 %8874, %v4111_v31  }
 0xd35   :  { %8875 = vset.pattern.permute.xlu1 %v9183_v62 }
 0xd36   :  { %4669 = vperm.xlu1 %8875, %v4111_v31  }
 0xd3a   :  { %8876 = vset.pattern.permute.xlu1 %v9185_v0 }
 0xd3b   :  { %4927 = vperm.xlu1 %8876, %v4111_v31  }
 0xd3f   :  { %8878 = vset.pattern.permute.xlu1 %v9191_v10 }
 0xd40   :  { %5443 = vperm.xlu1 %8878, %v4111_v31  }
 0xd44   :  { %8879 = vset.pattern.permute.xlu1 %v9184_v63 }
 0xd45   :  { %4794 = vperm.xlu1 %8879, %v4111_v31  }
 0xd49   :  { %8880 = vset.pattern.permute.xlu1 %v9186_v2  ;;  %v11898_v46 = vpop.trf.xlu0 }
 0xd4a   :  { %5052 = vperm.xlu1 %8880, %v4111_v31   ;;  %v11902_v47 = vrot.slane %v11898_v46, %v9541_v12  ;;  %v11907_v63 = vrot.slane %v11898_v46, %v9543_v13  ;;  %v11912_v7 = vrot.slane %v11898_v46, %v9545_v14  ;;  %v11921_v5 = vrot.slane %v11898_v46, %v9547_v15 }
 0xd4b   :  { %v11940_v20 = vrot.slane %v11898_v46, %v9569_v23 }
 0xd4e   :  { %8881 = vset.pattern.permute.xlu1 %v9192_v61 }
 0xd4f   :  { %5310 = vperm.xlu1 %8881, %v4111_v31  }
 0xd53   :  { %8882 = vset.pattern.permute.xlu1 %v9193_v37  ;;  %v11951_v37 = vrot.slane %v11898_v46, %v9597_v50 }
 0xd54   :  { %5568 = vperm.xlu1 %8882, %v4111_v31  }
 0xd6a   :  { %v4149_v60 = vpop.permute.xlu1 %4148 }
 0xd6b   :  { %v4160_v62 = vadd.f32 %v11902_v47, %v4149_v60 }
 0xd6d   :  { %v4164_v0 = vmul.f32 0.2, %v4160_v62  ;;  %vm4162_vm8 = vcmp.ge.f32.partialorder %v4160_v62, 0.0 }
 0xd6f   :  { %v4275_v2 = vpop.permute.xlu1 %4274  ;;  %v4166_v38 = vsel %vm4162_vm8, %v4160_v62, %v4164_v0 }
 0xd70   :  { %v4285_v39 = vadd.f32 %v11907_v63, %v4275_v2  ;;  %v11916_v48 = vsel %vm434_vm3, %v4166_v38, -1e+30 }
 0xd71   :  { %v4170_v44 = vsel %vm438_vm6, %v11916_v48, -inf }
 0xd72   :  { %v4289_v54 = vmul.f32 0.2, %v4285_v39  ;;  %vm4287_vm10 = vcmp.ge.f32.partialorder %v4285_v39, 0.0 }
 0xd74   :  { %v4408_v3 = vpop.permute.xlu1 %4407  ;;  %v4291_v40 = vsel %vm4287_vm10, %v4285_v39, %v4289_v54  ;;  %v4131_v54 = vpop.trf.xlu0 }
 0xd75   :  { %v4418_v49 = vadd.f32 %v11912_v7, %v4408_v3  ;;  %v11927_v25 = vsel %vm434_vm3, %v4291_v40, -1e+30 }
 0xd76   :  { %v4295_v9 = vsel %vm438_vm6, %v11927_v25, -inf }
 0xd77   :  { %v4422_v4 = vmul.f32 0.2, %v4418_v49  ;;  %vm4420_vm1 = vcmp.ge.f32.partialorder %v4418_v49, 0.0 }
 0xd78   :  { %4171 = vmax.xlane.f32.xlu1 %v4170_v44 }
 0xd79   :  { %v4533_v30 = vpop.permute.xlu1 %4532  ;;  %v4424_v36 = vsel %vm4420_vm1, %v4418_v49, %v4422_v4  ;;  %v11961_v49 = vrot.slane %v4131_v54, %v9541_v12 }
 0xd7a   :  { %v4543_v43 = vadd.f32 %v11921_v5, %v4533_v30  ;;  %v11932_v42 = vsel %vm434_vm3, %v4424_v36, -1e+30 }
 0xd7b   :  { %v4428_v55 = vsel %vm438_vm6, %v11932_v42, -inf }
 0xd7c   :  { %vm4545_vm4 = vcmp.ge.f32.partialorder %v4543_v43, 0.0  ;;  %v4547_v26 = vmul.f32 0.2, %v4543_v43  ;;  %4429 = vmax.xlane.f32.xlu0 %v4428_v55  ;;  %4296 = vmax.xlane.f32.xlu1 %v4295_v9 }
 0xd7e   :  { %v4666_v41 = vpop.permute.xlu1 %4665  ;;  %v4549_v31 = vsel %vm4545_vm4, %v4543_v43, %v4547_v26  ;;  %v11971_v43 = vrot.slane %v4131_v54, %v9545_v14 }
 0xd7f   :  { %v4676_v1 = vadd.f32 %v11940_v20, %v4666_v41  ;;  %v11945_v10 = vsel %vm434_vm3, %v4549_v31, -1e+30 }
 0xd80   :  { %v4553_v61 = vsel %vm438_vm6, %v11945_v10, -inf }
 0xd81   :  { %vm4678_vm5 = vcmp.ge.f32.partialorder %v4676_v1, 0.0  ;;  %v4680_v60 = vmul.f32 0.2, %v4676_v1  ;;  %4554 = vmax.xlane.f32.xlu0 %v4553_v61  ;;  %v11982_v61 = vrot.slane %v11898_v46, %v9575_v29 }
 0xd83   :  { %v4924_v62 = vpop.permute.xlu1 %4923  ;;  %v4682_v0 = vsel %vm4678_vm5, %v4676_v1, %v4680_v60 }
 0xd84   :  { %v4934_v2 = vadd.f32 %v11951_v37, %v4924_v62  ;;  %v11956_v39 = vsel %vm434_vm3, %v4682_v0, -1e+30 }
 0xd85   :  { %v4686_v38 = vsel %vm438_vm6, %v11956_v39, -inf }
 0xd86   :  { %vm4936_vm7 = vcmp.ge.f32.partialorder %v4934_v2, 0.0  ;;  %v4938_v3 = vmul.f32 0.2, %v4934_v2  ;;  %4687 = vmax.xlane.f32.xlu1 %v4686_v38 }
 0xd88   :  { %v5182_v40 = vpop.permute.xlu1 %5181  ;;  %v4940_v4 = vsel %vm4936_vm7, %v4934_v2, %v4938_v3 }
 0xd89   :  { %v5192_v44 = vadd.f32 %v11961_v49, %v5182_v40  ;;  %v11966_v30 = vsel %vm434_vm3, %v4940_v4, -1e+30  ;;  %v11993_v40 = vrot.slane %v11898_v46, %v9609_v57 }
 0xd8a   :  { %v4944_v36 = vsel %vm438_vm6, %v11966_v30, -inf }
 0xd8b   :  { %vm5194_vm11 = vcmp.ge.f32.partialorder %v5192_v44, 0.0  ;;  %v5196_v55 = vmul.f32 0.2, %v5192_v44  ;;  %4945 = vmax.xlane.f32.xlu1 %v4944_v36 }
 0xd8d   :  { %v5440_v9 = vpop.permute.xlu1 %5439  ;;  %v5198_v26 = vsel %vm5194_vm11, %v5192_v44, %v5196_v55 }
 0xd8e   :  { %v5450_v41 = vadd.f32 %v11971_v43, %v5440_v9  ;;  %v11976_v31 = vsel %vm434_vm3, %v5198_v26, -1e+30 }
 0xd8f   :  { %v5202_v1 = vsel %vm438_vm6, %v11976_v31, -inf }
 0xd90   :  { %vm5452_vm12 = vcmp.ge.f32.partialorder %v5450_v41, 0.0  ;;  %v5454_v60 = vmul.f32 0.2, %v5450_v41  ;;  %5203 = vmax.xlane.f32.xlu1 %v5202_v1  ;;  %v4412_v1 = vpop.permute.xlu0 %4411 }
 0xd92   :  { %v4791_v62 = vpop.permute.xlu1 %4790  ;;  %v5456_v0 = vsel %vm5452_vm12, %v5450_v41, %v5454_v60  ;;  %v12003_v41 = vrot.slane %v4131_v54, %v9543_v13 }
 0xd93   :  { %v4801_v2 = vadd.f32 %v11982_v61, %v4791_v62  ;;  %v11987_v38 = vsel %vm434_vm3, %v5456_v0, -1e+30 }
 0xd94   :  { %v5460_v3 = vsel %vm438_vm6, %v11987_v38, -inf }
 0xd95   :  { %vm4803_vm13 = vcmp.ge.f32.partialorder %v4801_v2, 0.0  ;;  %v4805_v4 = vmul.f32 0.2, %v4801_v2  ;;  %5461 = vmax.xlane.f32.xlu1 %v5460_v3  ;;  %v4419_v3 = vadd.f32 %v11912_v7, %v4412_v1 }
 0xd97   :  { %v5049_v44 = vpop.permute.xlu1 %5048  ;;  %v4807_v36 = vsel %vm4803_vm13, %v4801_v2, %v4805_v4  ;;  %vm4421_vm0 = vcmp.ge.f32.partialorder %v4419_v3, 0.0 }
 0xd98   :  { %v5059_v55 = vadd.f32 %v11993_v40, %v5049_v44  ;;  %v11998_v9 = vsel %vm434_vm3, %v4807_v36, -1e+30  ;;  %v12014_v44 = vrot.slane %v4131_v54, %v9547_v15 }
 0xd99   :  { %v4811_v26 = vsel %vm438_vm6, %v11998_v9, -inf }
 0xd9a   :  { %vm5061_vm14 = vcmp.ge.f32.partialorder %v5059_v55, 0.0  ;;  %v5063_v46 = vmul.f32 0.2, %v5059_v55  ;;  %4812 = vmax.xlane.f32.xlu1 %v4811_v26 }
 0xd9c   :  { %v5307_v60 = vpop.permute.xlu1 %5306  ;;  %v5065_v62 = vsel %vm5061_vm14, %v5059_v55, %v5063_v46  ;;  %v4423_v55 = vmul.f32 0.2, %v4419_v3 }
 0xd9d   :  { %v5317_v0 = vadd.f32 %v12003_v41, %v5307_v60  ;;  %v12008_v2 = vsel %vm434_vm3, %v5065_v62, -1e+30 }
 0xd9e   :  { %v5069_v4 = vsel %vm438_vm6, %v12008_v2, -inf  ;;  %v4425_v57 = vsel %vm4421_vm0, %v4419_v3, %v4423_v55 }
 0xd9f   :  { %vm5319_vm15 = vcmp.ge.f32.partialorder %v5317_v0, 0.0  ;;  %v5321_v36 = vmul.f32 0.2, %v5317_v0  ;;  %5070 = vmax.xlane.f32.xlu1 %v5069_v4 }
 0xda1   :  { %v5565_v26 = vpop.permute.xlu1 %5564  ;;  %v5323_v11 = vsel %vm5319_vm15, %v5317_v0, %v5321_v36 }
 0xda2   :  { %v5575_v46 = vadd.f32 %v12014_v44, %v5565_v26  ;;  %v12019_v60 = vsel %vm434_vm3, %v5323_v11, -1e+30  ;;  %v12032_v26 = vsel %vm435_vm2, %v4425_v57, -1e+30 }
 0xda3   :  { %v5327_v7 = vsel %vm438_vm6, %v12019_v60, -inf }
 0xda4   :  { %vm5577_vm8 = vcmp.ge.f32.partialorder %v5575_v46, 0.0  ;;  %v5579_v1 = vmul.f32 0.2, %v5575_v46  ;;  %5328 = vmax.xlane.f32.xlu1 %v5327_v7 }
 0xda6   :  { %v4154_v54 = vpop.permute.xlu1 %4153  ;;  %v5581_v62 = vsel %vm5577_vm8, %v5575_v46, %v5579_v1 }
 0xda7   :  { %v4161_v4 = vadd.f32 %v11902_v47, %v4154_v54  ;;  %v12026_v0 = vsel %vm434_vm3, %v5581_v62, -1e+30  ;;  %v4431_v47 = vsel %vm438_vm6, %v12032_v26, -inf }
 0xda8   :  { %v5585_v11 = vsel %vm438_vm6, %v12026_v0, -inf }
 0xda9   :  { %vm4163_vm10 = vcmp.ge.f32.partialorder %v4161_v4, 0.0  ;;  %v4165_v36 = vmul.f32 0.2, %v4161_v4  ;;  %5586 = vmax.xlane.f32.xlu1 %v5585_v11 }
 0xdab   :  { %v4279_v7 = vpop.permute.xlu1 %4278  ;;  %v4167_v50 = vsel %vm4163_vm10, %v4161_v4, %v4165_v36  ;;  %v5186_v4 = vpop.permute.xlu0 %5185 }
 0xdac   :  { %v4286_v3 = vadd.f32 %v11907_v63, %v4279_v7  ;;  %v12039_v19 = vsel %vm435_vm2, %v4167_v50, -1e+30 }
 0xdad   :  { %4432 = vmax.xlane.f32.xlu1 %v4431_v47  ;;  %v4173_v55 = vsel %vm438_vm6, %v12039_v19, -inf }
 0xdae   :  { %vm4288_vm3 = vcmp.ge.f32.partialorder %v4286_v3, 0.0  ;;  %v4290_v46 = vmul.f32 0.2, %v4286_v3  ;;  %4174 = vmax.xlane.f32.xlu0 %v4173_v55 }
 0xdb0   :  { %v4537_v57 = vpop.permute.xlu1 %4536  ;;  %v4292_v1 = vsel %vm4288_vm3, %v4286_v3, %v4290_v46 }
 0xdb1   :  { %v4544_v54 = vadd.f32 %v11921_v5, %v4537_v57  ;;  %v12046_v63 = vsel %vm435_vm2, %v4292_v1, -1e+30  ;;  %v5193_v5 = vadd.f32 %v11961_v49, %v5186_v4 }
 0xdb2   :  { %v4298_v62 = vsel %vm438_vm6, %v12046_v63, -inf }
 0xdb3   :  { %vm4546_vm1 = vcmp.ge.f32.partialorder %v4544_v54, 0.0  ;;  %v4548_v50 = vmul.f32 0.2, %v4544_v54  ;;  %4299 = vmax.xlane.f32.xlu0 %v4298_v62  ;;  %v5197_v1 = vmul.f32 0.2, %v5193_v5  ;;  %vm5195_vm5 = vcmp.ge.f32.partialorder %v5193_v5, 0.0 }
 0xdb5   :  { %v4670_v11 = vpop.permute.xlu1 %4669  ;;  %v4550_v36 = vsel %vm4546_vm1, %v4544_v54, %v4548_v50  ;;  %v13065_v50 = vpack.i.bf16 %v11488_v45, %v11438_v8 }
 0xdb6   :  { %v4677_v7 = vadd.f32 %v11940_v20, %v4670_v11  ;;  %v12053_v3 = vsel %vm435_vm2, %v4550_v36, -1e+30  ;;  %v5199_v36 = vsel %vm5195_vm5, %v5193_v5, %v5197_v1 }
 0xdb7   :  { %v4556_v47 = vsel %vm438_vm6, %v12053_v3, -inf }
 0xdb8   :  { %vm4679_vm4 = vcmp.ge.f32.partialorder %v4677_v7, 0.0  ;;  %v4681_v55 = vmul.f32 0.2, %v4677_v7  ;;  %4557 = vmax.xlane.f32.xlu0 %v4556_v47 }
 0xdba   :  { %v4928_v46 = vpop.permute.xlu1 %4927  ;;  %v4683_v57 = vsel %vm4679_vm4, %v4677_v7, %v4681_v55 }
 0xdbb   :  { %v4935_v62 = vadd.f32 %v11951_v37, %v4928_v46  ;;  %v12061_v20 = vsel %vm435_vm2, %v4683_v57, -1e+30  ;;  %v12078_v46 = vsel %vm435_vm2, %v5199_v36, -1e+30 }
 0xdbc   :  { %v4689_v54 = vsel %vm438_vm6, %v12061_v20, -inf }
 0xdbd   :  { %vm4937_vm7 = vcmp.ge.f32.partialorder %v4935_v62, 0.0  ;;  %v4939_v49 = vmul.f32 0.2, %v4935_v62  ;;  %4690 = vmax.xlane.f32.xlu0 %v4689_v54 }
 0xdbe   :  { %8884 = vrot.lane.b32.xlu1 %v13065_v50, %s9188_s23 }
 0xdbf   :  { %v5444_v4 = vpop.permute.xlu1 %5443  ;;  %v4941_v11 = vsel %vm4937_vm7, %v4935_v62, %v4939_v49 }
 0xdc0   :  { %v5451_v37 = vadd.f32 %v11971_v43, %v5444_v4  ;;  %v12072_v7 = vsel %vm435_vm2, %v4941_v11, -1e+30  ;;  %v5205_v43 = vsel %vm438_vm6, %v12078_v46, -inf }
 0xdc1   :  { %v4947_v47 = vsel %vm438_vm6, %v12072_v7, -inf }
 0xdc2   :  { %vm5453_vm11 = vcmp.ge.f32.partialorder %v5451_v37, 0.0  ;;  %v5455_v55 = vmul.f32 0.2, %v5451_v37  ;;  %4948 = vmax.xlane.f32.xlu0 %v4947_v47 }
 0xdc4   :  { %v4795_v8 = vpop.permute.xlu1 %4794  ;;  %v5457_v45 = vsel %vm5453_vm11, %v5451_v37, %v5455_v55 }
 0xdc5   :  { %v4802_v5 = vadd.f32 %v11982_v61, %v4795_v8  ;;  %v12085_v57 = vsel %vm435_vm2, %v5457_v45, -1e+30 }
 0xdc6   :  { %5206 = vmax.xlane.f32.xlu0 %v5205_v43  ;;  %v5463_v54 = vsel %vm438_vm6, %v12085_v57, -inf }
 0xdc7   :  { %vm4804_vm12 = vcmp.ge.f32.partialorder %v4802_v5, 0.0  ;;  %v4806_v1 = vmul.f32 0.2, %v4802_v5 }
 0xdc9   :  { %v5053_v62 = vpop.permute.xlu1 %5052  ;;  %v4808_v49 = vsel %vm4804_vm12, %v4802_v5, %v4806_v1 }
 0xdca   :  { %v5060_v50 = vadd.f32 %v11993_v40, %v5053_v62  ;;  %5464 = vmax.xlane.f32.xlu0 %v5463_v54  ;;  %v12092_v61 = vsel %vm435_vm2, %v4808_v49, -1e+30 }
 0xdcb   :  { %v4814_v11 = vsel %vm438_vm6, %v12092_v61, -inf }
 0xdcc   :  { %vm5062_vm13 = vcmp.ge.f32.partialorder %v5060_v50, 0.0  ;;  %v5064_v4 = vmul.f32 0.2, %v5060_v50 }
 0xdce   :  { %v5311_v36 = vpop.permute.xlu1 %5310  ;;  %4815 = vmax.xlane.f32.xlu0 %v4814_v11  ;;  %v5066_v37 = vsel %vm5062_vm13, %v5060_v50, %v5064_v4 }
 0xdcf   :  { %v5318_v47 = vadd.f32 %v12003_v41, %v5311_v36  ;;  %v12099_v55 = vsel %vm435_vm2, %v5066_v37, -1e+30 }
 0xdd0   :  { %v5072_v40 = vsel %vm438_vm6, %v12099_v55, -inf }
 0xdd1   :  { %vm5320_vm14 = vcmp.ge.f32.partialorder %v5318_v47, 0.0  ;;  %v5322_v8 = vmul.f32 0.2, %v5318_v47 }
 0xdd2   :  { %5073 = vmax.xlane.f32.xlu0 %v5072_v40 }
 0xdd3   :  { %v5569_v45 = vpop.permute.xlu1 %5568  ;;  %v5324_v5 = vsel %vm5320_vm14, %v5318_v47, %v5322_v8 }
 0xdd4   :  { %v5576_v43 = vadd.f32 %v12014_v44, %v5569_v45  ;;  %v12106_v1 = vsel %vm435_vm2, %v5324_v5, -1e+30 }
 0xdd5   :  { %v5330_v41 = vsel %vm438_vm6, %v12106_v1, -inf }
 0xdd6   :  { %vm5578_vm15 = vcmp.ge.f32.partialorder %v5576_v43, 0.0  ;;  %v5580_v62 = vmul.f32 0.2, %v5576_v43  ;;  %5331 = vmax.xlane.f32.xlu0 %v5330_v41 }
 0xdd8   :  { %v5582_v54 = vsel %vm5578_vm15, %v5576_v43, %v5580_v62 }
 0xdd9   :  { %v12112_v49 = vsel %vm435_vm2, %v5582_v54, -1e+30  ;;  %vm6930_vm2 = vcmask 1024  }
 0xdda   :  { %v5588_v50 = vsel %vm438_vm6, %v12112_v49, -inf }
 0xddb   :  { %5589 = vmax.xlane.f32.xlu0 %v5588_v50 }
 0xe05   :  { %v4172_v44 = vpop.xlane.xlu1 %4171 }
 0xe06   :  { %v4176_v4 = vsub.f32 %v11916_v48, %v4172_v44 }
 0xe08   :  { %v4178_v11 = vmul.f32 1.442695, %v4176_v4 }
 0xe09   :  { %v4297_v36 = vpop.xlane.xlu1 %4296  ;;  %v4430_v37 = vpop.xlane.xlu0 %4429 }
 0xe0a   :  { %9038 = vpow2.f32 %v4178_v11  ;;  %v4301_v47 = vsub.f32 %v11927_v25, %v4297_v36  ;;  %v4434_v40 = vsub.f32 %v11932_v42, %v4430_v37 }
 0xe0c   :  { %v4303_v8 = vmul.f32 1.442695, %v4301_v47  ;;  %v4436_v45 = vmul.f32 1.442695, %v4434_v40 }
 0xe0e   :  { %9040 = vpow2.f32 %v4303_v8  ;;  %v4555_v17 = vpop.xlane.xlu0 %4554 }
 0xe0f   :  { %9042 = vpow2.f32 %v4436_v45  ;;  %v4559_v5 = vsub.f32 %v11945_v10, %v4555_v17 }
 0xe11   :  { %v4561_v43 = vmul.f32 1.442695, %v4559_v5 }
 0xe13   :  { %9044 = vpow2.f32 %v4561_v43  ;;  %v4688_v41 = vpop.xlane.xlu1 %4687 }
 0xe14   :  { %v12120_v62 = vpop.eup %9038  ;;  %v4692_v48 = vsub.f32 %v11956_v39, %v4688_v41 }
 0xe15   :  { %v4182_v54 = vsel %vm438_vm6, %v12120_v62, 0.0 }
 0xe16   :  { %v4694_v25 = vmul.f32 1.442695, %v4692_v48  ;;  %4183 = vadd.xlane.f32.xlu1 %v4182_v54 }
 0xe18   :  { %v12125_v42 = vpop.eup %9040  ;;  %9046 = vpow2.f32 %v4694_v25  ;;  %v4946_v50 = vpop.xlane.xlu1 %4945 }
 0xe19   :  { %v12127_v44 = vpop.eup %9042  ;;  %v4950_v10 = vsub.f32 %v11966_v30, %v4946_v50  ;;  %v4307_v4 = vsel %vm438_vm6, %v12125_v42, 0.0 }
 0xe1a   :  { %4308 = vadd.xlane.f32.xlu0 %v4307_v4  ;;  %v4440_v39 = vsel %vm438_vm6, %v12127_v44, 0.0 }
 0xe1b   :  { %v4952_v11 = vmul.f32 1.442695, %v4950_v10  ;;  %4441 = vadd.xlane.f32.xlu1 %v4440_v39 }
 0xe1d   :  { %v12134_v36 = vpop.eup %9044  ;;  %9048 = vpow2.f32 %v4952_v11  ;;  %v5204_v37 = vpop.xlane.xlu1 %5203 }
 0xe1e   :  { %v5208_v47 = vsub.f32 %v11976_v31, %v5204_v37  ;;  %v4565_v40 = vsel %vm438_vm6, %v12134_v36, 0.0 }
 0xe1f   :  { %4566 = vadd.xlane.f32.xlu1 %v4565_v40 }
 0xe20   :  { %v5210_v30 = vmul.f32 1.442695, %v5208_v47 }
 0xe22   :  { %v12139_v8 = vpop.eup %9046  ;;  %9050 = vpow2.f32 %v5210_v30  ;;  %v5462_v45 = vpop.xlane.xlu1 %5461 }
 0xe23   :  { %v5466_v17 = vsub.f32 %v11987_v38, %v5462_v45  ;;  %v4698_v5 = vsel %vm438_vm6, %v12139_v8, 0.0 }
 0xe24   :  { %4699 = vadd.xlane.f32.xlu0 %v4698_v5 }
 0xe25   :  { %v5468_v43 = vmul.f32 1.442695, %v5466_v17 }
 0xe27   :  { %v12144_v41 = vpop.eup %9048  ;;  %9052 = vpow2.f32 %v5468_v43  ;;  %v4813_v31 = vpop.xlane.xlu1 %4812 }
 0xe28   :  { %v4817_v48 = vsub.f32 %v11998_v9, %v4813_v31  ;;  %v4956_v54 = vsel %vm438_vm6, %v12144_v41, 0.0 }
 0xe29   :  { %4957 = vadd.xlane.f32.xlu0 %v4956_v54 }
 0xe2a   :  { %v4819_v25 = vmul.f32 1.442695, %v4817_v48 }
 0xe2c   :  { %v12149_v50 = vpop.eup %9050  ;;  %9054 = vpow2.f32 %v4819_v25  ;;  %v5071_v38 = vpop.xlane.xlu1 %5070 }
 0xe2d   :  { %v5075_v10 = vsub.f32 %v12008_v2, %v5071_v38  ;;  %v5214_v4 = vsel %vm438_vm6, %v12149_v50, 0.0 }
 0xe2e   :  { %5215 = vadd.xlane.f32.xlu0 %v5214_v4 }
 0xe2f   :  { %v5077_v39 = vmul.f32 1.442695, %v5075_v10 }
 0xe31   :  { %v12154_v11 = vpop.eup %9052  ;;  %9056 = vpow2.f32 %v5077_v39  ;;  %v5329_v9 = vpop.xlane.xlu1 %5328 }
 0xe32   :  { %v5333_v37 = vsub.f32 %v12019_v60, %v5329_v9  ;;  %v5472_v47 = vsel %vm438_vm6, %v12154_v11, 0.0 }
 0xe33   :  { %5473 = vadd.xlane.f32.xlu0 %v5472_v47 }
 0xe34   :  { %v5335_v40 = vmul.f32 1.442695, %v5333_v37 }
 0xe36   :  { %v12159_v30 = vpop.eup %9054  ;;  %9058 = vpow2.f32 %v5335_v40  ;;  %v5587_v2 = vpop.xlane.xlu1 %5586 }
 0xe37   :  { %v5591_v45 = vsub.f32 %v12026_v0, %v5587_v2  ;;  %v4823_v17 = vsel %vm438_vm6, %v12159_v30, 0.0 }
 0xe38   :  { %4824 = vadd.xlane.f32.xlu0 %v4823_v17 }
 0xe39   :  { %v5593_v5 = vmul.f32 1.442695, %v5591_v45 }
 0xe3a   :  { %v4433_v43 = vpop.xlane.xlu1 %4432 }
 0xe3b   :  { %v12164_v31 = vpop.eup %9056  ;;  %9060 = vpow2.f32 %v5593_v5  ;;  %v4175_v60 = vpop.xlane.xlu0 %4174  ;;  %v4435_v0 = vsub.f32 %v12032_v26, %v4433_v43 }
 0xe3c   :  { %v4177_v48 = vsub.f32 %v12039_v19, %v4175_v60  ;;  %v5081_v54 = vsel %vm438_vm6, %v12164_v31, 0.0 }
 0xe3d   :  { %5082 = vadd.xlane.f32.xlu0 %v5081_v54  ;;  %v4438_v40 = vmul.f32 1.442695, %v4435_v0 }
 0xe3e   :  { %v4180_v25 = vmul.f32 1.442695, %v4177_v48  ;;  %v8885_v38 = vpop.permute.xlu1 %8884 }
 0xe3f   :  { %v8887_v10 = vunpack.i.h.bf16 %v8885_v38  ;;  %v8886_v4 = vunpack.i.l.bf16 %v8885_v38 }
 0xe40   :  { %v12170_v39 = vpop.eup %9058  ;;  %9062 = vpow2.f32 %v4180_v25  ;;  %v4300_v9 = vpop.xlane.xlu0 %4299 }
 0xe41   :  { %v12172_v37 = vpack.c.bf16 %v8887_v10, %v8886_v4  ;;  %v4302_v47 = vsub.f32 %v12046_v63, %v4300_v9  ;;  %v5339_v19 = vsel %vm438_vm6, %v12170_v39, 0.0 }
 0xe42   :  { %5340 = vadd.xlane.f32.xlu0 %v5339_v19 }
 0xe43   :  { %v4305_v2 = vmul.f32 1.442695, %v4302_v47  ;;  %8531 = vmatprep.subr.bf16.mxu0 %v12172_v37 }
 0xe45   :  { %v12178_v45 = vpop.eup %9060  ;;  %9064 = vpow2.f32 %v4305_v2  ;;  %v4558_v26 = vpop.xlane.xlu0 %4557 }
 0xe46   :  { %v4560_v17 = vsub.f32 %v12053_v3, %v4558_v26  ;;  %v5597_v5 = vsel %vm438_vm6, %v12178_v45, 0.0  ;;  %9066 = vpow2.f32 %v4438_v40 }
 0xe47   :  { %5598 = vadd.xlane.f32.xlu0 %v5597_v5 }
 0xe48   :  { %v4563_v63 = vmul.f32 1.442695, %v4560_v17 }
 0xe4a   :  { %v12183_v43 = vpop.eup %9062  ;;  %v4691_v60 = vpop.xlane.xlu0 %4690  ;;  %9068 = vpow2.f32 %v4563_v63 }
 0xe4b   :  { %v4693_v48 = vsub.f32 %v12061_v20, %v4691_v60  ;;  %v4185_v54 = vsel %vm438_vm6, %v12183_v43, 0.0 }
 0xe4c   :  { %4186 = vadd.xlane.f32.xlu1 %v4185_v54 }
 0xe4d   :  { %v4696_v25 = vmul.f32 1.442695, %v4693_v48 }
 0xe4f   :  { %v12188_v38 = vpop.eup %9064  ;;  %9070 = vpow2.f32 %v4696_v25  ;;  %v4949_v3 = vpop.xlane.xlu0 %4948 }
 0xe50   :  { %v4951_v0 = vsub.f32 %v12072_v7, %v4949_v3  ;;  %v4310_v10 = vsel %vm438_vm6, %v12188_v38, 0.0  ;;  %v12193_v4 = vpop.eup %9066 }
 0xe51   :  { %4311 = vadd.xlane.f32.xlu0 %v4310_v10  ;;  %v4443_v19 = vsel %vm438_vm6, %v12193_v4, 0.0 }
 0xe52   :  { %v4954_v9 = vmul.f32 1.442695, %v4951_v0 }
 0xe53   :  { %v5207_v47 = vpop.xlane.xlu0 %5206 }
 0xe54   :  { %9072 = vpow2.f32 %v4954_v9  ;;  %v5209_v20 = vsub.f32 %v12078_v46, %v5207_v47  ;;  %v12198_v40 = vpop.eup %9068 }
 0xe55   :  { %4444 = vadd.xlane.f32.xlu0 %v4443_v19  ;;  %v4568_v17 = vsel %vm438_vm6, %v12198_v40, 0.0 }
 0xe56   :  { %v5212_v2 = vmul.f32 1.442695, %v5209_v20 }
 0xe57   :  { %v5465_v26 = vpop.xlane.xlu0 %5464 }
 0xe58   :  { %9074 = vpow2.f32 %v5212_v2  ;;  %v5467_v7 = vsub.f32 %v12085_v57, %v5465_v26 }
 0xe59   :  { %v12203_v5 = vpop.eup %9070  ;;  %4569 = vadd.xlane.f32.xlu0 %v4568_v17 }
 0xe5a   :  { %v5470_v63 = vmul.f32 1.442695, %v5467_v7  ;;  %v4701_v48 = vsel %vm438_vm6, %v12203_v5, 0.0 }
 0xe5b   :  { %v4816_v60 = vpop.xlane.xlu0 %4815 }
 0xe5c   :  { %9076 = vpow2.f32 %v5470_v63  ;;  %v4818_v46 = vsub.f32 %v12092_v61, %v4816_v60 }
 0xe5d   :  { %4702 = vadd.xlane.f32.xlu0 %v4701_v48  ;;  %v13067_v48 = vpack.i.bf16 %v11490_v24, %v11440_v22 }
 0xe5e   :  { %v12208_v54 = vpop.eup %9072  ;;  %v4821_v25 = vmul.f32 1.442695, %v4818_v46  ;;  %v13066_v46 = vpack.i.bf16 %v11482_v27, %v11436_v28 }
 0xe5f   :  { %v5074_v3 = vpop.xlane.xlu0 %5073  ;;  %v4959_v57 = vsel %vm438_vm6, %v12208_v54, 0.0 }
 0xe60   :  { %9078 = vpow2.f32 %v4821_v25  ;;  %v5076_v0 = vsub.f32 %v12099_v55, %v5074_v3  ;;  %v13068_v25 = vpack.i.bf16 %v11719_v6, %v11688_v58  ;;  %v5882_v3 = vld [vmem:[%s13033_s14] sm:$0x3] }
 0xe61   :  { %4960 = vadd.xlane.f32.xlu0 %v4959_v57 }
 0xe62   :  { %v12213_v10 = vpop.eup %9074  ;;  %v5079_v9 = vmul.f32 1.442695, %v5076_v0 }
 0xe63   :  { %v5332_v47 = vpop.xlane.xlu0 %5331  ;;  %v5217_v61 = vsel %vm438_vm6, %v12213_v10, 0.0 }
 0xe64   :  { %9080 = vpow2.f32 %v5079_v9  ;;  %v5334_v20 = vsub.f32 %v12106_v1, %v5332_v47  ;;  %5218 = vadd.xlane.f32.xlu1 %v5217_v61 }
 0xe66   :  { %v12218_v19 = vpop.eup %9076  ;;  %v5337_v2 = vmul.f32 1.442695, %v5334_v20 }
 0xe67   :  { %v5475_v26 = vsel %vm438_vm6, %v12218_v19, 0.0 }
 0xe68   :  { %9082 = vpow2.f32 %v5337_v2  ;;  %5476 = vadd.xlane.f32.xlu0 %v5475_v26  ;;  %v5590_v57 = vpop.xlane.xlu0 %5589 }
 0xe69   :  { %v5592_v0 = vsub.f32 %v12112_v49, %v5590_v57  ;;  %v13069_v49 = vpack.i.bf16 %v11724_v33, %v11693_v59 }
 0xe6a   :  { %v12222_v55 = vpop.eup %9078 }
 0xe6b   :  { %v4826_v7 = vsel %vm438_vm6, %v12222_v55, 0.0  ;;  %v5595_v28 = vmul.f32 1.442695, %v5592_v0 }
 0xe6c   :  { %4827 = vadd.xlane.f32.xlu0 %v4826_v7 }
 0xe6d   :  { %9084 = vpow2.f32 %v5595_v28 }
 0xe6e   :  { %v12226_v17 = vpop.eup %9080 }
 0xe6f   :  { %v5084_v1 = vsel %vm438_vm6, %v12226_v17, 0.0 }
 0xe70   :  { %5085 = vadd.xlane.f32.xlu0 %v5084_v1 }
 0xe72   :  { %v12230_v63 = vpop.eup %9082 }
 0xe73   :  { %v5342_v60 = vsel %vm438_vm6, %v12230_v63, 0.0 }
 0xe74   :  { %5343 = vadd.xlane.f32.xlu0 %v5342_v60 }
 0xe75   :  { %8890 = vrot.lane.b32.xlu1 %v13066_v46, %s9188_s23 }
 0xe77   :  { %v12250_v27 = vpop.eup %9084 }
 0xe78   :  { %v5600_v22 = vsel %vm438_vm6, %v12250_v27, 0.0 }
 0xe79   :  { %8895 = vrot.lane.b32.xlu1 %v13067_v48, %s9188_s23 }
 0xe7d   :  { %8900 = vrot.lane.b32.xlu1 %v13068_v25, %s9188_s23 }
 0xe8a   :  { %5886 = vperm.xlu0 %8888, %v5882_v3  }
 0xea1   :  { %5601 = vadd.xlane.f32.xlu1 %v5600_v22 }
 0xea3   :  { %v4184_v24 = vpop.xlane.xlu1 %4183 }
 0xea4   :  { %9086 = vrcp.f32 %v4184_v24 }
 0xea7   :  { %v4309_v58 = vpop.xlane.xlu0 %4308 }
 0xea8   :  { %9088 = vrcp.f32 %v4309_v58 }
 0xeae   :  { %v9087_v6 = vpop.eup %9086 }
 0xeaf   :  { %v4190_v9 = vmul.f32 %v9087_v6, %v12120_v62  ;;  %v4442_v62 = vpop.xlane.xlu1 %4441 }
 0xeb0   :  { %9090 = vrcp.f32 %v4442_v62 }
 0xeb1   :  { %7798 = vmatprep.mubr.msk.f32.mxu1 %vm438_vm6, %v4190_v9  ;;  %v4700_v47 = vpop.xlane.xlu0 %4699 }
 0xeb2   :  { %v9089_v61 = vpop.eup %9088  ;;  %8905 = vrot.lane.b32.xlu1 %v13069_v49, %s9188_s23 }
 0xeb3   :  { %v4315_v20 = vmul.f32 %v9089_v61, %v12125_v42  ;;  %v4567_v48 = vpop.xlane.xlu1 %4566 }
 0xeb5   :  { %7805 = vmatprep.mubr.msk.f32.mxu0 %vm438_vm6, %v4315_v20 }
 0xeb6   :  { %v4958_v2 = vpop.xlane.xlu0 %4957 }
 0xeba   :  { %v9091_v42 = vpop.eup %9090 }
 0xebb   :  { %v5216_v26 = vpop.xlane.xlu0 %5215  ;;  %v4448_v22 = vmul.f32 %v9091_v42, %v12127_v44 }
 0xec0   :  { %v5474_v7 = vpop.xlane.xlu0 %5473 }
 0xec5   :  { %v4825_v1 = vpop.xlane.xlu0 %4824 }
 0xeca   :  { %v12262_v60 = vpop.xlane.xlu0 %5082 }
 0xecf   :  { %v12264_v46 = vpop.xlane.xlu0 %5340 }
 0xed4   :  { %v12266_v3 = vpop.xlane.xlu0 %5598 }
 0xed9   :  { %v4187_v25 = vpop.xlane.xlu1 %4186 }
 0xeda   :  { %9092 = vrcp.f32 %v4187_v25 }
 0xedb   :  { %9094 = vrcp.f32 %v4567_v48 }
 0xede   :  { %v4312_v59 = vpop.xlane.xlu0 %4311 }
 0xedf   :  { %9096 = vrcp.f32 %v4312_v59 }
 0xee0   :  { %9098 = vrcp.f32 %v4700_v47 }
 0xee2   :  { %v4445_v33 = vpop.xlane.xlu0 %4444 }
 0xee3   :  { %9100 = vrcp.f32 %v4445_v33 }
 0xee4   :  { %v9093_v57 = vpop.eup %9092  ;;  %9102 = vrcp.f32 %v4825_v1 }
 0xee5   :  { %v4191_v0 = vmul.f32 %v9093_v57, %v12183_v43  ;;  %v9095_v24 = vpop.eup %9094 }
 0xee6   :  { %v4570_v28 = vpop.xlane.xlu0 %4569  ;;  %v4573_v43 = vmul.f32 %v9095_v24, %v12134_v36 }
 0xee7   :  { %9104 = vrcp.f32 %v4570_v28  ;;  %7799 = vmatmul.mubr.msk.f32.vlgmr.msra.gmra.mrb[50].mxu1 %vm438_vm6, %v4191_v0 }
 0xee8   :  { %8529 = vmatpush3.bf16.msra.mxu1 %v11519_v56  ;;  %7812 = vmatprep.mubr.msk.f32.mxu1 %vm438_vm6, %v4448_v22  ;;  %9106 = vrcp.f32 %v4958_v2 }
 0xee9   :  { %v9097_v58 = vpop.eup %9096  ;;  %8535 = vmatprep.subr.bf16.mxu1 %v11504_v51 }
 0xeea   :  { %v4316_v6 = vmul.f32 %v9097_v58, %v12188_v38  ;;  %v4703_v9 = vpop.xlane.xlu0 %4702  ;;  %v9099_v47 = vpop.eup %9098  ;;  %v5905_v58 = vld [vmem:[%s13034_s17] sm:$0xff] }
 0xeeb   :  { %9108 = vrcp.f32 %v4703_v9  ;;  %v4706_v49 = vmul.f32 %v9099_v47, %v12139_v8 }
 0xeec   :  { %7806 = vmatmul.mubr.msk.f32.vlgmr.msra.gmra.mrb[42].mxu0 %vm438_vm6, %v4316_v6  ;;  %9110 = vrcp.f32 %v5216_v26  ;;  %v5920_v6 = vld [vmem:[%s13034_s17 + $0x78] sm:$0xff] }
 0xeed   :  { %v9101_v44 = vpop.eup %9100  ;;  %8533 = vmatpush3.bf16.msra.mxu0 %v12172_v37  ;;  %7819 = vmatprep.mubr.msk.f32.mxu0 %vm438_vm6, %v4573_v43 }
 0xeee   :  { %v4449_v56 = vmul.f32 %v9101_v44, %v12193_v4  ;;  %v4961_v61 = vpop.xlane.xlu0 %4960  ;;  %v9103_v38 = vpop.eup %9102 }
 0xeef   :  { %9112 = vrcp.f32 %v4961_v61  ;;  %v4831_v4 = vmul.f32 %v9103_v38, %v12159_v30 }
 0xef0   :  { %7813 = vmatmul.mubr.msk.f32.vlgmr.msra.gmra.mrb[52].mxu1 %vm438_vm6, %v4449_v56  ;;  %9114 = vrcp.f32 %v5474_v7 }
 0xef1   :  { %v9105_v20 = vpop.eup %9104  ;;  %8537 = vmatpush3.bf16.msra.mxu1 %v11504_v51  ;;  %v5219_v36 = vpop.xlane.xlu1 %5218  ;;  %7826 = vmatprep.mubr.msk.f32.mxu1 %vm438_vm6, %v4706_v49 }
 0xef2   :  { %v4574_v37 = vmul.f32 %v9105_v20, %v12198_v40  ;;  %9116 = vrcp.f32 %v5219_v36  ;;  %8543 = vmatprep.subr.bf16.mxu1 %v11523_v32  ;;  %v9107_v2 = vpop.eup %9106 }
 0xef3   :  { %v4964_v40 = vmul.f32 %v9107_v2, %v12144_v41 }
 0xef4   :  { %7820 = vmatmul.mubr.msk.f32.vlgmr.msra.gmra.mrb[44].mxu0 %vm438_vm6, %v4574_v37 }
 0xef5   :  { %v9109_v8 = vpop.eup %9108  ;;  %v8891_v26 = vpop.permute.xlu1 %8890  ;;  %7833 = vmatprep.mubr.msk.f32.mxu0 %vm438_vm6, %v4831_v4  ;;  %v6996_v4 = vld [vmem:[%s13035_s15] ss:$0 sm:$0xff] }
 0xef6   :  { %v5477_v7 = vpop.xlane.xlu0 %5476  ;;  %v4707_v51 = vmul.f32 %v9109_v8, %v12203_v5  ;;  %v8893_v1 = vunpack.i.h.bf16 %v8891_v26  ;;  %v8892_v62 = vunpack.i.l.bf16 %v8891_v26  ;;  %v9111_v48 = vpop.eup %9110 }
 0xef7   :  { %9118 = vrcp.f32 %v5477_v7  ;;  %v5222_v0 = vmul.f32 %v9111_v48, %v12149_v50 }
 0xef8   :  { %v8538_v25 = vpack.c.bf16 %v8893_v1, %v8892_v62  ;;  %7827 = vmatmul.mubr.msk.f32.vlgmr.msra.gmra.mrb[54].mxu1 %vm438_vm6, %v4707_v51  ;;  %9120 = vrcp.f32 %v12262_v60  ;;  %v5916_v60 = vld [vmem:[%s13034_s17 + $0x58] sm:$0xff]  ;;  %v5909_v51 = vld [vmem:[%s13034_s17 + $0x20] sm:$0xff]  ;;  %v5919_v1 = vld [vmem:[%s13034_s17 + $0x70] sm:$0xff] }
 0xef9   :  { %v9113_v30 = vpop.eup %9112  ;;  %8545 = vmatpush3.bf16.msra.mxu1 %v11523_v32  ;;  %v8896_v59 = vpop.permute.xlu1 %8895  ;;  %7840 = vmatprep.mubr.msk.f32.mxu1 %vm438_vm6, %v4964_v40  ;;  %v5906_v32 = vld [vmem:[%s13034_s17 + $0x8] sm:$0xff]  ;;  %v5924_v40 = vld [vmem:[%s13034_s17 + $0x98] sm:$0xff] }
 0xefa   :  { %v4828_v33 = vpop.xlane.xlu0 %4827  ;;  %v4965_v5 = vmul.f32 %v9113_v30, %v12208_v54  ;;  %v8898_v42 = vunpack.i.h.bf16 %v8896_v59  ;;  %v8897_v57 = vunpack.i.l.bf16 %v8896_v59  ;;  %8551 = vmatprep.subr.bf16.mxu1 %v11737_v53  ;;  %8539 = vmatprep.subr.bf16.mxu0 %v8538_v25  ;;  %v9115_v41 = vpop.eup %9114  ;;  %v8566_v24 = vpack.c.bf16 %v5916_v60, %v5906_v32  ;;  %v5918_v32 = vld [vmem:[%s13034_s17 + $0x68] sm:$0xff] }
 0xefb   :  { %9122 = vrcp.f32 %v4828_v33  ;;  %8541 = vmatpush3.bf16.msra.mxu0 %v8538_v25  ;;  %v8576_v30 = vpack.c.bf16 %v5919_v1, %v5909_v51 }
 0xefc   :  { %v9117_v28 = vpop.eup %9116  ;;  %v8546_v54 = vpack.c.bf16 %v8898_v42, %v8897_v57  ;;  %7841 = vmatmul.mubr.msk.f32.vlgmr.msra.gmra.mrb[56].mxu1 %vm438_vm6, %v4965_v5  ;;  %9124 = vrcp.f32 %v12264_v46  ;;  %v5915_v46 = vld [vmem:[%s13034_s17 + $0x50] sm:$0xff]  ;;  %v5913_v42 = vld [vmem:[%s13034_s17 + $0x40] sm:$0xff] }
 0xefd   :  { %v5223_v22 = vmul.f32 %v9117_v28, %v12213_v10  ;;  %8553 = vmatpush3.bf16.msra.mxu1 %v11737_v53  ;;  %7854 = vmatprep.mubr.msk.f32.mxu1 %vm438_vm6, %v5222_v0  ;;  %v5480_v10 = vmul.f32 %v9115_v41, %v12154_v11  ;;  %v5910_v53 = vld [vmem:[%s13034_s17 + $0x28] sm:$0xff]  ;;  %v8901_v43 = vpop.permute.xlu1 %8900  ;;  %v8568_v44 = vpack.c.bf16 %v5915_v46, %v5905_v58  ;;  %v5923_v57 = vld [vmem:[%s13034_s17 + $0x90] sm:$0xff]  ;;  %v5908_v0 = vld [vmem:[%s13034_s17 + $0x18] sm:$0xff] }
 0xefe   :  { %v5086_v50 = vpop.xlane.xlu0 %5085  ;;  %8559 = vmatprep.subr.bf16.mxu1 %v11753_v18  ;;  %8547 = vmatprep.subr.bf16.mxu0 %v8546_v54  ;;  %v8574_v56 = vpack.c.bf16 %v5920_v6, %v5910_v53  ;;  %v8903_v49 = vunpack.i.h.bf16 %v8901_v43  ;;  %v8902_v38 = vunpack.i.l.bf16 %v8901_v43  ;;  %v5912_v58 = vld [vmem:[%s13034_s17 + $0x38] sm:$0xff]  ;;  %v5922_v46 = vld [vmem:[%s13034_s17 + $0x88] sm:$0xff]  ;;  %v5911_v43 = vld [vmem:[%s13034_s17 + $0x30] sm:$0xff] }
 0xeff   :  { %9126 = vrcp.f32 %v5086_v50  ;;  %v5907_v50 = vld [vmem:[%s13034_s17 + $0x10] sm:$0xff] }
 0xf00   :  { %7855 = vmatmul.mubr.msk.f32.vlgmr.msra.gmra.mrb[58].mxu1 %vm438_vm6, %v5223_v22  ;;  %9128 = vrcp.f32 %v12266_v3  ;;  %v13070_v3 = vmov 0.0   ;;  %v8554_v37 = vpack.c.bf16 %v8903_v49, %v8902_v38  ;;  %v8570_v22 = vpack.c.bf16 %v5918_v32, %v5908_v0  ;;  %v6408_v49 = vld [vmem:[%s13037_s19 + $0x8] sm:$0xff] }
 0xf01   :  { %v9119_v9 = vpop.eup %9118  ;;  %8561 = vmatpush3.bf16.msra.mxu1 %v11753_v18  ;;  %7868 = vmatprep.mubr.msk.f32.mxu1 %vm438_vm6, %v5480_v10  ;;  %v6436_v0 = vld [vmem:[%s13037_s19 + $0xe8] sm:$0xff] }
 0xf02   :  { %v5481_v47 = vmul.f32 %v9119_v9, %v12218_v19  ;;  %v5344_v11 = vpop.xlane.xlu0 %5343  ;;  %8567 = vmatprep.subr.bf16.mxu1 %v8566_v24  ;;  %v9121_v61 = vpop.eup %9120  ;;  %v5917_v24 = vld [vmem:[%s13034_s17 + $0x60] sm:$0xff]  ;;  %v8578_v9 = vpack.c.bf16 %v5922_v46, %v5912_v58  ;;  %v6421_v46 = vld [vmem:[%s13037_s19 + $0x70] sm:$0xff] }
 0xf03   :  { %9130 = vrcp.f32 %v5344_v11  ;;  %v5089_v18 = vmul.f32 %v9121_v61, %v12164_v31  ;;  %v6997_v31 = vld [vmem:[%s13036_s16] ss:$0 sm:$0xff]  ;;  %v8572_v53 = vpack.c.bf16 %v5917_v24, %v5907_v50  ;;  %v6438_v50 = vld [vmem:[%s13037_s19 + $0xf8] sm:$0xff] }
 0xf04   :  { %7869 = vmatmul.mubr.msk.f32.vlgmr.msra.gmra.mrb[60].mxu1 %vm438_vm6, %v5481_v47  ;;  %v5921_v47 = vld [vmem:[%s13034_s17 + $0x80] sm:$0xff] }
 0xf05   :  { %v9123_v20 = vpop.eup %9122  ;;  %8569 = vmatpush1.bf16.msra.mxu1 %v8568_v44  ;;  %6046 = vmatprep.mubr.f32.mxu1 %v13070_v3  ;;  %v8580_v11 = vpack.c.bf16 %v5921_v47, %v5911_v43  ;;  %v6424_v44 = vld [vmem:[%s13037_s19 + $0x88] sm:$0xff]  ;;  %v6407_v61 = vld [vmem:[%s13037_s19] sm:$0xff] }
 0xf06   :  { %v4832_v36 = vmul.f32 %v9123_v20, %v12222_v55  ;;  %8575 = vmatprep.subr.bf16.mxu1 %v8574_v56  ;;  %v9125_v19 = vpop.eup %9124  ;;  %v8588_v38 = vpack.c.bf16 %v6408_v49, %v6407_v61  ;;  %v6425_v20 = vld [vmem:[%s13037_s19 + $0x90] sm:$0xff]  ;;  %v6439_v47 = vld [vmem:[%s13037_s19 + $0x100] sm:$0xff] }
 0xf07   :  { %v5347_v7 = vmul.f32 %v9125_v19, %v12170_v39  ;;  %v6410_v19 = vld [vmem:[%s13037_s19 + $0x18] sm:$0xff]  ;;  %v6441_v61 = vld [vmem:[%s13037_s19 + $0x110] sm:$0xff] }
 0xf08   :  { %7834 = vmatmul.mubr.msk.f32.vlgmr.msra.gmra.mrb[46].mxu0 %vm438_vm6, %v4832_v36  ;;  %v6426_v36 = vld [vmem:[%s13037_s19 + $0x98] sm:$0xff] }
 0xf09   :  { %v9127_v2 = vpop.eup %9126  ;;  %8549 = vmatpush3.bf16.msra.mxu0 %v8546_v54  ;;  %7847 = vmatprep.mubr.msk.f32.mxu0 %vm438_vm6, %v5089_v18  ;;  %v5887_v8 = vpop.permute.xlu0 %5886  ;;  %v8590_v18 = vpack.c.bf16 %v6426_v36, %v6425_v20  ;;  %v6459_v20 = vld [vmem:[%s13037_s19 + $0x1a0] sm:$0xff]  ;;  %v6460_v36 = vld [vmem:[%s13037_s19 + $0x1a8] sm:$0xff] }
 0xf0a   :  { %v5090_v55 = vmul.f32 %v9127_v2, %v12226_v17  ;;  %8555 = vmatprep.subr.bf16.mxu0 %v8554_v37  ;;  %v5895_v26 = vmul.f32 %v6996_v4, %v5887_v8  ;;  %v9129_v62 = vpop.eup %9128  ;;  %v5914_v17 = vld [vmem:[%s13034_s17 + $0x48] sm:$0xff] }
 0xf0b   :  { %v5605_v33 = vmul.f32 %v9129_v62, %v12178_v45  ;;  %v8582_v5 = vpack.c.bf16 %v5924_v40, %v5914_v17  ;;  %v6428_v4 = vld [vmem:[%s13037_s19 + $0xa8] sm:$0xff]  ;;  %v6413_v62 = vld [vmem:[%s13037_s19 + $0x30] sm:$0xff]  ;;  %v6414_v17 = vld [vmem:[%s13037_s19 + $0x38] sm:$0xff] }
 0xf0c   :  { %7848 = vmatmul.mubr.msk.f32.vlgmr.msra.gmra.mrb[48].mxu0 %vm438_vm6, %v5090_v55  ;;  %v5903_v48 = vadd.f32 %v6997_v31, %v5895_v26  ;;  %v6411_v31 = vld [vmem:[%s13037_s19 + $0x20] sm:$0xff]  ;;  %v6412_v8 = vld [vmem:[%s13037_s19 + $0x28] sm:$0xff]  ;;  %v6429_v26 = vld [vmem:[%s13037_s19 + $0xb0] sm:$0xff] }
 0xf0d   :  { %v9131_v39 = vpop.eup %9130  ;;  %8557 = vmatpush3.bf16.msra.mxu0 %v8554_v37  ;;  %7861 = vmatprep.mubr.msk.f32.mxu0 %vm438_vm6, %v5347_v7  ;;  %v6427_v37 = vld [vmem:[%s13037_s19 + $0xa0] sm:$0xff]  ;;  %v6430_v7 = vld [vmem:[%s13037_s19 + $0xb8] sm:$0xff]  ;;  %v8596_v51 = vpack.c.bf16 %v6412_v8, %v6411_v31  ;;  %v6445_v8 = vld [vmem:[%s13037_s19 + $0x130] sm:$0xff] }
 0xf0e   :  { %v5348_v25 = vmul.f32 %v9131_v39, %v12230_v63  ;;  %v5904_v59 = vmax.f32 %v5903_v48, 0.0  ;;  %v8584_v63 = vpack.c.bf16 %v5923_v57, %v5913_v42  ;;  %v8594_v55 = vpack.c.bf16 %v6428_v4, %v6427_v37  ;;  %v6431_v40 = vld [vmem:[%s13037_s19 + $0xc0] sm:$0xff]  ;;  %v6432_v39 = vld [vmem:[%s13037_s19 + $0xc8] sm:$0xff]  ;;  %v6461_v4 = vld [vmem:[%s13037_s19 + $0x1b0] sm:$0xff] }
 0xf0f   :  { %v8598_v1 = vpack.c.bf16 %v6430_v7, %v6429_v26  ;;  %v8600_v48 = vpack.c.bf16 %v6414_v17, %v6413_v62  ;;  %v6444_v37 = vld [vmem:[%s13037_s19 + $0x128] sm:$0xff]  ;;  %v6446_v26 = vld [vmem:[%s13037_s19 + $0x138] sm:$0xff]  ;;  %v6463_v7 = vld [vmem:[%s13037_s19 + $0x1c0] sm:$0xff] }
 0xf10   :  { %7862 = vmatmul.mubr.msk.f32.vlgmr.msra.gmra.mrb[50].mxu0 %vm438_vm6, %v5348_v25  ;;  %6998 = vmatmul.mubr.msk.f32.vlgmr.msra.gmra.mrb[62].mxu1 %vm438_vm6, %v5904_v59  ;;  %v8602_v25 = vpack.c.bf16 %v6432_v39, %v6431_v40  ;;  %v6447_v17 = vld [vmem:[%s13037_s19 + $0x140] sm:$0xff]  ;;  %v6448_v40 = vld [vmem:[%s13037_s19 + $0x148] sm:$0xff]  ;;  %v6465_v39 = vld [vmem:[%s13037_s19 + $0x1d0] sm:$0xff] }
 0xf11   :  { %7875 = vmatprep.mubr.msk.f32.mxu0 %vm438_vm6, %v5605_v33  ;;  %8577 = vmatpush1.bf16.msra.mxu1 %v8576_v30  ;;  %v6415_v30 = vld [vmem:[%s13037_s19 + $0x40] sm:$0xff]  ;;  %v6433_v33 = vld [vmem:[%s13037_s19 + $0xd0] sm:$0xff] }
 0xf12   :  { %6188 = vmatprep.mubr.f32.mxu1 %v13070_v3  ;;  %8583 = vmatprep.subr.bf16.mxu1 %v8582_v5  ;;  %v6434_v5 = vld [vmem:[%s13037_s19 + $0xd8] sm:$0xff] }
 0xf13   :  { %v8606_v57 = vpack.c.bf16 %v6434_v5, %v6433_v33  ;;  %v6450_v33 = vld [vmem:[%s13037_s19 + $0x158] sm:$0xff]  ;;  %v6467_v5 = vld [vmem:[%s13037_s19 + $0x1e0] sm:$0xff] }
 0xf14   :  { %7000 = vmatmul.mubr.msk.f32.vlgmr.msra.gmra.mrb[64].mxu1 %vm438_vm6, %v5904_v59 }
 0xf15   :  { %8585 = vmatpush1.bf16.msra.mxu1 %v8584_v63  ;;  %6330 = vmatprep.mubr.f32.mxu1 %v13070_v3  ;;  %v6417_v63 = vld [vmem:[%s13037_s19 + $0x50] sm:$0xff] }
 0xf18   :  { %7002 = vmatmul.mubr.msk.f32.vlgmr.msra.gmra.mrb[66].mxu1 %vm438_vm6, %v5904_v59 }
 0xf2e   :  { %v5602_v45 = vpop.xlane.xlu1 %5601 }
 0xf2f   :  { %9132 = vrcp.f32 %v5602_v45  ;;  %v6418_v45 = vld [vmem:[%s13037_s19 + $0x58] sm:$0xff] }
 0xf30   :  { %v8608_v32 = vpack.c.bf16 %v6418_v45, %v6417_v63  ;;  %v6451_v45 = vld [vmem:[%s13037_s19 + $0x160] sm:$0xff] }
 0xf32   :  { %v8906_v41 = vpop.permute.xlu1 %8905 }
 0xf33   :  { %v8908_v60 = vunpack.i.h.bf16 %v8906_v41  ;;  %v8907_v28 = vunpack.i.l.bf16 %v8906_v41  ;;  %v6435_v41 = vld [vmem:[%s13037_s19 + $0xe0] sm:$0xff] }
 0xf35   :  { %v8562_v54 = vpack.c.bf16 %v8908_v60, %v8907_v28  ;;  %v8610_v60 = vpack.c.bf16 %v6436_v0, %v6435_v41  ;;  %v6419_v28 = vld [vmem:[%s13037_s19 + $0x60] sm:$0xff]  ;;  %v6452_v41 = vld [vmem:[%s13037_s19 + $0x168] sm:$0xff] }
 0xf37   :  { %8563 = vmatprep.subr.bf16.mxu0 %v8562_v54 }
 0xf38   :  { %8565 = vmatpush3.bf16.msra.mxu0 %v8562_v54  ;;  %v6420_v54 = vld [vmem:[%s13037_s19 + $0x68] sm:$0xff] }
 0xf39   :  { %v9133_v10 = vpop.eup %9132  ;;  %8571 = vmatprep.subr.bf16.mxu0 %v8570_v22  ;;  %v6437_v22 = vld [vmem:[%s13037_s19 + $0xf0] sm:$0xff]  ;;  %v8612_v24 = vpack.c.bf16 %v6420_v54, %v6419_v28  ;;  %v8644_v54 = vpack.c.bf16 %v6452_v41, %v6451_v45 }
 0xf3a   :  { %v5606_v6 = vmul.f32 %v9133_v10, %v12250_v27  ;;  %v6423_v27 = vld [vmem:[%s13037_s19 + $0x80] sm:$0xff]  ;;  %v8614_v58 = vpack.c.bf16 %v6438_v50, %v6437_v22  ;;  %v6422_v10 = vld [vmem:[%s13037_s19 + $0x78] sm:$0xff]  ;;  %v6453_v50 = vld [vmem:[%s13037_s19 + $0x170] sm:$0xff] }
 0xf3b   :  { %v8586_v56 = vpack.c.bf16 %v6424_v44, %v6423_v27  ;;  %v6457_v44 = vld [vmem:[%s13037_s19 + $0x190] sm:$0xff] }
 0xf3c   :  { %7876 = vmatmul.mubr.msk.f32.vlgmr.msra.gmra.mrb[52].mxu0 %vm438_vm6, %v5606_v6  ;;  %v6455_v6 = vld [vmem:[%s13037_s19 + $0x180] sm:$0xff] }
 0xf3d   :  { %8573 = vmatpush1.bf16.msra.mxu0 %v8572_v53  ;;  %6117 = vmatprep.mubr.f32.mxu0 %v13070_v3  ;;  %v8616_v53 = vpack.c.bf16 %v6422_v10, %v6421_v46 }
 0xf3e   :  { %8579 = vmatprep.subr.bf16.mxu0 %v8578_v9  ;;  %v6456_v9 = vld [vmem:[%s13037_s19 + $0x188] sm:$0xff] }
 0xf3f   :  { %v8618_v43 = vpack.c.bf16 %v6456_v9, %v6455_v6  ;;  %v6487_v9 = vld [vmem:[%s13037_s19 + $0x280] sm:$0xff] }
 0xf40   :  { %6999 = vmatmul.mubr.msk.f32.vlgmr.msra.gmra.mrb[54].mxu0 %vm438_vm6, %v5904_v59 }
 0xf41   :  { %8581 = vmatpush1.bf16.msra.mxu0 %v8580_v11  ;;  %6259 = vmatprep.mubr.f32.mxu0 %v13070_v3  ;;  %v6409_v3 = vld [vmem:[%s13037_s19 + $0x10] sm:$0xff]  ;;  %v6440_v11 = vld [vmem:[%s13037_s19 + $0x108] sm:$0xff] }
 0xf42   :  { %8587 = vmatprep.subr.bf16.mxu0 %v8586_v56  ;;  %v8592_v2 = vpack.c.bf16 %v6410_v19, %v6409_v3  ;;  %v8620_v27 = vpack.c.bf16 %v6440_v11, %v6439_v47  ;;  %v6458_v56 = vld [vmem:[%s13037_s19 + $0x198] sm:$0xff]  ;;  %8619 = vmatprep.subr.bf16.mxu1 %v8618_v43  ;;  %v6443_v19 = vld [vmem:[%s13037_s19 + $0x120] sm:$0xff]  ;;  %v6488_v43 = vld [vmem:[%s13037_s19 + $0x288] sm:$0xff] }
 0xf43   :  { %v8622_v49 = vpack.c.bf16 %v6458_v56, %v6457_v44  ;;  %v8650_v11 = vpack.c.bf16 %v6488_v43, %v6487_v9  ;;  %v6471_v43 = vld [vmem:[%s13037_s19 + $0x200] sm:$0xff] }
 0xf44   :  { %7001 = vmatmul.mubr.msk.f32.vlgmr.msra.gmra.mrb[56].mxu0 %vm438_vm6, %v5904_v59  ;;  %v6416_v59 = vld [vmem:[%s13037_s19 + $0x48] sm:$0xff]  ;;  %8621 = vmatpush3.bf16.msra.mxu1 %v8620_v27 }
 0xf45   :  { %8589 = vmatpush3.bf16.msra.mxu0 %v8588_v38  ;;  %v8604_v42 = vpack.c.bf16 %v6416_v59, %v6415_v30  ;;  %v6442_v38 = vld [vmem:[%s13037_s19 + $0x118] sm:$0xff]  ;;  %8623 = vmatprep.subr.bf16.mxu1 %v8622_v49  ;;  %v6449_v59 = vld [vmem:[%s13037_s19 + $0x150] sm:$0xff]  ;;  %v6520_v49 = vld [vmem:[%s13037_s19 + $0x388] sm:$0xff] }
 0xf46   :  { %8591 = vmatprep.subr.bf16.mxu0 %v8590_v18  ;;  %v8624_v3 = vpack.c.bf16 %v6442_v38, %v6441_v61  ;;  %v8626_v18 = vpack.c.bf16 %v6460_v36, %v6459_v20  ;;  %v6519_v61 = vld [vmem:[%s13037_s19 + $0x380] sm:$0xff] }
 0xf47   :  { %v8682_v20 = vpack.c.bf16 %v6520_v49, %v6519_v61 }
 0xf48   :  { %8625 = vmatpush3.bf16.msra.mxu1 %v8624_v3 }
 0xf49   :  { %8593 = vmatpush3.bf16.msra.mxu0 %v8592_v2  ;;  %v6462_v2 = vld [vmem:[%s13037_s19 + $0x1b8] sm:$0xff]  ;;  %8627 = vmatprep.subr.bf16.mxu1 %v8626_v18 }
 0xf4a   :  { %8595 = vmatprep.subr.bf16.mxu0 %v8594_v55  ;;  %v8628_v55 = vpack.c.bf16 %v6444_v37, %v6443_v19  ;;  %v8630_v31 = vpack.c.bf16 %v6462_v2, %v6461_v4 }
 0xf4c   :  { %8629 = vmatpush3.bf16.msra.mxu1 %v8628_v55  ;;  %v12638_v55 = vld [vmem:[%s13038_s18] sm:$0xff] }
 0xf4d   :  { %8597 = vmatpush3.bf16.msra.mxu0 %v8596_v51  ;;  %v6464_v51 = vld [vmem:[%s13037_s19 + $0x1c8] sm:$0xff]  ;;  %8631 = vmatprep.subr.bf16.mxu1 %v8630_v31 }
 0xf4e   :  { %8599 = vmatprep.subr.bf16.mxu0 %v8598_v1  ;;  %v8632_v1 = vpack.c.bf16 %v6446_v26, %v6445_v8  ;;  %v8634_v62 = vpack.c.bf16 %v6464_v51, %v6463_v7  ;;  %v5932_v26 = vrot.slane %v12638_v55, %v9541_v12  ;;  %v5936_v7 = vrot.slane %v12638_v55, %v9543_v13 }
 0xf50   :  { %8633 = vmatpush3.bf16.msra.mxu1 %v8632_v1 }
 0xf51   :  { %8601 = vmatpush3.bf16.msra.mxu0 %v8600_v48  ;;  %v6466_v48 = vld [vmem:[%s13037_s19 + $0x1d8] sm:$0xff]  ;;  %8635 = vmatprep.subr.bf16.mxu1 %v8634_v62 }
 0xf52   :  { %8603 = vmatprep.subr.bf16.mxu0 %v8602_v25  ;;  %v8636_v25 = vpack.c.bf16 %v6448_v40, %v6447_v17  ;;  %v8638_v30 = vpack.c.bf16 %v6466_v48, %v6465_v39 }
 0xf54   :  { %8637 = vmatpush3.bf16.msra.mxu1 %v8636_v25 }
 0xf55   :  { %8605 = vmatpush3.bf16.msra.mxu0 %v8604_v42  ;;  %v6468_v42 = vld [vmem:[%s13037_s19 + $0x1e8] sm:$0xff]  ;;  %8639 = vmatprep.subr.bf16.mxu1 %v8638_v30 }
 0xf56   :  { %8607 = vmatprep.subr.bf16.mxu0 %v8606_v57  ;;  %v8640_v57 = vpack.c.bf16 %v6450_v33, %v6449_v59  ;;  %v8642_v63 = vpack.c.bf16 %v6468_v42, %v6467_v5  ;;  %v5813_v33 = vrot.slane %v10169_v21, 4  ;;  %v5820_v5 = vrot.slane %v10175_v35, 4 }
 0xf58   :  { %8641 = vmatpush3.bf16.msra.mxu1 %v8640_v57  ;;  %v5821_v45 = vadd.f32 %v5820_v5, %v10175_v35  ;;  %v6478_v5 = vld [vmem:[%s13037_s19 + $0x238] sm:$0xff] }
 0xf59   :  { %8609 = vmatpush3.bf16.msra.mxu0 %v8608_v32  ;;  %v6469_v32 = vld [vmem:[%s13037_s19 + $0x1f0] sm:$0xff]  ;;  %8643 = vmatprep.subr.bf16.mxu1 %v8642_v63  ;;  %v5814_v63 = vadd.f32 %v5813_v33, %v10169_v21  ;;  %v6472_v21 = vld [vmem:[%s13037_s19 + $0x208] sm:$0xff] }
 0xf5a   :  { %8611 = vmatprep.subr.bf16.mxu0 %v8610_v60  ;;  %v6470_v60 = vld [vmem:[%s13037_s19 + $0x1f8] sm:$0xff]  ;;  %v6477_v33 = vld [vmem:[%s13037_s19 + $0x230] sm:$0xff] }
 0xf5b   :  { %v8646_v22 = vpack.c.bf16 %v6470_v60, %v6469_v32  ;;  %v5815_v32 = vrot.slane %v5814_v63, 2 }
 0xf5c   :  { %8645 = vmatpush3.bf16.msra.mxu1 %v8644_v54  ;;  %v5822_v54 = vrot.slane %v5821_v45, 2 }
 0xf5d   :  { %8613 = vmatpush3.bf16.msra.mxu0 %v8612_v24  ;;  %v6454_v24 = vld [vmem:[%s13037_s19 + $0x178] sm:$0xff]  ;;  %8647 = vmatprep.subr.bf16.mxu1 %v8646_v22 }
 0xf5e   :  { %8615 = vmatprep.subr.bf16.mxu0 %v8614_v58  ;;  %v8648_v10 = vpack.c.bf16 %v6454_v24, %v6453_v50  ;;  %v5816_v24 = vadd.f32 %v5815_v32, %v5814_v63  ;;  %v6495_v63 = vld [vmem:[%s13037_s19 + $0x2c0] sm:$0xff] }
 0xf60   :  { %8649 = vmatpush3.bf16.msra.mxu1 %v8648_v10 }
 0xf61   :  { %8617 = vmatpush3.bf16.msra.mxu0 %v8616_v53  ;;  %8683 = vmatprep.subr.bf16.mxu1 %v8682_v20 }
 0xf62   :  { %8651 = vmatprep.subr.bf16.mxu0 %v8650_v11  ;;  %v6489_v11 = vld [vmem:[%s13037_s19 + $0x290] sm:$0xff] }
 0xfba   :  { %v12581_v0 = vpop.f32.mrb[50].mxu1 }
 0xfbb   :  { %v12589_v28 = vpop.f32.mrb[51].mxu1 }
 0xfbf   :  { %v7807_v58 = vpop.f32.mrb[42].mxu0 }
 0xfc0   :  { %5700 = vrot.lane.b32.xlu1 %v7807_v58, %s9188_s23  ;;  %v4397_v46 = vpop.f32.mrb[43].mxu0  ;;  %v5823_v58 = vadd.f32 %v5822_v54, %v5821_v45  ;;  %v6496_v45 = vld [vmem:[%s13037_s19 + $0x2c8] sm:$0xff] }
 0xfc1   :  { %v8666_v32 = vpack.c.bf16 %v6496_v45, %v6495_v63  ;;  %v6480_v54 = vld [vmem:[%s13037_s19 + $0x248] sm:$0xff] }
 0xfc2   :  { %v5824_v10 = vrot.slane %v5823_v58, 1 }
 0xfc3   :  { %v12598_v53 = vpop.f32.mrb[52].mxu1 }
 0xfc4   :  { %5698 = vrot.lane.b32.xlu1 %v4397_v46, %s9188_s23  ;;  %v12601_v6 = vpop.f32.mrb[53].mxu1  ;;  %v5817_v46 = vrot.slane %v5816_v24, 1 }
 0xfc6   :  { %v5818_v9 = vadd.f32 %v5817_v46, %v5816_v24  ;;  %v6498_v24 = vld [vmem:[%s13037_s19 + $0x2d8] sm:$0xff]  ;;  %v5940_v46 = vrot.slane %v12638_v55, %v9545_v14 }
 0xfc7   :  { %v7821_v47 = vpop.f32.mrb[44].mxu0 }
 0xfc8   :  { %v4655_v27 = vpop.f32.mrb[45].mxu0 }
 0xfc9   :  { %5706 = vrot.lane.b32.xlu1 %v4655_v27, %s9188_s23  ;;  %v6490_v27 = vld [vmem:[%s13037_s19 + $0x298] sm:$0xff] }
 0xfcb   :  { %v12610_v44 = vpop.f32.mrb[54].mxu1 }
 0xfcc   :  { %v12612_v56 = vpop.f32.mrb[55].mxu1 }
 0xfcd   :  { %5708 = vrot.lane.b32.xlu1 %v7821_v47, %s9188_s23  ;;  %v5825_v47 = vadd.f32 %v5824_v10, %v5823_v58  ;;  %v5944_v10 = vrot.slane %v12638_v55, %v9547_v15 }
 0xfcf   :  { %v12621_v38 = vpop.f32.mrb[56].mxu1 }
 0xfd0   :  { %v12623_v36 = vpop.f32.mrb[57].mxu1 }
 0xfd3   :  { %v12625_v3 = vpop.f32.mrb[58].mxu1 }
 0xfd4   :  { %v12627_v18 = vpop.f32.mrb[59].mxu1 }
 0xfd7   :  { %v12629_v19 = vpop.f32.mrb[60].mxu1 }
 0xfd8   :  { %v12631_v37 = vpop.f32.mrb[61].mxu1 }
 0xfdb   :  { %v7835_v4 = vpop.f32.mrb[46].mxu0 }
 0xfdc   :  { %5716 = vrot.lane.b32.xlu1 %v7835_v4, %s9188_s23  ;;  %v4913_v2 = vpop.f32.mrb[47].mxu0  ;;  %v8652_v4 = vpack.c.bf16 %v6472_v21, %v6471_v43  ;;  %v6481_v21 = vld [vmem:[%s13037_s19 + $0x250] sm:$0xff] }
 0xfdd   :  { %5714 = vrot.lane.b32.xlu0 %v4913_v2, %s9188_s23  ;;  %v8654_v2 = vpack.c.bf16 %v6490_v27, %v6489_v11  ;;  %v6499_v11 = vld [vmem:[%s13037_s19 + $0x2e0] sm:$0xff]  ;;  %v6500_v27 = vld [vmem:[%s13037_s19 + $0x2e8] sm:$0xff] }
 0xfdf   :  { %v7849_v31 = vpop.f32.mrb[48].mxu0 }
 0xfe0   :  { %5724 = vrot.lane.b32.xlu1 %v7849_v31, %s9188_s23  ;;  %v5171_v8 = vpop.f32.mrb[49].mxu0  ;;  %v6473_v31 = vld [vmem:[%s13037_s19 + $0x210] sm:$0xff] }
 0xfe1   :  { %5722 = vrot.lane.b32.xlu0 %v5171_v8, %s9188_s23  ;;  %v6474_v8 = vld [vmem:[%s13037_s19 + $0x218] sm:$0xff] }
 0xfe3   :  { %v7863_v51 = vpop.f32.mrb[50].mxu0  ;;  %v6048_v62 = vpop.f32.mrb[62].mxu1 }
 0xfe4   :  { %5732 = vrot.lane.b32.xlu1 %v7863_v51, %s9188_s23  ;;  %v5429_v1 = vpop.f32.mrb[51].mxu0  ;;  %v6049_v17 = vadd.f32 %v6048_v62, %v5932_v26  ;;  %v6050_v40 = vpop.f32.mrb[63].mxu1  ;;  %v6491_v26 = vld [vmem:[%s13037_s19 + $0x2a0] sm:$0xff]  ;;  %v8656_v51 = vpack.c.bf16 %v6474_v8, %v6473_v31  ;;  %v8674_v31 = vpack.c.bf16 %v6500_v27, %v6499_v11 }
 0xfe5   :  { %5730 = vrot.lane.b32.xlu0 %v5429_v1, %s9188_s23  ;;  %v6051_v39 = vadd.f32 %v6050_v40, %v5936_v7  ;;  %v6492_v7 = vld [vmem:[%s13037_s19 + $0x2a8] sm:$0xff]  ;;  %v6475_v62 = vld [vmem:[%s13037_s19 + $0x220] sm:$0xff]  ;;  %v6493_v40 = vld [vmem:[%s13037_s19 + $0x2b0] sm:$0xff] }
 0xfe6   :  { %v7003_v48 = vmul.f32 -1.442695, %v6049_v17  ;;  %v8658_v1 = vpack.c.bf16 %v6492_v7, %v6491_v26  ;;  %v6476_v17 = vld [vmem:[%s13037_s19 + $0x228] sm:$0xff]  ;;  %v6483_v8 = vld [vmem:[%s13037_s19 + $0x260] sm:$0xff] }
 0xfe7   :  { %v7004_v25 = vmul.f32 -1.442695, %v6051_v39  ;;  %v12648_v30 = vpop.f32.mrb[64].mxu1  ;;  %v6494_v39 = vld [vmem:[%s13037_s19 + $0x2b8] sm:$0xff]  ;;  %v6484_v26 = vld [vmem:[%s13037_s19 + $0x268] sm:$0xff] }
 0xfe8   :  { %9134 = vpow2.f32 %v7003_v48  ;;  %v12650_v59 = vpop.f32.mrb[65].mxu1  ;;  %v8660_v48 = vpack.c.bf16 %v6476_v17, %v6475_v62  ;;  %v6502_v62 = vld [vmem:[%s13037_s19 + $0x2f8] sm:$0xff]  ;;  %v5826_v17 = vadd.f32 %v11120_v16, %v11036_v34  ;;  %v6551_v34 = vld [vmem:[%s13037_s19 + $0x480] sm:$0xff]  ;;  %v6552_v16 = vld [vmem:[%s13037_s19 + $0x488] sm:$0xff] }
 0xfe9   :  { %9136 = vpow2.f32 %v7004_v25  ;;  %v8662_v25 = vpack.c.bf16 %v6494_v39, %v6493_v40  ;;  %v8676_v39 = vpack.c.bf16 %v6484_v26, %v6483_v8 }
 0xfea   :  { %v5827_v63 = vrot.slane %v5826_v17, 4 }
 0xfeb   :  { %v12654_v42 = vpop.f32.mrb[66].mxu1 }
 0xfec   :  { %v12656_v57 = vpop.f32.mrb[67].mxu1 }
 0xff2   :  { %v9135_v41 = vpop.eup %9134 }
 0xff3   :  { %v9137_v60 = vpop.eup %9136  ;;  %v6367_v22 = vadd.f32 1.0, %v9135_v41  ;;  %v8664_v41 = vpack.c.bf16 %v6478_v5, %v6477_v33  ;;  %v6486_v33 = vld [vmem:[%s13037_s19 + $0x278] sm:$0xff]  ;;  %v5834_v5 = vrot.slane %v11133_v52, 4 }
 0xff4   :  { %v6368_v50 = vadd.f32 1.0, %v9137_v60  ;;  %v6479_v60 = vld [vmem:[%s13037_s19 + $0x240] sm:$0xff] }
 0xff5   :  { %9138 = vrcp.f32 %v6367_v22 }
 0xff6   :  { %9140 = vrcp.f32 %v6368_v50  ;;  %v6497_v50 = vld [vmem:[%s13037_s19 + $0x2d0] sm:$0xff] }
 0xff7   :  { %v8670_v43 = vpack.c.bf16 %v6498_v24, %v6497_v50 }
 0xfff   :  { %v9139_v35 = vpop.eup %9138 }
0x1000   :  { %v9141_v61 = vpop.eup %9140  ;;  %v6397_v49 = vmul.f32 %v9139_v35, %v5818_v9  ;;  %v8668_v9 = vpack.c.bf16 %v6480_v54, %v6479_v60  ;;  %v6482_v35 = vld [vmem:[%s13037_s19 + $0x258] sm:$0xff]  ;;  %v5828_v60 = vadd.f32 %v5827_v63, %v5826_v17  ;;  %v5948_v54 = vrot.slane %v12638_v55, %v9569_v23 }
0x1001   :  { %v6398_v20 = vmul.f32 %v9141_v61, %v5825_v47 }
0x1003   :  { %6638 = vmatprep.mubr.f32.mxu0 %v6398_v20 }
0x1004   :  { %6639 = vmatmul.mubr.f32.vlgmr.msra.gmra.mrb[58].mxu0 %v6397_v49 }
0x1005   :  { %8653 = vmatpush3.bf16.msra.mxu0 %v8652_v4  ;;  %v8672_v4 = vpack.c.bf16 %v6482_v35, %v6481_v21 }
0x1006   :  { %8655 = vmatprep.subr.bf16.mxu0 %v8654_v2 }
0x1009   :  { %8657 = vmatpush3.bf16.msra.mxu0 %v8656_v51 }
0x100a   :  { %8659 = vmatprep.subr.bf16.mxu0 %v8658_v1  ;;  %v6501_v1 = vld [vmem:[%s13037_s19 + $0x2f0] sm:$0xff] }
0x100d   :  { %8661 = vmatpush3.bf16.msra.mxu0 %v8660_v48  ;;  %v8678_v48 = vpack.c.bf16 %v6502_v62, %v6501_v1 }
0x100e   :  { %8663 = vmatprep.subr.bf16.mxu0 %v8662_v25  ;;  %v6485_v25 = vld [vmem:[%s13037_s19 + $0x270] sm:$0xff] }
0x100f   :  { %v7877_v22 = vpop.f32.mrb[52].mxu0  ;;  %v8680_v45 = vpack.c.bf16 %v6486_v33, %v6485_v25  ;;  %v6505_v25 = vld [vmem:[%s13037_s19 + $0x310] sm:$0xff]  ;;  %v6506_v33 = vld [vmem:[%s13037_s19 + $0x318] sm:$0xff] }
0x1010   :  { %5740 = vrot.lane.b32.xlu1 %v7877_v22, %s9188_s23  ;;  %v5687_v58 = vpop.f32.mrb[53].mxu0  ;;  %v8688_v63 = vpack.c.bf16 %v6506_v33, %v6505_v25 }
0x1011   :  { %5738 = vrot.lane.b32.xlu0 %v5687_v58, %s9188_s23  ;;  %8665 = vmatpush3.bf16.msra.mxu0 %v8664_v41  ;;  %v8714_v41 = vpack.c.bf16 %v6552_v16, %v6551_v34  ;;  %v6523_v34 = vld [vmem:[%s13037_s19 + $0x3a0] sm:$0xff]  ;;  %v6524_v16 = vld [vmem:[%s13037_s19 + $0x3a8] sm:$0xff] }
0x1012   :  { %8667 = vmatprep.subr.bf16.mxu0 %v8666_v32  ;;  %v5835_v32 = vadd.f32 %v5834_v5, %v11133_v52  ;;  %v5952_v52 = vrot.slane %v12638_v55, %v9575_v29 }
0x1013   :  { %v6119_v47 = vpop.f32.mrb[54].mxu0 }
0x1014   :  { %v6120_v61 = vadd.f32 %v6119_v47, %v5940_v46  ;;  %v6121_v49 = vpop.f32.mrb[55].mxu0  ;;  %v5836_v58 = vrot.slane %v5835_v32, 2  ;;  %v6193_v27 = vadd.f32 %v12650_v59, %v5952_v52  ;;  %v6522_v59 = vld [vmem:[%s13037_s19 + $0x398] sm:$0xff] }
0x1015   :  { %v6122_v20 = vadd.f32 %v6121_v49, %v5944_v10  ;;  %8669 = vmatpush3.bf16.msra.mxu0 %v8668_v9  ;;  %v6191_v10 = vadd.f32 %v12648_v30, %v5948_v54  ;;  %v5829_v9 = vrot.slane %v5828_v60, 2  ;;  %v6504_v30 = vld [vmem:[%s13037_s19 + $0x308] sm:$0xff] }
0x1016   :  { %v7005_v2 = vmul.f32 -1.442695, %v6120_v61  ;;  %8671 = vmatprep.subr.bf16.mxu0 %v8670_v43  ;;  %v5837_v43 = vadd.f32 %v5836_v58, %v5835_v32  ;;  %v6503_v61 = vld [vmem:[%s13037_s19 + $0x300] sm:$0xff]  ;;  %v7008_v26 = vmul.f32 -1.442695, %v6193_v27  ;;  %v6508_v54 = vld [vmem:[%s13037_s19 + $0x328] sm:$0xff] }
0x1017   :  { %v7006_v7 = vmul.f32 -1.442695, %v6122_v20  ;;  %v12744_v51 = vpop.f32.mrb[56].mxu0  ;;  %v7007_v21 = vmul.f32 -1.442695, %v6191_v10  ;;  %v5830_v35 = vadd.f32 %v5829_v9, %v5828_v60  ;;  %v8684_v1 = vpack.c.bf16 %v6504_v30, %v6503_v61  ;;  %v6527_v61 = vld [vmem:[%s13037_s19 + $0x3c0] sm:$0xff] }
0x1018   :  { %9142 = vpow2.f32 %v7005_v2  ;;  %v12754_v40 = vpop.f32.mrb[57].mxu0  ;;  %v5838_v47 = vrot.slane %v5837_v43, 1  ;;  %v12785_v20 = vld [vmem:[%s13039_s13] sm:$0x3f]  ;;  %v6521_v2 = vld [vmem:[%s13037_s19 + $0x390] sm:$0xff]  ;;  %v8690_v60 = vpack.c.bf16 %v6524_v16, %v6523_v34  ;;  %v6528_v30 = vld [vmem:[%s13037_s19 + $0x3c8] sm:$0xff] }
0x1019   :  { %9144 = vpow2.f32 %v7006_v7  ;;  %8673 = vmatpush3.bf16.msra.mxu0 %v8672_v4  ;;  %v5831_v11 = vrot.slane %v5830_v35, 1  ;;  %v5761_v62 = vrot.slane %v12785_v20, %v9541_v12 }
0x101a   :  { %8675 = vmatprep.subr.bf16.mxu0 %v8674_v31  ;;  %v5839_v4 = vadd.f32 %v5838_v47, %v5837_v43  ;;  %v6510_v47 = vld [vmem:[%s13037_s19 + $0x338] sm:$0xff] }
0x101b   :  { %v5832_v8 = vadd.f32 %v5831_v11, %v5830_v35  ;;  %v5765_v11 = vrot.slane %v12785_v20, %v9543_v13 }
0x101d   :  { %8677 = vmatpush3.bf16.msra.mxu0 %v8676_v39 }
0x101e   :  { %8679 = vmatprep.subr.bf16.mxu0 %v8678_v48  ;;  %v8686_v48 = vpack.c.bf16 %v6522_v59, %v6521_v2 }
0x1021   :  { %8681 = vmatpush3.bf16.msra.mxu0 %v8680_v45 }
0x1022   :  { %v9143_v22 = vpop.eup %9142  ;;  %8715 = vmatprep.subr.bf16.mxu0 %v8714_v41 }
0x1023   :  { %v9145_v50 = vpop.eup %9144  ;;  %v6369_v24 = vadd.f32 1.0, %v9143_v22 }
0x1024   :  { %v6370_v46 = vadd.f32 1.0, %v9145_v50  ;;  %v6525_v50 = vld [vmem:[%s13037_s19 + $0x3b0] sm:$0xff] }
0x1025   :  { %9146 = vrcp.f32 %v6369_v24  ;;  %v6526_v24 = vld [vmem:[%s13037_s19 + $0x3b8] sm:$0xff] }
0x1026   :  { %9148 = vrcp.f32 %v6370_v46  ;;  %v8694_v52 = vpack.c.bf16 %v6526_v24, %v6525_v50 }
0x1027   :  { %9150 = vpow2.f32 %v7007_v21  ;;  %v13071_v21 = vld [vmem:[#allocation3_spill] sm:$0xff] }
0x1028   :  { %9152 = vpow2.f32 %v7008_v26  ;;  %v5956_v35 = vrot.slane %v12638_v55, %v13071_v21  ;;  %v12845_v26 = vld [vmem:[%s13038_s18 + $0x8] sm:$0x3]  ;;  %v6515_v21 = vld [vmem:[%s13037_s19 + $0x360] sm:$0xff] }
0x1029   :  { %v5964_v34 = vrot.slane %v12845_v26, %v9541_v12  ;;  %v6531_v12 = vld [vmem:[%s13037_s19 + $0x3e0] sm:$0xff] }
0x102f   :  { %v9147_v49 = vpop.eup %9146 }
0x1030   :  { %v9149_v31 = vpop.eup %9148  ;;  %v6399_v39 = vmul.f32 %v9147_v49, %v5832_v8  ;;  %v6262_v8 = vadd.f32 %v12744_v51, %v5956_v35  ;;  %v6516_v35 = vld [vmem:[%s13037_s19 + $0x368] sm:$0xff] }
0x1031   :  { %v6400_v7 = vmul.f32 %v9149_v31, %v5839_v4  ;;  %v9151_v45 = vpop.eup %9150 }
0x1032   :  { %v5701_v17 = vpop.permute.xlu1 %5700  ;;  %v6371_v46 = vadd.f32 1.0, %v9151_v45  ;;  %v9153_v59 = vpop.eup %9152  ;;  %v6513_v45 = vld [vmem:[%s13037_s19 + $0x350] sm:$0xff] }
0x1033   :  { %v5745_v5 = vsel %vm1508_vm9, %v12581_v0, %v5701_v17  ;;  %6708 = vmatprep.mubr.f32.mxu1 %v6400_v7  ;;  %v6507_v0 = vld [vmem:[%s13037_s19 + $0x320] sm:$0xff]  ;;  %v13072_v7 = vld [vmem:[#allocation4_spill] sm:$0xff] }
0x1034   :  { %6709 = vmatmul.mubr.f32.vlgmr.msra.gmra.mrb[68].mxu1 %v6399_v39  ;;  %v5794_v41 = vadd.f32 %v5761_v62, %v5745_v5  ;;  %v8692_v10 = vpack.c.bf16 %v6508_v54, %v6507_v0  ;;  %9154 = vrcp.f32 %v6371_v46  ;;  %v6512_v17 = vld [vmem:[%s13037_s19 + $0x348] sm:$0xff]  ;;  %v6372_v5 = vadd.f32 1.0, %v9153_v59  ;;  %v6518_v59 = vld [vmem:[%s13037_s19 + $0x378] sm:$0xff] }
0x1035   :  { %8685 = vmatpush3.bf16.msra.mxu1 %v8684_v1  ;;  %v5960_v1 = vrot.slane %v12638_v55, %v13072_v7  ;;  %v6530_v55 = vld [vmem:[%s13037_s19 + $0x3d8] sm:$0xff]  ;;  %v6532_v54 = vld [vmem:[%s13037_s19 + $0x3e8] sm:$0xff] }
0x1036   :  { %v5699_v32 = vpop.permute.xlu1 %5698  ;;  %8687 = vmatprep.subr.bf16.mxu1 %v8686_v48  ;;  %v5806_v9 = vmax.f32 %v5794_v41, 0.0  ;;  %v6529_v48 = vld [vmem:[%s13037_s19 + $0x3d0] sm:$0xff]  ;;  %9156 = vrcp.f32 %v6372_v5  ;;  %v8706_v46 = vpack.c.bf16 %v6532_v54, %v6531_v12  ;;  %v6538_v12 = vld [vmem:[%s13037_s19 + $0x418] sm:$0xff] }
0x1037   :  { %v5744_v22 = vsel %vm1508_vm9, %v12589_v28, %v5699_v32  ;;  %v6509_v28 = vld [vmem:[%s13037_s19 + $0x330] sm:$0xff]  ;;  %v7009_v32 = vmul.f32 -1.442695, %v6262_v8  ;;  %v8702_v0 = vpack.c.bf16 %v6530_v55, %v6529_v48  ;;  %v5769_v8 = vrot.slane %v12785_v20, %v9545_v14  ;;  %v6535_v14 = vld [vmem:[%s13037_s19 + $0x400] sm:$0xff] }
0x1038   :  { %v5788_v58 = vadd.f32 %v5761_v62, %v5744_v22  ;;  %v8696_v2 = vpack.c.bf16 %v6510_v47, %v6509_v28  ;;  %v8698_v62 = vpack.c.bf16 %v6528_v30, %v6527_v61  ;;  %v6533_v47 = vld [vmem:[%s13037_s19 + $0x3f0] sm:$0xff]  ;;  %v8708_v61 = vpack.c.bf16 %v6516_v35, %v6515_v21 }
0x1039   :  { %8689 = vmatpush3.bf16.msra.mxu1 %v8688_v63  ;;  %9158 = vpow2.f32 %v7009_v32  ;;  %v5773_v55 = vrot.slane %v12785_v20, %v9547_v15  ;;  %v6554_v15 = vld [vmem:[%s13037_s19 + $0x498] sm:$0xff] }
0x103a   :  { %v5800_v43 = vmax.f32 %v5788_v58, 0.0  ;;  %8691 = vmatprep.subr.bf16.mxu1 %v8690_v60  ;;  %v6264_v60 = vadd.f32 %v12754_v40, %v5960_v1 }
0x103b   :  { %v5707_v27 = vpop.permute.xlu1 %5706 }
0x103c   :  { %v5840_v49 = vadd.f32 %v5806_v9, %v5800_v43  ;;  %v5746_v4 = vsel %vm1508_vm9, %v12601_v6, %v5707_v27  ;;  %v6511_v6 = vld [vmem:[%s13037_s19 + $0x340] sm:$0xff]  ;;  %v6333_v9 = vadd.f32 %v12654_v42, %v5964_v34  ;;  %v7010_v43 = vmul.f32 -1.442695, %v6264_v60  ;;  %v6534_v42 = vld [vmem:[%s13037_s19 + $0x3f8] sm:$0xff] }
0x103d   :  { %8693 = vmatpush3.bf16.msra.mxu1 %v8692_v10  ;;  %v5789_v39 = vadd.f32 %v5765_v11, %v5746_v4  ;;  %v8700_v63 = vpack.c.bf16 %v6512_v17, %v6511_v6  ;;  %v8710_v4 = vpack.c.bf16 %v6534_v42, %v6533_v47  ;;  %v5777_v60 = vrot.slane %v12785_v20, %v9569_v23  ;;  %v6556_v23 = vld [vmem:[%s13037_s19 + $0x4a8] sm:$0xff] }
0x103e   :  { %v5841_v31 = vrot.slane %v5840_v49, 4  ;;  %8695 = vmatprep.subr.bf16.mxu1 %v8694_v52  ;;  %v9155_v52 = vpop.eup %9154  ;;  %v7011_v30 = vmul.f32 -1.442695, %v6333_v9  ;;  %9160 = vpow2.f32 %v7010_v43 }
0x103f   :  { %v5709_v51 = vpop.permute.xlu1 %5708  ;;  %v5801_v22 = vmax.f32 %v5789_v39, 0.0 }
0x1040   :  { %v5842_v25 = vadd.f32 %v5841_v31, %v5840_v49  ;;  %v5747_v33 = vsel %vm1508_vm9, %v12598_v53, %v5709_v51  ;;  %v6514_v53 = vld [vmem:[%s13037_s19 + $0x358] sm:$0xff]  ;;  %9162 = vpow2.f32 %v7011_v30  ;;  %v9157_v39 = vpop.eup %9156 }
0x1041   :  { %v5795_v16 = vadd.f32 %v5765_v11, %v5747_v33  ;;  %8697 = vmatpush3.bf16.msra.mxu1 %v8696_v2  ;;  %v8704_v40 = vpack.c.bf16 %v6514_v53, %v6513_v45  ;;  %v6517_v2 = vld [vmem:[%s13037_s19 + $0x370] sm:$0xff]  ;;  %v6536_v33 = vld [vmem:[%s13037_s19 + $0x408] sm:$0xff] }
0x1042   :  { %v5843_v41 = vrot.slane %v5842_v25, 2  ;;  %8699 = vmatprep.subr.bf16.mxu1 %v8698_v62  ;;  %v8712_v62 = vpack.c.bf16 %v6518_v59, %v6517_v2  ;;  %v6537_v53 = vld [vmem:[%s13037_s19 + $0x410] sm:$0xff]  ;;  %v6539_v59 = vld [vmem:[%s13037_s19 + $0x420] sm:$0xff] }
0x1043   :  { %v5807_v50 = vmax.f32 %v5795_v16, 0.0  ;;  %v8720_v21 = vpack.c.bf16 %v6538_v12, %v6537_v53  ;;  %v6561_v53 = vld [vmem:[%s13037_s19 + $0x4d0] sm:$0xff]  ;;  %v6562_v12 = vld [vmem:[%s13037_s19 + $0x4d8] sm:$0xff] }
0x1044   :  { %v5844_v24 = vadd.f32 %v5843_v41, %v5842_v25 }
0x1045   :  { %v5847_v58 = vadd.f32 %v5807_v50, %v5801_v22  ;;  %8701 = vmatpush3.bf16.msra.mxu1 %v8700_v63 }
0x1046   :  { %v5845_v10 = vrot.slane %v5844_v24, 1  ;;  %8703 = vmatprep.subr.bf16.mxu1 %v8702_v0  ;;  %v8716_v0 = vpack.c.bf16 %v6536_v33, %v6535_v14  ;;  %v6542_v14 = vld [vmem:[%s13037_s19 + $0x438] sm:$0xff]  ;;  %v6559_v33 = vld [vmem:[%s13037_s19 + $0x4c0] sm:$0xff] }
0x1047   :  { %v5848_v28 = vrot.slane %v5847_v58, 4 }
0x1048   :  { %v5846_v11 = vadd.f32 %v5845_v10, %v5844_v24 }
0x1049   :  { %v5849_v27 = vadd.f32 %v5848_v28, %v5847_v58  ;;  %8705 = vmatpush3.bf16.msra.mxu1 %v8704_v40 }
0x104a   :  { %v6401_v49 = vmul.f32 %v9155_v52, %v5846_v11  ;;  %8707 = vmatprep.subr.bf16.mxu1 %v8706_v46 }
0x104b   :  { %v5850_v31 = vrot.slane %v5849_v27, 2 }
0x104d   :  { %v5851_v1 = vadd.f32 %v5850_v31, %v5849_v27  ;;  %8709 = vmatpush3.bf16.msra.mxu1 %v8708_v61 }
0x104e   :  { %v5717_v7 = vpop.permute.xlu1 %5716  ;;  %8711 = vmatprep.subr.bf16.mxu1 %v8710_v4 }
0x104f   :  { %v5749_v6 = vsel %vm1508_vm9, %v12610_v44, %v5717_v7  ;;  %v5715_v17 = vpop.permute.xlu0 %5714  ;;  %v5852_v25 = vrot.slane %v5851_v1, 1  ;;  %v9159_v44 = vpop.eup %9158 }
0x1050   :  { %v5796_v51 = vadd.f32 %v5769_v8, %v5749_v6  ;;  %v5748_v48 = vsel %vm1508_vm9, %v12612_v56, %v5715_v17  ;;  %v6553_v56 = vld [vmem:[%s13037_s19 + $0x490] sm:$0xff]  ;;  %v6373_v54 = vadd.f32 1.0, %v9159_v44  ;;  %v9161_v58 = vpop.eup %9160  ;;  %v6560_v44 = vld [vmem:[%s13037_s19 + $0x4c8] sm:$0xff] }
0x1051   :  { %v5790_v5 = vadd.f32 %v5769_v8, %v5748_v48  ;;  %v5853_v63 = vadd.f32 %v5852_v25, %v5851_v1  ;;  %8713 = vmatpush3.bf16.msra.mxu1 %v8712_v62  ;;  %v8718_v10 = vpack.c.bf16 %v6554_v15, %v6553_v56  ;;  %v6374_v42 = vadd.f32 1.0, %v9161_v58  ;;  %v9163_v61 = vpop.eup %9162  ;;  %v6558_v8 = vld [vmem:[%s13037_s19 + $0x4b8] sm:$0xff]  ;;  %v6541_v25 = vld [vmem:[%s13037_s19 + $0x430] sm:$0xff] }
0x1052   :  { %v5808_v34 = vmax.f32 %v5796_v51, 0.0  ;;  %v5725_v16 = vpop.permute.xlu1 %5724  ;;  %9164 = vrcp.f32 %v6373_v54  ;;  %v6375_v6 = vadd.f32 1.0, %v9163_v61  ;;  %v8734_v58 = vpack.c.bf16 %v6562_v12, %v6561_v53  ;;  %v6566_v61 = vld [vmem:[%s13037_s19 + $0x4f8] sm:$0xff] }
0x1053   :  { %v5802_v45 = vmax.f32 %v5790_v5, 0.0  ;;  %v5751_v41 = vsel %vm1508_vm9, %v12621_v38, %v5725_v16  ;;  %v5723_v32 = vpop.permute.xlu0 %5722  ;;  %v6402_v24 = vmul.f32 %v9157_v39, %v5853_v63  ;;  %v6555_v38 = vld [vmem:[%s13037_s19 + $0x4a0] sm:$0xff]  ;;  %9166 = vrcp.f32 %v6374_v42 }
0x1054   :  { %v5797_v22 = vadd.f32 %v5773_v55, %v5751_v41  ;;  %v5750_v50 = vsel %vm1508_vm9, %v12623_v36, %v5723_v32  ;;  %v8722_v47 = vpack.c.bf16 %v6556_v23, %v6555_v38  ;;  %9168 = vrcp.f32 %v6375_v6  ;;  %v6543_v32 = vld [vmem:[%s13037_s19 + $0x440] sm:$0xff] }
0x1055   :  { %v5854_v40 = vadd.f32 %v5808_v34, %v5802_v45  ;;  %v5791_v46 = vadd.f32 %v5773_v55, %v5750_v50  ;;  %6778 = vmatprep.mubr.f32.mxu0 %v6402_v24  ;;  %v8728_v63 = vpack.c.bf16 %v6542_v14, %v6541_v25  ;;  %v8730_v41 = vpack.c.bf16 %v6560_v44, %v6559_v33 }
0x1056   :  { %v5809_v9 = vmax.f32 %v5797_v22, 0.0  ;;  %v5733_v43 = vpop.permute.xlu1 %5732  ;;  %6779 = vmatmul.mubr.f32.vlgmr.msra.gmra.mrb[60].mxu0 %v6401_v49  ;;  %v26_v49 = vstv %s13040_s20 }
0x1057   :  { %v5855_v35 = vrot.slane %v5854_v40, 4  ;;  %v5803_v52 = vmax.f32 %v5791_v46, 0.0  ;;  %v5753_v36 = vsel %vm1508_vm9, %v12625_v3, %v5733_v43  ;;  %v5731_v28 = vpop.permute.xlu0 %5730  ;;  %8717 = vmatpush3.bf16.msra.mxu0 %v8716_v0  ;;  %v6540_v3 = vld [vmem:[%s13037_s19 + $0x428] sm:$0xff]  ;;  %27 = vst [vmem:[#allocation2] sm:$0x1] %v26_v49  ;;  %v6546_v46 = vld [vmem:[%s13037_s19 + $0x458] sm:$0xff]  ;;  %v5968_v49 = vrot.slane %v12845_v26, %v9543_v13 }
0x1058   :  { %v5798_v11 = vadd.f32 %v5777_v60, %v5753_v36  ;;  %v5752_v27 = vsel %vm1508_vm9, %v12627_v18, %v5731_v28  ;;  %8719 = vmatprep.subr.bf16.mxu0 %v8718_v10  ;;  %v6557_v18 = vld [vmem:[%s13037_s19 + $0x4b0] sm:$0xff]  ;;  %v8724_v17 = vpack.c.bf16 %v6540_v3, %v6539_v59  ;;  %v6564_v43 = vld [vmem:[%s13037_s19 + $0x4e8] sm:$0xff]  ;;  %v6547_v28 = vld [vmem:[%s13037_s19 + $0x460] sm:$0xff] }
0x1059   :  { %v5856_v30 = vadd.f32 %v5855_v35, %v5854_v40  ;;  %v5861_v4 = vadd.f32 %v5809_v9, %v5803_v52  ;;  %v5792_v2 = vadd.f32 %v5777_v60, %v5752_v27  ;;  %v8726_v55 = vpack.c.bf16 %v6558_v8, %v6557_v18  ;;  %v6544_v60 = vld [vmem:[%s13037_s19 + $0x448] sm:$0xff]  ;;  %v6545_v40 = vld [vmem:[%s13037_s19 + $0x450] sm:$0xff]  ;;  %v6563_v9 = vld [vmem:[%s13037_s19 + $0x4e0] sm:$0xff] }
0x105a   :  { %v5810_v31 = vmax.f32 %v5798_v11, 0.0  ;;  %v8732_v24 = vpack.c.bf16 %v6544_v60, %v6543_v32  ;;  %v8736_v52 = vpack.c.bf16 %v6546_v46, %v6545_v40  ;;  %v8738_v36 = vpack.c.bf16 %v6564_v43, %v6563_v9  ;;  %v6565_v27 = vld [vmem:[%s13037_s19 + $0x4f0] sm:$0xff]  ;;  %v6550_v3 = vld [vmem:[%s13037_s19 + $0x478] sm:$0xff] }
0x105b   :  { %v5857_v7 = vrot.slane %v5856_v30, 2  ;;  %v5862_v1 = vrot.slane %v5861_v4, 4  ;;  %v5804_v62 = vmax.f32 %v5792_v2, 0.0  ;;  %8721 = vmatpush3.bf16.msra.mxu0 %v8720_v21  ;;  %v8742_v2 = vpack.c.bf16 %v6566_v61, %v6565_v27  ;;  %v6549_v59 = vld [vmem:[%s13037_s19 + $0x470] sm:$0xff] }
0x105c   :  { %8723 = vmatprep.subr.bf16.mxu0 %v8722_v47  ;;  %v9165_v0 = vpop.eup %9164  ;;  %v6548_v47 = vld [vmem:[%s13037_s19 + $0x468] sm:$0xff]  ;;  %v6335_v18 = vadd.f32 %v12656_v57, %v5968_v49 }
0x105d   :  { %v5858_v39 = vadd.f32 %v5857_v7, %v5856_v30  ;;  %v5863_v51 = vadd.f32 %v5862_v1, %v5861_v4  ;;  %v5868_v48 = vadd.f32 %v5810_v31, %v5804_v62  ;;  %v9167_v10 = vpop.eup %9166  ;;  %v8740_v4 = vpack.c.bf16 %v6548_v47, %v6547_v28 }
0x105e   :  { %v9169_v11 = vpop.eup %9168  ;;  %v8744_v31 = vpack.c.bf16 %v6550_v3, %v6549_v59  ;;  %v7012_v8 = vmul.f32 -1.442695, %v6335_v18  ;;  %v5781_v7 = vrot.slane %v12785_v20, %v9575_v29 }
0x105f   :  { %v5859_v5 = vrot.slane %v5858_v39, 1  ;;  %v5864_v34 = vrot.slane %v5863_v51, 2  ;;  %v5869_v16 = vrot.slane %v5868_v48, 4  ;;  %8725 = vmatpush3.bf16.msra.mxu0 %v8724_v17 }
0x1060   :  { %8727 = vmatprep.subr.bf16.mxu0 %v8726_v55  ;;  %9170 = vpow2.f32 %v7012_v8 }
0x1061   :  { %v5870_v56 = vadd.f32 %v5869_v16, %v5868_v48  ;;  %v5865_v15 = vadd.f32 %v5864_v34, %v5863_v51  ;;  %v5860_v45 = vadd.f32 %v5859_v5, %v5858_v39 }
0x1063   :  { %v5871_v54 = vrot.slane %v5870_v56, 2  ;;  %v5866_v22 = vrot.slane %v5865_v15, 1  ;;  %v6403_v50 = vmul.f32 %v9165_v0, %v5860_v45  ;;  %8729 = vmatpush3.bf16.msra.mxu0 %v8728_v63  ;;  %v7013_v63 = vld [vmem:[#allocation2] ss:$0 sm:$0xff] }
0x1064   :  { %8731 = vmatprep.subr.bf16.mxu0 %v8730_v41 }
0x1065   :  { %v5872_v38 = vadd.f32 %v5871_v54, %v5870_v56  ;;  %v5867_v23 = vadd.f32 %v5866_v22, %v5865_v15 }
0x1067   :  { %v5873_v21 = vrot.slane %v5872_v38, 1  ;;  %v6404_v35 = vmul.f32 %v9167_v10, %v5867_v23  ;;  %8733 = vmatpush3.bf16.msra.mxu0 %v8732_v24 }
0x1068   :  { %8735 = vmatprep.subr.bf16.mxu0 %v8734_v58 }
0x1069   :  { %6848 = vmatprep.mubr.f32.mxu1 %v6404_v35  ;;  %v5874_v42 = vadd.f32 %v5873_v21, %v5872_v38 }
0x106a   :  { %6849 = vmatmul.mubr.f32.vlgmr.msra.gmra.mrb[70].mxu1 %v6403_v50  ;;  %v9171_v26 = vpop.eup %9170 }
0x106b   :  { %v6405_v30 = vmul.f32 %v9169_v11, %v5874_v42  ;;  %8737 = vmatpush3.bf16.msra.mxu0 %v8736_v52  ;;  %v6376_v57 = vadd.f32 1.0, %v9171_v26 }
0x106c   :  { %8739 = vmatprep.subr.bf16.mxu0 %v8738_v36 }
0x106d   :  { %9172 = vrcp.f32 %v6376_v57 }
0x106f   :  { %8741 = vmatpush3.bf16.msra.mxu0 %v8740_v4 }
0x1070   :  { %8743 = vmatprep.subr.bf16.mxu0 %v8742_v2 }
0x1073   :  { %8745 = vmatpush3.bf16.msra.mxu0 %v8744_v31 }
0x1077   :  { %v9173_v5 = vpop.eup %9172 }
0x1082   :  { %v5741_v1 = vpop.permute.xlu1 %5740 }
0x1083   :  { %v5755_v62 = vsel %vm1508_vm9, %v12629_v19, %v5741_v1  ;;  %v5739_v6 = vpop.permute.xlu0 %5738 }
0x1084   :  { %v5799_v17 = vadd.f32 %v5781_v7, %v5755_v62  ;;  %v5754_v13 = vsel %vm1508_vm9, %v12631_v37, %v5739_v6 }
0x1085   :  { %v5793_v39 = vadd.f32 %v5781_v7, %v5754_v13 }
0x1086   :  { %v5811_v51 = vmax.f32 %v5799_v17, 0.0 }
0x1087   :  { %v5805_v48 = vmax.f32 %v5793_v39, 0.0 }
0x1089   :  { %v5875_v55 = vadd.f32 %v5811_v51, %v5805_v48 }
0x108b   :  { %v5876_v25 = vrot.slane %v5875_v55, 4 }
0x108d   :  { %v5877_v14 = vadd.f32 %v5876_v25, %v5875_v55 }
0x108f   :  { %v5878_v33 = vrot.slane %v5877_v14, 2 }
0x1091   :  { %v5879_v29 = vadd.f32 %v5878_v33, %v5877_v14 }
0x1093   :  { %v5880_v20 = vrot.slane %v5879_v29, 1 }
0x1095   :  { %v5881_v44 = vadd.f32 %v5880_v20, %v5879_v29 }
0x1097   :  { %v6406_v19 = vmul.f32 %v9173_v5, %v5881_v44 }
0x1099   :  { %6918 = vmatprep.mubr.f32.mxu0 %v6406_v19 }
0x109a   :  { %6919 = vmatmul.mubr.f32.vlgmr.msra.gmra.mrb[62].mxu0 %v6405_v30 }
0x10d7   :  { %v7539_v34 = vpop.f32.mrb[58].mxu0 }
0x10d8   :  { %v7540_v16 = vpop.f32.mrb[59].mxu0 }
0x10d9   :  { %v7541_v37 = vadd.f32 %v7540_v16, %v7539_v34 }
0x10db   :  { %v6641_v45 = vadd.f32 %v7541_v37, %v7013_v63 }
0x1107   :  { %v7574_v56 = vpop.f32.mrb[68].mxu1 }
0x1108   :  { %v7575_v15 = vpop.f32.mrb[69].mxu1 }
0x1109   :  { %v7576_v41 = vadd.f32 %v7575_v15, %v7574_v56 }
0x110b   :  { %v6711_v32 = vadd.f32 %v7576_v41, %v6641_v45 }
0x1129   :  { %v7609_v60 = vpop.f32.mrb[60].mxu0 }
0x112a   :  { %v7610_v0 = vpop.f32.mrb[61].mxu0 }
0x112b   :  { %v7611_v53 = vadd.f32 %v7610_v0, %v7609_v60 }
0x112d   :  { %v6781_v12 = vadd.f32 %v7611_v53, %v6711_v32 }
0x113d   :  { %v7644_v54 = vpop.f32.mrb[70].mxu1 }
0x113e   :  { %v7645_v22 = vpop.f32.mrb[71].mxu1 }
0x113f   :  { %v7646_v50 = vadd.f32 %v7645_v22, %v7644_v54 }
0x1141   :  { %v6851_v24 = vadd.f32 %v7646_v50, %v6781_v12 }
0x116d   :  { %v7679_v38 = vpop.f32.mrb[62].mxu0 }
0x116e   :  { %v7680_v23 = vpop.f32.mrb[63].mxu0 }
0x116f   :  { %v7681_v58 = vadd.f32 %v7680_v23, %v7679_v38 }
0x1171   :  { %v6921_v40 = vadd.f32 %v7681_v58, %v6851_v24 }
0x1173   :  { %v7014_v46 = vmul.f32 -1.442695, %v6921_v40 }
0x1175   :  { %9174 = vpow2.f32 %v7014_v46 }
0x117f   :  { %v9175_v10 = vpop.eup %9174 }
0x1180   :  { %v6927_v9 = vadd.f32 1.0, %v9175_v10 }
0x1182   :  { %9176 = vrcp.f32 %v6927_v9 }
0x118c   :  { %v9177_v43 = vpop.eup %9176 }
0x118d   :  { %6931 = vst.msk [vmem:[%s13041_s21] sm:$0x3] %vm6930_vm2, %v9177_v43 }

</bundles_post_ra>
